<compile_context>
chip_gen: v7x
topology: tpu7x:2x2x1
jax: 0.10.0
libtpu: 0.0.40
codegen_flags: <defaults>
</compile_context>

<pallas_src>
import jax
import jax.numpy as jnp
from jax.experimental import pallas as pl
from jax.experimental.pallas import tpu as pltpu


def _se_basic_block_kernel(x_ref, w1_ref, w2_ref,
                           fc1w_ref, fc1b_ref, fc2w_ref, fc2b_ref,
                           o_ref, wpad_ref, col_ref):
    # Per-grid-step refs (Nb = samples per step):
    #   x_ref    : (Nb, H, W, C)        f32   input block (also residual source)
    #   w1_ref   : (3, 3*C, C)          bf16  conv1 weights, rows = ky, cols = (kx, Cin)
    #   w2_ref   : (3, 3*C, C)          bf16  conv2 weights
    #   fc1w/fc1b: (C, Ch) / (1, Ch)    f32   SE squeeze FC
    #   fc2w/fc2b: (Ch, C) / (1, C)     f32   SE excite FC
    #   o_ref    : (Nb, H, W, C)        f32   output block
    #   wpad_ref : (Nb, H, W + 2, C)    f32   W-padded staging (source of W shifts)
    #   col_ref  : (Nb, H + 2, W, 3*C)  bf16  H-padded kx-im2col staging
    Nb, H, W, C = x_ref.shape
    HW = H * W
    M = Nb * HW
    K3 = 3 * C

    # Re-zero only the static padding every step (scratch persists per core but
    # is uninitialized on each core's first step; interior is overwritten below).
    zcol = jnp.zeros((Nb, H, 1, C), jnp.float32)
    wpad_ref[:, :, 0:1, :] = zcol                      # left zero column
    wpad_ref[:, :, W + 1:W + 2, :] = zcol              # right zero column
    zrow = jnp.zeros((Nb, 1, W, K3), jnp.bfloat16)
    col_ref[:, 0:1, :, :] = zrow                       # top H halo row
    col_ref[:, H + 1:H + 2, :, :] = zrow               # bottom H halo row

    def stage(act):
        """Build the kx-im2col of `act` (f32 (Nb,H,W,C)) in col_ref (bf16).

        col_ref[:, 1+h, w, kx*C:(kx+1)*C] == act[:, h, w+kx-1, :]  (0 outside),
        H halo rows stay zero.  All writes into col_ref are tile-aligned.
        """
        wpad_ref[:, :, 1:1 + W, :] = act                               # W-pad copy
        col_ref[:, 1:1 + H, :, C:2 * C] = act.astype(jnp.bfloat16)     # kx = 1
        col_ref[:, 1:1 + H, :, 0:C] = (
            wpad_ref[:, :, 0:W, :].astype(jnp.bfloat16))               # kx = 0 (x[w-1])
        col_ref[:, 1:1 + H, :, 2 * C:3 * C] = (
            wpad_ref[:, :, 2:2 + W, :].astype(jnp.bfloat16))           # kx = 2 (x[w+1])

    def conv3x3(w_ref):
        """3x3 SAME conv: 3 MXU dots with K = 3*C (kx and Cin fused into K)."""
        acc = None
        for ky in range(3):
            patch = col_ref[:, ky:ky + H, :, :].reshape(M, K3)  # aligned window read
            part = jnp.dot(patch, w_ref[ky],
                           preferred_element_type=jnp.float32)
            acc = part if acc is None else acc + part
        return acc                                              # (M, C) f32

    # ---- conv1 + ReLU -------------------------------------------------------
    stage(x_ref[...])
    h1 = jnp.maximum(conv3x3(w1_ref), 0.0)

    # ---- conv2 --------------------------------------------------------------
    stage(h1.reshape(Nb, H, W, C))
    out2 = conv3x3(w2_ref).reshape(Nb, HW, C)

    # ---- SE: per-sample global average pool -> FC -> ReLU -> FC -> sigmoid --
    pooled = jnp.sum(out2, axis=1) * (1.0 / HW)                        # (Nb, C)
    z = jnp.maximum(
        jnp.dot(pooled, fc1w_ref[...], preferred_element_type=jnp.float32)
        + fc1b_ref[...], 0.0)                                          # (Nb, Ch)
    s = jax.nn.sigmoid(
        jnp.dot(z, fc2w_ref[...], preferred_element_type=jnp.float32)
        + fc2b_ref[...])                                               # (Nb, C)

    # ---- scale + residual add + final ReLU (f32 VPU, lane-dense C) ----------
    res = x_ref[...].reshape(Nb, HW, C)          # re-read at point of use
    out = jnp.maximum(out2 * s[:, None, :] + res, 0.0)
    o_ref[...] = out.reshape(Nb, H, W, C)


def _pick_block_batch(B):
    # Prefer >= 4 grid steps (>= 2 per TensorCore on 2-core chips), then the
    # largest per-step sample count in {4, 2, 1}.
    for steps_min in (4, 2, 1):
        for nb in (4, 2, 1):
            if B % nb == 0 and B // nb >= steps_min:
                return nb
    return 1


def se_basic_block(x_nchw, params, block_batch=None):
    """SEBasicBlock forward (stride=1, downsample=None, with_norm=False).

    x_nchw: (B, C, H, W) float32, matching the PyTorch module's input layout.
    """
    x = jnp.transpose(x_nchw, (0, 2, 3, 1)).astype(jnp.float32)   # -> NHWC
    B, H, W, C = x.shape

    w1 = params["w1"]                     # (3, 3, C, C) HWIO
    w2 = params["w2"]
    fc1w, fc1b = params["fc1w"], params["fc1b"]
    fc2w, fc2b = params["fc2w"], params["fc2b"]

    assert w1.shape[2] == C and w1.shape[3] == C, (
        "residual path (downsample=None) requires inplanes == planes")
    assert C % 128 == 0, "kernel assumes lane-dense channels (C % 128 == 0)"
    assert H >= 2 and W >= 2

    # Pre-fuse the (kx, Cin) axes of the conv weights so each ky tap is a single
    # (3C, C) bf16 MXU operand matching the kx-im2col channel-block layout.
    w1r = w1.reshape(3, 3 * C, C).astype(jnp.bfloat16)
    w2r = w2.reshape(3, 3 * C, C).astype(jnp.bfloat16)

    nb = block_batch if block_batch is not None else _pick_block_batch(B)
    assert B % nb == 0
    grid = (B // nb,)

    block = pl.BlockSpec((nb, H, W, C), lambda b: (b, 0, 0, 0))

    def resident(shape):
        # Constant block index -> fetched once, stays resident across steps.
        return pl.BlockSpec(shape, lambda b, _n=len(shape): (0,) * _n)

    # Computed VMEM budget: double-buffered I/O blocks + (conservatively
    # double-buffered) bf16 weights + staging scratch + f32 temporaries, with
    # headroom; capped at 32 MiB so it fits v7x's 64 MiB physical VMEM.
    # TODO(synk): for ResNet-scale H*W*C, tile the grid over H rows (1-row halo)
    # so the per-step working set stays well under ~32 MiB.
    act_bytes = nb * H * W * C * 4
    weight_bytes = 2 * (w1r.size + w2r.size) * 2
    scratch_bytes = nb * H * (W + 2) * C * 4 + nb * (H + 2) * W * 3 * C * 2
    temp_bytes = 8 * act_bytes
    est = 4 * act_bytes + weight_bytes + scratch_bytes + temp_bytes
    vmem_limit = int(min(32 * 1024 * 1024, max(20 * 1024 * 1024, 2 * est)))

    out_nhwc = pl.pallas_call(
        _se_basic_block_kernel,
        out_shape=jax.ShapeDtypeStruct((B, H, W, C), jnp.float32),
        grid=grid,
        in_specs=[
            block,                         # x (pipelined over batch blocks)
            resident(w1r.shape),
            resident(w2r.shape),
            resident(fc1w.shape),
            resident(fc1b.shape),
            resident(fc2w.shape),
            resident(fc2b.shape),
        ],
        out_specs=block,
        scratch_shapes=[
            pltpu.VMEM((nb, H, W + 2, C), jnp.float32),       # W-padded staging
            pltpu.VMEM((nb, H + 2, W, 3 * C), jnp.bfloat16),  # kx-im2col staging
        ],
        compiler_params=pltpu.CompilerParams(
            dimension_semantics=("parallel",),   # batch blocks are independent
            vmem_limit_bytes=vmem_limit),
    )(x, w1r, w2r, fc1w, fc1b, fc2w, fc2b)

    return jnp.transpose(out_nhwc, (0, 3, 1, 2))    # back to NCHW


def make_params(key, inplanes, planes, reduction):
    hidden = planes // reduction
    assert hidden >= 1, "planes // reduction must be >= 1"
    k = jax.random.split(key, 6)
    scale = 0.05
    return {
        # conv weights stored HWIO (3, 3, Cin, Cout)
        "w1": scale * jax.random.normal(k[0], (3, 3, inplanes, planes), jnp.float32),
        "w2": scale * jax.random.normal(k[1], (3, 3, planes, planes), jnp.float32),
        # SE fully-connected layers (stored as (in, out) for right-multiplication)
        "fc1w": scale * jax.random.normal(k[2], (planes, hidden), jnp.float32),
        "fc1b": scale * jax.random.normal(k[3], (1, hidden), jnp.float32),
        "fc2w": scale * jax.random.normal(k[4], (hidden, planes), jnp.float32),
        "fc2b": scale * jax.random.normal(k[5], (1, planes), jnp.float32),
    }


def reference(x_nchw, p):
    """Pure-JAX f32 reference of the PyTorch forward pass (for verification)."""
    x = jnp.transpose(x_nchw, (0, 2, 3, 1)).astype(jnp.float32)
    dn = ("NHWC", "HWIO", "NHWC")
    o = jax.lax.conv_general_dilated(x, p["w1"], (1, 1), "SAME", dimension_numbers=dn)
    o = jnp.maximum(o, 0.0)
    o = jax.lax.conv_general_dilated(o, p["w2"], (1, 1), "SAME", dimension_numbers=dn)
    pooled = jnp.mean(o, axis=(1, 2))
    z = jnp.maximum(pooled @ p["fc1w"] + p["fc1b"][0], 0.0)
    s = jax.nn.sigmoid(z @ p["fc2w"] + p["fc2b"][0])
    o = o * s[:, None, None, :]
    o = jnp.maximum(o + x, 0.0)
    return jnp.transpose(o, (0, 3, 1, 2))


if __name__ == "__main__":
    # Deterministic example. planes=128 keeps channels lane-dense and matches the
    # module's default reduction=64 (hidden=2). B=8 -> 4 grid steps of 2 samples,
    # so 2-core chips get >= 2 pipelined steps per core.
    B, C, H, W = 8, 128, 16, 16
    inplanes = planes = C
    reduction = 64

    key = jax.random.PRNGKey(0)
    kx_, kp = jax.random.split(key)
    x = jax.random.normal(kx_, (B, C, H, W), jnp.float32)
    params = make_params(kp, inplanes, planes, reduction)

    out = jax.block_until_ready(se_basic_block(x, params))
    ref = reference(x, params)

    assert out.shape == (B, C, H, W)
    max_err = float(jnp.max(jnp.abs(out - ref)))
    # bf16 MXU operands with f32 accumulation -> compare at bf16-level tolerance.
    assert jnp.allclose(out, ref, atol=3e-2, rtol=3e-2), (
        f"mismatch vs reference: max abs err = {max_err}")

    print("KERNEL_OK")
</pallas_src>

<mosaic_0001>
module attributes {stable_mosaic.version = 11 : i64} {
  func.func @_se_basic_block_kernel(%arg0: i32, %arg1: memref<2x16x16x128xf32, #tpu.memory_space<vmem>>, %arg2: memref<3x384x128xbf16, #tpu.memory_space<vmem>>, %arg3: memref<3x384x128xbf16, #tpu.memory_space<vmem>>, %arg4: memref<128x2xf32, #tpu.memory_space<vmem>>, %arg5: memref<1x2xf32, #tpu.memory_space<vmem>>, %arg6: memref<2x128xf32, #tpu.memory_space<vmem>>, %arg7: memref<1x128xf32, #tpu.memory_space<vmem>>, %arg8: memref<2x16x16x128xf32, #tpu.memory_space<vmem>>, %arg9: memref<2x16x18x128xf32, #tpu.memory_space<vmem>>, %arg10: memref<2x18x16x384xbf16, #tpu.memory_space<vmem>>) attributes {dimension_semantics = [#tpu.dimension_semantics<parallel>], iteration_bounds = array<i64: 4>, scalar_prefetch = 0 : i64, scratch_operands = 2 : i64, tpu.core_type = #tpu.core_type<tc>, window_params = [{transform_indices = @transform_0, window_bounds = array<i64: 2, 16, 16, 128>}, {pipeline_mode = #tpu.pipeline_mode<synchronous>, transform_indices = @transform_1, window_bounds = array<i64: 3, 384, 128>}, {pipeline_mode = #tpu.pipeline_mode<synchronous>, transform_indices = @transform_2, window_bounds = array<i64: 3, 384, 128>}, {pipeline_mode = #tpu.pipeline_mode<synchronous>, transform_indices = @transform_3, window_bounds = array<i64: 128, 2>}, {pipeline_mode = #tpu.pipeline_mode<synchronous>, transform_indices = @transform_4, window_bounds = array<i64: 1, 2>}, {pipeline_mode = #tpu.pipeline_mode<synchronous>, transform_indices = @transform_5, window_bounds = array<i64: 2, 128>}, {pipeline_mode = #tpu.pipeline_mode<synchronous>, transform_indices = @transform_6, window_bounds = array<i64: 1, 128>}, {transform_indices = @transform_7, window_bounds = array<i64: 2, 16, 16, 128>}]} {
    %cst = arith.constant 0.000000e+00 : f32
    %0 = vector.broadcast %cst : f32 to vector<2x16x1x128xf32>
    %c0 = arith.constant 0 : index
    %c0_0 = arith.constant 0 : index
    %c0_1 = arith.constant 0 : index
    %c0_2 = arith.constant 0 : index
    %1 = vector.load %arg9[%c0, %c0_0, %c0_1, %c0_2] : memref<2x16x18x128xf32, #tpu.memory_space<vmem>>, vector<2x16x1x128xf32>
    tpu.vector_store %arg9[%c0, %c0_0, %c0_1, %c0_2], %0 {strides = array<i32>} : memref<2x16x18x128xf32, #tpu.memory_space<vmem>>, vector<2x16x1x128xf32>,
    %c0_3 = arith.constant 0 : index
    %c0_4 = arith.constant 0 : index
    %c17 = arith.constant 17 : index
    %c0_5 = arith.constant 0 : index
    %2 = vector.load %arg9[%c0_3, %c0_4, %c17, %c0_5] : memref<2x16x18x128xf32, #tpu.memory_space<vmem>>, vector<2x16x1x128xf32>
    tpu.vector_store %arg9[%c0_3, %c0_4, %c17, %c0_5], %0 {strides = array<i32>} : memref<2x16x18x128xf32, #tpu.memory_space<vmem>>, vector<2x16x1x128xf32>,
    %cst_6 = arith.constant 0.000000e+00 : bf16
    %3 = vector.broadcast %cst_6 : bf16 to vector<2x1x16x384xbf16>
    %c0_7 = arith.constant 0 : index
    %c0_8 = arith.constant 0 : index
    %c0_9 = arith.constant 0 : index
    %c0_10 = arith.constant 0 : index
    %4 = vector.load %arg10[%c0_7, %c0_8, %c0_9, %c0_10] : memref<2x18x16x384xbf16, #tpu.memory_space<vmem>>, vector<2x1x16x384xbf16>
    tpu.vector_store %arg10[%c0_7, %c0_8, %c0_9, %c0_10], %3 {strides = array<i32>} : memref<2x18x16x384xbf16, #tpu.memory_space<vmem>>, vector<2x1x16x384xbf16>,
    %c0_11 = arith.constant 0 : index
    %c17_12 = arith.constant 17 : index
    %c0_13 = arith.constant 0 : index
    %c0_14 = arith.constant 0 : index
    %5 = vector.load %arg10[%c0_11, %c17_12, %c0_13, %c0_14] : memref<2x18x16x384xbf16, #tpu.memory_space<vmem>>, vector<2x1x16x384xbf16>
    tpu.vector_store %arg10[%c0_11, %c17_12, %c0_13, %c0_14], %3 {strides = array<i32>} : memref<2x18x16x384xbf16, #tpu.memory_space<vmem>>, vector<2x1x16x384xbf16>,
    %c0_15 = arith.constant 0 : index
    %c0_16 = arith.constant 0 : index
    %c0_17 = arith.constant 0 : index
    %c0_18 = arith.constant 0 : index
    %6 = vector.load %arg1[%c0_15, %c0_16, %c0_17, %c0_18] : memref<2x16x16x128xf32, #tpu.memory_space<vmem>>, vector<2x16x16x128xf32>
    %c0_19 = arith.constant 0 : index
    %c0_20 = arith.constant 0 : index
    %c1 = arith.constant 1 : index
    %c0_21 = arith.constant 0 : index
    %7 = vector.load %arg9[%c0_19, %c0_20, %c1, %c0_21] : memref<2x16x18x128xf32, #tpu.memory_space<vmem>>, vector<2x16x16x128xf32>
    tpu.vector_store %arg9[%c0_19, %c0_20, %c1, %c0_21], %6 {strides = array<i32>} : memref<2x16x18x128xf32, #tpu.memory_space<vmem>>, vector<2x16x16x128xf32>,
    %8 = arith.truncf %6 : vector<2x16x16x128xf32> to vector<2x16x16x128xbf16>
    %c0_22 = arith.constant 0 : index
    %c1_23 = arith.constant 1 : index
    %c0_24 = arith.constant 0 : index
    %c128 = arith.constant 128 : index
    %9 = vector.load %arg10[%c0_22, %c1_23, %c0_24, %c128] : memref<2x18x16x384xbf16, #tpu.memory_space<vmem>>, vector<2x16x16x128xbf16>
    tpu.vector_store %arg10[%c0_22, %c1_23, %c0_24, %c128], %8 {strides = array<i32>} : memref<2x18x16x384xbf16, #tpu.memory_space<vmem>>, vector<2x16x16x128xbf16>,
    %c0_25 = arith.constant 0 : index
    %c0_26 = arith.constant 0 : index
    %c0_27 = arith.constant 0 : index
    %c0_28 = arith.constant 0 : index
    %10 = vector.load %arg9[%c0_25, %c0_26, %c0_27, %c0_28] : memref<2x16x18x128xf32, #tpu.memory_space<vmem>>, vector<2x16x16x128xf32>
    %11 = arith.truncf %10 : vector<2x16x16x128xf32> to vector<2x16x16x128xbf16>
    %c0_29 = arith.constant 0 : index
    %c1_30 = arith.constant 1 : index
    %c0_31 = arith.constant 0 : index
    %c0_32 = arith.constant 0 : index
    %12 = vector.load %arg10[%c0_29, %c1_30, %c0_31, %c0_32] : memref<2x18x16x384xbf16, #tpu.memory_space<vmem>>, vector<2x16x16x128xbf16>
    tpu.vector_store %arg10[%c0_29, %c1_30, %c0_31, %c0_32], %11 {strides = array<i32>} : memref<2x18x16x384xbf16, #tpu.memory_space<vmem>>, vector<2x16x16x128xbf16>,
    %c0_33 = arith.constant 0 : index
    %c0_34 = arith.constant 0 : index
    %c2 = arith.constant 2 : index
    %c0_35 = arith.constant 0 : index
    %13 = vector.load %arg9[%c0_33, %c0_34, %c2, %c0_35] : memref<2x16x18x128xf32, #tpu.memory_space<vmem>>, vector<2x16x16x128xf32>
    %14 = arith.truncf %13 : vector<2x16x16x128xf32> to vector<2x16x16x128xbf16>
    %c0_36 = arith.constant 0 : index
    %c1_37 = arith.constant 1 : index
    %c0_38 = arith.constant 0 : index
    %c256 = arith.constant 256 : index
    %15 = vector.load %arg10[%c0_36, %c1_37, %c0_38, %c256] : memref<2x18x16x384xbf16, #tpu.memory_space<vmem>>, vector<2x16x16x128xbf16>
    tpu.vector_store %arg10[%c0_36, %c1_37, %c0_38, %c256], %14 {strides = array<i32>} : memref<2x18x16x384xbf16, #tpu.memory_space<vmem>>, vector<2x16x16x128xbf16>,
    %c0_39 = arith.constant 0 : index
    %c0_40 = arith.constant 0 : index
    %c0_41 = arith.constant 0 : index
    %c0_42 = arith.constant 0 : index
    %16 = vector.load %arg10[%c0_39, %c0_40, %c0_41, %c0_42] : memref<2x18x16x384xbf16, #tpu.memory_space<vmem>>, vector<2x16x16x384xbf16>
    %17 = vector.shape_cast %16 : vector<2x16x16x384xbf16> to vector<512x384xbf16>
    %c0_43 = arith.constant 0 : index
    %c0_44 = arith.constant 0 : index
    %c0_45 = arith.constant 0 : index
    %18 = vector.load %arg2[%c0_43, %c0_44, %c0_45] : memref<3x384x128xbf16, #tpu.memory_space<vmem>>, vector<1x384x128xbf16>
    %19 = vector.shape_cast %18 : vector<1x384x128xbf16> to vector<384x128xbf16>
    %cst_46 = arith.constant dense<0.000000e+00> : vector<512x128xf32>
    %20 = tpu.matmul %17, %19, %cst_46 {dimension_numbers = #tpu.dot_dimension_numbers<[1], [0], [0], [1], [0, 0, 1, 1], [], []>} : vector<512x384xbf16>, vector<384x128xbf16>, vector<512x128xf32> -> vector<512x128xf32>
    %c0_47 = arith.constant 0 : index
    %c1_48 = arith.constant 1 : index
    %c0_49 = arith.constant 0 : index
    %c0_50 = arith.constant 0 : index
    %21 = vector.load %arg10[%c0_47, %c1_48, %c0_49, %c0_50] : memref<2x18x16x384xbf16, #tpu.memory_space<vmem>>, vector<2x16x16x384xbf16>
    %22 = vector.shape_cast %21 : vector<2x16x16x384xbf16> to vector<512x384xbf16>
    %c1_51 = arith.constant 1 : index
    %c0_52 = arith.constant 0 : index
    %c0_53 = arith.constant 0 : index
    %23 = vector.load %arg2[%c1_51, %c0_52, %c0_53] : memref<3x384x128xbf16, #tpu.memory_space<vmem>>, vector<1x384x128xbf16>
    %24 = vector.shape_cast %23 : vector<1x384x128xbf16> to vector<384x128xbf16>
    %cst_54 = arith.constant dense<0.000000e+00> : vector<512x128xf32>
    %25 = tpu.matmul %22, %24, %cst_54 {dimension_numbers = #tpu.dot_dimension_numbers<[1], [0], [0], [1], [0, 0, 1, 1], [], []>} : vector<512x384xbf16>, vector<384x128xbf16>, vector<512x128xf32> -> vector<512x128xf32>
    %26 = arith.addf %20, %25 : vector<512x128xf32>
    %c0_55 = arith.constant 0 : index
    %c2_56 = arith.constant 2 : index
    %c0_57 = arith.constant 0 : index
    %c0_58 = arith.constant 0 : index
    %27 = vector.load %arg10[%c0_55, %c2_56, %c0_57, %c0_58] : memref<2x18x16x384xbf16, #tpu.memory_space<vmem>>, vector<2x16x16x384xbf16>
    %28 = vector.shape_cast %27 : vector<2x16x16x384xbf16> to vector<512x384xbf16>
    %c2_59 = arith.constant 2 : index
    %c0_60 = arith.constant 0 : index
    %c0_61 = arith.constant 0 : index
    %29 = vector.load %arg2[%c2_59, %c0_60, %c0_61] : memref<3x384x128xbf16, #tpu.memory_space<vmem>>, vector<1x384x128xbf16>
    %30 = vector.shape_cast %29 : vector<1x384x128xbf16> to vector<384x128xbf16>
    %cst_62 = arith.constant dense<0.000000e+00> : vector<512x128xf32>
    %31 = tpu.matmul %28, %30, %cst_62 {dimension_numbers = #tpu.dot_dimension_numbers<[1], [0], [0], [1], [0, 0, 1, 1], [], []>} : vector<512x384xbf16>, vector<384x128xbf16>, vector<512x128xf32> -> vector<512x128xf32>
    %32 = arith.addf %26, %31 : vector<512x128xf32>
    %cst_63 = arith.constant 0.000000e+00 : f32
    %33 = vector.broadcast %cst_63 : f32 to vector<512x128xf32>
    %34 = arith.maximumf %32, %33 : vector<512x128xf32>
    %35 = vector.shape_cast %34 : vector<512x128xf32> to vector<2x16x16x128xf32>
    %c0_64 = arith.constant 0 : index
    %c0_65 = arith.constant 0 : index
    %c1_66 = arith.constant 1 : index
    %c0_67 = arith.constant 0 : index
    %36 = vector.load %arg9[%c0_64, %c0_65, %c1_66, %c0_67] : memref<2x16x18x128xf32, #tpu.memory_space<vmem>>, vector<2x16x16x128xf32>
    tpu.vector_store %arg9[%c0_64, %c0_65, %c1_66, %c0_67], %35 {strides = array<i32>} : memref<2x16x18x128xf32, #tpu.memory_space<vmem>>, vector<2x16x16x128xf32>,
    %37 = arith.truncf %35 : vector<2x16x16x128xf32> to vector<2x16x16x128xbf16>
    %c0_68 = arith.constant 0 : index
    %c1_69 = arith.constant 1 : index
    %c0_70 = arith.constant 0 : index
    %c128_71 = arith.constant 128 : index
    %38 = vector.load %arg10[%c0_68, %c1_69, %c0_70, %c128_71] : memref<2x18x16x384xbf16, #tpu.memory_space<vmem>>, vector<2x16x16x128xbf16>
    tpu.vector_store %arg10[%c0_68, %c1_69, %c0_70, %c128_71], %37 {strides = array<i32>} : memref<2x18x16x384xbf16, #tpu.memory_space<vmem>>, vector<2x16x16x128xbf16>,
    %c0_72 = arith.constant 0 : index
    %c0_73 = arith.constant 0 : index
    %c0_74 = arith.constant 0 : index
    %c0_75 = arith.constant 0 : index
    %39 = vector.load %arg9[%c0_72, %c0_73, %c0_74, %c0_75] : memref<2x16x18x128xf32, #tpu.memory_space<vmem>>, vector<2x16x16x128xf32>
    %40 = arith.truncf %39 : vector<2x16x16x128xf32> to vector<2x16x16x128xbf16>
    %c0_76 = arith.constant 0 : index
    %c1_77 = arith.constant 1 : index
    %c0_78 = arith.constant 0 : index
    %c0_79 = arith.constant 0 : index
    %41 = vector.load %arg10[%c0_76, %c1_77, %c0_78, %c0_79] : memref<2x18x16x384xbf16, #tpu.memory_space<vmem>>, vector<2x16x16x128xbf16>
    tpu.vector_store %arg10[%c0_76, %c1_77, %c0_78, %c0_79], %40 {strides = array<i32>} : memref<2x18x16x384xbf16, #tpu.memory_space<vmem>>, vector<2x16x16x128xbf16>,
    %c0_80 = arith.constant 0 : index
    %c0_81 = arith.constant 0 : index
    %c2_82 = arith.constant 2 : index
    %c0_83 = arith.constant 0 : index
    %42 = vector.load %arg9[%c0_80, %c0_81, %c2_82, %c0_83] : memref<2x16x18x128xf32, #tpu.memory_space<vmem>>, vector<2x16x16x128xf32>
    %43 = arith.truncf %42 : vector<2x16x16x128xf32> to vector<2x16x16x128xbf16>
    %c0_84 = arith.constant 0 : index
    %c1_85 = arith.constant 1 : index
    %c0_86 = arith.constant 0 : index
    %c256_87 = arith.constant 256 : index
    %44 = vector.load %arg10[%c0_84, %c1_85, %c0_86, %c256_87] : memref<2x18x16x384xbf16, #tpu.memory_space<vmem>>, vector<2x16x16x128xbf16>
    tpu.vector_store %arg10[%c0_84, %c1_85, %c0_86, %c256_87], %43 {strides = array<i32>} : memref<2x18x16x384xbf16, #tpu.memory_space<vmem>>, vector<2x16x16x128xbf16>,
    %c0_88 = arith.constant 0 : index
    %c0_89 = arith.constant 0 : index
    %c0_90 = arith.constant 0 : index
    %c0_91 = arith.constant 0 : index
    %45 = vector.load %arg10[%c0_88, %c0_89, %c0_90, %c0_91] : memref<2x18x16x384xbf16, #tpu.memory_space<vmem>>, vector<2x16x16x384xbf16>
    %46 = vector.shape_cast %45 : vector<2x16x16x384xbf16> to vector<512x384xbf16>
    %c0_92 = arith.constant 0 : index
    %c0_93 = arith.constant 0 : index
    %c0_94 = arith.constant 0 : index
    %47 = vector.load %arg3[%c0_92, %c0_93, %c0_94] : memref<3x384x128xbf16, #tpu.memory_space<vmem>>, vector<1x384x128xbf16>
    %48 = vector.shape_cast %47 : vector<1x384x128xbf16> to vector<384x128xbf16>
    %cst_95 = arith.constant dense<0.000000e+00> : vector<512x128xf32>
    %49 = tpu.matmul %46, %48, %cst_95 {dimension_numbers = #tpu.dot_dimension_numbers<[1], [0], [0], [1], [0, 0, 1, 1], [], []>} : vector<512x384xbf16>, vector<384x128xbf16>, vector<512x128xf32> -> vector<512x128xf32>
    %c0_96 = arith.constant 0 : index
    %c1_97 = arith.constant 1 : index
    %c0_98 = arith.constant 0 : index
    %c0_99 = arith.constant 0 : index
    %50 = vector.load %arg10[%c0_96, %c1_97, %c0_98, %c0_99] : memref<2x18x16x384xbf16, #tpu.memory_space<vmem>>, vector<2x16x16x384xbf16>
    %51 = vector.shape_cast %50 : vector<2x16x16x384xbf16> to vector<512x384xbf16>
    %c1_100 = arith.constant 1 : index
    %c0_101 = arith.constant 0 : index
    %c0_102 = arith.constant 0 : index
    %52 = vector.load %arg3[%c1_100, %c0_101, %c0_102] : memref<3x384x128xbf16, #tpu.memory_space<vmem>>, vector<1x384x128xbf16>
    %53 = vector.shape_cast %52 : vector<1x384x128xbf16> to vector<384x128xbf16>
    %cst_103 = arith.constant dense<0.000000e+00> : vector<512x128xf32>
    %54 = tpu.matmul %51, %53, %cst_103 {dimension_numbers = #tpu.dot_dimension_numbers<[1], [0], [0], [1], [0, 0, 1, 1], [], []>} : vector<512x384xbf16>, vector<384x128xbf16>, vector<512x128xf32> -> vector<512x128xf32>
    %55 = arith.addf %49, %54 : vector<512x128xf32>
    %c0_104 = arith.constant 0 : index
    %c2_105 = arith.constant 2 : index
    %c0_106 = arith.constant 0 : index
    %c0_107 = arith.constant 0 : index
    %56 = vector.load %arg10[%c0_104, %c2_105, %c0_106, %c0_107] : memref<2x18x16x384xbf16, #tpu.memory_space<vmem>>, vector<2x16x16x384xbf16>
    %57 = vector.shape_cast %56 : vector<2x16x16x384xbf16> to vector<512x384xbf16>
    %c2_108 = arith.constant 2 : index
    %c0_109 = arith.constant 0 : index
    %c0_110 = arith.constant 0 : index
    %58 = vector.load %arg3[%c2_108, %c0_109, %c0_110] : memref<3x384x128xbf16, #tpu.memory_space<vmem>>, vector<1x384x128xbf16>
    %59 = vector.shape_cast %58 : vector<1x384x128xbf16> to vector<384x128xbf16>
    %cst_111 = arith.constant dense<0.000000e+00> : vector<512x128xf32>
    %60 = tpu.matmul %57, %59, %cst_111 {dimension_numbers = #tpu.dot_dimension_numbers<[1], [0], [0], [1], [0, 0, 1, 1], [], []>} : vector<512x384xbf16>, vector<384x128xbf16>, vector<512x128xf32> -> vector<512x128xf32>
    %61 = arith.addf %55, %60 : vector<512x128xf32>
    %62 = vector.shape_cast %61 : vector<512x128xf32> to vector<2x256x128xf32>
    %cst_112 = arith.constant dense<0.000000e+00> : vector<2x128xf32>
    %63 = vector.multi_reduction <add>, %62, %cst_112 [1] : vector<2x256x128xf32> to vector<2x128xf32>
    %cst_113 = arith.constant 3.906250e-03 : f32
    %64 = vector.broadcast %cst_113 : f32 to vector<2x128xf32>
    %65 = arith.mulf %63, %64 : vector<2x128xf32>
    %c0_114 = arith.constant 0 : index
    %c0_115 = arith.constant 0 : index
    %66 = vector.load %arg4[%c0_114, %c0_115] : memref<128x2xf32, #tpu.memory_space<vmem>>, vector<128x2xf32>
    %cst_116 = arith.constant dense<0.000000e+00> : vector<2x2xf32>
    %67 = tpu.matmul %65, %66, %cst_116 {dimension_numbers = #tpu.dot_dimension_numbers<[1], [0], [0], [1], [0, 0, 1, 1], [], []>} : vector<2x128xf32>, vector<128x2xf32>, vector<2x2xf32> -> vector<2x2xf32>
    %c0_117 = arith.constant 0 : index
    %c0_118 = arith.constant 0 : index
    %68 = vector.load %arg5[%c0_117, %c0_118] : memref<1x2xf32, #tpu.memory_space<vmem>>, vector<1x2xf32>
    %69 = vector.broadcast %68 : vector<1x2xf32> to vector<2x2xf32>
    %70 = arith.addf %67, %69 : vector<2x2xf32>
    %cst_119 = arith.constant 0.000000e+00 : f32
    %71 = vector.broadcast %cst_119 : f32 to vector<2x2xf32>
    %72 = arith.maximumf %70, %71 : vector<2x2xf32>
    %c0_120 = arith.constant 0 : index
    %c0_121 = arith.constant 0 : index
    %73 = vector.load %arg6[%c0_120, %c0_121] : memref<2x128xf32, #tpu.memory_space<vmem>>, vector<2x128xf32>
    %cst_122 = arith.constant dense<0.000000e+00> : vector<2x128xf32>
    %74 = tpu.matmul %72, %73, %cst_122 {dimension_numbers = #tpu.dot_dimension_numbers<[1], [0], [0], [1], [0, 0, 1, 1], [], []>} : vector<2x2xf32>, vector<2x128xf32>, vector<2x128xf32> -> vector<2x128xf32>
    %c0_123 = arith.constant 0 : index
    %c0_124 = arith.constant 0 : index
    %75 = vector.load %arg7[%c0_123, %c0_124] : memref<1x128xf32, #tpu.memory_space<vmem>>, vector<1x128xf32>
    %76 = vector.broadcast %75 : vector<1x128xf32> to vector<2x128xf32>
    %77 = arith.addf %74, %76 : vector<2x128xf32>
    %78 = arith.negf %77 : vector<2x128xf32>
    %79 = math.exp %78 : vector<2x128xf32>
    %cst_125 = arith.constant 1.000000e+00 : f32
    %80 = vector.broadcast %cst_125 : f32 to vector<2x128xf32>
    %81 = arith.addf %80, %79 : vector<2x128xf32>
    %82 = arith.divf %80, %81 : vector<2x128xf32>
    %c0_126 = arith.constant 0 : index
    %c0_127 = arith.constant 0 : index
    %c0_128 = arith.constant 0 : index
    %c0_129 = arith.constant 0 : index
    %83 = vector.load %arg1[%c0_126, %c0_127, %c0_128, %c0_129] : memref<2x16x16x128xf32, #tpu.memory_space<vmem>>, vector<2x16x16x128xf32>
    %84 = vector.shape_cast %83 : vector<2x16x16x128xf32> to vector<2x256x128xf32>
    %85 = vector.shape_cast %82 : vector<2x128xf32> to vector<2x1x128xf32>
    %86 = vector.broadcast %85 : vector<2x1x128xf32> to vector<2x256x128xf32>
    %87 = arith.mulf %62, %86 : vector<2x256x128xf32>
    %88 = arith.addf %87, %84 : vector<2x256x128xf32>
    %cst_130 = arith.constant 0.000000e+00 : f32
    %89 = vector.broadcast %cst_130 : f32 to vector<2x256x128xf32>
    %90 = arith.maximumf %88, %89 : vector<2x256x128xf32>
    %91 = vector.shape_cast %90 : vector<2x256x128xf32> to vector<2x16x16x128xf32>
    %c0_131 = arith.constant 0 : index
    %c0_132 = arith.constant 0 : index
    %c0_133 = arith.constant 0 : index
    %c0_134 = arith.constant 0 : index
    %92 = vector.load %arg8[%c0_131, %c0_132, %c0_133, %c0_134] : memref<2x16x16x128xf32, #tpu.memory_space<vmem>>, vector<2x16x16x128xf32>
    tpu.vector_store %arg8[%c0_131, %c0_132, %c0_133, %c0_134], %91 {strides = array<i32>} : memref<2x16x16x128xf32, #tpu.memory_space<vmem>>, vector<2x16x16x128xf32>,
    return
  }
  func.func @transform_0(%arg0: i32) -> (i32, i32, i32, i32) {
    %c0_i32 = arith.constant 0 : i32
    %c0_i32_0 = arith.constant 0 : i32
    %c0_i32_1 = arith.constant 0 : i32
    %c0_i32_2 = arith.constant 0 : i32
    return %arg0, %c0_i32, %c0_i32_0, %c0_i32_1 : i32, i32, i32, i32
  }
  func.func @transform_1(%arg0: i32) -> (i32, i32, i32) {
    %c0_i32 = arith.constant 0 : i32
    %c0_i32_0 = arith.constant 0 : i32
    %c0_i32_1 = arith.constant 0 : i32
    %c0_i32_2 = arith.constant 0 : i32
    return %c0_i32, %c0_i32_0, %c0_i32_1 : i32, i32, i32
  }
  func.func @transform_2(%arg0: i32) -> (i32, i32, i32) {
    %c0_i32 = arith.constant 0 : i32
    %c0_i32_0 = arith.constant 0 : i32
    %c0_i32_1 = arith.constant 0 : i32
    %c0_i32_2 = arith.constant 0 : i32
    return %c0_i32, %c0_i32_0, %c0_i32_1 : i32, i32, i32
  }
  func.func @transform_3(%arg0: i32) -> (i32, i32) {
    %c0_i32 = arith.constant 0 : i32
    %c0_i32_0 = arith.constant 0 : i32
    %c0_i32_1 = arith.constant 0 : i32
    return %c0_i32, %c0_i32_0 : i32, i32
  }
  func.func @transform_4(%arg0: i32) -> (i32, i32) {
    %c0_i32 = arith.constant 0 : i32
    %c0_i32_0 = arith.constant 0 : i32
    %c0_i32_1 = arith.constant 0 : i32
    return %c0_i32, %c0_i32_0 : i32, i32
  }
  func.func @transform_5(%arg0: i32) -> (i32, i32) {
    %c0_i32 = arith.constant 0 : i32
    %c0_i32_0 = arith.constant 0 : i32
    %c0_i32_1 = arith.constant 0 : i32
    return %c0_i32, %c0_i32_0 : i32, i32
  }
  func.func @transform_6(%arg0: i32) -> (i32, i32) {
    %c0_i32 = arith.constant 0 : i32
    %c0_i32_0 = arith.constant 0 : i32
    %c0_i32_1 = arith.constant 0 : i32
    return %c0_i32, %c0_i32_0 : i32, i32
  }
  func.func @transform_7(%arg0: i32) -> (i32, i32, i32, i32) {
    %c0_i32 = arith.constant 0 : i32
    %c0_i32_0 = arith.constant 0 : i32
    %c0_i32_1 = arith.constant 0 : i32
    %c0_i32_2 = arith.constant 0 : i32
    return %arg0, %c0_i32, %c0_i32_0, %c0_i32_1 : i32, i32, i32, i32
  }
}

</mosaic_0001>

<bundles_post_ra>
// kernel: tpu_custom_call.1
= control target key start
LH: loop header
LB: loop body
LE: loop exit
PB: predicated region body
PF: predicated region fallthrough
CT: control target
= control target key end

     0   :  { %12 = vsyncpa [#allocation5], 0  ;;  %s12708_s0 = inlined_call_operand.hbm [shape: f32[8,16,16,128], index: 0, kind: input, shape index: {}]   ;;  %s12709_s1 = inlined_call_operand.hbm [shape: bf16[3,384,128], index: 1, kind: input, shape index: {}]   ;;  %s12710_s2 = inlined_call_operand.hbm [shape: bf16[3,384,128], index: 2, kind: input, shape index: {}]   ;;  %s12711_s3 = inlined_call_operand.vmem [shape: f32[128,2], index: 3, kind: input, shape index: {}]   ;;  %s12712_s4 = inlined_call_operand.vmem [shape: f32[1,2], index: 4, kind: input, shape index: {}]   ;;  %s12713_s5 = inlined_call_operand.vmem [shape: f32[2,128], index: 5, kind: input, shape index: {}]   ;;  %s12714_s6 = inlined_call_operand.vmem [shape: f32[1,128], index: 6, kind: input, shape index: {}]   ;;  %s12715_s7 = inlined_call_operand.hbm [shape: f32[8,16,16,128], index: 7, kind: output, shape index: {}]  }
   0x1   :  { %14 = vsyncpa [#allocation5 + $0x1], 0 }
   0x2   :  { %15 = vsyncpa [#allocation8], 0 }
   0x3   :  { %16 = vsyncpa [#allocation6], 0 }
   0x4   :  { %18 = vsyncpa [#allocation6 + $0x1], 0  ;;  %s8785_s24 = smov 0   ;;  %s8787_s25 = smov 0  }
   0x5   :  { %s8789_s26 = smov 0   ;;  %s8791_s27 = smov 0  }
   0x6 LB: > { %s8806_s28 = sadd.s32 4294967295, %s8728_s27   ;;  %s7360_s29 = sadd.s32 4294967294, %s8728_s27   ;;  %s8728_s27 = sphi %s8791_s27, %s13830_s27   ;;  %s8724_s26 = sphi %s8789_s26, %s13829_s26   ;;  %s8720_s25 = sphi %s8787_s25, %s13828_s25   ;;  %s8716_s24 = sphi %s8785_s24, %s13827_s24  }
   0x7   : > { %p44_p0 = scmp.ne.s32.totalorder %s8720_s25, %s8716_s24  ;;  %p12716_p1 = scmp.eq.s32.totalorder %s8806_s28, 0 }
   0x8   : > { %p200_p3 = scmp.eq.s32.totalorder %s7360_s29, 3  ;;  %p7361_p5 = scmp.ge.s32.totalorder %s8728_s27, 1 }
   0x9   : > { %p8815_p4 = por %p12716_p1, %p44_p0  ;;  %p207_p7 = scmp.lt.s32.totalorder %s8728_s27, 5 }
   0xa   : > { %p8820_p6 = por %p200_p3, %p44_p0  ;;  %s8730_s10 = smov [#allocation7]  }
   0xb   : > { %s12977_s30 = scalar_select %p8815_p4, 1, 0 }
   0xc   : > { %s12978_s8 = scalar_select %p8820_p6, 1, 0 }
   0xd   : > { %p8825_p8 = pnand %p7361_p5, %p207_p7  ;;  %s219_s11 = sshll.u32 %s8730_s10, 4  ;;  %s220_s11 = int_to_ptr.vmem [resolvable:$true] %s219_s11 }
   0xe   : > { %s8731_s13 = smov [#allocation9]   ;;  %s8572_s17 = scalar_lea.hbm %s12709_s1, 9216 }
   0xf   : > { %s12979_s9 = scalar_select %p8825_p8, 1, 0 }
  0x10   : > { %p8348_p9 = pneg %p8825_p8  ;;  %s232_s14 = sshll.u32 %s8731_s13, 4  ;;  %s8837_s14 = int_to_ptr.vmem [resolvable:$true] %s232_s14 }
  0x11   : > { %p8573_p11 = scmp.ne.s32.totalorder %s12709_s1, %s8572_s17  ;;  %p8579_p3 = scmp.lt.u32.totalorder %s8572_s17, %s12709_s1 }
  0x12   : > { %p8833_p10 = pnand %p8348_p9, %p12716_p1 }
  0x14   : > { %p8574_p12 = pneg %p8833_p10 }
  0x16   : > { %p8575_p13 = pnand %p8574_p12, %p8573_p11 }
  0x18   : > { %p8576_p0 = pneg %p8575_p13 }
  0x1a   : > { %p8581_p5 = pnand %p8579_p3, %p8576_p0 }
  0x1c   : > { %8584 = shalt.err (!%p8581_p5)
}
  0x1d   : > { %s8585_s22 = scalar_lea.vmem %s220_s11, 9216  ;;  %p8593_p2 = scmp.lt.s32.totalorder %s220_s11, %s220_s11 }
  0x1e   : > { %p8586_p7 = scmp.ne.s32.totalorder %s220_s11, %s8585_s22  ;;  %p8594_p6 = scmp.lt.s32.totalorder %s8585_s22, %s8585_s22 }
  0x20   : > { %p8588_p9 = pnand %p8586_p7, %p8574_p12  ;;  %p8595_p4 = por %p8594_p6, %p8593_p2 }
  0x22   : > { %p8589_p1 = pneg %p8588_p9 }
  0x24   : > { %p8596_p8 = pnand %p8595_p4, %p8589_p1 }
  0x26   : > { %8599 = shalt.err (!%p8596_p8)
}
  0x27   : > { %s8732_s23 = smov 64   ;;  %s8733_s29 = smov 4  }
  0x28   : > { %8351 = dma.hbm_to_vmem [thread:$0]  (!%p8833_p10), %s12709_s1, 9216, %s220_s11, [#allocation8], %s8732_s23, %s8732_s23, %s8733_s29  }
  0x29   : > { %s8600_s17 = scalar_lea.hbm %s12710_s2, 9216 }
  0x2a   : > { %p8601_p11 = scmp.ne.s32.totalorder %s12710_s2, %s8600_s17  ;;  %p8607_p4 = scmp.lt.u32.totalorder %s8600_s17, %s12710_s2 }
  0x2c   : > { %p8603_p1 = pnand %p8601_p11, %p8574_p12 }
  0x2e   : > { %p8604_p2 = pneg %p8603_p1 }
  0x30   : > { %p8609_p6 = pnand %p8607_p4, %p8604_p2 }
  0x32   : > { %8612 = shalt.err (!%p8609_p6)
}
  0x33   : > { %s8613_s11 = scalar_lea.vmem %s8837_s14, 9216  ;;  %p8621_p3 = scmp.lt.s32.totalorder %s8837_s14, %s8837_s14 }
  0x34   : > { %p8614_p8 = scmp.ne.s32.totalorder %s8837_s14, %s8613_s11  ;;  %p8622_p5 = scmp.lt.s32.totalorder %s8613_s11, %s8613_s11 }
  0x36   : > { %p8616_p13 = pnand %p8614_p8, %p8574_p12  ;;  %p8623_p7 = por %p8622_p5, %p8621_p3 }
  0x38   : > { %p8617_p0 = pneg %p8616_p13 }
  0x3a   : > { %p8624_p9 = pnand %p8623_p7, %p8617_p0 }
  0x3c   : > { %8627 = shalt.err (!%p8624_p9)
}
  0x3d   : > { %8354 = dma.hbm_to_vmem [thread:$0]  (!%p8833_p10), %s12710_s2, 9216, %s8837_s14, [#allocation8], %s8732_s23, %s8732_s23, %s8733_s29  }
  0x3e   : > { %s8887_s13 = sadd.s32 1, %s8728_s27   ;;  %s31_s12 = sadd.s32 1, %s8724_s26 }
  0x3f   : > { %s28_s15 = ssub.s32 %s8728_s27, %s8887_s13  ;;  %p38_p12 = scmp.ne.s32.totalorder %s8724_s26, %s8720_s25 }
  0x40   : > { %p29_p11 = scmp.eq.s32.totalorder %s28_s15, 0  ;;  %p39_p1 = scmp.eq.s32.totalorder %s8728_s27, 0 }
  0x41   : > { %p12981_p2 = scmp.eq.s32.totalorder %s8806_s28, 3  ;;  %p8365_p6 = scmp.lt.s32.totalorder %s8728_s27, 4 }
  0x42   : > { %s8903_s17 = scalar_select %p29_p11, %s8724_s26, %s31_s12  }
  0x43   : > { %p8897_p4 = por %p12981_p2, %p38_p12  ;;  %p40_p8 = por %p39_p1, %p38_p12 }
  0x44   : > { %s258_s18 = sand.u32 1, %s8724_s26   ;;  %s7530_s14 = sshll.u32 %s8728_s27, 13 }
  0x45   : > { %s7365_s19 = sshll.u32 %s258_s18, 9  ;;  %s8910_s20 = scalar_lea.hbm %s12708_s0, %s7530_s14 }
  0x46   : > { %s262_s21 = scalar_lea.vmem [#allocation4], %s7365_s19  ;;  %p8914_p10 = pnand %p8365_p6, %p40_p8 }
  0x47   : > { %s270_s11 = sshll.u32 %s262_s21, 4  ;;  %s8918_s10 = scalar_lea.sflag [#allocation5], %s258_s18  ;;  %s8912_s11 = int_to_ptr.vmem [resolvable:$true] %s270_s11 }
  0x48   : > { %s8628_s12 = scalar_lea.hbm %s8910_s20, 8192  ;;  %p8630_p0 = pneg %p8914_p10 }
  0x49   : > { %p8629_p13 = scmp.ne.s32.totalorder %s8910_s20, %s8628_s12  ;;  %s8633_s14 = scalar_lea.hbm %s12708_s0, 32768 }
  0x4a   : > { %p8634_p7 = scmp.lt.u32.totalorder %s8910_s20, %s12708_s0  ;;  %p8635_p9 = scmp.lt.u32.totalorder %s8633_s14, %s8628_s12 }
  0x4b   : > { %p8631_p3 = pnand %p8630_p0, %p8629_p13  ;;  %p8637_p11 = scmp.lt.u32.totalorder %s8628_s12, %s8910_s20 }
  0x4c   : > { %p8636_p12 = por %p8635_p9, %p8634_p7 }
  0x4d   : > { %p8632_p5 = pneg %p8631_p3 }
  0x4e   : > { %p8638_p1 = por %p8637_p11, %p8636_p12 }
  0x50   : > { %p8639_p2 = pnand %p8638_p1, %p8632_p5 }
  0x52   : > { %8642 = shalt.err (!%p8639_p2)
}
  0x53   : > { %s8643_s18 = scalar_lea.vmem %s8912_s11, 8192  ;;  %s8734_s21 = smov [#allocation4]  }
  0x54   : > { %p8644_p6 = scmp.ne.s32.totalorder %s8912_s11, %s8643_s18  ;;  %s8648_s15 = sshll.u32 %s8734_s21, 4  ;;  %s8649_s15 = int_to_ptr.vmem [resolvable:$false] %s8648_s15 }
  0x55   : > { %s8650_s19 = scalar_lea.vmem %s8649_s15, 16384  ;;  %p8651_p3 = scmp.lt.s32.totalorder %s8912_s11, %s8649_s15 }
  0x56   : > { %p8646_p8 = pnand %p8644_p6, %p8630_p0  ;;  %p8652_p7 = scmp.lt.s32.totalorder %s8650_s19, %s8643_s18 }
  0x58   : > { %p8647_p13 = pneg %p8646_p8  ;;  %p8653_p9 = por %p8652_p7, %p8651_p3 }
  0x5a   : > { %p8654_p12 = pnand %p8653_p9, %p8647_p13 }
  0x5c   : > { %8657 = shalt.err (!%p8654_p12)
}
  0x5d   : > { %s8735_s12 = smov 128   ;;  %s8736_s14 = smov 8  }
  0x5e   : > { %8358 = dma.hbm_to_vmem [thread:$0]  (!%p8914_p10), %s8910_s20, 8192, %s8912_s11, %s8918_s10, %s8735_s12, %s8735_s12, %s8736_s14  }
  0x5f   : > { %p12984_p0 = scmp.ne.s32.totalorder %s12979_s9, 0 }
  0x61   : > { %282 = sbr.rel (%p12984_p0) target bundleno = 2224 (0x8b0), region = 48 }
  0x68   : > { %s8949_s23 = sand.u32 1, %s8720_s25   ;;  %p12985_p5 = scmp.ne.s32.totalorder %s12977_s30, 0 }
  0x69   : > { %s7370_s29 = sshll.u32 %s8949_s23, 9  ;;  %s285_s18 = scalar_lea.sflag [#allocation5], %s8949_s23 }
  0x6a   : > { %s8955_s21 = scalar_lea.vmem [#allocation4], %s7370_s29 }
  0x6b   : > { %8703 = dma.done.wait (%p12985_p5), %s285_s18, 8192  }
  0x6c   : > { %8705 = vsyncadd (%p12985_p5), %s285_s18, 4294959104  ;;  %p12986_p10 = scmp.eq.s32.totalorder %s8806_s28, 0 }
  0x6e   : > { %8707 = dma.done.wait (%p12986_p10), [#allocation8], 18432   ;;  %p12987_p11 = pmov %p12986_p10 }
  0x6f   : > { %v12721_v0 = vmov 0   ;;  %v12719_v1 = vmov 0.0   ;;  %v8414_v2 = vld [vmem:[#allocation7 + $0xc0] sm:$0xff]   ;;  %v8416_v4 = vld [vmem:[#allocation7 + $0xc8] sm:$0xff]   ;;  %v8419_v6 = vld [vmem:[#allocation7 + $0x150] sm:$0xff]   ;;  %vm8740_vm0 = vmmov 0  }
  0x70   : > { %8709 = vsyncadd (%p12987_p11), [#allocation8], 4294948864  ;;  %1289 = vmatprep.subr.bf16.mxu0 %v12721_v0  ;;  %362 = vst [vmem:[#allocation2 + $0x11] sm:$0x1] %v12719_v1  ;;  %v8415_v3 = vld [vmem:[#allocation7 + $0x140] sm:$0xff]   ;;  %v8417_v5 = vld [vmem:[#allocation7 + $0x148] sm:$0xff]  }
  0x71   : > { %330 = vst [vmem:[#allocation2] sm:$0x1] %v12719_v1  ;;  %331 = vst [vmem:[#allocation2 + $0x18] sm:$0x1] %v12719_v1  ;;  %1290 = vmatpush1.bf16.msra.mxu0 %v8414_v2  ;;  %7792 = vmatprep.subr.bf16.mxu1 %v8415_v3  ;;  %v8418_v7 = vld [vmem:[#allocation7 + $0xd0] sm:$0xff]   ;;  %v8421_v8 = vld [vmem:[#allocation7 + $0x158] sm:$0xff]  }
  0x72   : > { %332 = vst [vmem:[#allocation2 + $0x30] sm:$0x1] %v12719_v1  ;;  %333 = vst [vmem:[#allocation2 + $0x48] sm:$0x1] %v12719_v1  ;;  %1291 = vmatprep.subr.bf16.mxu0 %v12721_v0  ;;  %7793 = vmatpush3.bf16.msra.mxu1 %v8415_v3  ;;  %v8420_v9 = vld [vmem:[#allocation7 + $0xd8] sm:$0xff]   ;;  %v8423_v10 = vld [vmem:[#allocation7 + $0x160] sm:$0xff]  }
  0x73   : > { %334 = vst [vmem:[#allocation2 + $0x60] sm:$0x1] %v12719_v1  ;;  %335 = vst [vmem:[#allocation2 + $0x78] sm:$0x1] %v12719_v1  ;;  %7794 = vmatprep.subr.bf16.mxu1 %v8417_v5  ;;  %v8422_v11 = vld [vmem:[#allocation7 + $0xe0] sm:$0xff]   ;;  %v8424_v12 = vld [vmem:[#allocation7 + $0xe8] sm:$0xff]  }
  0x74   : > { %336 = vst [vmem:[#allocation2 + $0x90] sm:$0x1] %v12719_v1  ;;  %337 = vst [vmem:[#allocation2 + $0xa8] sm:$0x1] %v12719_v1  ;;  %v407_v13 = vld [vmem:[%s8955_s21] sm:$0xff]  ;;  %v408_v14 = vld [vmem:[%s8955_s21 + $0x8] sm:$0xff] }
  0x75   : > { %338 = vst [vmem:[#allocation2 + $0xc0] sm:$0x1] %v12719_v1  ;;  %339 = vst [vmem:[#allocation2 + $0xd8] sm:$0x1] %v12719_v1  ;;  %1292 = vmatpush1.bf16.msra.mxu0 %v8416_v4  ;;  %v8425_v15 = vld [vmem:[#allocation7 + $0x168] sm:$0xff]   ;;  %v9037_v16 = vld [vmem:[%s8955_s21 + $0x10] sm:$0xff]  ;;  %v9039_v17 = vpack.c.bf16 %v408_v14, %v407_v13 }
  0x76   : > { %340 = vst [vmem:[#allocation2 + $0xf0] sm:$0x1] %v12719_v1  ;;  %341 = vst [vmem:[#allocation2 + $0x108] sm:$0x1] %v12719_v1  ;;  %1293 = vmatprep.subr.bf16.mxu0 %v12721_v0  ;;  %7795 = vmatpush3.bf16.msra.mxu1 %v8417_v5  ;;  %v9042_v18 = vld [vmem:[%s8955_s21 + $0x18] sm:$0xff]  ;;  %v9048_v19 = vld [vmem:[%s8955_s21 + $0x20] sm:$0xff] }
  0x77   : > { %342 = vst [vmem:[#allocation2 + $0x120] sm:$0x1] %v12719_v1  ;;  %343 = vst [vmem:[#allocation2 + $0x138] sm:$0x1] %v12719_v1  ;;  %7796 = vmatprep.subr.bf16.mxu1 %v8419_v6  ;;  %v9051_v20 = vld [vmem:[%s8955_s21 + $0x28] sm:$0xff]  ;;  %1321 = vmatprep.mubr.bf16.mxu0 %v9039_v17  ;;  %v8427_v21 = vld [vmem:[#allocation7 + $0x170] sm:$0xff]  }
  0x78   : > { %344 = vst [vmem:[#allocation2 + $0x150] sm:$0x1] %v12719_v1  ;;  %345 = vst [vmem:[#allocation2 + $0x168] sm:$0x1] %v12719_v1  ;;  %v9057_v22 = vld [vmem:[%s8955_s21 + $0x30] sm:$0xff]  ;;  %v9060_v23 = vld [vmem:[%s8955_s21 + $0x38] sm:$0xff] }
  0x79   : > { %346 = vst [vmem:[#allocation2 + $0x180] sm:$0x1] %v12719_v1  ;;  %347 = vst [vmem:[#allocation2 + $0x198] sm:$0x1] %v12719_v1  ;;  %1294 = vmatpush1.bf16.msra.mxu0 %v8418_v7  ;;  %v8426_v24 = vld [vmem:[#allocation7 + $0xf0] sm:$0xff]   ;;  %v415_v25 = vld [vmem:[%s8955_s21 + $0x40] sm:$0xff] }
  0x7a   : > { %348 = vst [vmem:[#allocation2 + $0x1b0] sm:$0x1] %v12719_v1  ;;  %349 = vst [vmem:[#allocation2 + $0x1c8] sm:$0x1] %v12719_v1  ;;  %1295 = vmatprep.subr.bf16.mxu0 %v12721_v0  ;;  %7797 = vmatpush3.bf16.msra.mxu1 %v8419_v6  ;;  %v416_v26 = vld [vmem:[%s8955_s21 + $0x48] sm:$0xff]  ;;  %v8429_v27 = vld [vmem:[#allocation7 + $0x178] sm:$0xff]  }
  0x7b   : > { %350 = vst [vmem:[#allocation2 + $0x1e0] sm:$0x1] %v12719_v1  ;;  %351 = vst [vmem:[#allocation2 + $0x1f8] sm:$0x1] %v12719_v1  ;;  %7798 = vmatprep.subr.bf16.mxu1 %v8421_v8  ;;  %v9067_v30 = vpack.c.bf16 %v416_v26, %v415_v25  ;;  %v417_v32 = vld [vmem:[%s8955_s21 + $0x50] sm:$0xff]  ;;  %v418_v33 = vld [vmem:[%s8955_s21 + $0x58] sm:$0xff] }
  0x7c   : > { %352 = vst [vmem:[#allocation2 + $0x210] sm:$0x1] %v12719_v1  ;;  %353 = vst [vmem:[#allocation2 + $0x228] sm:$0x1] %v12719_v1  ;;  %v8428_v34 = vld [vmem:[#allocation7 + $0xf8] sm:$0xff]   ;;  %v9073_v35 = vpack.c.bf16 %v418_v33, %v417_v32  ;;  %v419_v38 = vld [vmem:[%s8955_s21 + $0x60] sm:$0xff] }
  0x7d   : > { %354 = vst [vmem:[#allocation2 + $0x240] sm:$0x1] %v12719_v1  ;;  %355 = vst [vmem:[#allocation2 + $0x258] sm:$0x1] %v12719_v1  ;;  %1296 = vmatpush1.bf16.msra.mxu0 %v8420_v9  ;;  %v420_v39 = vld [vmem:[%s8955_s21 + $0x68] sm:$0xff]  ;;  %v8430_v43 = vld [vmem:[#allocation7 + $0x100] sm:$0xff]  }
  0x7e   : > { %356 = vst [vmem:[#allocation2 + $0x270] sm:$0x1] %v12719_v1  ;;  %357 = vst [vmem:[#allocation2 + $0x288] sm:$0x1] %v12719_v1  ;;  %1297 = vmatprep.subr.bf16.mxu0 %v12721_v0  ;;  %7799 = vmatpush3.bf16.msra.mxu1 %v8421_v8  ;;  %v9079_v42 = vpack.c.bf16 %v420_v39, %v419_v38  ;;  %v421_v44 = vld [vmem:[%s8955_s21 + $0x70] sm:$0xff]  ;;  %v422_v45 = vld [vmem:[%s8955_s21 + $0x78] sm:$0xff] }
  0x7f   : > { %358 = vst [vmem:[#allocation2 + $0x2a0] sm:$0x1] %v12719_v1  ;;  %359 = vst [vmem:[#allocation2 + $0x2b8] sm:$0x1] %v12719_v1  ;;  %7800 = vmatprep.subr.bf16.mxu1 %v8423_v10  ;;  %v9086_v47 = vpack.c.bf16 %v422_v45, %v421_v44  ;;  %v8431_v49 = vld [vmem:[#allocation7 + $0x108] sm:$0xff]   ;;  %v8438_v51 = vld [vmem:[#allocation7] sm:$0xff]  }
  0x80   : > { %360 = vst [vmem:[#allocation2 + $0x2d0] sm:$0x1] %v12719_v1  ;;  %361 = vst [vmem:[#allocation2 + $0x2e8] sm:$0x1] %v12719_v1  ;;  %v423_v52 = vld [vmem:[%s8955_s21 + $0x80] sm:$0xff]  ;;  %v424_v53 = vld [vmem:[%s8955_s21 + $0x88] sm:$0xff] }
  0x81   : > { %363 = vst [vmem:[#allocation2 + $0x29] sm:$0x1] %v12719_v1  ;;  %364 = vst [vmem:[#allocation2 + $0x41] sm:$0x1] %v12719_v1  ;;  %1298 = vmatpush1.bf16.msra.mxu0 %v8422_v11  ;;  %v9096_v56 = vpack.c.bf16 %v424_v53, %v423_v52  ;;  %v425_v58 = vld [vmem:[%s8955_s21 + $0x90] sm:$0xff]  ;;  %v426_v59 = vld [vmem:[%s8955_s21 + $0x98] sm:$0xff] }
  0x82   : > { %365 = vst [vmem:[#allocation2 + $0x59] sm:$0x1] %v12719_v1  ;;  %366 = vst [vmem:[#allocation2 + $0x71] sm:$0x1] %v12719_v1  ;;  %1299 = vmatprep.subr.bf16.mxu0 %v12721_v0  ;;  %7801 = vmatpush3.bf16.msra.mxu1 %v8423_v10  ;;  %v8432_v60 = vld [vmem:[#allocation7 + $0x110] sm:$0xff]   ;;  %v9101_v61 = vpack.c.bf16 %v426_v59, %v425_v58  ;;  %v8440_v63 = vld [vmem:[#allocation7 + $0x8] sm:$0xff]  }
  0x83   : > { %367 = vst [vmem:[#allocation2 + $0x89] sm:$0x1] %v12719_v1  ;;  %368 = vst [vmem:[#allocation2 + $0xa1] sm:$0x1] %v12719_v1  ;;  %7802 = vmatprep.subr.bf16.mxu1 %v8425_v15  ;;  %v427_v3 = vld [vmem:[%s8955_s21 + $0xa0] sm:$0xff]  ;;  %v428_v4 = vld [vmem:[%s8955_s21 + $0xa8] sm:$0xff] }
  0x84   : > { %369 = vst [vmem:[#allocation2 + $0xb9] sm:$0x1] %v12719_v1  ;;  %370 = vst [vmem:[#allocation2 + $0xd1] sm:$0x1] %v12719_v1  ;;  %v429_v5 = vld [vmem:[%s8955_s21 + $0xb0] sm:$0xff]  ;;  %v430_v6 = vld [vmem:[%s8955_s21 + $0xb8] sm:$0xff]  ;;  %v9112_v7 = vpack.c.bf16 %v428_v4, %v427_v3 }
  0x85   : > { %371 = vst [vmem:[#allocation2 + $0xe9] sm:$0x1] %v12719_v1  ;;  %372 = vst [vmem:[#allocation2 + $0x101] sm:$0x1] %v12719_v1  ;;  %1300 = vmatpush1.bf16.msra.mxu0 %v8424_v12  ;;  %v8433_v8 = vld [vmem:[#allocation7 + $0x118] sm:$0xff]   ;;  %v8441_v9 = vld [vmem:[#allocation7 + $0x10] sm:$0xff]   ;;  %v9115_v10 = vpack.c.bf16 %v430_v6, %v429_v5 }
  0x86   : > { %373 = vst [vmem:[#allocation2 + $0x119] sm:$0x1] %v12719_v1  ;;  %374 = vst [vmem:[#allocation2 + $0x131] sm:$0x1] %v12719_v1  ;;  %1301 = vmatprep.subr.bf16.mxu0 %v12721_v0  ;;  %7803 = vmatpush3.bf16.msra.mxu1 %v8425_v15  ;;  %v432_v15 = vld [vmem:[%s8955_s21 + $0xc8] sm:$0xff]  ;;  %vm6734_vm1 = vcmask 1041409  }
  0x87   : > { %375 = vst [vmem:[#allocation2 + $0x149] sm:$0x1] %v12719_v1  ;;  %376 = vst [vmem:[#allocation2 + $0x161] sm:$0x1] %v12719_v1  ;;  %7804 = vmatprep.subr.bf16.mxu1 %v8427_v21  ;;  %vm6820_vm2 = vcmask 1041408   ;;  %vm6816_vm3 = vcmask 15360  }
  0x88   : > { %377 = vst [vmem:[#allocation2 + $0x179] sm:$0x1] %v12719_v1  ;;  %378 = vst [vmem:[#allocation2 + $0x191] sm:$0x1] %v12719_v1  ;;  %s7254_s12 = scalar_lea.sflag [#allocation6], %s8949_s23  ;;  %s8742_s18 = smov [#allocation10]  }
  0x89   : > { %379 = vst [vmem:[#allocation2 + $0x1a9] sm:$0x1] %v12719_v1  ;;  %380 = vst [vmem:[#allocation2 + $0x1c1] sm:$0x1] %v12719_v1  ;;  %1302 = vmatpush1.bf16.msra.mxu0 %v8426_v24  ;;  %s8662_s30 = sshll.u32 %s8742_s18, 4  ;;  %s8663_s30 = int_to_ptr.vmem [resolvable:$false] %s8662_s30 }
  0x8a   : > { %381 = vst [vmem:[#allocation2 + $0x1d9] sm:$0x1] %v12719_v1  ;;  %382 = vst [vmem:[#allocation2 + $0x1f1] sm:$0x1] %v12719_v1  ;;  %1303 = vmatprep.subr.bf16.mxu0 %v12721_v0  ;;  %7805 = vmatpush3.bf16.msra.mxu1 %v8427_v21  ;;  %v433_v21 = vld [vmem:[%s8955_s21 + $0xd0] sm:$0xff]  ;;  %s8664_s9 = scalar_lea.vmem %s8663_s30, 16384 }
  0x8b   : > { %383 = vst [vmem:[#allocation2 + $0x209] sm:$0x1] %v12719_v1  ;;  %384 = vst [vmem:[#allocation2 + $0x221] sm:$0x1] %v12719_v1  ;;  %7806 = vmatprep.subr.bf16.mxu1 %v8429_v27 }
  0x8c   : > { %385 = vst [vmem:[#allocation2 + $0x239] sm:$0x1] %v12719_v1  ;;  %386 = vst [vmem:[#allocation2 + $0x251] sm:$0x1] %v12719_v1 }
  0x8d   : > { %387 = vst [vmem:[#allocation2 + $0x269] sm:$0x1] %v12719_v1  ;;  %388 = vst [vmem:[#allocation2 + $0x281] sm:$0x1] %v12719_v1  ;;  %1304 = vmatpush1.bf16.msra.mxu0 %v8428_v34 }
  0x8e   : > { %389 = vst [vmem:[#allocation2 + $0x299] sm:$0x1] %v12719_v1  ;;  %390 = vst [vmem:[#allocation2 + $0x2b1] sm:$0x1] %v12719_v1  ;;  %1305 = vmatprep.subr.bf16.mxu0 %v12721_v0  ;;  %7807 = vmatpush3.bf16.msra.mxu1 %v8429_v27 }
  0x8f   : > { %391 = vst [vmem:[#allocation2 + $0x2c9] sm:$0x1] %v12719_v1  ;;  %392 = vst [vmem:[#allocation2 + $0x2e1] sm:$0x1] %v12719_v1  ;;  %2011 = vmatprep.subr.bf16.mxu1 %v12721_v0 }
  0x90   : > { %393 = vst [vmem:[#allocation2 + $0x2f9] sm:$0x1] %v12719_v1  ;;  %471 = vst [vmem:[#allocation2 + $0x1] sm:$0xff] %v407_v13  ;;  %v8434_v13 = vld [vmem:[#allocation7 + $0x120] sm:$0xff]   ;;  %v461_v1 = vld [vmem:[%s8955_s21 + $0x1b0] sm:$0xff] }
  0x91   : > { %472 = vst [vmem:[#allocation2 + $0x9] sm:$0xff] %v408_v14  ;;  %473 = vst [vmem:[#allocation2 + $0x19] sm:$0xff] %v9037_v16  ;;  %1306 = vmatpush1.bf16.msra.mxu0 %v8430_v43  ;;  %v431_v14 = vld [vmem:[%s8955_s21 + $0xc0] sm:$0xff] }
  0x92   : > { %474 = vst [vmem:[#allocation2 + $0x21] sm:$0xff] %v9042_v18  ;;  %475 = vst [vmem:[#allocation2 + $0x31] sm:$0xff] %v9048_v19  ;;  %1307 = vmatprep.subr.bf16.mxu0 %v12721_v0  ;;  %v9124_v27 = vpack.c.bf16 %v432_v15, %v431_v14 }
  0x93   : > { %476 = vst [vmem:[#allocation2 + $0x39] sm:$0xff] %v9051_v20  ;;  %477 = vst [vmem:[#allocation2 + $0x49] sm:$0xff] %v9057_v22 }
  0x94   : > { %478 = vst [vmem:[#allocation2 + $0x51] sm:$0xff] %v9060_v23  ;;  %479 = vst [vmem:[#allocation2 + $0x61] sm:$0xff] %v415_v25 }
  0x95   : > { %480 = vst [vmem:[#allocation2 + $0x69] sm:$0xff] %v416_v26  ;;  %12988 = vst [vmem:[#allocation14_spill] sm:$0xff] %v9067_v30  ;;  %1308 = vmatpush1.bf16.msra.mxu0 %v8431_v49  ;;  %v434_v26 = vld [vmem:[%s8955_s21 + $0xd8] sm:$0xff]  ;;  %v439_v49 = vld [vmem:[%s8955_s21 + $0x100] sm:$0xff] }
  0x96   : > { %481 = vst [vmem:[#allocation2 + $0x79] sm:$0xff] %v417_v32  ;;  %482 = vst [vmem:[#allocation2 + $0x81] sm:$0xff] %v418_v33  ;;  %1309 = vmatprep.subr.bf16.mxu0 %v12721_v0  ;;  %v435_v33 = vld [vmem:[%s8955_s21 + $0xe0] sm:$0xff] }
  0x97   : > { %12989 = vst [vmem:[#allocation15_spill] sm:$0xff] %v9073_v35  ;;  %483 = vst [vmem:[#allocation2 + $0x91] sm:$0xff] %v419_v38  ;;  %v437_v38 = vld [vmem:[%s8955_s21 + $0xf0] sm:$0xff] }
  0x98   : > { %v728_v28 = vld [vmem:[#allocation2 + $0x2] sm:$0xff]  ;;  %v729_v29 = vld [vmem:[#allocation2 + $0xa] sm:$0xff]  ;;  %484 = vst [vmem:[#allocation2 + $0x99] sm:$0xff] %v420_v39  ;;  %12990 = vst [vmem:[#allocation16_spill] sm:$0xff] %v9079_v42 }
  0x99   : > { %v9069_v31 = vpack.c.bf16 %v729_v29, %v728_v28  ;;  %v730_v36 = vld [vmem:[#allocation2 + $0x1a] sm:$0xff]  ;;  %v731_v37 = vld [vmem:[#allocation2 + $0x22] sm:$0xff]  ;;  %485 = vst [vmem:[#allocation2 + $0xa9] sm:$0xff] %v421_v44  ;;  %486 = vst [vmem:[#allocation2 + $0xb1] sm:$0xff] %v422_v45  ;;  %1310 = vmatpush1.bf16.msra.mxu0 %v8432_v60  ;;  %v9127_v29 = vpack.c.bf16 %v434_v26, %v433_v21 }
  0x9a   : > { %v732_v40 = vld [vmem:[#allocation2 + $0x32] sm:$0xff]  ;;  %v733_v41 = vld [vmem:[#allocation2 + $0x3a] sm:$0xff]  ;;  %v9084_v46 = vpack.c.bf16 %v731_v37, %v730_v36  ;;  %12992 = vst [vmem:[#allocation18_spill] sm:$0xff] %v9086_v47  ;;  %487 = vst [vmem:[#allocation2 + $0xc1] sm:$0xff] %v423_v52  ;;  %1311 = vmatprep.subr.bf16.mxu0 %v12721_v0 }
  0x9b   : > { %7808 = vmatprep.mubr.bf16.mxu1 %v9069_v31  ;;  %v9088_v48 = vpack.c.bf16 %v733_v41, %v732_v40  ;;  %v734_v50 = vld [vmem:[#allocation2 + $0x4a] sm:$0xff]  ;;  %v735_v54 = vld [vmem:[#allocation2 + $0x52] sm:$0xff]  ;;  %488 = vst [vmem:[#allocation2 + $0xc9] sm:$0xff] %v424_v53  ;;  %12994 = vst [vmem:[#allocation20_spill] sm:$0xff] %v9096_v56 }
  0x9c   : > { %12991 = vst [vmem:[#allocation17_spill] sm:$0xff] %v9084_v46  ;;  %7809 = vmatmul.mubr.bf16.vlgmr.msra.gmra.mrb[0].mxu1 %v9084_v46  ;;  %v736_v55 = vld [vmem:[#allocation2 + $0x62] sm:$0xff]  ;;  %v737_v57 = vld [vmem:[#allocation2 + $0x6a] sm:$0xff]  ;;  %489 = vst [vmem:[#allocation2 + $0xd9] sm:$0xff] %v425_v58  ;;  %v9104_v62 = vpack.c.bf16 %v735_v54, %v734_v50 }
  0x9d   : > { %12993 = vst [vmem:[#allocation19_spill] sm:$0xff] %v9088_v48  ;;  %7812 = vmatprep.mubr.bf16.mxu1 %v9088_v48  ;;  %2012 = vmatpush1.bf16.msra.mxu1 %v8438_v51  ;;  %490 = vst [vmem:[#allocation2 + $0xe1] sm:$0xff] %v426_v59  ;;  %v9106_v2 = vpack.c.bf16 %v737_v57, %v736_v55  ;;  %v738_v11 = vld [vmem:[#allocation2 + $0x7a] sm:$0xff]  ;;  %v739_v12 = vld [vmem:[#allocation2 + $0x82] sm:$0xff] }
  0x9e   : > { %2013 = vmatprep.subr.bf16.mxu1 %v12721_v0  ;;  %12995 = vst [vmem:[#allocation21_spill] sm:$0xff] %v9101_v61  ;;  %12996 = vst [vmem:[#allocation22_spill] sm:$0xff] %v9104_v62  ;;  %1312 = vmatpush1.bf16.msra.mxu0 %v8433_v8  ;;  %v8442_v28 = vld [vmem:[#allocation7 + $0x18] sm:$0xff]   ;;  %v9130_v32 = vpack.c.bf16 %v739_v12, %v738_v11  ;;  %v436_v36 = vld [vmem:[%s8955_s21 + $0xe8] sm:$0xff] }
  0x9f   : > { %491 = vst [vmem:[#allocation2 + $0xf1] sm:$0xff] %v427_v3  ;;  %492 = vst [vmem:[#allocation2 + $0xf9] sm:$0xff] %v428_v4  ;;  %v740_v24 = vld [vmem:[#allocation2 + $0x92] sm:$0xff]  ;;  %v741_v25 = vld [vmem:[#allocation2 + $0x9a] sm:$0xff]  ;;  %1313 = vmatprep.subr.bf16.mxu0 %v12721_v0  ;;  %v9137_v39 = vpack.c.bf16 %v436_v36, %v435_v33 }
  0xa0   : > { %12997 = vst [vmem:[#allocation23_spill] sm:$0xff] %v9112_v7  ;;  %493 = vst [vmem:[#allocation2 + $0x109] sm:$0xff] %v429_v5  ;;  %v9133_v34 = vpack.c.bf16 %v741_v25, %v740_v24  ;;  %v8435_v37 = vld [vmem:[#allocation7 + $0x128] sm:$0xff]   ;;  %v438_v40 = vld [vmem:[%s8955_s21 + $0xf8] sm:$0xff]  ;;  %v9185_v25 = vpack.c.bf16 %v9042_v18, %v9037_v16 }
  0xa1   : > { %2014 = vmatpush1.bf16.msra.mxu1 %v8440_v63  ;;  %494 = vst [vmem:[#allocation2 + $0x111] sm:$0xff] %v430_v6  ;;  %12998 = vst [vmem:[#allocation24_spill] sm:$0xff] %v9115_v10  ;;  %v8443_v41 = vld [vmem:[#allocation7 + $0x20] sm:$0xff]   ;;  %v9143_v43 = vpack.c.bf16 %v438_v40, %v437_v38  ;;  %v742_v44 = vld [vmem:[#allocation2 + $0xaa] sm:$0xff] }
  0xa2   : > { %2015 = vmatprep.subr.bf16.mxu1 %v12721_v0  ;;  %495 = vst [vmem:[#allocation2 + $0x121] sm:$0xff] %v431_v14  ;;  %496 = vst [vmem:[#allocation2 + $0x129] sm:$0xff] %v432_v15  ;;  %1314 = vmatpush1.bf16.msra.mxu0 %v8434_v13  ;;  %v743_v45 = vld [vmem:[#allocation2 + $0xb2] sm:$0xff]  ;;  %v744_v50 = vld [vmem:[#allocation2 + $0xc2] sm:$0xff] }
  0xa3   : > { %497 = vst [vmem:[#allocation2 + $0x139] sm:$0xff] %v433_v21  ;;  %12999 = vst [vmem:[#allocation25_spill] sm:$0xff] %v9124_v27  ;;  %1315 = vmatprep.subr.bf16.mxu0 %v12721_v0  ;;  %v745_v51 = vld [vmem:[#allocation2 + $0xca] sm:$0xff]  ;;  %v9150_v54 = vpack.c.bf16 %v743_v45, %v742_v44  ;;  %v442_v57 = vld [vmem:[%s8955_s21 + $0x118] sm:$0xff] }
  0xa4   : > { %7813 = vmatmul.mubr.bf16.gmra.mrb[4].mxu1 %v9104_v62  ;;  %498 = vst [vmem:[#allocation2 + $0x141] sm:$0xff] %v434_v26  ;;  %13000 = vst [vmem:[#allocation26_spill] sm:$0xff] %v9127_v29  ;;  %v440_v52 = vld [vmem:[%s8955_s21 + $0x108] sm:$0xff]  ;;  %v8436_v53 = vld [vmem:[#allocation7 + $0x130] sm:$0xff]   ;;  %v9156_v60 = vpack.c.bf16 %v745_v51, %v744_v50 }
  0xa5   : > { %7816 = vmatprep.mubr.bf16.mxu1 %v9106_v2  ;;  %2016 = vmatpush1.bf16.msra.mxu1 %v8441_v9  ;;  %499 = vst [vmem:[#allocation2 + $0x151] sm:$0xff] %v435_v33  ;;  %500 = vst [vmem:[#allocation2 + $0x159] sm:$0xff] %v436_v36  ;;  %v9153_v55 = vld [vmem:[%s8955_s21 + $0x110] sm:$0xff]  ;;  %v8437_v58 = vld [vmem:[#allocation7 + $0x138] sm:$0xff]   ;;  %v9174_v13 = vpack.c.bf16 %v440_v52, %v439_v49 }
  0xa6   : > { %2017 = vmatprep.subr.bf16.mxu1 %v12721_v0  ;;  %13001 = vst [vmem:[#allocation27_spill] sm:$0xff] %v9137_v39  ;;  %501 = vst [vmem:[#allocation2 + $0x169] sm:$0xff] %v437_v38  ;;  %1316 = vmatpush1.bf16.msra.mxu0 %v8435_v37  ;;  %v600_v59 = vld [vmem:[#allocation2] sm:$0xff]  ;;  %v601_v63 = vld [vmem:[#allocation2 + $0x8] sm:$0xff] }
  0xa7   : > { %502 = vst [vmem:[#allocation2 + $0x171] sm:$0xff] %v438_v40  ;;  %13002 = vst [vmem:[#allocation28_spill] sm:$0xff] %v9143_v43  ;;  %1317 = vmatprep.subr.bf16.mxu0 %v12721_v0  ;;  %v8439_v3 = vld [vmem:[#allocation7 + $0x80] sm:$0xff]   ;;  %v8445_v4 = vld [vmem:[#allocation7 + $0x28] sm:$0xff]   ;;  %v9180_v15 = vpack.c.bf16 %v601_v63, %v600_v59 }
  0xa8   : > { %503 = vst [vmem:[#allocation2 + $0x181] sm:$0xff] %v439_v49  ;;  %504 = vst [vmem:[#allocation2 + $0x189] sm:$0xff] %v440_v52  ;;  %v746_v5 = vld [vmem:[#allocation2 + $0xda] sm:$0xff]  ;;  %v747_v6 = vld [vmem:[#allocation2 + $0xe2] sm:$0xff]  ;;  %v9224_v52 = vpack.c.bf16 %v442_v57, %v9153_v55 }
  0xa9   : > { %2018 = vmatpush1.bf16.msra.mxu1 %v8442_v28  ;;  %13003 = vst [vmem:[#allocation29_spill] sm:$0xff] %v9156_v60  ;;  %505 = vst [vmem:[#allocation2 + $0x199] sm:$0xff] %v9153_v55  ;;  %v9160_v8 = vld [vmem:[%s8955_s21 + $0x120] sm:$0xff]  ;;  %v9165_v9 = vld [vmem:[%s8955_s21 + $0x128] sm:$0xff]  ;;  %v9193_v33 = vpack.c.bf16 %v747_v6, %v746_v5  ;;  %v9236_v55 = vpack.c.bf16 %v9051_v20, %v9048_v19 }
  0xaa   : > { %2019 = vmatprep.subr.bf16.mxu1 %v12721_v0  ;;  %506 = vst [vmem:[#allocation2 + $0x1a1] sm:$0xff] %v442_v57  ;;  %1318 = vmatpush1.bf16.msra.mxu0 %v8436_v53  ;;  %507 = vst [vmem:[#allocation2 + $0x1b1] sm:$0xff] %v9160_v8  ;;  %v9169_v11 = vld [vmem:[%s8955_s21 + $0x130] sm:$0xff]  ;;  %v9172_v12 = vld [vmem:[%s8955_s21 + $0x138] sm:$0xff] }
  0xab   : > { %1319 = vmatprep.subr.bf16.mxu0 %v12721_v0  ;;  %508 = vst [vmem:[#allocation2 + $0x1b9] sm:$0xff] %v9165_v9  ;;  %509 = vst [vmem:[#allocation2 + $0x1c9] sm:$0xff] %v9169_v11  ;;  %v8446_v14 = vld [vmem:[#allocation7 + $0x30] sm:$0xff]   ;;  %v749_v24 = vld [vmem:[#allocation2 + $0xfa] sm:$0xff] }
  0xac   : > { %7817 = vmatmul.mubr.bf16.gmra.mrb[8].mxu1 %v9130_v32  ;;  %510 = vst [vmem:[#allocation2 + $0x1d1] sm:$0xff] %v9172_v12  ;;  %v748_v21 = vld [vmem:[#allocation2 + $0xf2] sm:$0xff]  ;;  %13004 = vst [vmem:[#allocation30_spill] sm:$0xff] %v9185_v25  ;;  %v9188_v26 = vld [vmem:[%s8955_s21 + $0x140] sm:$0xff] }
  0xad   : > { %7820 = vmatprep.mubr.bf16.mxu1 %v9133_v34  ;;  %2020 = vmatpush1.bf16.msra.mxu1 %v8443_v41  ;;  %v9191_v28 = vld [vmem:[%s8955_s21 + $0x148] sm:$0xff]  ;;  %13005 = vst [vmem:[#allocation31_spill] sm:$0xff] %v9193_v33  ;;  %511 = vst [vmem:[#allocation2 + $0x1e1] sm:$0xff] %v9188_v26  ;;  %v9198_v37 = vld [vmem:[%s8955_s21 + $0x150] sm:$0xff]  ;;  %v9200_v38 = vpack.c.bf16 %v749_v24, %v748_v21 }
  0xae   : > { %2021 = vmatprep.subr.bf16.mxu1 %v12721_v0  ;;  %1320 = vmatpush1.bf16.msra.mxu0 %v8437_v58  ;;  %v8444_v36 = vld [vmem:[#allocation7 + $0x88] sm:$0xff]   ;;  %512 = vst [vmem:[#allocation2 + $0x1e9] sm:$0xff] %v9191_v28  ;;  %v9203_v16 = vld [vmem:[%s8955_s21 + $0x158] sm:$0xff]  ;;  %513 = vst [vmem:[#allocation2 + $0x1f9] sm:$0xff] %v9198_v37 }
  0xaf   : > { %7872 = vmatprep.subr.bf16.mxu0 %v8439_v3  ;;  %13006 = vst [vmem:[#allocation32_spill] sm:$0xff] %v9200_v38  ;;  %v602_v18 = vld [vmem:[#allocation2 + $0x18] sm:$0xff]  ;;  %v603_v40 = vld [vmem:[#allocation2 + $0x20] sm:$0xff]  ;;  %514 = vst [vmem:[#allocation2 + $0x201] sm:$0xff] %v9203_v16 }
  0xb0   : > { %v8447_v41 = vld [vmem:[#allocation7 + $0x38] sm:$0xff]   ;;  %v9211_v44 = vld [vmem:[%s8955_s21 + $0x160] sm:$0xff]  ;;  %v9214_v45 = vld [vmem:[%s8955_s21 + $0x168] sm:$0xff]  ;;  %13007 = vst [vmem:[#allocation33_spill] sm:$0xff] %v9224_v52  ;;  %v9230_v59 = vpack.c.bf16 %v603_v40, %v602_v18  ;;  %v9264_v40 = vpack.c.bf16 %v9165_v9, %v9160_v8  ;;  %v13015_v9 = vmov 0  }
  0xb1   : > { %2022 = vmatpush1.bf16.msra.mxu1 %v8445_v4  ;;  %1322 = vmatmul.mubr.bf16.vlgmr.msra.gmra.mrb[0].mxu0 %v9180_v15  ;;  %v9217_v49 = vld [vmem:[%s8955_s21 + $0x170] sm:$0xff]  ;;  %515 = vst [vmem:[#allocation2 + $0x211] sm:$0xff] %v9211_v44  ;;  %516 = vst [vmem:[#allocation2 + $0x219] sm:$0xff] %v9214_v45  ;;  %v752_v53 = vld [vmem:[#allocation2 + $0x122] sm:$0xff] }
  0xb2   : > { %2023 = vmatprep.subr.bf16.mxu1 %v12721_v0  ;;  %7873 = vmatpush3.bf16.msra.mxu0 %v8439_v3  ;;  %v750_v50 = vld [vmem:[#allocation2 + $0x10a] sm:$0xff]  ;;  %v751_v51 = vld [vmem:[#allocation2 + $0x112] sm:$0xff]  ;;  %517 = vst [vmem:[#allocation2 + $0x229] sm:$0xff] %v9217_v49  ;;  %13008 = vst [vmem:[#allocation34_spill] sm:$0xff] %v9230_v59 }
  0xb3   : > { %1329 = vmatprep.mubr.bf16.mxu0 %v9185_v25  ;;  %7874 = vmatprep.subr.bf16.mxu0 %v8444_v36  ;;  %v9228_v58 = vld [vmem:[%s8955_s21 + $0x178] sm:$0xff]  ;;  %v753_v63 = vld [vmem:[#allocation2 + $0x12a] sm:$0xff]  ;;  %v8448_v3 = vld [vmem:[#allocation7 + $0x40] sm:$0xff]   ;;  %13009 = vst [vmem:[#allocation35_spill] sm:$0xff] %v9236_v55  ;;  %v9238_v57 = vpack.c.bf16 %v751_v51, %v750_v50 }
  0xb4   : > { %7821 = vmatmul.mubr.bf16.gmra.mrb[12].mxu1 %v9150_v54  ;;  %518 = vst [vmem:[#allocation2 + $0x231] sm:$0xff] %v9228_v58  ;;  %v9241_v4 = vld [vmem:[%s8955_s21 + $0x180] sm:$0xff]  ;;  %v9244_v5 = vld [vmem:[%s8955_s21 + $0x188] sm:$0xff]  ;;  %v9246_v6 = vpack.c.bf16 %v753_v63, %v752_v53  ;;  %v9252_v21 = vld [vmem:[%s8955_s21 + $0x190] sm:$0xff] }
  0xb5   : > { %7824 = vmatprep.mubr.bf16.mxu1 %v9156_v60  ;;  %2024 = vmatpush1.bf16.msra.mxu1 %v8446_v14  ;;  %13010 = vst [vmem:[#allocation36_spill] sm:$0xff] %v9238_v57  ;;  %519 = vst [vmem:[#allocation2 + $0x241] sm:$0xff] %v9241_v4  ;;  %v8449_v14 = vld [vmem:[#allocation7 + $0x90] sm:$0xff]   ;;  %v9255_v19 = vld [vmem:[%s8955_s21 + $0x198] sm:$0xff] }
  0xb6   : > { %2025 = vmatprep.subr.bf16.mxu1 %v12721_v0  ;;  %7875 = vmatpush3.bf16.msra.mxu0 %v8444_v36  ;;  %13011 = vst [vmem:[#allocation37_spill] sm:$0xff] %v9246_v6  ;;  %520 = vst [vmem:[#allocation2 + $0x249] sm:$0xff] %v9244_v5  ;;  %v604_v20 = vld [vmem:[#allocation2 + $0x30] sm:$0xff]  ;;  %v605_v24 = vld [vmem:[#allocation2 + $0x38] sm:$0xff] }
  0xb7   : > { %521 = vst [vmem:[#allocation2 + $0x259] sm:$0xff] %v9252_v21  ;;  %522 = vst [vmem:[#allocation2 + $0x261] sm:$0xff] %v9255_v19  ;;  %v754_v36 = vld [vmem:[#allocation2 + $0x13a] sm:$0xff]  ;;  %7876 = vmatprep.subr.bf16.mxu0 %v8449_v14  ;;  %v8450_v18 = vld [vmem:[#allocation7 + $0x48] sm:$0xff]   ;;  %v9267_v53 = vpack.c.bf16 %v605_v24, %v604_v20 }
  0xb8   : > { %13012 = vst [vmem:[#allocation38_spill] sm:$0xff] %v9264_v40  ;;  %v756_v50 = vld [vmem:[#allocation2 + $0x152] sm:$0xff]  ;;  %v757_v51 = vld [vmem:[#allocation2 + $0x15a] sm:$0xff]  ;;  %525 = vst [vmem:[#allocation2 + $0x289] sm:$0xff] %v461_v1 }
  0xb9   : > { %2026 = vmatpush1.bf16.msra.mxu1 %v8447_v41  ;;  %1330 = vmatmul.mubr.bf16.gmra.mrb[4].mxu0 %v9230_v59  ;;  %v755_v41 = vld [vmem:[#allocation2 + $0x142] sm:$0xff]  ;;  %13013 = vst [vmem:[#allocation39_spill] sm:$0xff] %v9267_v53  ;;  %v462_v8 = vld [vmem:[%s8955_s21 + $0x1b8] sm:$0xff]  ;;  %v8451_v20 = vld [vmem:[#allocation7 + $0x50] sm:$0xff]   ;;  %v9286_v24 = vpack.c.bf16 %v757_v51, %v756_v50 }
  0xba   : > { %2027 = vmatprep.subr.bf16.mxu1 %v12721_v0  ;;  %1337 = vmatprep.mubr.bf16.mxu0 %v9236_v55  ;;  %v9270_v63 = vld [vmem:[%s8955_s21 + $0x1a0] sm:$0xff]  ;;  %526 = vst [vmem:[#allocation2 + $0x291] sm:$0xff] %v462_v8  ;;  %v758_v1 = vld [vmem:[#allocation2 + $0x16a] sm:$0xff]  ;;  %v466_v51 = vld [vmem:[%s8955_s21 + $0x1d8] sm:$0xff]  ;;  %v9298_v8 = vpack.c.bf16 %v9172_v12, %v9169_v11 }
  0xbb   : > { %7877 = vmatpush3.bf16.msra.mxu0 %v8449_v14  ;;  %523 = vst [vmem:[#allocation2 + $0x271] sm:$0xff] %v9270_v63  ;;  %v9284_v14 = vpack.c.bf16 %v755_v41, %v754_v36  ;;  %13017 = vst [vmem:[#allocation42_spill] sm:$0xff] %v9286_v24  ;;  %v463_v36 = vld [vmem:[%s8955_s21 + $0x1c0] sm:$0xff]  ;;  %v464_v41 = vld [vmem:[%s8955_s21 + $0x1c8] sm:$0xff] }
  0xbc   : > { %7825 = vmatmul.mubr.bf16.gmra.mrb[16].mxu1 %v9193_v33  ;;  %527 = vst [vmem:[#allocation2 + $0x2a1] sm:$0xff] %v463_v36  ;;  %528 = vst [vmem:[#allocation2 + $0x2a9] sm:$0xff] %v464_v41  ;;  %v465_v50 = vld [vmem:[%s8955_s21 + $0x1d0] sm:$0xff]  ;;  %v8453_v36 = vld [vmem:[#allocation7 + $0x60] sm:$0xff]  }
  0xbd   : > { %7828 = vmatprep.mubr.bf16.mxu1 %v9200_v38  ;;  %2028 = vmatpush1.bf16.msra.mxu1 %v8448_v3  ;;  %v9273_v3 = vld [vmem:[%s8955_s21 + $0x1a8] sm:$0xff]  ;;  %13016 = vst [vmem:[#allocation41_spill] sm:$0xff] %v9284_v14  ;;  %13018 = vst [vmem:[#allocation43_spill] sm:$0xff] %v9298_v8  ;;  %v467_v38 = vld [vmem:[%s8955_s21 + $0x1e0] sm:$0xff] }
  0xbe   : > { %2029 = vmatprep.subr.bf16.mxu1 %v12721_v0  ;;  %v9278_v0 = vpack.c.bf16 %v9060_v23, %v9057_v22  ;;  %524 = vst [vmem:[#allocation2 + $0x279] sm:$0xff] %v9273_v3  ;;  %v606_v22 = vld [vmem:[#allocation2 + $0x48] sm:$0xff]  ;;  %v607_v23 = vld [vmem:[#allocation2 + $0x50] sm:$0xff]  ;;  %529 = vst [vmem:[#allocation2 + $0x2b9] sm:$0xff] %v465_v50 }
  0xbf   : > { %530 = vst [vmem:[#allocation2 + $0x2c1] sm:$0xff] %v466_v51  ;;  %v468_v11 = vld [vmem:[%s8955_s21 + $0x1e8] sm:$0xff]  ;;  %531 = vst [vmem:[#allocation2 + $0x2d1] sm:$0xff] %v467_v38  ;;  %v469_v12 = vld [vmem:[%s8955_s21 + $0x1f0] sm:$0xff]  ;;  %v9318_v38 = vpack.c.bf16 %v9191_v28, %v9188_v26 }
  0xc0   : > { %13014 = vst [vmem:[#allocation40_spill] sm:$0xff] %v9278_v0  ;;  %v470_v60 = vld [vmem:[%s8955_s21 + $0x1f8] sm:$0xff]  ;;  %v8454_v50 = vld [vmem:[#allocation7 + $0x68] sm:$0xff]   ;;  %532 = vst [vmem:[#allocation2 + $0x2d9] sm:$0xff] %v468_v11 }
  0xc1   : > { %2030 = vmatpush1.bf16.msra.mxu1 %v8450_v18  ;;  %1338 = vmatmul.mubr.bf16.gmra.mrb[8].mxu0 %v9267_v53  ;;  %v8452_v18 = vld [vmem:[#allocation7 + $0x58] sm:$0xff]   ;;  %533 = vst [vmem:[#allocation2 + $0x2e9] sm:$0xff] %v469_v12  ;;  %534 = vst [vmem:[#allocation2 + $0x2f1] sm:$0xff] %v470_v60  ;;  %v8455_v51 = vld [vmem:[#allocation7 + $0x70] sm:$0xff]  }
  0xc2   : > { %2031 = vmatprep.subr.bf16.mxu1 %v13015_v9  ;;  %1345 = vmatprep.mubr.bf16.mxu0 %v9278_v0  ;;  %13022 = vst [vmem:[#allocation47_spill] sm:$0xff] %v9318_v38  ;;  %v8456_v26 = vld [vmem:[#allocation7 + $0x78] sm:$0xff]   ;;  %v611_v12 = vld [vmem:[#allocation2 + $0x80] sm:$0xff] }
  0xc3   : > { %v610_v28 = vld [vmem:[#allocation2 + $0x78] sm:$0xff] }
  0xc4   : > { %7829 = vmatmul.mubr.bf16.gmra.mrb[20].mxu1 %v9238_v57  ;;  %v9301_v57 = vpack.c.bf16 %v607_v23, %v606_v22  ;;  %v608_v22 = vld [vmem:[#allocation2 + $0x60] sm:$0xff]  ;;  %v609_v23 = vld [vmem:[#allocation2 + $0x68] sm:$0xff] }
  0xc5   : > { %7832 = vmatprep.mubr.bf16.mxu1 %v9246_v6  ;;  %2032 = vmatpush1.bf16.msra.mxu1 %v8451_v20  ;;  %v759_v6 = vld [vmem:[#allocation2 + $0x172] sm:$0xff]  ;;  %v760_v20 = vld [vmem:[#allocation2 + $0x182] sm:$0xff]  ;;  %v9321_v60 = vpack.c.bf16 %v609_v23, %v608_v22  ;;  %v9334_v22 = vpack.c.bf16 %v9203_v16, %v9198_v37  ;;  %v766_v23 = vld [vmem:[#allocation2 + $0x1ca] sm:$0xff] }
  0xc6   : > { %2033 = vmatprep.subr.bf16.mxu1 %v13015_v9  ;;  %13019 = vst [vmem:[#allocation44_spill] sm:$0xff] %v9301_v57  ;;  %v9304_v41 = vpack.c.bf16 %v759_v6, %v758_v1  ;;  %v762_v6 = vld [vmem:[#allocation2 + $0x19a] sm:$0xff]  ;;  %v8462_v16 = vld [vmem:[#allocation7 + $0xa8] sm:$0xff]  }
  0xc7   : > { %v765_v1 = vld [vmem:[#allocation2 + $0x1ba] sm:$0xff]  ;;  %13023 = vst [vmem:[#allocation48_spill] sm:$0xff] %v9321_v60  ;;  %13026 = vst [vmem:[#allocation51_spill] sm:$0xff] %v9334_v22 }
  0xc8   : > { %13020 = vst [vmem:[#allocation45_spill] sm:$0xff] %v9304_v41  ;;  %v613_v37 = vld [vmem:[#allocation2 + $0x98] sm:$0xff] }
  0xc9   : > { %2034 = vmatpush1.bf16.msra.mxu1 %v8452_v18  ;;  %1346 = vmatmul.mubr.bf16.gmra.mrb[12].mxu0 %v9301_v57  ;;  %v764_v18 = vld [vmem:[#allocation2 + $0x1b2] sm:$0xff] }
  0xca   : > { %2035 = vmatprep.subr.bf16.mxu1 %v13015_v9  ;;  %1353 = vmatprep.mubr.bf16.mxu0 %v9067_v30  ;;  %v9326_v11 = vpack.c.bf16 %v765_v1, %v764_v18  ;;  %v768_v18 = vld [vmem:[#allocation2 + $0x1e2] sm:$0xff]  ;;  %v769_v1 = vld [vmem:[#allocation2 + $0x1ea] sm:$0xff] }
  0xcc   : > { %7833 = vmatmul.mubr.bf16.gmra.mrb[24].mxu1 %v9284_v14  ;;  %v761_v14 = vld [vmem:[#allocation2 + $0x18a] sm:$0xff]  ;;  %13025 = vst [vmem:[#allocation50_spill] sm:$0xff] %v9326_v11 }
  0xcd   : > { %7836 = vmatprep.mubr.bf16.mxu1 %v9286_v24  ;;  %v9307_v33 = vpack.c.bf16 %v761_v14, %v760_v20  ;;  %2036 = vmatpush1.bf16.msra.mxu1 %v8453_v36  ;;  %v763_v14 = vld [vmem:[#allocation2 + $0x1a2] sm:$0xff]  ;;  %v8457_v20 = vld [vmem:[#allocation7 + $0x98] sm:$0xff]  }
  0xce   : > { %2037 = vmatprep.subr.bf16.mxu1 %v13015_v9  ;;  %v9324_v36 = vpack.c.bf16 %v763_v14, %v762_v6  ;;  %7878 = vmatprep.subr.bf16.mxu0 %v8457_v20  ;;  %v767_v6 = vld [vmem:[#allocation2 + $0x1d2] sm:$0xff]  ;;  %v9337_v14 = vpack.c.bf16 %v611_v12, %v610_v28  ;;  %v770_v28 = vld [vmem:[#allocation2 + $0x1fa] sm:$0xff]  ;;  %v771_v12 = vld [vmem:[#allocation2 + $0x202] sm:$0xff] }
  0xcf   : > { %13021 = vst [vmem:[#allocation46_spill] sm:$0xff] %v9307_v33  ;;  %7879 = vmatpush3.bf16.msra.mxu0 %v8457_v20  ;;  %v612_v20 = vld [vmem:[#allocation2 + $0x90] sm:$0xff] }
  0xd0   : > { %13024 = vst [vmem:[#allocation49_spill] sm:$0xff] %v9324_v36  ;;  %13027 = vst [vmem:[#allocation52_spill] sm:$0xff] %v9337_v14 }
  0xd1   : > { %2038 = vmatpush1.bf16.msra.mxu1 %v8454_v50  ;;  %1354 = vmatmul.mubr.bf16.gmra.mrb[16].mxu0 %v9321_v60  ;;  %v8459_v50 = vld [vmem:[#allocation7 + $0xa0] sm:$0xff]  }
  0xd2   : > { %2039 = vmatprep.subr.bf16.mxu1 %v13015_v9  ;;  %1361 = vmatprep.mubr.bf16.mxu0 %v9073_v35 }
  0xd3   : > { %7880 = vmatprep.subr.bf16.mxu0 %v8459_v50 }
  0xd4   : > { %7837 = vmatmul.mubr.bf16.gmra.mrb[28].mxu1 %v9304_v41  ;;  %7881 = vmatpush3.bf16.msra.mxu0 %v8459_v50  ;;  %v9342_v41 = vpack.c.bf16 %v769_v1, %v768_v18  ;;  %v9349_v50 = vpack.c.bf16 %v9214_v45, %v9211_v44  ;;  %v614_v18 = vld [vmem:[#allocation2 + $0xa8] sm:$0xff]  ;;  %v615_v1 = vld [vmem:[#allocation2 + $0xb0] sm:$0xff] }
  0xd5   : > { %7840 = vmatprep.mubr.bf16.mxu1 %v9307_v33  ;;  %2040 = vmatpush1.bf16.msra.mxu1 %v8455_v51  ;;  %v9340_v51 = vpack.c.bf16 %v767_v6, %v766_v23  ;;  %v9352_v23 = vpack.c.bf16 %v613_v37, %v612_v20  ;;  %v9354_v6 = vpack.c.bf16 %v771_v12, %v770_v28  ;;  %v775_v33 = vld [vmem:[#allocation2 + $0x232] sm:$0xff]  ;;  %v776_v44 = vld [vmem:[#allocation2 + $0x242] sm:$0xff]  ;;  %v777_v45 = vld [vmem:[#allocation2 + $0x24a] sm:$0xff] }
  0xd6   : > { %2041 = vmatprep.subr.bf16.mxu1 %v13015_v9  ;;  %13029 = vst [vmem:[#allocation54_spill] sm:$0xff] %v9342_v41  ;;  %7882 = vmatprep.subr.bf16.mxu0 %v8462_v16  ;;  %13030 = vst [vmem:[#allocation55_spill] sm:$0xff] %v9349_v50  ;;  %v9363_v20 = vpack.c.bf16 %v9228_v58, %v9217_v49  ;;  %v9366_v37 = vpack.c.bf16 %v615_v1, %v614_v18  ;;  %v617_v28 = vld [vmem:[#allocation2 + $0xc8] sm:$0xff]  ;;  %v780_v49 = vld [vmem:[#allocation2 + $0x272] sm:$0xff] }
  0xd7   : > { %13028 = vst [vmem:[#allocation53_spill] sm:$0xff] %v9340_v51  ;;  %13031 = vst [vmem:[#allocation56_spill] sm:$0xff] %v9352_v23  ;;  %v9370_v12 = vpack.c.bf16 %v777_v45, %v776_v44  ;;  %v781_v58 = vld [vmem:[#allocation2 + $0x27a] sm:$0xff]  ;;  %v9377_v18 = vpack.c.bf16 %v9244_v5, %v9241_v4  ;;  %v784_v4 = vld [vmem:[#allocation2 + $0x2a2] sm:$0xff] }
  0xd8   : > { %7883 = vmatpush3.bf16.msra.mxu0 %v8462_v16  ;;  %13032 = vst [vmem:[#allocation57_spill] sm:$0xff] %v9354_v6  ;;  %13034 = vst [vmem:[#allocation59_spill] sm:$0xff] %v9363_v20  ;;  %v616_v16 = vld [vmem:[#allocation2 + $0xc0] sm:$0xff]  ;;  %v618_v1 = vld [vmem:[#allocation2 + $0xd8] sm:$0xff]  ;;  %v9384_v45 = vpack.c.bf16 %v781_v58, %v780_v49 }
  0xd9   : > { %2042 = vmatpush1.bf16.msra.mxu1 %v8456_v26  ;;  %1362 = vmatmul.mubr.bf16.gmra.mrb[20].mxu0 %v9337_v14  ;;  %v772_v26 = vld [vmem:[#allocation2 + $0x212] sm:$0xff]  ;;  %13035 = vst [vmem:[#allocation60_spill] sm:$0xff] %v9366_v37  ;;  %13037 = vst [vmem:[#allocation62_spill] sm:$0xff] %v9370_v12  ;;  %v619_v44 = vld [vmem:[#allocation2 + $0xe0] sm:$0xff] }
  0xda   : > { %2879 = vmatprep.subr.bf16.mxu1 %v13015_v9  ;;  %1369 = vmatprep.mubr.bf16.mxu0 %v9079_v42  ;;  %13038 = vst [vmem:[#allocation63_spill] sm:$0xff] %v9377_v18  ;;  %13041 = vst [vmem:[#allocation66_spill] sm:$0xff] %v9384_v45  ;;  %v785_v5 = vld [vmem:[#allocation2 + $0x2aa] sm:$0xff]  ;;  %v621_v49 = vld [vmem:[#allocation2 + $0xf8] sm:$0xff] }
  0xdb   : > { %v9398_v58 = vpack.c.bf16 %v785_v5, %v784_v4  ;;  %v790_v5 = vld [vmem:[#allocation2 + $0x2ea] sm:$0xff] }
  0xdc   : > { %7841 = vmatmul.mubr.bf16.gmra.mrb[32].mxu1 %v9324_v36 }
  0xdd   : > { %7844 = vmatprep.mubr.bf16.mxu1 %v9326_v11  ;;  %v773_v11 = vld [vmem:[#allocation2 + $0x21a] sm:$0xff]  ;;  %13045 = vst [vmem:[#allocation70_spill] sm:$0xff] %v9398_v58 }
  0xde   : > { %v9356_v36 = vpack.c.bf16 %v773_v11, %v772_v26  ;;  %v778_v26 = vld [vmem:[#allocation2 + $0x25a] sm:$0xff] }
  0xe0   : > { %13033 = vst [vmem:[#allocation58_spill] sm:$0xff] %v9356_v36 }
  0xe1   : > { %1370 = vmatmul.mubr.bf16.gmra.mrb[24].mxu0 %v9352_v23 }
  0xe2   : > { %1377 = vmatprep.mubr.bf16.mxu0 %v9086_v47 }
  0xe4   : > { %7845 = vmatmul.mubr.bf16.gmra.mrb[36].mxu1 %v9340_v51  ;;  %v774_v51 = vld [vmem:[#allocation2 + $0x22a] sm:$0xff] }
  0xe5   : > { %7848 = vmatprep.mubr.bf16.mxu1 %v9342_v41  ;;  %v9368_v11 = vpack.c.bf16 %v775_v33, %v774_v51  ;;  %v9380_v33 = vpack.c.bf16 %v617_v28, %v616_v16  ;;  %v783_v41 = vld [vmem:[#allocation2 + $0x292] sm:$0xff]  ;;  %v9394_v16 = vpack.c.bf16 %v619_v44, %v618_v1  ;;  %v622_v1 = vld [vmem:[#allocation2 + $0x108] sm:$0xff] }
  0xe6   : > { %v623_v44 = vld [vmem:[#allocation2 + $0x110] sm:$0xff] }
  0xe7   : > { %13036 = vst [vmem:[#allocation61_spill] sm:$0xff] %v9368_v11  ;;  %13039 = vst [vmem:[#allocation64_spill] sm:$0xff] %v9380_v33 }
  0xe8   : > { %13043 = vst [vmem:[#allocation68_spill] sm:$0xff] %v9394_v16 }
  0xe9   : > { %1378 = vmatmul.mubr.bf16.gmra.mrb[28].mxu0 %v9366_v37 }
  0xea   : > { %1385 = vmatprep.mubr.bf16.mxu0 %v9096_v56 }
  0xec   : > { %7849 = vmatmul.mubr.bf16.gmra.mrb[40].mxu1 %v9354_v6  ;;  %v779_v6 = vld [vmem:[#allocation2 + $0x262] sm:$0xff] }
  0xed   : > { %7852 = vmatprep.mubr.bf16.mxu1 %v9356_v36  ;;  %v9382_v51 = vpack.c.bf16 %v779_v6, %v778_v26  ;;  %v782_v36 = vld [vmem:[#allocation2 + $0x28a] sm:$0xff]  ;;  %v9391_v6 = vpack.c.bf16 %v9255_v19, %v9252_v21  ;;  %v787_v21 = vld [vmem:[#allocation2 + $0x2c2] sm:$0xff]  ;;  %v788_v19 = vld [vmem:[#allocation2 + $0x2d2] sm:$0xff] }
  0xee   : > { %v9396_v28 = vpack.c.bf16 %v783_v41, %v782_v36  ;;  %v620_v26 = vld [vmem:[#allocation2 + $0xf0] sm:$0xff] }
  0xef   : > { %13040 = vst [vmem:[#allocation65_spill] sm:$0xff] %v9382_v51  ;;  %13042 = vst [vmem:[#allocation67_spill] sm:$0xff] %v9391_v6  ;;  %v9408_v41 = vpack.c.bf16 %v621_v49, %v620_v26  ;;  %v625_v26 = vld [vmem:[#allocation2 + $0x128] sm:$0xff]  ;;  %v8458_v49 = vld [vmem:[#allocation7 + $0x180] sm:$0xff]  }
  0xf0   : > { %13044 = vst [vmem:[#allocation69_spill] sm:$0xff] %v9396_v28 }
  0xf1   : > { %1386 = vmatmul.mubr.bf16.gmra.mrb[32].mxu0 %v9380_v33  ;;  %13047 = vst [vmem:[#allocation72_spill] sm:$0xff] %v9408_v41 }
  0xf2   : > { %1393 = vmatprep.mubr.bf16.mxu0 %v9101_v61 }
  0xf4   : > { %7853 = vmatmul.mubr.bf16.gmra.mrb[44].mxu1 %v9368_v11  ;;  %v8465_v11 = vld [vmem:[#allocation7 + $0xb0] sm:$0xff]  }
  0xf5   : > { %7856 = vmatprep.mubr.bf16.mxu1 %v9370_v12  ;;  %7884 = vmatprep.subr.bf16.mxu0 %v8465_v11  ;;  %v789_v12 = vld [vmem:[#allocation2 + $0x2da] sm:$0xff] }
  0xf6   : > { %7885 = vmatpush3.bf16.msra.mxu0 %v8465_v11  ;;  %v9405_v11 = vpack.c.bf16 %v9273_v3, %v9270_v63  ;;  %v9412_v4 = vpack.c.bf16 %v789_v12, %v788_v19  ;;  %v9418_v63 = vpack.c.bf16 %v623_v44, %v622_v1  ;;  %v627_v19 = vld [vmem:[#allocation2 + $0x140] sm:$0xff]  ;;  %v8468_v1 = vld [vmem:[#allocation7 + $0xb8] sm:$0xff]  }
  0xf7   : > { %7886 = vmatprep.subr.bf16.mxu0 %v8468_v1 }
  0xf8   : > { %13046 = vst [vmem:[#allocation71_spill] sm:$0xff] %v9405_v11  ;;  %13049 = vst [vmem:[#allocation74_spill] sm:$0xff] %v9412_v4 }
  0xf9   : > { %1394 = vmatmul.mubr.bf16.gmra.mrb[36].mxu0 %v9394_v16  ;;  %13050 = vst [vmem:[#allocation75_spill] sm:$0xff] %v9418_v63 }
  0xfa   : > { %1401 = vmatprep.mubr.bf16.mxu0 %v9112_v7  ;;  %7887 = vmatpush3.bf16.msra.mxu0 %v8468_v1 }
  0xfc   : > { %7857 = vmatmul.mubr.bf16.gmra.mrb[48].mxu1 %v9382_v51  ;;  %v786_v51 = vld [vmem:[#allocation2 + $0x2ba] sm:$0xff] }
  0xfd   : > { %7860 = vmatprep.mubr.bf16.mxu1 %v9384_v45  ;;  %v9410_v36 = vpack.c.bf16 %v787_v21, %v786_v51  ;;  %v624_v51 = vld [vmem:[#allocation2 + $0x120] sm:$0xff]  ;;  %v626_v21 = vld [vmem:[#allocation2 + $0x138] sm:$0xff] }
  0xfe   : > { %v9426_v12 = vpack.c.bf16 %v625_v26, %v624_v51  ;;  %v9432_v44 = vpack.c.bf16 %v627_v19, %v626_v21  ;;  %v628_v51 = vld [vmem:[#allocation2 + $0x150] sm:$0xff]  ;;  %v629_v26 = vld [vmem:[#allocation2 + $0x158] sm:$0xff]  ;;  %v630_v21 = vld [vmem:[#allocation2 + $0x168] sm:$0xff] }
  0xff   : > { %13048 = vst [vmem:[#allocation73_spill] sm:$0xff] %v9410_v36  ;;  %v631_v19 = vld [vmem:[#allocation2 + $0x170] sm:$0xff] }
 0x100   : > { %13052 = vst [vmem:[#allocation77_spill] sm:$0xff] %v9426_v12  ;;  %13053 = vst [vmem:[#allocation78_spill] sm:$0xff] %v9432_v44  ;;  %v9448_v1 = vpack.c.bf16 %v631_v19, %v630_v21  ;;  %v9461_v21 = vld [vmem:[#allocation7 + $0x200] sm:$0xff]   ;;  %v634_v19 = vld [vmem:[#allocation2 + $0x198] sm:$0xff] }
 0x101   : > { %1402 = vmatmul.mubr.bf16.gmra.mrb[40].mxu0 %v9408_v41  ;;  %7952 = vmatprep.subr.bf16.mxu0 %v9461_v21 }
 0x102   : > { %1409 = vmatprep.mubr.bf16.mxu0 %v9115_v10  ;;  %13055 = vst [vmem:[#allocation80_spill] sm:$0xff] %v9448_v1 }
 0x104   : > { %7861 = vmatmul.mubr.bf16.gmra.mrb[52].mxu1 %v9396_v28  ;;  %v791_v28 = vld [vmem:[#allocation2 + $0x2f2] sm:$0xff] }
 0x105   : > { %7864 = vmatprep.mubr.bf16.mxu1 %v9398_v58  ;;  %v9420_v3 = vpack.c.bf16 %v791_v28, %v790_v5  ;;  %v8460_v28 = vld [vmem:[#allocation7 + $0x188] sm:$0xff]   ;;  %v8461_v5 = vld [vmem:[#allocation7 + $0x190] sm:$0xff]  }
 0x106   : > { %v8480_v58 = vld [vmem:[#allocation7 + $0x1e8] sm:$0xff]  }
 0x107   : > { %13051 = vst [vmem:[#allocation76_spill] sm:$0xff] %v9420_v3 }
 0x109   : > { %1410 = vmatmul.mubr.bf16.gmra.mrb[44].mxu0 %v9418_v63 }
 0x10a   : > { %1417 = vmatprep.mubr.bf16.mxu0 %v9124_v27 }
 0x10c   : > { %7865 = vmatmul.mubr.bf16.gmra.mrb[56].mxu1 %v9410_v36 }
 0x10d   : > { %7868 = vmatprep.mubr.bf16.mxu1 %v9412_v4  ;;  %v652_v4 = vld [vmem:[#allocation2 + $0x270] sm:$0xff] }
 0x111   : > { %1418 = vmatmul.mubr.bf16.gmra.mrb[48].mxu0 %v9426_v12 }
 0x112   : > { %1425 = vmatprep.mubr.bf16.mxu0 %v9127_v29 }
 0x114   : > { %7869 = vmatmul.mubr.bf16.gmra.mrb[60].mxu1 %v9420_v3  ;;  %v8463_v3 = vld [vmem:[#allocation7 + $0x198] sm:$0xff]  }
 0x115   : > { %2043 = vmatprep.mubr.bf16.mxu1 %v13015_v9 }
 0x119   : > { %1426 = vmatmul.mubr.bf16.gmra.mrb[52].mxu0 %v9432_v44 }
 0x11a   : > { %1433 = vmatprep.mubr.bf16.mxu0 %v9137_v39 }
 0x11c   : > { %2044 = vmatmul.mubr.bf16.vlgmr.msra.gmra.mrb[64].mxu1 %v13015_v9 }
 0x11d   : > { %2051 = vmatprep.mubr.bf16.mxu1 %v9039_v17  ;;  %2880 = vmatpush1.bf16.msra.mxu1 %v8458_v49  ;;  %v9440_v17 = vpack.c.bf16 %v629_v26, %v628_v51  ;;  %v8464_v49 = vld [vmem:[#allocation7 + $0x1a0] sm:$0xff]   ;;  %v8469_v51 = vld [vmem:[#allocation7 + $0x1b8] sm:$0xff]  }
 0x11e   : > { %2881 = vmatprep.subr.bf16.mxu1 %v13015_v9 }
 0x11f   : > { %13054 = vst [vmem:[#allocation79_spill] sm:$0xff] %v9440_v17 }
 0x121   : > { %2882 = vmatpush1.bf16.msra.mxu1 %v8460_v28  ;;  %1434 = vmatmul.mubr.bf16.gmra.mrb[56].mxu0 %v9440_v17  ;;  %v632_v28 = vld [vmem:[#allocation2 + $0x180] sm:$0xff] }
 0x122   : > { %2883 = vmatprep.subr.bf16.mxu1 %v13015_v9  ;;  %1441 = vmatprep.mubr.bf16.mxu0 %v9143_v43  ;;  %v8474_v43 = vld [vmem:[#allocation7 + $0x1d0] sm:$0xff]  }
 0x124   : > { %2052 = vmatmul.mubr.bf16.gmra.mrb[68].mxu1 %v9180_v15  ;;  %v8466_v15 = vld [vmem:[#allocation7 + $0x1a8] sm:$0xff]  }
 0x125   : > { %2059 = vmatprep.mubr.bf16.mxu1 %v9185_v25  ;;  %2884 = vmatpush1.bf16.msra.mxu1 %v8461_v5  ;;  %v633_v5 = vld [vmem:[#allocation2 + $0x188] sm:$0xff] }
 0x126   : > { %2885 = vmatprep.subr.bf16.mxu1 %v13015_v9  ;;  %v9456_v26 = vpack.c.bf16 %v633_v5, %v632_v28  ;;  %v636_v28 = vld [vmem:[#allocation2 + $0x1b0] sm:$0xff]  ;;  %v637_v5 = vld [vmem:[#allocation2 + $0x1b8] sm:$0xff] }
 0x129   : > { %2886 = vmatpush1.bf16.msra.mxu1 %v8463_v3  ;;  %v8467_v3 = vld [vmem:[#allocation7 + $0x1b0] sm:$0xff]   ;;  %1442 = vmatmul.mubr.bf16.gmra.mrb[60].mxu0 %v9448_v1  ;;  %v8472_v1 = vld [vmem:[#allocation7 + $0x1c8] sm:$0xff]  }
 0x12a   : > { %2887 = vmatprep.subr.bf16.mxu1 %v13015_v9  ;;  %1449 = vmatprep.mubr.bf16.mxu0 %v9174_v13 }
 0x12c   : > { %2060 = vmatmul.mubr.bf16.gmra.mrb[72].mxu1 %v9230_v59  ;;  %v8565_v59 = vld [vmem:[#allocation2 + $0x2a9] sm:$0xff] }
 0x12d   : > { %2067 = vmatprep.mubr.bf16.mxu1 %v9236_v55  ;;  %2888 = vmatpush1.bf16.msra.mxu1 %v8464_v49  ;;  %v8470_v49 = vld [vmem:[#allocation7 + $0x1c0] sm:$0xff]  }
 0x12e   : > { %2889 = vmatprep.subr.bf16.mxu1 %v13015_v9  ;;  %v8564_v55 = vld [vmem:[#allocation2 + $0x2a1] sm:$0xff] }
 0x131   : > { %2890 = vmatpush1.bf16.msra.mxu1 %v8466_v15  ;;  %1450 = vmatmul.mubr.bf16.gmra.mrb[64].mxu0 %v9456_v26  ;;  %v635_v15 = vld [vmem:[#allocation2 + $0x1a0] sm:$0xff] }
 0x132   : > { %2891 = vmatprep.subr.bf16.mxu1 %v13015_v9  ;;  %1457 = vmatprep.mubr.bf16.mxu0 %v9224_v52 }
 0x134   : > { %2068 = vmatmul.mubr.bf16.gmra.mrb[76].mxu1 %v9267_v53 }
 0x135   : > { %2075 = vmatprep.mubr.bf16.mxu1 %v9278_v0  ;;  %2892 = vmatpush1.bf16.msra.mxu1 %v8467_v3  ;;  %v9467_v3 = vpack.c.bf16 %v635_v15, %v634_v19  ;;  %v639_v19 = vld [vmem:[#allocation2 + $0x1d0] sm:$0xff] }
 0x136   : > { %2893 = vmatprep.subr.bf16.mxu1 %v13015_v9 }
 0x137   : > { %13056 = vst [vmem:[#allocation81_spill] sm:$0xff] %v9467_v3 }
 0x139   : > { %2894 = vmatpush1.bf16.msra.mxu1 %v8469_v51  ;;  %1458 = vmatmul.mubr.bf16.gmra.mrb[68].mxu0 %v9467_v3  ;;  %v9474_v51 = vpack.c.bf16 %v637_v5, %v636_v28  ;;  %v640_v28 = vld [vmem:[#allocation2 + $0x1e0] sm:$0xff]  ;;  %v641_v5 = vld [vmem:[#allocation2 + $0x1e8] sm:$0xff] }
 0x13a   : > { %2895 = vmatprep.subr.bf16.mxu1 %v13015_v9  ;;  %1465 = vmatprep.mubr.bf16.mxu0 %v9264_v40 }
 0x13b   : > { %13057 = vst [vmem:[#allocation82_spill] sm:$0xff] %v9474_v51 }
 0x13c   : > { %2076 = vmatmul.mubr.bf16.gmra.mrb[80].mxu1 %v9301_v57 }
 0x13d   : > { %2083 = vmatprep.mubr.bf16.mxu1 %v9067_v30  ;;  %2896 = vmatpush1.bf16.msra.mxu1 %v8470_v49  ;;  %v638_v49 = vld [vmem:[#allocation2 + $0x1c8] sm:$0xff]  ;;  %v653_v30 = vld [vmem:[#allocation2 + $0x278] sm:$0xff] }
 0x13e   : > { %2897 = vmatprep.subr.bf16.mxu1 %v13015_v9  ;;  %v9481_v15 = vpack.c.bf16 %v639_v19, %v638_v49  ;;  %v642_v49 = vld [vmem:[#allocation2 + $0x1f8] sm:$0xff]  ;;  %v643_v19 = vld [vmem:[#allocation2 + $0x200] sm:$0xff] }
 0x140   : > { %13058 = vst [vmem:[#allocation83_spill] sm:$0xff] %v9481_v15 }
 0x141   : > { %1466 = vmatmul.mubr.bf16.gmra.mrb[72].mxu0 %v9474_v51  ;;  %2898 = vmatpush1.bf16.msra.mxu1 %v8472_v1  ;;  %v9487_v1 = vpack.c.bf16 %v641_v5, %v640_v28  ;;  %v644_v28 = vld [vmem:[#allocation2 + $0x210] sm:$0xff]  ;;  %v645_v5 = vld [vmem:[#allocation2 + $0x218] sm:$0xff] }
 0x142   : > { %1473 = vmatprep.mubr.bf16.mxu0 %v9298_v8  ;;  %2899 = vmatprep.subr.bf16.mxu1 %v13015_v9 }
 0x143   : > { %13059 = vst [vmem:[#allocation84_spill] sm:$0xff] %v9487_v1 }
 0x144   : > { %2084 = vmatmul.mubr.bf16.gmra.mrb[84].mxu1 %v9321_v60 }
 0x145   : > { %2091 = vmatprep.mubr.bf16.mxu1 %v9073_v35  ;;  %2900 = vmatpush1.bf16.msra.mxu1 %v8474_v43  ;;  %v9500_v43 = vpack.c.bf16 %v645_v5, %v644_v28  ;;  %v650_v35 = vld [vmem:[#allocation2 + $0x258] sm:$0xff] }
 0x146   : > { %2901 = vmatprep.subr.bf16.mxu1 %v13015_v9 }
 0x147   : > { %13061 = vst [vmem:[#allocation86_spill] sm:$0xff] %v9500_v43 }
 0x149   : > { %1474 = vmatmul.mubr.bf16.gmra.mrb[76].mxu0 %v9481_v15 }
 0x14a   : > { %1481 = vmatprep.mubr.bf16.mxu0 %v9318_v38 }
 0x14c   : > { %2092 = vmatmul.mubr.bf16.gmra.mrb[88].mxu1 %v9337_v14 }
 0x14d   : > { %2099 = vmatprep.mubr.bf16.mxu1 %v9079_v42  ;;  %v9494_v42 = vpack.c.bf16 %v643_v19, %v642_v49  ;;  %v646_v49 = vld [vmem:[#allocation2 + $0x228] sm:$0xff]  ;;  %v647_v19 = vld [vmem:[#allocation2 + $0x230] sm:$0xff] }
 0x14f   : > { %13060 = vst [vmem:[#allocation85_spill] sm:$0xff] %v9494_v42 }
 0x151   : > { %1482 = vmatmul.mubr.bf16.gmra.mrb[80].mxu0 %v9487_v1 }
 0x152   : > { %1489 = vmatprep.mubr.bf16.mxu0 %v9334_v22 }
 0x154   : > { %2100 = vmatmul.mubr.bf16.gmra.mrb[92].mxu1 %v9352_v23 }
 0x155   : > { %2107 = vmatprep.mubr.bf16.mxu1 %v9086_v47  ;;  %v8476_v47 = vld [vmem:[#allocation7 + $0x1d8] sm:$0xff]  }
 0x156   : > { %2902 = vmatpush1.bf16.msra.mxu1 %v8476_v47 }
 0x157   : > { %2903 = vmatprep.subr.bf16.mxu1 %v13015_v9 }
 0x159   : > { %1490 = vmatmul.mubr.bf16.gmra.mrb[84].mxu0 %v9494_v42 }
 0x15a   : > { %1497 = vmatprep.mubr.bf16.mxu0 %v9349_v50 }
 0x15c   : > { %2108 = vmatmul.mubr.bf16.gmra.mrb[96].mxu1 %v9366_v37  ;;  %v649_v37 = vld [vmem:[#allocation2 + $0x248] sm:$0xff] }
 0x15d   : > { %2115 = vmatprep.mubr.bf16.mxu1 %v9096_v56  ;;  %v9507_v56 = vpack.c.bf16 %v647_v19, %v646_v49 }
 0x15f   : > { %13062 = vst [vmem:[#allocation87_spill] sm:$0xff] %v9507_v56 }
 0x161   : > { %1498 = vmatmul.mubr.bf16.gmra.mrb[88].mxu0 %v9500_v43 }
 0x162   : > { %1505 = vmatprep.mubr.bf16.mxu0 %v9363_v20 }
 0x164   : > { %2116 = vmatmul.mubr.bf16.gmra.mrb[100].mxu1 %v9380_v33 }
 0x165   : > { %2123 = vmatprep.mubr.bf16.mxu1 %v9101_v61  ;;  %v648_v61 = vld [vmem:[#allocation2 + $0x240] sm:$0xff] }
 0x169   : > { %1506 = vmatmul.mubr.bf16.gmra.mrb[92].mxu0 %v9507_v56 }
 0x16a   : > { %1513 = vmatprep.mubr.bf16.mxu0 %v9377_v18 }
 0x16c   : > { %2124 = vmatmul.mubr.bf16.gmra.mrb[104].mxu1 %v9394_v16  ;;  %v9517_v16 = vpack.c.bf16 %v649_v37, %v648_v61 }
 0x16d   : > { %2131 = vmatprep.mubr.bf16.mxu1 %v9112_v7  ;;  %v8478_v7 = vld [vmem:[#allocation7 + $0x1e0] sm:$0xff]  }
 0x16e   : > { %13063 = vst [vmem:[#allocation88_spill] sm:$0xff] %v9517_v16  ;;  %2904 = vmatpush1.bf16.msra.mxu1 %v8478_v7 }
 0x16f   : > { %v9509_v33 = vpop.f32.mrb[0].mxu1  ;;  %2905 = vmatprep.subr.bf16.mxu1 %v13015_v9 }
 0x170   : > { %v1612_v28 = vpop.f32.mrb[1].mxu1 }
 0x171   : > { %v9511_v5 = vpop.f32.mrb[2].mxu1  ;;  %1514 = vmatmul.mubr.bf16.gmra.mrb[96].mxu0 %v9517_v16 }
 0x172   : > { %v1615_v47 = vpop.f32.mrb[3].mxu1  ;;  %1521 = vmatprep.mubr.bf16.mxu0 %v9391_v6  ;;  %2906 = vmatpush1.bf16.msra.mxu1 %v8480_v58  ;;  %v9567_v58 = vpack.c.bf16 %v8565_v59, %v8564_v55 }
 0x173   : > { %2907 = vmatprep.subr.bf16.mxu1 %v13015_v9 }
 0x174   : > { %2132 = vmatmul.mubr.bf16.gmra.mrb[108].mxu1 %v9408_v41  ;;  %v651_v41 = vld [vmem:[#allocation2 + $0x260] sm:$0xff]  ;;  %13069 = vst [vmem:[#allocation94_spill] sm:$0xff] %v9567_v58 }
 0x175   : > { %2139 = vmatprep.mubr.bf16.mxu1 %v9115_v10  ;;  %v9532_v61 = vpack.c.bf16 %v651_v41, %v650_v35  ;;  %v9546_v35 = vpack.c.bf16 %v653_v30, %v652_v4  ;;  %v8562_v41 = vld [vmem:[#allocation2 + $0x289] sm:$0xff] }
 0x176   : > { %v654_v30 = vld [vmem:[#allocation2 + $0x288] sm:$0xff]  ;;  %v655_v4 = vld [vmem:[#allocation2 + $0x290] sm:$0xff] }
 0x177   : > { %v9519_v49 = vpop.f32.mrb[4].mxu1  ;;  %13064 = vst [vmem:[#allocation89_spill] sm:$0xff] %v9532_v61  ;;  %13065 = vst [vmem:[#allocation90_spill] sm:$0xff] %v9546_v35 }
 0x178   : > { %v9521_v19 = vpop.f32.mrb[5].mxu1 }
 0x179   : > { %v9523_v23 = vpop.f32.mrb[6].mxu1  ;;  %1522 = vmatmul.mubr.bf16.gmra.mrb[100].mxu0 %v9532_v61 }
 0x17a   : > { %v9526_v14 = vpop.f32.mrb[7].mxu1  ;;  %1529 = vmatprep.mubr.bf16.mxu0 %v9405_v11 }
 0x17c   : > { %2140 = vmatmul.mubr.bf16.gmra.mrb[112].mxu1 %v9418_v63 }
 0x17d   : > { %2147 = vmatprep.mubr.bf16.mxu1 %v9124_v27  ;;  %v8563_v27 = vld [vmem:[#allocation2 + $0x291] sm:$0xff] }
 0x17e   : > { %v9548_v63 = vpack.c.bf16 %v8563_v27, %v8562_v41 }
 0x17f   : > { %v9534_v37 = vpop.f32.mrb[8].mxu1 }
 0x180   : > { %v9536_v10 = vpop.f32.mrb[9].mxu1  ;;  %13066 = vst [vmem:[#allocation91_spill] sm:$0xff] %v9548_v63 }
 0x181   : > { %v9538_v60 = vpop.f32.mrb[10].mxu1  ;;  %1530 = vmatmul.mubr.bf16.gmra.mrb[104].mxu0 %v9546_v35 }
 0x182   : > { %v9541_v7 = vpop.f32.mrb[11].mxu1  ;;  %1537 = vmatprep.mubr.bf16.mxu0 %v9548_v63 }
 0x184   : > { %2148 = vmatmul.mubr.bf16.gmra.mrb[116].mxu1 %v9426_v12  ;;  %v1323_v27 = vpop.f32.mrb[0].mxu0  ;;  %v9565_v12 = vpack.c.bf16 %v655_v4, %v654_v30  ;;  %v657_v30 = vld [vmem:[#allocation2 + $0x2a8] sm:$0xff]  ;;  %v8482_v4 = vld [vmem:[#allocation7 + $0x1f0] sm:$0xff]  }
 0x185   : > { %2155 = vmatprep.mubr.bf16.mxu1 %v9127_v29  ;;  %v9563_v41 = vadd.f32 %v1612_v28, %v1323_v27  ;;  %v1325_v29 = vpop.f32.mrb[1].mxu0  ;;  %2908 = vmatpush1.bf16.msra.mxu1 %v8482_v4  ;;  %v8566_v27 = vld [vmem:[#allocation2 + $0x2b9] sm:$0xff] }
 0x186   : > { %13068 = vst [vmem:[#allocation93_spill] sm:$0xff] %v9565_v12  ;;  %v1326_v45 = vpop.f32.mrb[2].mxu0  ;;  %v656_v29 = vld [vmem:[#allocation2 + $0x2a0] sm:$0xff]  ;;  %2909 = vmatprep.subr.bf16.mxu1 %v13015_v9 }
 0x187   : > { %v9550_v57 = vpop.f32.mrb[12].mxu1  ;;  %13067 = vst [vmem:[#allocation92_spill] sm:$0xff] %v9563_v41  ;;  %v9571_v63 = vadd.f32 %v1615_v47, %v1326_v45  ;;  %v1328_v35 = vpop.f32.mrb[3].mxu0  ;;  %v9586_v47 = vpack.c.bf16 %v657_v30, %v656_v29  ;;  %v659_v30 = vld [vmem:[#allocation2 + $0x2c0] sm:$0xff] }
 0x188   : > { %v9552_v36 = vpop.f32.mrb[13].mxu1 }
 0x189   : > { %v9554_v0 = vpop.f32.mrb[14].mxu1  ;;  %13070 = vst [vmem:[#allocation95_spill] sm:$0xff] %v9571_v63  ;;  %1538 = vmatmul.mubr.bf16.gmra.mrb[108].mxu0 %v9565_v12  ;;  %13072 = vst [vmem:[#allocation97_spill] sm:$0xff] %v9586_v47 }
 0x18a   : > { %v9557_v53 = vpop.f32.mrb[15].mxu1  ;;  %1545 = vmatprep.mubr.bf16.mxu0 %v9567_v58 }
 0x18c   : > { %2156 = vmatmul.mubr.bf16.gmra.mrb[120].mxu1 %v9432_v44  ;;  %v1331_v59 = vpop.f32.mrb[4].mxu0 }
 0x18d   : > { %2163 = vmatprep.mubr.bf16.mxu1 %v9137_v39  ;;  %v9584_v55 = vadd.f32 %v9509_v33, %v1331_v59  ;;  %v1333_v45 = vpop.f32.mrb[5].mxu0  ;;  %v8567_v39 = vld [vmem:[#allocation2 + $0x2c1] sm:$0xff] }
 0x18e   : > { %v1334_v35 = vpop.f32.mrb[6].mxu0  ;;  %v9589_v58 = vpack.c.bf16 %v8567_v39, %v8566_v27  ;;  %v658_v39 = vld [vmem:[#allocation2 + $0x2b8] sm:$0xff] }
 0x18f   : > { %v9569_v25 = vpop.f32.mrb[16].mxu1  ;;  %13071 = vst [vmem:[#allocation96_spill] sm:$0xff] %v9584_v55  ;;  %v9594_v63 = vadd.f32 %v9511_v5, %v1334_v35  ;;  %v1336_v4 = vpop.f32.mrb[7].mxu0  ;;  %v9609_v35 = vpack.c.bf16 %v659_v30, %v658_v39  ;;  %v8568_v27 = vld [vmem:[#allocation2 + $0x2d1] sm:$0xff] }
 0x190   : > { %v9573_v24 = vpop.f32.mrb[17].mxu1  ;;  %13073 = vst [vmem:[#allocation98_spill] sm:$0xff] %v9589_v58  ;;  %v8569_v4 = vld [vmem:[#allocation2 + $0x2d9] sm:$0xff]  ;;  %v660_v39 = vld [vmem:[#allocation2 + $0x2d0] sm:$0xff] }
 0x191   : > { %v9575_v44 = vpop.f32.mrb[18].mxu1  ;;  %13074 = vst [vmem:[#allocation99_spill] sm:$0xff] %v9594_v63  ;;  %1546 = vmatmul.mubr.bf16.gmra.mrb[112].mxu0 %v9586_v47  ;;  %13076 = vst [vmem:[#allocation101_spill] sm:$0xff] %v9609_v35  ;;  %v9611_v47 = vpack.c.bf16 %v8569_v4, %v8568_v27  ;;  %v661_v30 = vld [vmem:[#allocation2 + $0x2d8] sm:$0xff]  ;;  %v8570_v27 = vld [vmem:[#allocation2 + $0x2e9] sm:$0xff] }
 0x192   : > { %v9578_v28 = vpop.f32.mrb[19].mxu1  ;;  %1553 = vmatprep.mubr.bf16.mxu0 %v9589_v58  ;;  %v8571_v4 = vld [vmem:[#allocation2 + $0x2f1] sm:$0xff] }
 0x193   : > { %13077 = vst [vmem:[#allocation102_spill] sm:$0xff] %v9611_v47 }
 0x194   : > { %2164 = vmatmul.mubr.bf16.gmra.mrb[124].mxu1 %v9440_v17  ;;  %v8483_v17 = vld [vmem:[#allocation7 + $0x1f8] sm:$0xff]   ;;  %v1339_v59 = vpop.f32.mrb[8].mxu0 }
 0x195   : > { %2171 = vmatprep.mubr.bf16.mxu1 %v13015_v9  ;;  %2910 = vmatpush1.bf16.msra.mxu1 %v8483_v17  ;;  %v9607_v5 = vadd.f32 %v9521_v19, %v1339_v59  ;;  %v1341_v45 = vpop.f32.mrb[9].mxu0 }
 0x196   : > { %v1342_v17 = vpop.f32.mrb[10].mxu0  ;;  %v9631_v45 = vpack.c.bf16 %v661_v30, %v660_v39  ;;  %v662_v39 = vld [vmem:[#allocation2 + $0x2e8] sm:$0xff]  ;;  %v663_v30 = vld [vmem:[#allocation2 + $0x2f0] sm:$0xff] }
 0x197   : > { %v9591_v12 = vpop.f32.mrb[20].mxu1  ;;  %13075 = vst [vmem:[#allocation100_spill] sm:$0xff] %v9607_v5  ;;  %v9616_v58 = vadd.f32 %v9526_v14, %v1342_v17  ;;  %v1344_v55 = vpop.f32.mrb[11].mxu0 }
 0x198   : > { %v9596_v41 = vpop.f32.mrb[21].mxu1  ;;  %13079 = vst [vmem:[#allocation104_spill] sm:$0xff] %v9631_v45 }
 0x199   : > { %v9598_v33 = vpop.f32.mrb[22].mxu1  ;;  %13078 = vst [vmem:[#allocation103_spill] sm:$0xff] %v9616_v58  ;;  %1554 = vmatmul.mubr.bf16.gmra.mrb[116].mxu0 %v9609_v35  ;;  %v9633_v35 = vpack.c.bf16 %v8571_v4, %v8570_v27 }
 0x19a   : > { %v9601_v29 = vpop.f32.mrb[23].mxu1  ;;  %1561 = vmatprep.mubr.bf16.mxu0 %v9611_v47 }
 0x19b   : > { %13080 = vst [vmem:[#allocation105_spill] sm:$0xff] %v9633_v35 }
 0x19c   : > { %2172 = vmatmul.mubr.bf16.gmra.mrb[128].mxu1 %v13015_v9  ;;  %v1347_v59 = vpop.f32.mrb[12].mxu0 }
 0x19d   : > { %2179 = vmatprep.mubr.bf16.mxu1 %v9174_v13  ;;  %v9629_v14 = vadd.f32 %v9519_v49, %v1347_v59  ;;  %v1349_v55 = vpop.f32.mrb[13].mxu0 }
 0x19e   : > { %v1350_v17 = vpop.f32.mrb[14].mxu0 }
 0x19f   : > { %v9613_v63 = vpop.f32.mrb[24].mxu1  ;;  %v9638_v47 = vadd.f32 %v9523_v23, %v1350_v17  ;;  %v9653_v17 = vpack.c.bf16 %v663_v30, %v662_v39 }
 0x1a0   : > { %v9618_v11 = vpop.f32.mrb[25].mxu1 }
 0x1a1   : > { %v9620_v13 = vpop.f32.mrb[26].mxu1  ;;  %13081 = vst [vmem:[#allocation106_spill] sm:$0xff] %v9638_v47  ;;  %1562 = vmatmul.mubr.bf16.gmra.mrb[120].mxu0 %v9631_v45  ;;  %13082 = vst [vmem:[#allocation107_spill] sm:$0xff] %v9653_v17 }
 0x1a2   : > { %v9623_v19 = vpop.f32.mrb[27].mxu1  ;;  %1569 = vmatprep.mubr.bf16.mxu0 %v9633_v35 }
 0x1a4   : > { %2180 = vmatmul.mubr.bf16.gmra.mrb[132].mxu1 %v9456_v26  ;;  %v1352_v26 = vpop.f32.mrb[15].mxu0 }
 0x1a5   : > { %2187 = vmatprep.mubr.bf16.mxu1 %v9224_v52  ;;  %v1355_v59 = vpop.f32.mrb[16].mxu0 }
 0x1a6   : > { %v9651_v23 = vadd.f32 %v9536_v10, %v1355_v59  ;;  %v1357_v55 = vpop.f32.mrb[17].mxu0 }
 0x1a7   : > { %v9635_v58 = vpop.f32.mrb[28].mxu1  ;;  %v1358_v27 = vpop.f32.mrb[18].mxu0 }
 0x1a8   : > { %v9640_v5 = vpop.f32.mrb[29].mxu1  ;;  %v9658_v26 = vadd.f32 %v9541_v7, %v1358_v27  ;;  %v1360_v35 = vpop.f32.mrb[19].mxu0  ;;  %v8473_v27 = vld [vmem:[#allocation7 + $0x208] sm:$0xff]  }
 0x1a9   : > { %v9642_v52 = vpop.f32.mrb[30].mxu1  ;;  %1570 = vmatmul.mubr.bf16.gmra.mrb[124].mxu0 %v9653_v17 }
 0x1aa   : > { %v9645_v49 = vpop.f32.mrb[31].mxu1  ;;  %7888 = vmatprep.mubr.bf16.mxu0 %v13015_v9 }
 0x1ac   : > { %2188 = vmatmul.mubr.bf16.gmra.mrb[136].mxu1 %v9467_v3  ;;  %v1363_v10 = vpop.f32.mrb[20].mxu0 }
 0x1ad   : > { %2195 = vmatprep.mubr.bf16.mxu1 %v9264_v40  ;;  %v9671_v39 = vadd.f32 %v9534_v37, %v1363_v10  ;;  %v1365_v7 = vpop.f32.mrb[21].mxu0  ;;  %v8475_v37 = vld [vmem:[#allocation7 + $0x210] sm:$0xff]  }
 0x1ae   : > { %v1366_v35 = vpop.f32.mrb[22].mxu0 }
 0x1af   : > { %v9655_v4 = vpop.f32.mrb[32].mxu1  ;;  %v9676_v59 = vadd.f32 %v9538_v60, %v1366_v35  ;;  %v1368_v55 = vpop.f32.mrb[23].mxu0 }
 0x1b0   : > { %v9660_v45 = vpop.f32.mrb[33].mxu1 }
 0x1b1   : > { %v9662_v47 = vpop.f32.mrb[34].mxu1  ;;  %7889 = vmatmul.mubr.bf16.vlgmr.msra.gmra.mrb[128].mxu0 %v9069_v31 }
 0x1b2   : > { %v9665_v40 = vpop.f32.mrb[35].mxu1  ;;  %7953 = vmatpush3.bf16.msra.mxu0 %v9461_v21  ;;  %7892 = vmatprep.mubr.bf16.mxu0 %v9084_v46 }
 0x1b3   : > { %7954 = vmatprep.subr.bf16.mxu0 %v8473_v27 }
 0x1b4   : > { %2196 = vmatmul.mubr.bf16.gmra.mrb[140].mxu1 %v9474_v51  ;;  %v1371_v60 = vpop.f32.mrb[24].mxu0 }
 0x1b5   : > { %2203 = vmatprep.mubr.bf16.mxu1 %v9298_v8  ;;  %v9690_v10 = vadd.f32 %v9552_v36, %v1371_v60  ;;  %v1373_v7 = vpop.f32.mrb[25].mxu0  ;;  %v8479_v36 = vld [vmem:[#allocation7 + $0x220] sm:$0xff]  }
 0x1b6   : > { %v1374_v35 = vpop.f32.mrb[26].mxu0  ;;  %7955 = vmatpush3.bf16.msra.mxu0 %v8473_v27 }
 0x1b7   : > { %v9673_v30 = vpop.f32.mrb[36].mxu1  ;;  %v9695_v55 = vadd.f32 %v9557_v53, %v1374_v35  ;;  %v1376_v21 = vpop.f32.mrb[27].mxu0  ;;  %7956 = vmatprep.subr.bf16.mxu0 %v8475_v37 }
 0x1b8   : > { %v9678_v17 = vpop.f32.mrb[37].mxu1 }
 0x1b9   : > { %v9680_v3 = vpop.f32.mrb[38].mxu1  ;;  %7893 = vmatmul.mubr.bf16.gmra.mrb[132].mxu0 %v9088_v48 }
 0x1ba   : > { %v9683_v51 = vpop.f32.mrb[39].mxu1  ;;  %7896 = vmatprep.mubr.bf16.mxu0 %v9104_v62  ;;  %7957 = vmatpush3.bf16.msra.mxu0 %v8475_v37 }
 0x1bc   : > { %2204 = vmatmul.mubr.bf16.gmra.mrb[144].mxu1 %v9481_v15  ;;  %v8477_v15 = vld [vmem:[#allocation7 + $0x218] sm:$0xff]   ;;  %v1379_v53 = vpop.f32.mrb[28].mxu0 }
 0x1bd   : > { %2211 = vmatprep.mubr.bf16.mxu1 %v9318_v38  ;;  %7958 = vmatprep.subr.bf16.mxu0 %v8477_v15  ;;  %v9708_v27 = vadd.f32 %v9550_v57, %v1379_v53  ;;  %v1381_v60 = vpop.f32.mrb[29].mxu0  ;;  %v8484_v57 = vld [vmem:[#allocation7 + $0x230] sm:$0xff]  }
 0x1be   : > { %v1382_v7 = vpop.f32.mrb[30].mxu0  ;;  %7959 = vmatpush3.bf16.msra.mxu0 %v8477_v15 }
 0x1bf   : > { %v9692_v31 = vpop.f32.mrb[40].mxu1  ;;  %v9713_v21 = vadd.f32 %v9554_v0, %v1382_v7  ;;  %v1384_v62 = vpop.f32.mrb[31].mxu0  ;;  %7960 = vmatprep.subr.bf16.mxu0 %v8479_v36 }
 0x1c0   : > { %v9697_v8 = vpop.f32.mrb[41].mxu1 }
 0x1c1   : > { %v9699_v46 = vpop.f32.mrb[42].mxu1  ;;  %7897 = vmatmul.mubr.bf16.gmra.mrb[136].mxu0 %v9106_v2 }
 0x1c2   : > { %v9702_v38 = vpop.f32.mrb[43].mxu1  ;;  %7900 = vmatprep.mubr.bf16.mxu0 %v9130_v32  ;;  %7961 = vmatpush3.bf16.msra.mxu0 %v8479_v36 }
 0x1c4   : > { %2212 = vmatmul.mubr.bf16.gmra.mrb[148].mxu1 %v9487_v1  ;;  %v8481_v1 = vld [vmem:[#allocation7 + $0x228] sm:$0xff]   ;;  %v1387_v0 = vpop.f32.mrb[32].mxu0 }
 0x1c5   : > { %2219 = vmatprep.mubr.bf16.mxu1 %v9334_v22  ;;  %7962 = vmatprep.subr.bf16.mxu0 %v8481_v1  ;;  %v9726_v62 = vadd.f32 %v9573_v24, %v1387_v0  ;;  %v1389_v15 = vpop.f32.mrb[33].mxu0 }
 0x1c6   : > { %v1390_v53 = vpop.f32.mrb[34].mxu0  ;;  %7963 = vmatpush3.bf16.msra.mxu0 %v8481_v1 }
 0x1c7   : > { %v9710_v35 = vpop.f32.mrb[44].mxu1  ;;  %v9731_v7 = vadd.f32 %v9578_v28, %v1390_v53  ;;  %7964 = vmatprep.subr.bf16.mxu0 %v8484_v57 }
 0x1c8   : > { %13083 = vst [vmem:[#allocation108_spill] sm:$0xff] %v9710_v35  ;;  %v9715_v37 = vpop.f32.mrb[45].mxu1 }
 0x1c9   : > { %v9717_v48 = vpop.f32.mrb[46].mxu1  ;;  %7901 = vmatmul.mubr.bf16.gmra.mrb[140].mxu0 %v9133_v34 }
 0x1ca   : > { %13084 = vst [vmem:[#allocation109_spill] sm:$0xff] %v9717_v48  ;;  %v9720_v22 = vpop.f32.mrb[47].mxu1  ;;  %v1392_v48 = vpop.f32.mrb[35].mxu0  ;;  %7904 = vmatprep.mubr.bf16.mxu0 %v9150_v54  ;;  %7965 = vmatpush3.bf16.msra.mxu0 %v8484_v57 }
 0x1cc   : > { %2220 = vmatmul.mubr.bf16.gmra.mrb[152].mxu1 %v9494_v42  ;;  %v8485_v42 = vld [vmem:[#allocation7 + $0x238] sm:$0xff]   ;;  %v1395_v24 = vpop.f32.mrb[36].mxu0 }
 0x1cd   : > { %2227 = vmatprep.mubr.bf16.mxu1 %v9349_v50  ;;  %7966 = vmatprep.subr.bf16.mxu0 %v8485_v42  ;;  %v9744_v48 = vadd.f32 %v9569_v25, %v1395_v24  ;;  %v1397_v1 = vpop.f32.mrb[37].mxu0  ;;  %v13091_v25 = vld [vmem:[#allocation31_spill] sm:$0xff] }
 0x1ce   : > { %v1398_v28 = vpop.f32.mrb[38].mxu0  ;;  %7967 = vmatpush3.bf16.msra.mxu0 %v8485_v42 }
 0x1cf   : > { %v9728_v60 = vpop.f32.mrb[48].mxu1  ;;  %v9749_v15 = vadd.f32 %v9575_v44, %v1398_v28  ;;  %v1400_v53 = vpop.f32.mrb[39].mxu0  ;;  %4402 = vmatprep.subr.bf16.mxu0 %v13015_v9 }
 0x1d0   : > { %v9733_v36 = vpop.f32.mrb[49].mxu1 }
 0x1d1   : > { %v9735_v35 = vpop.f32.mrb[50].mxu1 }
 0x1d2   : > { %13085 = vst [vmem:[#allocation110_spill] sm:$0xff] %v9735_v35  ;;  %v9738_v50 = vpop.f32.mrb[51].mxu1 }
 0x1d4   : > { %2228 = vmatmul.mubr.bf16.gmra.mrb[156].mxu1 %v9500_v43  ;;  %v13089_v43 = vld [vmem:[#allocation29_spill] sm:$0xff]  ;;  %v1403_v24 = vpop.f32.mrb[40].mxu0 }
 0x1d5   : > { %2235 = vmatprep.mubr.bf16.mxu1 %v9363_v20  ;;  %7905 = vmatmul.mubr.bf16.gmra.mrb[144].mxu0 %v13089_v43  ;;  %v9763_v42 = vadd.f32 %v9596_v41, %v1403_v24  ;;  %v1405_v44 = vpop.f32.mrb[41].mxu0 }
 0x1d6   : > { %7908 = vmatprep.mubr.bf16.mxu0 %v13091_v25  ;;  %v1406_v1 = vpop.f32.mrb[42].mxu0 }
 0x1d7   : > { %v9746_v0 = vpop.f32.mrb[52].mxu1  ;;  %v9768_v53 = vadd.f32 %v9601_v29, %v1406_v1 }
 0x1d8   : > { %13086 = vst [vmem:[#allocation111_spill] sm:$0xff] %v9746_v0  ;;  %v9751_v35 = vpop.f32.mrb[53].mxu1 }
 0x1d9   : > { %13087 = vst [vmem:[#allocation112_spill] sm:$0xff] %v9751_v35  ;;  %v9754_v57 = vpop.f32.mrb[54].mxu1  ;;  %v13095_v35 = vld [vmem:[#allocation32_spill] sm:$0xff] }
 0x1da   : > { %13088 = vst [vmem:[#allocation113_spill] sm:$0xff] %v9754_v57  ;;  %v9757_v20 = vpop.f32.mrb[55].mxu1  ;;  %v1408_v57 = vpop.f32.mrb[43].mxu0 }
 0x1db   : > { %13090 = vst [vmem:[#allocation29_spill] sm:$0xff] %v9757_v20 }
 0x1dc   : > { %2236 = vmatmul.mubr.bf16.gmra.mrb[160].mxu1 %v9507_v56  ;;  %v1411_v41 = vpop.f32.mrb[44].mxu0 }
 0x1dd   : > { %2243 = vmatprep.mubr.bf16.mxu1 %v9377_v18  ;;  %7909 = vmatmul.mubr.bf16.gmra.mrb[148].mxu0 %v13095_v35  ;;  %v13097_v18 = vld [vmem:[#allocation36_spill] sm:$0xff]  ;;  %v9781_v24 = vadd.f32 %v9591_v12, %v1411_v41  ;;  %v1413_v29 = vpop.f32.mrb[45].mxu0  ;;  %v13104_v41 = vld [vmem:[#allocation71_spill] sm:$0xff]  ;;  %v13109_v35 = vld [vmem:[#allocation42_spill] sm:$0xff] }
 0x1de   : > { %7912 = vmatprep.mubr.bf16.mxu0 %v13097_v18  ;;  %v1414_v57 = vpop.f32.mrb[46].mxu0  ;;  %v13107_v18 = vld [vmem:[#allocation95_spill] sm:$0xff] }
 0x1df   : > { %v9765_v28 = vpop.f32.mrb[56].mxu1  ;;  %v9786_v1 = vadd.f32 %v9598_v33, %v1414_v57 }
 0x1e0   : > { %13092 = vst [vmem:[#allocation31_spill] sm:$0xff] %v9765_v28  ;;  %v9770_v0 = vpop.f32.mrb[57].mxu1 }
 0x1e1   : > { %13093 = vst [vmem:[#allocation114_spill] sm:$0xff] %v9770_v0  ;;  %v9772_v20 = vpop.f32.mrb[58].mxu1  ;;  %v13101_v0 = vld [vmem:[#allocation37_spill] sm:$0xff] }
 0x1e2   : > { %13094 = vst [vmem:[#allocation115_spill] sm:$0xff] %v9772_v20  ;;  %v9775_v56 = vpop.f32.mrb[59].mxu1  ;;  %v1416_v20 = vpop.f32.mrb[47].mxu0 }
 0x1e3   : > { %13096 = vst [vmem:[#allocation116_spill] sm:$0xff] %v9775_v56 }
 0x1e4   : > { %2244 = vmatmul.mubr.bf16.gmra.mrb[164].mxu1 %v9517_v16  ;;  %v1419_v12 = vpop.f32.mrb[48].mxu0 }
 0x1e5   : > { %2251 = vmatprep.mubr.bf16.mxu1 %v9391_v6  ;;  %7913 = vmatmul.mubr.bf16.gmra.mrb[152].mxu0 %v13101_v0  ;;  %v13103_v6 = vld [vmem:[#allocation41_spill] sm:$0xff]  ;;  %v9799_v29 = vadd.f32 %v9618_v11, %v1419_v12  ;;  %v1421_v33 = vpop.f32.mrb[49].mxu0  ;;  %v13110_v11 = vld [vmem:[#allocation90_spill] sm:$0xff] }
 0x1e6   : > { %7916 = vmatprep.mubr.bf16.mxu0 %v13103_v6  ;;  %v1422_v57 = vpop.f32.mrb[50].mxu0  ;;  %v13111_v33 = vld [vmem:[#allocation91_spill] sm:$0xff] }
 0x1e7   : > { %v9783_v44 = vpop.f32.mrb[60].mxu1  ;;  %v1424_v0 = vpop.f32.mrb[51].mxu0 }
 0x1e8   : > { %13098 = vst [vmem:[#allocation117_spill] sm:$0xff] %v9783_v44  ;;  %v9788_v28 = vpop.f32.mrb[61].mxu1  ;;  %v13105_v44 = vld [vmem:[#allocation92_spill] sm:$0xff] }
 0x1e9   : > { %13099 = vst [vmem:[#allocation118_spill] sm:$0xff] %v9788_v28  ;;  %v9790_v56 = vpop.f32.mrb[62].mxu1 }
 0x1ea   : > { %13100 = vst [vmem:[#allocation119_spill] sm:$0xff] %v9790_v56  ;;  %v9793_v16 = vpop.f32.mrb[63].mxu1  ;;  %v9805_v56 = vadd.f32 %v9623_v19, %v1422_v57 }
 0x1eb   : > { %13102 = vst [vmem:[#allocation120_spill] sm:$0xff] %v9793_v16 }
 0x1ec   : > { %2252 = vmatmul.mubr.bf16.gmra.mrb[168].mxu1 %v9532_v61  ;;  %v1427_v12 = vpop.f32.mrb[52].mxu0 }
 0x1ed   : > { %2259 = vmatprep.mubr.bf16.mxu1 %v13104_v41  ;;  %7917 = vmatmul.mubr.bf16.gmra.mrb[156].mxu0 %v13109_v35  ;;  %v1429_v19 = vpop.f32.mrb[53].mxu0  ;;  %v13117_v35 = vld [vmem:[#allocation46_spill] sm:$0xff] }
 0x1ee   : > { %7920 = vmatprep.mubr.bf16.mxu0 %v13015_v9  ;;  %v1430_v0 = vpop.f32.mrb[54].mxu0 }
 0x1ef   : > { %v2045_v20 = vpop.f32.mrb[64].mxu1 }
 0x1f0   : > { %v9802_v28 = vadd.f32 %v2045_v20, %v13105_v44  ;;  %v2047_v16 = vpop.f32.mrb[65].mxu1  ;;  %v9815_v44 = vadd.f32 %v9613_v63, %v1427_v12  ;;  %v13113_v20 = vld [vmem:[#allocation96_spill] sm:$0xff]  ;;  %v13118_v63 = vld [vmem:[#allocation49_spill] sm:$0xff] }
 0x1f1   : > { %v2048_v6 = vpop.f32.mrb[66].mxu1  ;;  %v13119_v12 = vld [vmem:[#allocation93_spill] sm:$0xff] }
 0x1f2   : > { %13106 = vst [vmem:[#allocation92_spill] sm:$0xff] %v9802_v28  ;;  %v9808_v61 = vadd.f32 %v2048_v6, %v13107_v18  ;;  %v2050_v41 = vpop.f32.mrb[67].mxu1  ;;  %13112 = vst [vmem:[#allocation121_spill] sm:$0xff] %v9815_v44  ;;  %v9821_v18 = vadd.f32 %v9620_v13, %v1430_v0  ;;  %v13115_v28 = vld [vmem:[#allocation99_spill] sm:$0xff]  ;;  %v13120_v44 = vld [vmem:[#allocation94_spill] sm:$0xff] }
 0x1f3   : > { %v1432_v41 = vpop.f32.mrb[55].mxu0 }
 0x1f4   : > { %13108 = vst [vmem:[#allocation95_spill] sm:$0xff] %v9808_v61  ;;  %2260 = vmatmul.mubr.bf16.gmra.mrb[172].mxu1 %v13110_v11  ;;  %v1435_v19 = vpop.f32.mrb[56].mxu0 }
 0x1f5   : > { %2267 = vmatprep.mubr.bf16.mxu1 %v13111_v33  ;;  %7921 = vmatmul.mubr.bf16.gmra.mrb[160].mxu0 %v13117_v35  ;;  %v1437_v13 = vpop.f32.mrb[57].mxu0 }
 0x1f6   : > { %7924 = vmatprep.mubr.bf16.mxu0 %v13118_v63  ;;  %v13128_v63 = vld [vmem:[#allocation98_spill] sm:$0xff] }
 0x1f7   : > { %v2053_v16 = vpop.f32.mrb[68].mxu1 }
 0x1f8   : > { %v9818_v57 = vadd.f32 %v2053_v16, %v13113_v20  ;;  %v2055_v6 = vpop.f32.mrb[69].mxu1  ;;  %v9831_v16 = vadd.f32 %v9640_v5, %v1435_v19  ;;  %v1438_v20 = vpop.f32.mrb[58].mxu0  ;;  %v13126_v5 = vld [vmem:[#allocation53_spill] sm:$0xff] }
 0x1f9   : > { %v2056_v61 = vpop.f32.mrb[70].mxu1  ;;  %v13121_v6 = vld [vmem:[#allocation100_spill] sm:$0xff]  ;;  %v13127_v19 = vld [vmem:[#allocation97_spill] sm:$0xff] }
 0x1fa   : > { %13114 = vst [vmem:[#allocation96_spill] sm:$0xff] %v9818_v57  ;;  %v9824_v11 = vadd.f32 %v2056_v61, %v13115_v28  ;;  %v2058_v33 = vpop.f32.mrb[71].mxu1  ;;  %v9837_v61 = vadd.f32 %v9645_v49, %v1438_v20  ;;  %v1440_v28 = vpop.f32.mrb[59].mxu0  ;;  %v13125_v57 = vld [vmem:[#allocation50_spill] sm:$0xff] }
 0x1fc   : > { %13116 = vst [vmem:[#allocation99_spill] sm:$0xff] %v9824_v11  ;;  %2268 = vmatmul.mubr.bf16.gmra.mrb[176].mxu1 %v13119_v12  ;;  %v13123_v11 = vld [vmem:[#allocation103_spill] sm:$0xff]  ;;  %v1443_v13 = vpop.f32.mrb[60].mxu0 }
 0x1fd   : > { %2275 = vmatprep.mubr.bf16.mxu1 %v13120_v44  ;;  %7925 = vmatmul.mubr.bf16.gmra.mrb[164].mxu0 %v13125_v57  ;;  %v1445_v49 = vpop.f32.mrb[61].mxu0 }
 0x1fe   : > { %7928 = vmatprep.mubr.bf16.mxu0 %v13126_v5  ;;  %v13135_v5 = vld [vmem:[#allocation102_spill] sm:$0xff] }
 0x1ff   : > { %v2061_v0 = vpop.f32.mrb[72].mxu1 }
 0x200   : > { %v9834_v41 = vadd.f32 %v2061_v0, %v13121_v6  ;;  %v2063_v35 = vpop.f32.mrb[73].mxu1  ;;  %v9847_v0 = vadd.f32 %v9635_v58, %v1443_v13  ;;  %v1446_v6 = vpop.f32.mrb[62].mxu0  ;;  %v13133_v58 = vld [vmem:[#allocation57_spill] sm:$0xff] }
 0x201   : > { %v2064_v33 = vpop.f32.mrb[74].mxu1  ;;  %v1448_v28 = vpop.f32.mrb[63].mxu0  ;;  %v13134_v13 = vld [vmem:[#allocation101_spill] sm:$0xff] }
 0x202   : > { %13122 = vst [vmem:[#allocation46_spill] sm:$0xff] %v9834_v41  ;;  %v9840_v12 = vadd.f32 %v2064_v33, %v13123_v11  ;;  %v2066_v44 = vpop.f32.mrb[75].mxu1  ;;  %v9853_v11 = vadd.f32 %v9642_v52, %v1446_v6  ;;  %v13132_v41 = vld [vmem:[#allocation54_spill] sm:$0xff] }
 0x204   : > { %13124 = vst [vmem:[#allocation100_spill] sm:$0xff] %v9840_v12  ;;  %2276 = vmatmul.mubr.bf16.gmra.mrb[180].mxu1 %v13127_v19  ;;  %v13130_v12 = vld [vmem:[#allocation106_spill] sm:$0xff]  ;;  %v1451_v49 = vpop.f32.mrb[64].mxu0 }
 0x205   : > { %2283 = vmatprep.mubr.bf16.mxu1 %v13128_v63  ;;  %7929 = vmatmul.mubr.bf16.gmra.mrb[168].mxu0 %v13132_v41  ;;  %v1453_v52 = vpop.f32.mrb[65].mxu0 }
 0x206   : > { %7932 = vmatprep.mubr.bf16.mxu0 %v13133_v58  ;;  %v1454_v6 = vpop.f32.mrb[66].mxu0 }
 0x207   : > { %v2069_v20 = vpop.f32.mrb[76].mxu1  ;;  %v1456_v28 = vpop.f32.mrb[67].mxu0 }
 0x208   : > { %v9850_v35 = vadd.f32 %v2069_v20, %v9629_v14  ;;  %v2071_v44 = vpop.f32.mrb[77].mxu1  ;;  %v9863_v14 = vadd.f32 %v9660_v45, %v1451_v49  ;;  %v13139_v45 = vld [vmem:[#allocation61_spill] sm:$0xff]  ;;  %v13140_v49 = vld [vmem:[#allocation104_spill] sm:$0xff] }
 0x209   : > { %v2072_v33 = vpop.f32.mrb[78].mxu1 }
 0x20a   : > { %13129 = vst [vmem:[#allocation103_spill] sm:$0xff] %v9850_v35  ;;  %v9856_v19 = vadd.f32 %v2072_v33, %v13130_v12  ;;  %v2074_v63 = vpop.f32.mrb[79].mxu1  ;;  %v9869_v12 = vadd.f32 %v9665_v40, %v1454_v6  ;;  %v13141_v35 = vld [vmem:[#allocation30_spill] sm:$0xff] }
 0x20c   : > { %13131 = vst [vmem:[#allocation50_spill] sm:$0xff] %v9856_v19  ;;  %2284 = vmatmul.mubr.bf16.gmra.mrb[184].mxu1 %v13134_v13  ;;  %v13138_v19 = vld [vmem:[#allocation58_spill] sm:$0xff]  ;;  %v1459_v52 = vpop.f32.mrb[68].mxu0 }
 0x20d   : > { %2291 = vmatprep.mubr.bf16.mxu1 %v13135_v5  ;;  %7933 = vmatmul.mubr.bf16.gmra.mrb[172].mxu0 %v13138_v19  ;;  %v1461_v40 = vpop.f32.mrb[69].mxu0 }
 0x20e   : > { %7936 = vmatprep.mubr.bf16.mxu0 %v13139_v45  ;;  %v1462_v6 = vpop.f32.mrb[70].mxu0  ;;  %v8486_v40 = vld [vmem:[#allocation9 + $0x140] sm:$0xff]  }
 0x20f   : > { %v2077_v20 = vpop.f32.mrb[80].mxu1  ;;  %v1464_v28 = vpop.f32.mrb[71].mxu0  ;;  %8032 = vmatprep.subr.bf16.mxu1 %v8486_v40 }
 0x210   : > { %v9866_v44 = vadd.f32 %v2077_v20, %v9651_v23  ;;  %v2079_v63 = vpop.f32.mrb[81].mxu1  ;;  %v9879_v23 = vadd.f32 %v9655_v4, %v1459_v52  ;;  %v13145_v4 = vld [vmem:[#allocation65_spill] sm:$0xff]  ;;  %v13146_v52 = vld [vmem:[#allocation34_spill] sm:$0xff] }
 0x211   : > { %v2080_v33 = vpop.f32.mrb[82].mxu1 }
 0x212   : > { %13136 = vst [vmem:[#allocation106_spill] sm:$0xff] %v9866_v44  ;;  %v9872_v13 = vadd.f32 %v2080_v33, %v9658_v26  ;;  %v2082_v5 = vpop.f32.mrb[83].mxu1  ;;  %v9885_v26 = vadd.f32 %v9662_v47, %v1462_v6 }
 0x214   : > { %13137 = vst [vmem:[#allocation54_spill] sm:$0xff] %v9872_v13  ;;  %2292 = vmatmul.mubr.bf16.gmra.mrb[188].mxu1 %v13140_v49  ;;  %v13144_v13 = vld [vmem:[#allocation62_spill] sm:$0xff]  ;;  %v1467_v44 = vpop.f32.mrb[72].mxu0 }
 0x215   : > { %2911 = vmatprep.mubr.bf16.mxu1 %v13141_v35  ;;  %7937 = vmatmul.mubr.bf16.gmra.mrb[176].mxu0 %v13144_v13  ;;  %v9895_v47 = vadd.f32 %v9678_v17, %v1467_v44  ;;  %v13151_v44 = vld [vmem:[#allocation69_spill] sm:$0xff] }
 0x216   : > { %7940 = vmatprep.mubr.bf16.mxu0 %v13145_v4 }
 0x217   : > { %v2085_v20 = vpop.f32.mrb[84].mxu1 }
 0x218   : > { %v9882_v63 = vadd.f32 %v2085_v20, %v9671_v39  ;;  %v2087_v5 = vpop.f32.mrb[85].mxu1  ;;  %v13147_v39 = vld [vmem:[#allocation35_spill] sm:$0xff]  ;;  %v1469_v20 = vpop.f32.mrb[73].mxu0 }
 0x219   : > { %v2088_v33 = vpop.f32.mrb[86].mxu1  ;;  %v1470_v5 = vpop.f32.mrb[74].mxu0  ;;  %v13152_v20 = vld [vmem:[#allocation39_spill] sm:$0xff] }
 0x21a   : > { %13142 = vst [vmem:[#allocation57_spill] sm:$0xff] %v9882_v63  ;;  %v9888_v49 = vadd.f32 %v2088_v33, %v9676_v59  ;;  %v2090_v35 = vpop.f32.mrb[87].mxu1  ;;  %v9901_v28 = vadd.f32 %v9683_v51, %v1470_v5  ;;  %v13153_v63 = vld [vmem:[#allocation40_spill] sm:$0xff] }
 0x21b   : > { %v1472_v35 = vpop.f32.mrb[75].mxu0 }
 0x21c   : > { %13143 = vst [vmem:[#allocation58_spill] sm:$0xff] %v9888_v49  ;;  %2912 = vmatmul.mubr.bf16.vlgmr.msra.gmra.mrb[192].mxu1 %v13146_v52 }
 0x21d   : > { %2919 = vmatprep.mubr.bf16.mxu1 %v13147_v39  ;;  %8033 = vmatpush3.bf16.msra.mxu1 %v8486_v40  ;;  %v13150_v39 = vld [vmem:[#allocation66_spill] sm:$0xff]  ;;  %v1475_v40 = vpop.f32.mrb[76].mxu0 }
 0x21e   : > { %7941 = vmatmul.mubr.bf16.gmra.mrb[180].mxu0 %v13150_v39  ;;  %v1477_v51 = vpop.f32.mrb[77].mxu0 }
 0x21f   : > { %v2093_v6 = vpop.f32.mrb[88].mxu1  ;;  %7944 = vmatprep.mubr.bf16.mxu0 %v13151_v44  ;;  %v1478_v5 = vpop.f32.mrb[78].mxu0 }
 0x220   : > { %v9898_v59 = vadd.f32 %v2093_v6, %v9690_v10  ;;  %v2095_v33 = vpop.f32.mrb[89].mxu1  ;;  %v9911_v10 = vadd.f32 %v9673_v30, %v1475_v40  ;;  %v13157_v30 = vld [vmem:[#allocation73_spill] sm:$0xff]  ;;  %v13158_v40 = vld [vmem:[#allocation44_spill] sm:$0xff] }
 0x221   : > { %v2096_v52 = vpop.f32.mrb[90].mxu1 }
 0x222   : > { %13148 = vst [vmem:[#allocation61_spill] sm:$0xff] %v9898_v59  ;;  %v9904_v49 = vadd.f32 %v2096_v52, %v9695_v55  ;;  %v2098_v17 = vpop.f32.mrb[91].mxu1  ;;  %v9917_v55 = vadd.f32 %v9680_v3, %v1478_v5  ;;  %v1480_v52 = vpop.f32.mrb[79].mxu0  ;;  %v13159_v59 = vld [vmem:[#allocation14_spill] sm:$0xff] }
 0x224   : > { %13149 = vst [vmem:[#allocation30_spill] sm:$0xff] %v9904_v49  ;;  %2920 = vmatmul.mubr.bf16.gmra.mrb[196].mxu1 %v13152_v20  ;;  %v13156_v49 = vld [vmem:[#allocation70_spill] sm:$0xff]  ;;  %v1483_v51 = vpop.f32.mrb[80].mxu0 }
 0x225   : > { %2927 = vmatprep.mubr.bf16.mxu1 %v13153_v63  ;;  %v1485_v3 = vpop.f32.mrb[81].mxu0 }
 0x226   : > { %7945 = vmatmul.mubr.bf16.gmra.mrb[184].mxu0 %v13156_v49  ;;  %v1486_v5 = vpop.f32.mrb[82].mxu0 }
 0x227   : > { %v2101_v6 = vpop.f32.mrb[92].mxu1  ;;  %7948 = vmatprep.mubr.bf16.mxu0 %v13157_v30 }
 0x228   : > { %v9914_v33 = vadd.f32 %v2101_v6, %v9708_v27  ;;  %v2103_v35 = vpop.f32.mrb[93].mxu1  ;;  %v9927_v27 = vadd.f32 %v9697_v8, %v1483_v51  ;;  %v13162_v8 = vld [vmem:[#allocation17_spill] sm:$0xff]  ;;  %v13163_v51 = vld [vmem:[#allocation48_spill] sm:$0xff] }
 0x229   : > { %v2104_v17 = vpop.f32.mrb[94].mxu1 }
 0x22a   : > { %13154 = vst [vmem:[#allocation62_spill] sm:$0xff] %v9914_v33  ;;  %v9920_v20 = vadd.f32 %v2104_v17, %v9713_v21  ;;  %v2106_v63 = vpop.f32.mrb[95].mxu1  ;;  %v9933_v21 = vadd.f32 %v9702_v38, %v1486_v5  ;;  %v1488_v17 = vpop.f32.mrb[83].mxu0  ;;  %v13164_v33 = vld [vmem:[#allocation15_spill] sm:$0xff] }
 0x22c   : > { %13155 = vst [vmem:[#allocation65_spill] sm:$0xff] %v9920_v20  ;;  %2928 = vmatmul.mubr.bf16.gmra.mrb[200].mxu1 %v13158_v40  ;;  %v13161_v20 = vld [vmem:[#allocation74_spill] sm:$0xff]  ;;  %v1491_v3 = vpop.f32.mrb[84].mxu0 }
 0x22d   : > { %2935 = vmatprep.mubr.bf16.mxu1 %v13159_v59  ;;  %v1493_v38 = vpop.f32.mrb[85].mxu0 }
 0x22e   : > { %7949 = vmatmul.mubr.bf16.gmra.mrb[188].mxu0 %v13161_v20  ;;  %v1494_v5 = vpop.f32.mrb[86].mxu0  ;;  %v8488_v38 = vld [vmem:[#allocation9 + $0xc8] sm:$0xff]  }
 0x22f   : > { %v2109_v6 = vpop.f32.mrb[96].mxu1  ;;  %7968 = vmatprep.mubr.bf16.mxu0 %v13162_v8  ;;  %v9949_v17 = vadd.f32 %v9699_v46, %v1494_v5 }
 0x230   : > { %v9930_v35 = vadd.f32 %v2109_v6, %v9726_v62  ;;  %v2111_v52 = vpop.f32.mrb[97].mxu1  ;;  %v9943_v62 = vadd.f32 %v9692_v31, %v1491_v3  ;;  %v13166_v3 = vld [vmem:[#allocation22_spill] sm:$0xff] }
 0x231   : > { %v2112_v63 = vpop.f32.mrb[98].mxu1  ;;  %v8487_v52 = vld [vmem:[#allocation9 + $0xc0] sm:$0xff]  }
 0x232   : > { %v9936_v40 = vadd.f32 %v2112_v63, %v9731_v7  ;;  %v2114_v59 = vpop.f32.mrb[99].mxu1 }
 0x233   : > { %v1496_v59 = vpop.f32.mrb[87].mxu0 }
 0x234   : > { %13160 = vst [vmem:[#allocation34_spill] sm:$0xff] %v9936_v40  ;;  %2936 = vmatmul.mubr.bf16.gmra.mrb[204].mxu1 %v13163_v51  ;;  %v13167_v40 = vld [vmem:[#allocation52_spill] sm:$0xff]  ;;  %v1499_v46 = vpop.f32.mrb[88].mxu0 }
 0x235   : > { %2943 = vmatprep.mubr.bf16.mxu1 %v13164_v33  ;;  %v13165_v33 = vld [vmem:[#allocation19_spill] sm:$0xff]  ;;  %v9960_v5 = vadd.f32 %v9715_v37, %v1499_v46 }
 0x236   : > { %7969 = vmatmul.mubr.bf16.vlgmr.msra.gmra.mrb[192].mxu0 %v13165_v33 }
 0x237   : > { %v2117_v6 = vpop.f32.mrb[100].mxu1  ;;  %7972 = vmatprep.mubr.bf16.mxu0 %v13166_v3  ;;  %4403 = vmatpush1.bf16.msra.mxu0 %v8487_v52 }
 0x238   : > { %v9946_v7 = vadd.f32 %v2117_v6, %v9744_v48  ;;  %v2119_v63 = vpop.f32.mrb[101].mxu1  ;;  %4404 = vmatprep.subr.bf16.mxu0 %v13015_v9  ;;  %v8491_v48 = vld [vmem:[#allocation9 + $0x148] sm:$0xff]   ;;  %v13168_v6 = vld [vmem:[#allocation16_spill] sm:$0xff] }
 0x239   : > { %v2120_v8 = vpop.f32.mrb[102].mxu1  ;;  %8034 = vmatprep.subr.bf16.mxu1 %v8491_v48 }
 0x23a   : > { %v9952_v51 = vadd.f32 %v2120_v8, %v9749_v15  ;;  %v2122_v31 = vpop.f32.mrb[103].mxu1  ;;  %v1501_v15 = vpop.f32.mrb[89].mxu0  ;;  %v8489_v8 = vld [vmem:[#allocation9 + $0xd0] sm:$0xff]   ;;  %8035 = vmatpush3.bf16.msra.mxu1 %v8491_v48  ;;  %v13170_v48 = vld [vmem:[#allocation18_spill] sm:$0xff] }
 0x23b   : > { %v1502_v59 = vpop.f32.mrb[90].mxu0  ;;  %4405 = vmatpush1.bf16.msra.mxu0 %v8488_v38  ;;  %v8490_v38 = vld [vmem:[#allocation9 + $0xd8] sm:$0xff]  }
 0x23c   : > { %2944 = vmatmul.mubr.bf16.gmra.mrb[208].mxu1 %v13167_v40  ;;  %v9966_v40 = vadd.f32 %v9720_v22, %v1502_v59  ;;  %v1504_v31 = vpop.f32.mrb[91].mxu0  ;;  %4406 = vmatprep.subr.bf16.mxu0 %v13015_v9 }
 0x23d   : > { %2951 = vmatprep.mubr.bf16.mxu1 %v13168_v6  ;;  %v1507_v22 = vpop.f32.mrb[92].mxu0  ;;  %v13171_v6 = vld [vmem:[#allocation108_spill] sm:$0xff] }
 0x23e   : > { %7973 = vmatmul.mubr.bf16.gmra.mrb[196].mxu0 %v9106_v2  ;;  %v9978_v15 = vadd.f32 %v13171_v6, %v1507_v22  ;;  %v8492_v2 = vld [vmem:[#allocation9 + $0xe0] sm:$0xff]   ;;  %v13174_v6 = vld [vmem:[#allocation20_spill] sm:$0xff] }
 0x23f   : > { %v2125_v63 = vpop.f32.mrb[104].mxu1  ;;  %7976 = vmatprep.mubr.bf16.mxu0 %v9130_v32  ;;  %4407 = vmatpush1.bf16.msra.mxu0 %v8489_v8  ;;  %v13172_v32 = vld [vmem:[#allocation109_spill] sm:$0xff] }
 0x240   : > { %v9963_v52 = vadd.f32 %v2125_v63, %v9763_v42  ;;  %v2127_v33 = vpop.f32.mrb[105].mxu1  ;;  %v13169_v42 = vld [vmem:[#allocation56_spill] sm:$0xff]  ;;  %4408 = vmatprep.subr.bf16.mxu0 %v13015_v9  ;;  %v1509_v63 = vpop.f32.mrb[93].mxu0 }
 0x241   : > { %v2128_v3 = vpop.f32.mrb[106].mxu1  ;;  %v1510_v59 = vpop.f32.mrb[94].mxu0 }
 0x242   : > { %v9970_v37 = vadd.f32 %v2128_v3, %v9768_v53  ;;  %v2130_v46 = vpop.f32.mrb[107].mxu1  ;;  %v9984_v8 = vadd.f32 %v13172_v32, %v1510_v59  ;;  %v1512_v3 = vpop.f32.mrb[95].mxu0 }
 0x243   : > { %4409 = vmatpush1.bf16.msra.mxu0 %v8490_v38  ;;  %v8493_v38 = vld [vmem:[#allocation9 + $0xe8] sm:$0xff]  }
 0x244   : > { %2952 = vmatmul.mubr.bf16.gmra.mrb[212].mxu1 %v13169_v42  ;;  %4410 = vmatprep.subr.bf16.mxu0 %v13015_v9 }
 0x245   : > { %2959 = vmatprep.mubr.bf16.mxu1 %v13170_v48  ;;  %v1515_v48 = vpop.f32.mrb[96].mxu0 }
 0x246   : > { %7977 = vmatmul.mubr.bf16.gmra.mrb[200].mxu0 %v9133_v34  ;;  %v9996_v63 = vadd.f32 %v9733_v36, %v1515_v48 }
 0x247   : > { %v2133_v53 = vpop.f32.mrb[108].mxu1  ;;  %7980 = vmatprep.mubr.bf16.mxu0 %v9150_v54  ;;  %4411 = vmatpush1.bf16.msra.mxu0 %v8492_v2 }
 0x248   : > { %v9981_v33 = vadd.f32 %v2133_v53, %v9781_v24  ;;  %v2135_v31 = vpop.f32.mrb[109].mxu1  ;;  %v13173_v24 = vld [vmem:[#allocation60_spill] sm:$0xff]  ;;  %4412 = vmatprep.subr.bf16.mxu0 %v13015_v9  ;;  %v1517_v53 = vpop.f32.mrb[97].mxu0 }
 0x249   : > { %v2136_v46 = vpop.f32.mrb[110].mxu1  ;;  %v1518_v59 = vpop.f32.mrb[98].mxu0  ;;  %v13178_v53 = vld [vmem:[#allocation110_spill] sm:$0xff] }
 0x24a   : > { %v9988_v42 = vadd.f32 %v2136_v46, %v9786_v1  ;;  %v2138_v22 = vpop.f32.mrb[111].mxu1  ;;  %v10002_v54 = vadd.f32 %v9738_v50, %v1518_v59  ;;  %v1520_v32 = vpop.f32.mrb[99].mxu0  ;;  %v8494_v46 = vld [vmem:[#allocation9 + $0xf0] sm:$0xff]   ;;  %v13176_v50 = vld [vmem:[#allocation21_spill] sm:$0xff] }
 0x24b   : > { %4413 = vmatpush1.bf16.msra.mxu0 %v8493_v38  ;;  %v13175_v22 = vld [vmem:[#allocation64_spill] sm:$0xff] }
 0x24c   : > { %2960 = vmatmul.mubr.bf16.gmra.mrb[216].mxu1 %v13173_v24  ;;  %4414 = vmatprep.subr.bf16.mxu0 %v13015_v9 }
 0x24d   : > { %2967 = vmatprep.mubr.bf16.mxu1 %v13174_v6  ;;  %v13177_v6 = vld [vmem:[#allocation121_spill] sm:$0xff] }
 0x24e   : > { %7981 = vmatmul.mubr.bf16.gmra.mrb[204].mxu0 %v13089_v43 }
 0x24f   : > { %v2141_v1 = vpop.f32.mrb[112].mxu1  ;;  %7984 = vmatprep.mubr.bf16.mxu0 %v13091_v25  ;;  %4415 = vmatpush1.bf16.msra.mxu0 %v8494_v46  ;;  %v13180_v46 = vld [vmem:[#allocation36_spill] sm:$0xff] }
 0x250   : > { %v9999_v34 = vadd.f32 %v2141_v1, %v9799_v29  ;;  %v2143_v2 = vpop.f32.mrb[113].mxu1  ;;  %v1523_v29 = vpop.f32.mrb[100].mxu0  ;;  %4416 = vmatprep.subr.bf16.mxu0 %v13015_v9 }
 0x251   : > { %v2144_v31 = vpop.f32.mrb[114].mxu1  ;;  %v10014_v38 = vadd.f32 %v9728_v60, %v1523_v29  ;;  %v1525_v24 = vpop.f32.mrb[101].mxu0  ;;  %v8495_v60 = vld [vmem:[#allocation9 + $0xf8] sm:$0xff]   ;;  %v8496_v29 = vld [vmem:[#allocation9 + $0x150] sm:$0xff]  }
 0x252   : > { %v10006_v3 = vadd.f32 %v2144_v31, %v9805_v56  ;;  %v2146_v36 = vpop.f32.mrb[115].mxu1  ;;  %v1526_v48 = vpop.f32.mrb[102].mxu0  ;;  %v13179_v31 = vld [vmem:[#allocation32_spill] sm:$0xff]  ;;  %v13182_v24 = vld [vmem:[#allocation23_spill] sm:$0xff]  ;;  %8036 = vmatprep.subr.bf16.mxu1 %v8496_v29 }
 0x253   : > { %v10020_v1 = vadd.f32 %v13178_v53, %v1526_v48  ;;  %v1528_v59 = vpop.f32.mrb[103].mxu0  ;;  %4417 = vmatpush1.bf16.msra.mxu0 %v8495_v60  ;;  %8037 = vmatpush3.bf16.msra.mxu1 %v8496_v29  ;;  %v13189_v29 = vld [vmem:[#allocation24_spill] sm:$0xff] }
 0x254   : > { %2968 = vmatmul.mubr.bf16.gmra.mrb[220].mxu1 %v13175_v22  ;;  %v13181_v22 = vld [vmem:[#allocation68_spill] sm:$0xff]  ;;  %4418 = vmatprep.subr.bf16.mxu0 %v13015_v9  ;;  %v13184_v59 = vld [vmem:[#allocation29_spill] sm:$0xff] }
 0x255   : > { %2975 = vmatprep.mubr.bf16.mxu1 %v13176_v50  ;;  %v1531_v50 = vpop.f32.mrb[104].mxu0 }
 0x256   : > { %7985 = vmatmul.mubr.bf16.gmra.mrb[208].mxu0 %v13179_v31 }
 0x257   : > { %v2149_v56 = vpop.f32.mrb[116].mxu1  ;;  %7988 = vmatprep.mubr.bf16.mxu0 %v13180_v46 }
 0x258   : > { %v10017_v43 = vadd.f32 %v2149_v56, %v13177_v6  ;;  %v2151_v25 = vpop.f32.mrb[117].mxu1  ;;  %v13183_v56 = vld [vmem:[#allocation112_spill] sm:$0xff] }
 0x259   : > { %v2152_v2 = vpop.f32.mrb[118].mxu1  ;;  %v10031_v48 = vadd.f32 %v13183_v56, %v1531_v50  ;;  %v13186_v50 = vld [vmem:[#allocation37_spill] sm:$0xff] }
 0x25a   : > { %v10023_v32 = vadd.f32 %v2152_v2, %v9821_v18  ;;  %v2154_v36 = vpop.f32.mrb[119].mxu1  ;;  %v1533_v18 = vpop.f32.mrb[105].mxu0  ;;  %v13187_v56 = vld [vmem:[#allocation41_spill] sm:$0xff] }
 0x25b   : > { %v1534_v53 = vpop.f32.mrb[106].mxu0  ;;  %v13188_v18 = vld [vmem:[#allocation72_spill] sm:$0xff] }
 0x25c   : > { %2976 = vmatmul.mubr.bf16.gmra.mrb[224].mxu1 %v13181_v22  ;;  %v10037_v2 = vadd.f32 %v13184_v59, %v1534_v53  ;;  %v1536_v36 = vpop.f32.mrb[107].mxu0 }
 0x25d   : > { %2983 = vmatprep.mubr.bf16.mxu1 %v13182_v24  ;;  %v8497_v24 = vld [vmem:[#allocation9 + $0x100] sm:$0xff]  }
 0x25e   : > { %7989 = vmatmul.mubr.bf16.gmra.mrb[212].mxu0 %v13186_v50 }
 0x25f   : > { %v2157_v6 = vpop.f32.mrb[120].mxu1  ;;  %7992 = vmatprep.mubr.bf16.mxu0 %v13187_v56  ;;  %4419 = vmatpush1.bf16.msra.mxu0 %v8497_v24 }
 0x260   : > { %v10034_v25 = vadd.f32 %v2157_v6, %v9831_v16  ;;  %v2159_v31 = vpop.f32.mrb[121].mxu1  ;;  %v1539_v16 = vpop.f32.mrb[108].mxu0  ;;  %4420 = vmatprep.subr.bf16.mxu0 %v13015_v9  ;;  %v13190_v6 = vld [vmem:[#allocation111_spill] sm:$0xff] }
 0x261   : > { %v2160_v60 = vpop.f32.mrb[122].mxu1  ;;  %v10048_v53 = vadd.f32 %v13190_v6, %v1539_v16  ;;  %v1541_v59 = vpop.f32.mrb[109].mxu0  ;;  %v8498_v16 = vld [vmem:[#allocation9 + $0x108] sm:$0xff]   ;;  %v13195_v6 = vld [vmem:[#allocation45_spill] sm:$0xff] }
 0x262   : > { %v10040_v46 = vadd.f32 %v2160_v60, %v9837_v61  ;;  %v2162_v22 = vpop.f32.mrb[123].mxu1  ;;  %v1542_v31 = vpop.f32.mrb[110].mxu0  ;;  %v13191_v60 = vld [vmem:[#allocation113_spill] sm:$0xff]  ;;  %v13196_v59 = vld [vmem:[#allocation75_spill] sm:$0xff] }
 0x263   : > { %v10054_v22 = vadd.f32 %v13191_v60, %v1542_v31  ;;  %v1544_v56 = vpop.f32.mrb[111].mxu0  ;;  %4421 = vmatpush1.bf16.msra.mxu0 %v8498_v16  ;;  %v13198_v31 = vld [vmem:[#allocation114_spill] sm:$0xff] }
 0x264   : > { %13185 = vst [vmem:[#allocation35_spill] sm:$0xff] %v10040_v46  ;;  %2984 = vmatmul.mubr.bf16.gmra.mrb[228].mxu1 %v13188_v18  ;;  %v13194_v46 = vld [vmem:[#allocation42_spill] sm:$0xff]  ;;  %4422 = vmatprep.subr.bf16.mxu0 %v13015_v9 }
 0x265   : > { %2991 = vmatprep.mubr.bf16.mxu1 %v13189_v29  ;;  %13192 = vst [vmem:[#allocation66_spill] sm:$0xff] %v10054_v22  ;;  %v8499_v22 = vld [vmem:[#allocation9 + $0x110] sm:$0xff]  }
 0x266   : > { %7993 = vmatmul.mubr.bf16.gmra.mrb[216].mxu0 %v13194_v46  ;;  %v13199_v46 = vld [vmem:[#allocation116_spill] sm:$0xff] }
 0x267   : > { %v2165_v61 = vpop.f32.mrb[124].mxu1  ;;  %7996 = vmatprep.mubr.bf16.mxu0 %v13195_v6  ;;  %4423 = vmatpush1.bf16.msra.mxu0 %v8499_v22 }
 0x268   : > { %v10051_v36 = vadd.f32 %v2165_v61, %v9847_v0  ;;  %v2167_v50 = vpop.f32.mrb[125].mxu1  ;;  %v1547_v0 = vpop.f32.mrb[112].mxu0  ;;  %v13197_v61 = vld [vmem:[#allocation25_spill] sm:$0xff]  ;;  %4424 = vmatprep.subr.bf16.mxu0 %v13015_v9 }
 0x269   : > { %v2168_v24 = vpop.f32.mrb[126].mxu1  ;;  %v10065_v60 = vadd.f32 %v13198_v31, %v1547_v0  ;;  %v1549_v50 = vpop.f32.mrb[113].mxu0  ;;  %v13202_v0 = vld [vmem:[#allocation49_spill] sm:$0xff] }
 0x26a   : > { %v10057_v18 = vadd.f32 %v2168_v24, %v9853_v11  ;;  %v2170_v29 = vpop.f32.mrb[127].mxu1  ;;  %v1550_v56 = vpop.f32.mrb[114].mxu0  ;;  %v13203_v31 = vld [vmem:[#allocation77_spill] sm:$0xff]  ;;  %v13204_v50 = vld [vmem:[#allocation26_spill] sm:$0xff] }
 0x26b   : > { %v10071_v29 = vadd.f32 %v13199_v46, %v1550_v56 }
 0x26c   : > { %13193 = vst [vmem:[#allocation69_spill] sm:$0xff] %v10057_v18  ;;  %2992 = vmatmul.mubr.bf16.gmra.mrb[232].mxu1 %v13196_v59  ;;  %v1552_v59 = vpop.f32.mrb[115].mxu0 }
 0x26d   : > { %2999 = vmatprep.mubr.bf16.mxu1 %v13197_v61  ;;  %13200 = vst [vmem:[#allocation39_spill] sm:$0xff] %v10071_v29  ;;  %v13206_v59 = vld [vmem:[#allocation115_spill] sm:$0xff]  ;;  %v8500_v29 = vld [vmem:[#allocation9 + $0x118] sm:$0xff]  }
 0x26e   : > { %7997 = vmatmul.mubr.bf16.gmra.mrb[220].mxu0 %v13015_v9 }
 0x26f   : > { %v2173_v11 = vpop.f32.mrb[128].mxu1  ;;  %8000 = vmatprep.mubr.bf16.mxu0 %v13202_v0  ;;  %4425 = vmatpush1.bf16.msra.mxu0 %v8500_v29  ;;  %v13212_v29 = vld [vmem:[#allocation120_spill] sm:$0xff] }
 0x270   : > { %v10068_v24 = vadd.f32 %v2173_v11, %v9863_v14  ;;  %v2175_v6 = vpop.f32.mrb[129].mxu1  ;;  %v1555_v14 = vpop.f32.mrb[116].mxu0  ;;  %v13205_v11 = vld [vmem:[#allocation31_spill] sm:$0xff]  ;;  %4426 = vmatprep.subr.bf16.mxu0 %v13015_v9 }
 0x271   : > { %v2176_v16 = vpop.f32.mrb[130].mxu1  ;;  %v10082_v56 = vadd.f32 %v13205_v11, %v1555_v14  ;;  %v1557_v46 = vpop.f32.mrb[117].mxu0  ;;  %v13208_v14 = vld [vmem:[#allocation53_spill] sm:$0xff]  ;;  %v13209_v11 = vld [vmem:[#allocation78_spill] sm:$0xff] }
 0x272   : > { %v10074_v61 = vadd.f32 %v2176_v16, %v9869_v12  ;;  %v2178_v18 = vpop.f32.mrb[131].mxu1  ;;  %v1558_v12 = vpop.f32.mrb[118].mxu0 }
 0x273   : > { %v10088_v16 = vadd.f32 %v13206_v59, %v1558_v12  ;;  %v1560_v0 = vpop.f32.mrb[119].mxu0  ;;  %v13211_v12 = vld [vmem:[#allocation118_spill] sm:$0xff] }
 0x274   : > { %13201 = vst [vmem:[#allocation40_spill] sm:$0xff] %v10074_v61  ;;  %3000 = vmatmul.mubr.bf16.gmra.mrb[236].mxu1 %v13203_v31  ;;  %v1563_v46 = vpop.f32.mrb[120].mxu0 }
 0x275   : > { %3007 = vmatprep.mubr.bf16.mxu1 %v13204_v50  ;;  %13207 = vst [vmem:[#allocation70_spill] sm:$0xff] %v10088_v16  ;;  %v10099_v59 = vadd.f32 %v13211_v12, %v1563_v46  ;;  %v8502_v16 = vld [vmem:[#allocation9 + $0x120] sm:$0xff]   ;;  %v13214_v12 = vld [vmem:[#allocation28_spill] sm:$0xff] }
 0x276   : > { %8001 = vmatmul.mubr.bf16.gmra.mrb[224].mxu0 %v13125_v57 }
 0x277   : > { %v2181_v6 = vpop.f32.mrb[132].mxu1  ;;  %8004 = vmatprep.mubr.bf16.mxu0 %v13208_v14  ;;  %4427 = vmatpush1.bf16.msra.mxu0 %v8502_v16 }
 0x278   : > { %v10085_v18 = vadd.f32 %v2181_v6, %v9879_v23  ;;  %v2183_v22 = vpop.f32.mrb[133].mxu1  ;;  %v8501_v23 = vld [vmem:[#allocation9 + $0x158] sm:$0xff]   ;;  %v13210_v6 = vld [vmem:[#allocation27_spill] sm:$0xff]  ;;  %4428 = vmatprep.subr.bf16.mxu0 %v13015_v9 }
 0x279   : > { %v2184_v31 = vpop.f32.mrb[134].mxu1  ;;  %v1565_v22 = vpop.f32.mrb[121].mxu0  ;;  %8038 = vmatprep.subr.bf16.mxu1 %v8501_v23 }
 0x27a   : > { %v10091_v61 = vadd.f32 %v2184_v31, %v9885_v26  ;;  %v2186_v50 = vpop.f32.mrb[135].mxu1  ;;  %v1566_v0 = vpop.f32.mrb[122].mxu0  ;;  %8039 = vmatpush3.bf16.msra.mxu1 %v8501_v23  ;;  %v13213_v23 = vld [vmem:[#allocation79_spill] sm:$0xff]  ;;  %v13215_v22 = vld [vmem:[#allocation117_spill] sm:$0xff] }
 0x27b   : > { %v10105_v31 = vadd.f32 %v13212_v29, %v1566_v0  ;;  %v1568_v14 = vpop.f32.mrb[123].mxu0 }
 0x27c   : > { %3008 = vmatmul.mubr.bf16.gmra.mrb[240].mxu1 %v13209_v11 }
 0x27d   : > { %3015 = vmatprep.mubr.bf16.mxu1 %v13210_v6 }
 0x27e   : > { %8005 = vmatmul.mubr.bf16.gmra.mrb[228].mxu0 %v13132_v41  ;;  %v13216_v41 = vld [vmem:[#allocation119_spill] sm:$0xff] }
 0x27f   : > { %v2189_v26 = vpop.f32.mrb[136].mxu1  ;;  %8008 = vmatprep.mubr.bf16.mxu0 %v13133_v58 }
 0x280   : > { %v10102_v57 = vadd.f32 %v2189_v26, %v9895_v47  ;;  %v2191_v50 = vpop.f32.mrb[137].mxu1  ;;  %v1571_v47 = vpop.f32.mrb[124].mxu0 }
 0x281   : > { %v2192_v11 = vpop.f32.mrb[138].mxu1  ;;  %v10116_v26 = vadd.f32 %v13215_v22, %v1571_v47  ;;  %v1573_v0 = vpop.f32.mrb[125].mxu0  ;;  %v13218_v47 = vld [vmem:[#allocation80_spill] sm:$0xff] }
 0x282   : > { %v10108_v6 = vadd.f32 %v2192_v11, %v9901_v28  ;;  %v2194_v46 = vpop.f32.mrb[139].mxu1  ;;  %v1574_v28 = vpop.f32.mrb[126].mxu0  ;;  %v13219_v22 = vld [vmem:[#allocation96_spill] sm:$0xff] }
 0x283   : > { %v10122_v14 = vadd.f32 %v13216_v41, %v1574_v28  ;;  %v1576_v16 = vpop.f32.mrb[127].mxu0  ;;  %v8503_v46 = vld [vmem:[#allocation9 + $0x128] sm:$0xff]  }
 0x284   : > { %3016 = vmatmul.mubr.bf16.gmra.mrb[244].mxu1 %v13213_v23  ;;  %4429 = vmatpush1.bf16.msra.mxu0 %v8503_v46  ;;  %v13222_v16 = vld [vmem:[#allocation99_spill] sm:$0xff] }
 0x285   : > { %3023 = vmatprep.mubr.bf16.mxu1 %v13214_v12  ;;  %13217 = vst [vmem:[#allocation73_spill] sm:$0xff] %v10122_v14  ;;  %4430 = vmatprep.subr.bf16.mxu0 %v13015_v9 }
 0x286   : > { %8009 = vmatmul.mubr.bf16.gmra.mrb[232].mxu0 %v13138_v19 }
 0x287   : > { %v2197_v29 = vpop.f32.mrb[140].mxu1  ;;  %8012 = vmatprep.mubr.bf16.mxu0 %v13139_v45 }
 0x288   : > { %v10119_v50 = vadd.f32 %v2197_v29, %v9911_v10  ;;  %v2199_v58 = vpop.f32.mrb[141].mxu1  ;;  %v7890_v10 = vpop.f32.mrb[128].mxu0 }
 0x289   : > { %v2200_v11 = vpop.f32.mrb[142].mxu1  ;;  %v10133_v0 = vadd.f32 %v7890_v10, %v13219_v22  ;;  %v2334_v29 = vpop.f32.mrb[129].mxu0  ;;  %v8505_v10 = vld [vmem:[#allocation9 + $0x160] sm:$0xff]  }
 0x28a   : > { %v10125_v23 = vadd.f32 %v2200_v11, %v9917_v55  ;;  %v2202_v12 = vpop.f32.mrb[143].mxu1  ;;  %v13221_v55 = vld [vmem:[#allocation92_spill] sm:$0xff]  ;;  %v7891_v58 = vpop.f32.mrb[130].mxu0  ;;  %8040 = vmatprep.subr.bf16.mxu1 %v8505_v10 }
 0x28b   : > { %13220 = vst [vmem:[#allocation44_spill] sm:$0xff] %v10133_v0  ;;  %v10136_v41 = vadd.f32 %v2334_v29, %v13221_v55  ;;  %v10142_v11 = vadd.f32 %v7891_v58, %v13222_v16  ;;  %v2337_v46 = vpop.f32.mrb[131].mxu0  ;;  %v8506_v55 = vld [vmem:[#allocation9 + $0x168] sm:$0xff]   ;;  %8041 = vmatpush3.bf16.msra.mxu1 %v8505_v10  ;;  %v8508_v10 = vld [vmem:[#allocation9 + $0x170] sm:$0xff]  }
 0x28c   : > { %3024 = vmatmul.mubr.bf16.gmra.mrb[248].mxu1 %v13218_v47  ;;  %v13223_v47 = vld [vmem:[#allocation95_spill] sm:$0xff]  ;;  %v7894_v29 = vpop.f32.mrb[132].mxu0  ;;  %8042 = vmatprep.subr.bf16.mxu1 %v8506_v55 }
 0x28d   : > { %3031 = vmatprep.mubr.bf16.mxu1 %v13015_v9  ;;  %v10145_v14 = vadd.f32 %v2337_v46, %v13223_v47  ;;  %v13226_v58 = vld [vmem:[#allocation103_spill] sm:$0xff]  ;;  %v2350_v16 = vpop.f32.mrb[133].mxu0  ;;  %v13229_v47 = vld [vmem:[#allocation50_spill] sm:$0xff] }
 0x28e   : > { %8013 = vmatmul.mubr.bf16.gmra.mrb[236].mxu0 %v13144_v13  ;;  %v13228_v13 = vld [vmem:[#allocation46_spill] sm:$0xff] }
 0x28f   : > { %v2205_v28 = vpop.f32.mrb[144].mxu1  ;;  %13224 = vst [vmem:[#allocation14_spill] sm:$0xff] %v10145_v14  ;;  %8016 = vmatprep.mubr.bf16.mxu0 %v13145_v4  ;;  %v7895_v4 = vpop.f32.mrb[134].mxu0  ;;  %8043 = vmatpush3.bf16.msra.mxu1 %v8506_v55 }
 0x290   : > { %v10139_v19 = vadd.f32 %v2205_v28, %v9927_v27  ;;  %v2207_v45 = vpop.f32.mrb[145].mxu1  ;;  %v8504_v27 = vld [vmem:[#allocation9 + $0x130] sm:$0xff]   ;;  %v13225_v28 = vld [vmem:[#allocation33_spill] sm:$0xff]  ;;  %8044 = vmatprep.subr.bf16.mxu1 %v8508_v10 }
 0x291   : > { %v2208_v12 = vpop.f32.mrb[146].mxu1  ;;  %4431 = vmatpush1.bf16.msra.mxu0 %v8504_v27  ;;  %v10155_v45 = vadd.f32 %v7894_v29, %v13226_v58  ;;  %v10165_v27 = vadd.f32 %v7895_v4, %v13229_v47  ;;  %v13231_v58 = vld [vmem:[#allocation100_spill] sm:$0xff]  ;;  %v8507_v4 = vld [vmem:[#allocation9 + $0x138] sm:$0xff]  }
 0x292   : > { %v10148_v22 = vadd.f32 %v2208_v12, %v9933_v21  ;;  %v2210_v0 = vpop.f32.mrb[147].mxu1  ;;  %4432 = vmatprep.subr.bf16.mxu0 %v13015_v9  ;;  %v13235_v47 = vld [vmem:[#allocation57_spill] sm:$0xff] }
 0x293   : > { %13227 = vst [vmem:[#allocation74_spill] sm:$0xff] %v10155_v45  ;;  %v10159_v0 = vadd.f32 %v2350_v16, %v13228_v13  ;;  %13230 = vst [vmem:[#allocation17_spill] sm:$0xff] %v10165_v27  ;;  %v13234_v13 = vld [vmem:[#allocation38_spill] sm:$0xff]  ;;  %8045 = vmatpush3.bf16.msra.mxu1 %v8508_v10 }
 0x294   : > { %3032 = vmatmul.mubr.bf16.gmra.mrb[252].mxu1 %v13015_v9 }
 0x295   : > { %3039 = vmatprep.mubr.bf16.mxu1 %v13225_v28  ;;  %v2353_v28 = vpop.f32.mrb[135].mxu0  ;;  %4433 = vmatpush1.bf16.msra.mxu0 %v8507_v4 }
 0x296   : > { %v10168_v45 = vadd.f32 %v2353_v28, %v13231_v58  ;;  %8017 = vmatmul.mubr.bf16.gmra.mrb[240].mxu0 %v13150_v39 }
 0x297   : > { %v2213_v21 = vpop.f32.mrb[148].mxu1  ;;  %8020 = vmatprep.mubr.bf16.mxu0 %v13151_v44 }
 0x298   : > { %v10162_v46 = vadd.f32 %v2213_v21, %v9943_v62  ;;  %v2215_v12 = vpop.f32.mrb[149].mxu1  ;;  %13232 = vst [vmem:[#allocation48_spill] sm:$0xff] %v10168_v45  ;;  %v13233_v62 = vld [vmem:[#allocation81_spill] sm:$0xff]  ;;  %v7898_v21 = vpop.f32.mrb[136].mxu0 }
 0x299   : > { %v2216_v29 = vpop.f32.mrb[150].mxu1  ;;  %v8509_v12 = vld [vmem:[#allocation9 + $0x178] sm:$0xff]   ;;  %v10178_v28 = vadd.f32 %v7898_v21, %v13235_v47  ;;  %v2366_v58 = vpop.f32.mrb[137].mxu0  ;;  %v13238_v21 = vld [vmem:[#allocation54_spill] sm:$0xff] }
 0x29a   : > { %v10171_v14 = vadd.f32 %v2216_v29, %v9949_v17  ;;  %v2218_v16 = vpop.f32.mrb[151].mxu1  ;;  %v13236_v29 = vld [vmem:[#allocation106_spill] sm:$0xff]  ;;  %v7899_v39 = vpop.f32.mrb[138].mxu0  ;;  %8046 = vmatprep.subr.bf16.mxu1 %v8509_v12 }
 0x29b   : > { %v10181_v16 = vadd.f32 %v2366_v58, %v13236_v29  ;;  %v2369_v45 = vpop.f32.mrb[139].mxu0  ;;  %8047 = vmatpush3.bf16.msra.mxu1 %v8509_v12  ;;  %v13242_v29 = vld [vmem:[#allocation62_spill] sm:$0xff] }
 0x29c   : > { %3040 = vmatmul.mubr.bf16.gmra.mrb[0].mxu1 %v13233_v62  ;;  %v13237_v62 = vld [vmem:[#allocation58_spill] sm:$0xff]  ;;  %v10190_v47 = vadd.f32 %v2369_v45, %v13238_v21  ;;  %5124 = vmatprep.subr.bf16.mxu1 %v13015_v9  ;;  %v7902_v4 = vpop.f32.mrb[140].mxu0  ;;  %v13244_v21 = vld [vmem:[#allocation65_spill] sm:$0xff] }
 0x29d   : > { %3047 = vmatprep.mubr.bf16.mxu1 %v13234_v13  ;;  %v10187_v13 = vadd.f32 %v7899_v39, %v13237_v62  ;;  %v10201_v39 = vadd.f32 %v7902_v4, %v13242_v29  ;;  %v2382_v45 = vpop.f32.mrb[141].mxu0 }
 0x29e   : > { %13239 = vst [vmem:[#allocation15_spill] sm:$0xff] %v10190_v47  ;;  %8021 = vmatmul.mubr.bf16.gmra.mrb[244].mxu0 %v13156_v49  ;;  %v7903_v62 = vpop.f32.mrb[142].mxu0  ;;  %v10206_v49 = vld [vmem:[#allocation9 + $0x80] sm:$0xff]  }
 0x29f   : > { %v2221_v17 = vpop.f32.mrb[152].mxu1  ;;  %8024 = vmatprep.mubr.bf16.mxu0 %v13157_v30  ;;  %v13246_v47 = vld [vmem:[#allocation30_spill] sm:$0xff]  ;;  %8112 = vmatprep.subr.bf16.mxu0 %v10206_v49 }
 0x2a0   : > { %v10184_v44 = vadd.f32 %v2221_v17, %v9960_v5  ;;  %v2223_v55 = vpop.f32.mrb[153].mxu1  ;;  %v13240_v5 = vld [vmem:[#allocation82_spill] sm:$0xff]  ;;  %v13241_v17 = vld [vmem:[#allocation43_spill] sm:$0xff] }
 0x2a1   : > { %v2224_v27 = vpop.f32.mrb[154].mxu1 }
 0x2a2   : > { %v10193_v10 = vadd.f32 %v2224_v27, %v9966_v40  ;;  %v2226_v58 = vpop.f32.mrb[155].mxu1  ;;  %v13243_v40 = vld [vmem:[#allocation61_spill] sm:$0xff] }
 0x2a3   : > { %v10204_v27 = vadd.f32 %v2382_v45, %v13243_v40  ;;  %v10212_v58 = vadd.f32 %v7903_v62, %v13244_v21  ;;  %v13247_v40 = vld [vmem:[#allocation76_spill] sm:$0xff]  ;;  %v13249_v62 = vld [vmem:[#allocation47_spill] sm:$0xff] }
 0x2a4   : > { %3048 = vmatmul.mubr.bf16.gmra.mrb[4].mxu1 %v13240_v5  ;;  %v2385_v5 = vpop.f32.mrb[143].mxu0 }
 0x2a5   : > { %3055 = vmatprep.mubr.bf16.mxu1 %v13241_v17  ;;  %13245 = vst [vmem:[#allocation19_spill] sm:$0xff] %v10212_v58  ;;  %v10215_v4 = vadd.f32 %v2385_v5, %v13246_v47  ;;  %v13250_v58 = vld [vmem:[#allocation34_spill] sm:$0xff] }
 0x2a6   : > { %8025 = vmatmul.mubr.bf16.gmra.mrb[248].mxu0 %v13161_v20 }
 0x2a7   : > { %v2229_v55 = vpop.f32.mrb[156].mxu1  ;;  %8028 = vmatprep.mubr.bf16.mxu0 %v13247_v40 }
 0x2a8   : > { %v10209_v30 = vadd.f32 %v2229_v55, %v9978_v15  ;;  %v2231_v12 = vpop.f32.mrb[157].mxu1  ;;  %v13248_v15 = vld [vmem:[#allocation83_spill] sm:$0xff]  ;;  %v7906_v55 = vpop.f32.mrb[144].mxu0 }
 0x2a9   : > { %v2232_v17 = vpop.f32.mrb[158].mxu1  ;;  %v10226_v12 = vadd.f32 %v7906_v55, %v9946_v7  ;;  %v2398_v47 = vpop.f32.mrb[145].mxu0 }
 0x2aa   : > { %v10219_v29 = vadd.f32 %v2232_v17, %v9984_v8  ;;  %v2234_v45 = vpop.f32.mrb[159].mxu1  ;;  %v10229_v5 = vadd.f32 %v2398_v47, %v9930_v35  ;;  %v7907_v8 = vpop.f32.mrb[146].mxu0  ;;  %v13251_v35 = vld [vmem:[#allocation84_spill] sm:$0xff] }
 0x2ab   : > { %v10235_v45 = vadd.f32 %v7907_v8, %v9952_v51  ;;  %v2401_v40 = vpop.f32.mrb[147].mxu0 }
 0x2ac   : > { %3056 = vmatmul.mubr.bf16.gmra.mrb[8].mxu1 %v13248_v15 }
 0x2ad   : > { %3063 = vmatprep.mubr.bf16.mxu1 %v13249_v62  ;;  %v10238_v62 = vadd.f32 %v2401_v40, %v13250_v58 }
 0x2ae   : > { %8029 = vmatmul.mubr.bf16.gmra.mrb[252].mxu0 %v13015_v9 }
 0x2af   : > { %v2237_v21 = vpop.f32.mrb[160].mxu1 }
 0x2b0   : > { %v10232_v17 = vadd.f32 %v2237_v21, %v9996_v63  ;;  %v2239_v20 = vpop.f32.mrb[161].mxu1  ;;  %v7910_v47 = vpop.f32.mrb[148].mxu0  ;;  %v13252_v63 = vld [vmem:[#allocation51_spill] sm:$0xff] }
 0x2b1   : > { %v2240_v15 = vpop.f32.mrb[162].mxu1  ;;  %v10247_v21 = vadd.f32 %v7910_v47, %v9981_v33  ;;  %v2414_v51 = vpop.f32.mrb[149].mxu0 }
 0x2b2   : > { %v10241_v7 = vadd.f32 %v2240_v15, %v10002_v54  ;;  %v2242_v55 = vpop.f32.mrb[163].mxu1  ;;  %v10250_v20 = vadd.f32 %v2414_v51, %v9963_v52  ;;  %v7911_v58 = vpop.f32.mrb[150].mxu0  ;;  %v13255_v51 = vld [vmem:[#allocation55_spill] sm:$0xff] }
 0x2b3   : > { %13253 = vst [vmem:[#allocation22_spill] sm:$0xff] %v10247_v21  ;;  %v10256_v15 = vadd.f32 %v7911_v58, %v9988_v42  ;;  %v2417_v55 = vpop.f32.mrb[151].mxu0  ;;  %v13254_v21 = vld [vmem:[#allocation85_spill] sm:$0xff] }
 0x2b4   : > { %3064 = vmatmul.mubr.bf16.gmra.mrb[12].mxu1 %v13251_v35 }
 0x2b5   : > { %3071 = vmatprep.mubr.bf16.mxu1 %v13252_v63  ;;  %v10259_v63 = vadd.f32 %v2417_v55, %v9970_v37 }
 0x2b7   : > { %v2245_v8 = vpop.f32.mrb[164].mxu1 }
 0x2b8   : > { %v10253_v54 = vadd.f32 %v2245_v8, %v10014_v38  ;;  %v2247_v40 = vpop.f32.mrb[165].mxu1  ;;  %v7914_v52 = vpop.f32.mrb[152].mxu0 }
 0x2b9   : > { %v2248_v35 = vpop.f32.mrb[166].mxu1  ;;  %v10267_v38 = vadd.f32 %v7914_v52, %v10017_v43  ;;  %v2430_v8 = vpop.f32.mrb[153].mxu0 }
 0x2ba   : > { %v10262_v33 = vadd.f32 %v2248_v35, %v10020_v1  ;;  %v2250_v47 = vpop.f32.mrb[167].mxu1  ;;  %v10270_v58 = vadd.f32 %v2430_v8, %v9999_v34  ;;  %v7915_v40 = vpop.f32.mrb[154].mxu0  ;;  %v13259_v8 = vld [vmem:[#allocation59_spill] sm:$0xff] }
 0x2bb   : > { %13256 = vst [vmem:[#allocation52_spill] sm:$0xff] %v10267_v38  ;;  %v10276_v55 = vadd.f32 %v7915_v40, %v10023_v32  ;;  %v13265_v38 = vld [vmem:[#allocation87_spill] sm:$0xff] }
 0x2bc   : > { %3072 = vmatmul.mubr.bf16.gmra.mrb[16].mxu1 %v13254_v21  ;;  %v2433_v21 = vpop.f32.mrb[155].mxu0 }
 0x2bd   : > { %3079 = vmatprep.mubr.bf16.mxu1 %v13255_v51  ;;  %13257 = vst [vmem:[#allocation16_spill] sm:$0xff] %v10276_v55  ;;  %v10279_v47 = vadd.f32 %v2433_v21, %v10006_v3  ;;  %v13258_v51 = vld [vmem:[#allocation86_spill] sm:$0xff]  ;;  %v13261_v21 = vld [vmem:[#allocation69_spill] sm:$0xff]  ;;  %v13263_v55 = vld [vmem:[#allocation35_spill] sm:$0xff] }
 0x2bf   : > { %v2253_v42 = vpop.f32.mrb[168].mxu1 }
 0x2c0   : > { %v10273_v37 = vadd.f32 %v2253_v42, %v10031_v48  ;;  %v2255_v1 = vpop.f32.mrb[169].mxu1  ;;  %v7918_v34 = vpop.f32.mrb[156].mxu0 }
 0x2c1   : > { %v2256_v35 = vpop.f32.mrb[170].mxu1  ;;  %v10287_v48 = vadd.f32 %v7918_v34, %v10051_v36  ;;  %v2446_v42 = vpop.f32.mrb[157].mxu0  ;;  %v13264_v36 = vld [vmem:[#allocation66_spill] sm:$0xff] }
 0x2c2   : > { %v10282_v43 = vadd.f32 %v2256_v35, %v10037_v2  ;;  %v2258_v52 = vpop.f32.mrb[171].mxu1  ;;  %v10290_v40 = vadd.f32 %v2446_v42, %v10034_v25  ;;  %v7919_v1 = vpop.f32.mrb[158].mxu0  ;;  %v13266_v42 = vld [vmem:[#allocation63_spill] sm:$0xff] }
 0x2c3   : > { %13260 = vst [vmem:[#allocation56_spill] sm:$0xff] %v10287_v48  ;;  %v10296_v35 = vadd.f32 %v7919_v1, %v13261_v21  ;;  %v2449_v52 = vpop.f32.mrb[159].mxu0 }
 0x2c4   : > { %3080 = vmatmul.mubr.bf16.gmra.mrb[20].mxu1 %v13258_v51 }
 0x2c5   : > { %3087 = vmatprep.mubr.bf16.mxu1 %v13259_v8  ;;  %13262 = vst [vmem:[#allocation18_spill] sm:$0xff] %v10296_v35  ;;  %v10299_v8 = vadd.f32 %v2449_v52, %v13263_v55  ;;  %v13270_v35 = vld [vmem:[#allocation88_spill] sm:$0xff] }
 0x2c7   : > { %v2261_v32 = vpop.f32.mrb[172].mxu1 }
 0x2c8   : > { %v10293_v3 = vadd.f32 %v2261_v32, %v10048_v53  ;;  %v2263_v2 = vpop.f32.mrb[173].mxu1  ;;  %v7922_v25 = vpop.f32.mrb[160].mxu0 }
 0x2c9   : > { %v2264_v51 = vpop.f32.mrb[174].mxu1  ;;  %v10307_v53 = vadd.f32 %v7922_v25, %v10085_v18  ;;  %v2462_v32 = vpop.f32.mrb[161].mxu0  ;;  %v13269_v18 = vld [vmem:[#allocation39_spill] sm:$0xff] }
 0x2ca   : > { %v10302_v34 = vadd.f32 %v2264_v51, %v13264_v36  ;;  %v2266_v48 = vpop.f32.mrb[175].mxu1  ;;  %v10310_v2 = vadd.f32 %v2462_v32, %v10068_v24  ;;  %v7923_v21 = vpop.f32.mrb[162].mxu0  ;;  %v13268_v36 = vld [vmem:[#allocation40_spill] sm:$0xff]  ;;  %v13271_v32 = vld [vmem:[#allocation67_spill] sm:$0xff] }
 0x2cb   : > { %13267 = vst [vmem:[#allocation108_spill] sm:$0xff] %v10307_v53  ;;  %v10316_v48 = vadd.f32 %v7923_v21, %v10091_v61 }
 0x2cc   : > { %3088 = vmatmul.mubr.bf16.gmra.mrb[24].mxu1 %v13265_v38  ;;  %v2465_v38 = vpop.f32.mrb[163].mxu0 }
 0x2cd   : > { %3095 = vmatprep.mubr.bf16.mxu1 %v13266_v42  ;;  %v10319_v42 = vadd.f32 %v2465_v38, %v13268_v36 }
 0x2cf   : > { %v2269_v1 = vpop.f32.mrb[176].mxu1 }
 0x2d0   : > { %v10313_v55 = vadd.f32 %v2269_v1, %v10065_v60  ;;  %v2271_v52 = vpop.f32.mrb[177].mxu1  ;;  %v7926_v24 = vpop.f32.mrb[164].mxu0 }
 0x2d1   : > { %v2272_v51 = vpop.f32.mrb[178].mxu1  ;;  %v10327_v60 = vadd.f32 %v7926_v24, %v10119_v50  ;;  %v2478_v1 = vpop.f32.mrb[165].mxu0  ;;  %v13273_v50 = vld [vmem:[#allocation70_spill] sm:$0xff] }
 0x2d2   : > { %v10322_v25 = vadd.f32 %v2272_v51, %v13269_v18  ;;  %v2274_v53 = vpop.f32.mrb[179].mxu1  ;;  %v10330_v21 = vadd.f32 %v2478_v1, %v10102_v57  ;;  %v7927_v52 = vpop.f32.mrb[166].mxu0  ;;  %v13275_v1 = vld [vmem:[#allocation71_spill] sm:$0xff] }
 0x2d3   : > { %13272 = vst [vmem:[#allocation109_spill] sm:$0xff] %v10327_v60  ;;  %v10336_v53 = vadd.f32 %v7927_v52, %v10125_v23  ;;  %v13274_v60 = vld [vmem:[#allocation89_spill] sm:$0xff] }
 0x2d4   : > { %3096 = vmatmul.mubr.bf16.gmra.mrb[28].mxu1 %v13270_v35  ;;  %v2481_v35 = vpop.f32.mrb[167].mxu0 }
 0x2d5   : > { %3103 = vmatprep.mubr.bf16.mxu1 %v13271_v32  ;;  %v10339_v18 = vadd.f32 %v2481_v35, %v10108_v6 }
 0x2d7   : > { %v2277_v61 = vpop.f32.mrb[180].mxu1 }
 0x2d8   : > { %v10333_v38 = vadd.f32 %v2277_v61, %v10082_v56  ;;  %v2279_v51 = vpop.f32.mrb[181].mxu1  ;;  %v7930_v57 = vpop.f32.mrb[168].mxu0 }
 0x2d9   : > { %v2280_v36 = vpop.f32.mrb[182].mxu1  ;;  %v10347_v56 = vadd.f32 %v7930_v57, %v10162_v46  ;;  %v2494_v61 = vpop.f32.mrb[169].mxu0 }
 0x2da   : > { %v10342_v24 = vadd.f32 %v2280_v36, %v13273_v50  ;;  %v2282_v32 = vpop.f32.mrb[183].mxu1  ;;  %v10350_v52 = vadd.f32 %v2494_v61, %v10139_v19  ;;  %v7931_v51 = vpop.f32.mrb[170].mxu0  ;;  %v13278_v61 = vld [vmem:[#allocation91_spill] sm:$0xff] }
 0x2db   : > { %v10356_v36 = vadd.f32 %v7931_v51, %v10171_v14 }
 0x2dc   : > { %3104 = vmatmul.mubr.bf16.gmra.mrb[32].mxu1 %v13274_v60  ;;  %v2497_v60 = vpop.f32.mrb[171].mxu0 }
 0x2dd   : > { %3111 = vmatprep.mubr.bf16.mxu1 %v13275_v1  ;;  %13276 = vst [vmem:[#allocation60_spill] sm:$0xff] %v10356_v36  ;;  %v10359_v32 = vadd.f32 %v2497_v60, %v10148_v22  ;;  %v13277_v1 = vld [vmem:[#allocation90_spill] sm:$0xff] }
 0x2df   : > { %v2285_v23 = vpop.f32.mrb[184].mxu1 }
 0x2e0   : > { %v10353_v6 = vadd.f32 %v2285_v23, %v10099_v59  ;;  %v2287_v35 = vpop.f32.mrb[185].mxu1  ;;  %v7934_v19 = vpop.f32.mrb[172].mxu0 }
 0x2e1   : > { %v2288_v50 = vpop.f32.mrb[186].mxu1  ;;  %v10367_v59 = vadd.f32 %v7934_v19, %v10209_v30  ;;  %v2510_v23 = vpop.f32.mrb[173].mxu0 }
 0x2e2   : > { %v10362_v46 = vadd.f32 %v2288_v50, %v10105_v31  ;;  %v2290_v57 = vpop.f32.mrb[187].mxu1  ;;  %v10370_v51 = vadd.f32 %v2510_v23, %v10184_v44  ;;  %v7935_v35 = vpop.f32.mrb[174].mxu0  ;;  %v13282_v44 = vld [vmem:[#allocation94_spill] sm:$0xff] }
 0x2e3   : > { %13279 = vst [vmem:[#allocation20_spill] sm:$0xff] %v10367_v59  ;;  %v10374_v31 = vadd.f32 %v7935_v35, %v10219_v29  ;;  %v2513_v50 = vpop.f32.mrb[175].mxu0  ;;  %v13281_v59 = vld [vmem:[#allocation93_spill] sm:$0xff] }
 0x2e4   : > { %3112 = vmatmul.mubr.bf16.gmra.mrb[36].mxu1 %v13277_v1  ;;  %v10377_v1 = vadd.f32 %v2513_v50, %v10193_v10 }
 0x2e5   : > { %3119 = vmatprep.mubr.bf16.mxu1 %v13278_v61  ;;  %v13280_v61 = vld [vmem:[#allocation73_spill] sm:$0xff] }
 0x2e7   : > { %v2293_v14 = vpop.f32.mrb[188].mxu1 }
 0x2e8   : > { %v2294_v22 = vadd.f32 %v2293_v14, %v10116_v26  ;;  %v2295_v60 = vpop.f32.mrb[189].mxu1  ;;  %v7938_v36 = vpop.f32.mrb[176].mxu0 }
 0x2e9   : > { %v2296_v57 = vpop.f32.mrb[190].mxu1  ;;  %v10383_v23 = vadd.f32 %v7938_v36, %v10253_v54  ;;  %v2526_v26 = vpop.f32.mrb[177].mxu0  ;;  %v13285_v36 = vld [vmem:[#allocation98_spill] sm:$0xff] }
 0x2ea   : > { %v2297_v30 = vadd.f32 %v2296_v57, %v13280_v61  ;;  %v2298_v19 = vpop.f32.mrb[191].mxu1  ;;  %v10386_v29 = vadd.f32 %v2526_v26, %v10232_v17  ;;  %v7939_v14 = vpop.f32.mrb[178].mxu0 }
 0x2eb   : > { %v10389_v10 = vadd.f32 %v7939_v14, %v10262_v33  ;;  %v2529_v60 = vpop.f32.mrb[179].mxu0  ;;  %v13284_v19 = vld [vmem:[#allocation97_spill] sm:$0xff] }
 0x2ec   : > { %3120 = vmatmul.mubr.bf16.gmra.mrb[40].mxu1 %v13281_v59  ;;  %v10392_v57 = vadd.f32 %v2529_v60, %v10241_v7 }
 0x2ed   : > { %3127 = vmatprep.mubr.bf16.mxu1 %v13282_v44  ;;  %13283 = vst [vmem:[#allocation64_spill] sm:$0xff] %v10389_v10 }
 0x2ef   : > { %v2913_v35 = vpop.f32.mrb[192].mxu1 }
 0x2f0   : > { %v2915_v50 = vpop.f32.mrb[193].mxu1 }
 0x2f1   : > { %v2916_v59 = vpop.f32.mrb[194].mxu1  ;;  %v7942_v54 = vpop.f32.mrb[180].mxu0 }
 0x2f2   : > { %v2918_v61 = vpop.f32.mrb[195].mxu1  ;;  %v10397_v17 = vadd.f32 %v7942_v54, %v10293_v3  ;;  %v2542_v44 = vpop.f32.mrb[181].mxu0  ;;  %v13290_v54 = vld [vmem:[#allocation102_spill] sm:$0xff] }
 0x2f3   : > { %v10400_v26 = vadd.f32 %v2542_v44, %v10273_v37  ;;  %v7943_v33 = vpop.f32.mrb[182].mxu0 }
 0x2f4   : > { %3128 = vmatmul.mubr.bf16.gmra.mrb[44].mxu1 %v13284_v19  ;;  %13286 = vst [vmem:[#allocation21_spill] sm:$0xff] %v10397_v17  ;;  %v10403_v50 = vadd.f32 %v7943_v33, %v10302_v34  ;;  %v2545_v7 = vpop.f32.mrb[183].mxu0 }
 0x2f5   : > { %3135 = vmatprep.mubr.bf16.mxu1 %v13285_v36  ;;  %v10406_v61 = vadd.f32 %v2545_v7, %v10282_v43  ;;  %v13289_v36 = vld [vmem:[#allocation101_spill] sm:$0xff] }
 0x2f6   : > { %13287 = vst [vmem:[#allocation121_spill] sm:$0xff] %v10403_v50 }
 0x2f7   : > { %v2921_v14 = vpop.f32.mrb[196].mxu1  ;;  %13288 = vst [vmem:[#allocation110_spill] sm:$0xff] %v10406_v61  ;;  %v13303_v61 = vld [vmem:[#allocation14_spill] sm:$0xff] }
 0x2f8   : > { %v2923_v60 = vpop.f32.mrb[197].mxu1 }
 0x2f9   : > { %v2924_v19 = vpop.f32.mrb[198].mxu1  ;;  %v7946_v3 = vpop.f32.mrb[184].mxu0 }
 0x2fa   : > { %v2926_v10 = vpop.f32.mrb[199].mxu1  ;;  %v10411_v37 = vadd.f32 %v7946_v3, %v10333_v38  ;;  %v2558_v44 = vpop.f32.mrb[185].mxu0  ;;  %v13296_v3 = vld [vmem:[#allocation105_spill] sm:$0xff] }
 0x2fb   : > { %v10414_v17 = vadd.f32 %v2558_v44, %v10313_v55  ;;  %v7947_v34 = vpop.f32.mrb[186].mxu0 }
 0x2fc   : > { %3136 = vmatmul.mubr.bf16.gmra.mrb[48].mxu1 %v13289_v36  ;;  %13291 = vst [vmem:[#allocation32_spill] sm:$0xff] %v10411_v37  ;;  %v10417_v60 = vadd.f32 %v7947_v34, %v10342_v24  ;;  %v2561_v43 = vpop.f32.mrb[187].mxu0 }
 0x2fd   : > { %3143 = vmatprep.mubr.bf16.mxu1 %v13290_v54  ;;  %13292 = vst [vmem:[#allocation36_spill] sm:$0xff] %v10414_v17  ;;  %v10420_v10 = vadd.f32 %v2561_v43, %v10322_v25  ;;  %v13295_v54 = vld [vmem:[#allocation104_spill] sm:$0xff] }
 0x2fe   : > { %13293 = vst [vmem:[#allocation68_spill] sm:$0xff] %v10417_v60 }
 0x2ff   : > { %v2929_v33 = vpop.f32.mrb[200].mxu1  ;;  %13294 = vst [vmem:[#allocation23_spill] sm:$0xff] %v10420_v10  ;;  %v13301_v10 = vld [vmem:[#allocation107_spill] sm:$0xff] }
 0x300   : > { %v2931_v7 = vpop.f32.mrb[201].mxu1 }
 0x301   : > { %v2932_v36 = vpop.f32.mrb[202].mxu1  ;;  %v7950_v38 = vpop.f32.mrb[188].mxu0 }
 0x302   : > { %v2934_v50 = vpop.f32.mrb[203].mxu1  ;;  %v10424_v37 = vadd.f32 %v7950_v38, %v2294_v22  ;;  %v2574_v55 = vpop.f32.mrb[189].mxu0 }
 0x303   : > { %v10427_v44 = vadd.f32 %v2574_v55, %v10353_v6  ;;  %v7951_v24 = vpop.f32.mrb[190].mxu0 }
 0x304   : > { %3144 = vmatmul.mubr.bf16.gmra.mrb[52].mxu1 %v13295_v54  ;;  %13297 = vst [vmem:[#allocation112_spill] sm:$0xff] %v10424_v37  ;;  %v10429_v60 = vadd.f32 %v7951_v24, %v2297_v30  ;;  %v2577_v7 = vpop.f32.mrb[191].mxu0 }
 0x305   : > { %3151 = vmatprep.mubr.bf16.mxu1 %v13296_v3  ;;  %13298 = vst [vmem:[#allocation29_spill] sm:$0xff] %v10427_v44  ;;  %v10432_v43 = vadd.f32 %v2577_v7, %v10362_v46  ;;  %v13302_v44 = vld [vmem:[#allocation44_spill] sm:$0xff] }
 0x306   : > { %13299 = vst [vmem:[#allocation37_spill] sm:$0xff] %v10429_v60 }
 0x307   : > { %v2937_v34 = vpop.f32.mrb[204].mxu1  ;;  %13300 = vst [vmem:[#allocation41_spill] sm:$0xff] %v10432_v43 }
 0x308   : > { %v2939_v25 = vpop.f32.mrb[205].mxu1 }
 0x309   : > { %v2940_v50 = vpop.f32.mrb[206].mxu1  ;;  %v7970_v3 = vpop.f32.mrb[192].mxu0 }
 0x30a   : > { %v2942_v54 = vpop.f32.mrb[207].mxu1  ;;  %v3211_v22 = vadd.f32 %v7970_v3, %v2921_v14  ;;  %v3202_v38 = vpop.f32.mrb[193].mxu0 }
 0x30b   : > { %v3203_v6 = vadd.f32 %v3202_v38, %v2913_v35  ;;  %v7971_v55 = vpop.f32.mrb[194].mxu0 }
 0x30c   : > { %3152 = vmatmul.mubr.bf16.gmra.mrb[56].mxu1 %v13301_v10  ;;  %v3459_v30 = vadd.f32 %v3211_v22, %v13302_v44  ;;  %v3214_v24 = vadd.f32 %v7971_v55, %v2924_v19  ;;  %v3205_v60 = vpop.f32.mrb[195].mxu0 }
 0x30d   : > { %3159 = vmatprep.mubr.bf16.mxu1 %v13015_v9  ;;  %v3457_v46 = vadd.f32 %v3203_v6, %v10136_v41  ;;  %v3206_v7 = vadd.f32 %v3205_v60, %v2916_v59 }
 0x30e   : > { %v3460_v10 = vadd.f32 %v3214_v24, %v10142_v11  ;;  %v3523_v17 = vmax.f32 %v3459_v30, 0.0 }
 0x30f   : > { %v2945_v37 = vpop.f32.mrb[208].mxu1  ;;  %v3458_v14 = vadd.f32 %v3206_v7, %v13303_v61  ;;  %v3521_v3 = vmax.f32 %v3457_v46, 0.0  ;;  %v13305_v61 = vld [vmem:[#allocation74_spill] sm:$0xff] }
 0x310   : > { %v2947_v25 = vpop.f32.mrb[209].mxu1  ;;  %v3524_v35 = vmax.f32 %v3460_v10, 0.0  ;;  %3587 = vst [vmem:[#allocation2 + $0x19] sm:$0xff] %v3523_v17 }
 0x311   : > { %v10438_v43 = vpop.f32.mrb[210].mxu1  ;;  %v7974_v44 = vpop.f32.mrb[196].mxu0  ;;  %v3522_v19 = vmax.f32 %v3458_v14, 0.0  ;;  %3585 = vst [vmem:[#allocation2 + $0x1] sm:$0xff] %v3521_v3 }
 0x312   : > { %v2950_v54 = vpop.f32.mrb[211].mxu1  ;;  %v3227_v22 = vadd.f32 %v7974_v44, %v2937_v34  ;;  %v3218_v38 = vpop.f32.mrb[197].mxu0  ;;  %3588 = vst [vmem:[#allocation2 + $0x21] sm:$0xff] %v3524_v35  ;;  %v10443_v41 = vpack.c.bf16 %v3524_v35, %v3523_v17  ;;  %v13306_v17 = vld [vmem:[#allocation17_spill] sm:$0xff]  ;;  %v13307_v35 = vld [vmem:[#allocation48_spill] sm:$0xff] }
 0x313   : > { %v3219_v59 = vadd.f32 %v3218_v38, %v2929_v33  ;;  %v7975_v60 = vpop.f32.mrb[198].mxu0  ;;  %3586 = vst [vmem:[#allocation2 + $0x9] sm:$0xff] %v3522_v19  ;;  %v10445_v11 = vpack.c.bf16 %v3522_v19, %v3521_v3 }
 0x314   : > { %3160 = vmatmul.mubr.bf16.gmra.mrb[60].mxu1 %v13015_v9  ;;  %v3463_v55 = vadd.f32 %v3227_v22, %v13305_v61  ;;  %v3230_v30 = vadd.f32 %v7975_v60, %v2940_v50  ;;  %v3221_v24 = vpop.f32.mrb[199].mxu0 }
 0x315   : > { %13304 = vst [vmem:[#allocation72_spill] sm:$0xff] %v10445_v11  ;;  %v3461_v46 = vadd.f32 %v3219_v59, %v10159_v0  ;;  %v3222_v7 = vadd.f32 %v3221_v24, %v2932_v36  ;;  %4434 = vmatprep.mubr.bf16.mxu0 %v10445_v11  ;;  %v8511_v11 = vld [vmem:[#allocation9 + $0x88] sm:$0xff]  }
 0x316   : > { %v3527_v10 = vmax.f32 %v3463_v55, 0.0  ;;  %v3464_v54 = vadd.f32 %v3230_v30, %v13306_v17 }
 0x317   : > { %v2953_v6 = vpop.f32.mrb[212].mxu1  ;;  %v3525_v14 = vmax.f32 %v3461_v46, 0.0  ;;  %v3462_v3 = vadd.f32 %v3222_v7, %v13307_v35 }
 0x318   : > { %v2955_v25 = vpop.f32.mrb[213].mxu1  ;;  %3591 = vst [vmem:[#allocation2 + $0x49] sm:$0xff] %v3527_v10  ;;  %v3528_v44 = vmax.f32 %v3464_v54, 0.0  ;;  %v3713_v22 = vld [vmem:[#allocation2] sm:$0xff] }
 0x319   : > { %v2956_v34 = vpop.f32.mrb[214].mxu1  ;;  %3589 = vst [vmem:[#allocation2 + $0x31] sm:$0xff] %v3525_v14  ;;  %v3526_v19 = vmax.f32 %v3462_v3, 0.0  ;;  %v7978_v50 = vpop.f32.mrb[200].mxu0  ;;  %v3843_v38 = vld [vmem:[#allocation2 + $0x1a] sm:$0xff]  ;;  %v3844_v60 = vld [vmem:[#allocation2 + $0x22] sm:$0xff] }
 0x31a   : > { %v2958_v33 = vpop.f32.mrb[215].mxu1  ;;  %3592 = vst [vmem:[#allocation2 + $0x51] sm:$0xff] %v3528_v44  ;;  %v3243_v0 = vadd.f32 %v7978_v50, %v2953_v6  ;;  %v3234_v36 = vpop.f32.mrb[201].mxu0  ;;  %v3714_v59 = vld [vmem:[#allocation2 + $0x8] sm:$0xff]  ;;  %v10452_v24 = vpack.c.bf16 %v3528_v44, %v3527_v10  ;;  %v10461_v3 = vpack.c.bf16 %v3844_v60, %v3843_v38  ;;  %v8514_v10 = vld [vmem:[#allocation9] sm:$0xff]  }
 0x31b   : > { %v3841_v61 = vld [vmem:[#allocation2 + $0x2] sm:$0xff]  ;;  %v3842_v55 = vld [vmem:[#allocation2 + $0xa] sm:$0xff]  ;;  %3590 = vst [vmem:[#allocation2 + $0x39] sm:$0xff] %v3526_v19  ;;  %v3235_v30 = vadd.f32 %v3234_v36, %v2945_v37  ;;  %v7979_v25 = vpop.f32.mrb[202].mxu0  ;;  %v10454_v46 = vpack.c.bf16 %v3714_v59, %v3713_v22  ;;  %v10458_v54 = vpack.c.bf16 %v3526_v19, %v3525_v14 }
 0x31c   : > { %v10456_v7 = vpack.c.bf16 %v3842_v55, %v3841_v61  ;;  %v3467_v33 = vadd.f32 %v3243_v0, %v10178_v28  ;;  %v3246_v35 = vadd.f32 %v7979_v25, %v2956_v34  ;;  %v3237_v6 = vpop.f32.mrb[203].mxu0  ;;  %13309 = vst [vmem:[#allocation111_spill] sm:$0xff] %v10461_v3  ;;  %v13310_v38 = vld [vmem:[#allocation15_spill] sm:$0xff]  ;;  %v8512_v0 = vld [vmem:[#allocation9 + $0x90] sm:$0xff]  }
 0x31d   : > { %v3465_v44 = vadd.f32 %v3235_v30, %v10181_v16  ;;  %v3238_v37 = vadd.f32 %v3237_v6, %v10438_v43  ;;  %4435 = vmatmul.mubr.bf16.vlgmr.msra.gmra.mrb[0].mxu0 %v10454_v46  ;;  %v3716_v43 = vld [vmem:[#allocation2 + $0x20] sm:$0xff]  ;;  %v3715_v30 = vld [vmem:[#allocation2 + $0x18] sm:$0xff] }
 0x31e   : > { %13308 = vst [vmem:[#allocation24_spill] sm:$0xff] %v10456_v7  ;;  %8048 = vmatprep.mubr.bf16.mxu1 %v10456_v7  ;;  %v3531_v14 = vmax.f32 %v3467_v33, 0.0  ;;  %v3468_v19 = vadd.f32 %v3246_v35, %v10187_v13  ;;  %4442 = vmatprep.mubr.bf16.mxu0 %v10443_v41 }
 0x31f   : > { %v2961_v17 = vpop.f32.mrb[216].mxu1  ;;  %8049 = vmatmul.mubr.bf16.vlgmr.msra.gmra.mrb[64].mxu1 %v10461_v3  ;;  %v3529_v34 = vmax.f32 %v3465_v44, 0.0  ;;  %v3466_v60 = vadd.f32 %v3238_v37, %v13310_v38  ;;  %8113 = vmatpush3.bf16.msra.mxu0 %v10206_v49  ;;  %v8513_v3 = vld [vmem:[#allocation9 + $0x98] sm:$0xff]  }
 0x320   : > { %v2963_v50 = vpop.f32.mrb[217].mxu1  ;;  %5125 = vmatpush1.bf16.msra.mxu1 %v8514_v10  ;;  %3595 = vst [vmem:[#allocation2 + $0x79] sm:$0xff] %v3531_v14  ;;  %v3532_v16 = vmax.f32 %v3468_v19, 0.0  ;;  %8114 = vmatprep.subr.bf16.mxu0 %v8511_v11  ;;  %v10475_v10 = vpack.c.bf16 %v3716_v43, %v3715_v30 }
 0x321   : > { %v2964_v22 = vpop.f32.mrb[218].mxu1  ;;  %5126 = vmatprep.subr.bf16.mxu1 %v13015_v9  ;;  %3593 = vst [vmem:[#allocation2 + $0x61] sm:$0xff] %v3529_v34  ;;  %v3530_v13 = vmax.f32 %v3466_v60, 0.0  ;;  %v7982_v36 = vpop.f32.mrb[204].mxu0  ;;  %v3847_v59 = vld [vmem:[#allocation2 + $0x4a] sm:$0xff]  ;;  %v3848_v61 = vld [vmem:[#allocation2 + $0x52] sm:$0xff] }
 0x322   : > { %v2966_v28 = vpop.f32.mrb[219].mxu1  ;;  %3596 = vst [vmem:[#allocation2 + $0x81] sm:$0xff] %v3532_v16  ;;  %v3250_v55 = vpop.f32.mrb[205].mxu0  ;;  %v3845_v25 = vld [vmem:[#allocation2 + $0x32] sm:$0xff]  ;;  %v3846_v33 = vld [vmem:[#allocation2 + $0x3a] sm:$0xff]  ;;  %v10473_v35 = vpack.c.bf16 %v3532_v16, %v3531_v14  ;;  %v10481_v60 = vpack.c.bf16 %v3848_v61, %v3847_v59  ;;  %v8516_v14 = vld [vmem:[#allocation9 + $0x8] sm:$0xff]  }
 0x323   : > { %3594 = vst [vmem:[#allocation2 + $0x69] sm:$0xff] %v3530_v13  ;;  %v3251_v6 = vadd.f32 %v3250_v55, %v2961_v17  ;;  %v7983_v50 = vpop.f32.mrb[206].mxu0  ;;  %v10477_v44 = vpack.c.bf16 %v3846_v33, %v3845_v25  ;;  %v10479_v37 = vpack.c.bf16 %v3530_v13, %v3529_v34  ;;  %8115 = vmatpush3.bf16.msra.mxu0 %v8511_v11  ;;  %v13315_v59 = vld [vmem:[#allocation19_spill] sm:$0xff]  ;;  %v3718_v61 = vld [vmem:[#allocation2 + $0x38] sm:$0xff]  ;;  %v8515_v55 = vld [vmem:[#allocation9 + $0xa0] sm:$0xff]  }
 0x324   : > { %13311 = vst [vmem:[#allocation113_spill] sm:$0xff] %v10473_v35  ;;  %v3253_v38 = vpop.f32.mrb[207].mxu0  ;;  %13314 = vst [vmem:[#allocation75_spill] sm:$0xff] %v10481_v60  ;;  %8116 = vmatprep.subr.bf16.mxu0 %v8512_v0  ;;  %5127 = vmatpush1.bf16.msra.mxu1 %v8516_v14 }
 0x325   : > { %13312 = vst [vmem:[#allocation42_spill] sm:$0xff] %v10477_v44  ;;  %13313 = vst [vmem:[#allocation45_spill] sm:$0xff] %v10479_v37  ;;  %v3469_v16 = vadd.f32 %v3251_v6, %v10204_v27  ;;  %v3254_v17 = vadd.f32 %v3253_v38, %v2964_v22  ;;  %4443 = vmatmul.mubr.bf16.gmra.mrb[4].mxu0 %v10475_v10  ;;  %8052 = vmatprep.mubr.bf16.mxu1 %v10477_v44  ;;  %v3717_v6 = vld [vmem:[#allocation2 + $0x30] sm:$0xff] }
 0x326   : > { %4450 = vmatprep.mubr.bf16.mxu0 %v10458_v54  ;;  %5128 = vmatprep.subr.bf16.mxu1 %v13015_v9 }
 0x327   : > { %v2969_v49 = vpop.f32.mrb[220].mxu1  ;;  %8053 = vmatmul.mubr.bf16.gmra.mrb[68].mxu1 %v10481_v60  ;;  %v3533_v13 = vmax.f32 %v3469_v16, 0.0  ;;  %8117 = vmatpush3.bf16.msra.mxu0 %v8512_v0  ;;  %v13344_v60 = vld [vmem:[#allocation56_spill] sm:$0xff] }
 0x328   : > { %v3259_v19 = vadd.f32 %v7982_v36, %v2969_v49  ;;  %v2971_v28 = vpop.f32.mrb[221].mxu1  ;;  %v3470_v36 = vadd.f32 %v3254_v17, %v10215_v4  ;;  %8118 = vmatprep.subr.bf16.mxu0 %v8513_v3 }
 0x329   : > { %v2972_v7 = vpop.f32.mrb[222].mxu1  ;;  %3597 = vst [vmem:[#allocation2 + $0x91] sm:$0xff] %v3533_v13  ;;  %v3851_v30 = vld [vmem:[#allocation2 + $0x7a] sm:$0xff]  ;;  %v3852_v25 = vld [vmem:[#allocation2 + $0x82] sm:$0xff]  ;;  %v10492_v28 = vpack.c.bf16 %v3718_v61, %v3717_v6 }
 0x32a   : > { %v3471_v34 = vadd.f32 %v3259_v19, %v10201_v39  ;;  %v3262_v43 = vadd.f32 %v7983_v50, %v2972_v7  ;;  %v2974_v11 = vpop.f32.mrb[223].mxu1  ;;  %v3534_v39 = vmax.f32 %v3470_v36, 0.0  ;;  %v7986_v7 = vpop.f32.mrb[208].mxu0  ;;  %v3849_v4 = vld [vmem:[#allocation2 + $0x62] sm:$0xff]  ;;  %v3850_v0 = vld [vmem:[#allocation2 + $0x6a] sm:$0xff] }
 0x32b   : > { %v3266_v49 = vpop.f32.mrb[209].mxu0  ;;  %v10494_v38 = vpack.c.bf16 %v3850_v0, %v3849_v4  ;;  %8119 = vmatpush3.bf16.msra.mxu0 %v8513_v3  ;;  %v8517_v36 = vld [vmem:[#allocation9 + $0x10] sm:$0xff]  }
 0x32c   : > { %v3535_v27 = vmax.f32 %v3471_v34, 0.0  ;;  %v3472_v22 = vadd.f32 %v3262_v43, %v13315_v59  ;;  %3598 = vst [vmem:[#allocation2 + $0x99] sm:$0xff] %v3534_v39  ;;  %v7987_v19 = vpop.f32.mrb[210].mxu0  ;;  %v10496_v14 = vpack.c.bf16 %v3534_v39, %v3533_v13  ;;  %v10498_v43 = vpack.c.bf16 %v3852_v25, %v3851_v30  ;;  %8120 = vmatprep.subr.bf16.mxu0 %v8515_v55  ;;  %v3720_v39 = vld [vmem:[#allocation2 + $0x50] sm:$0xff] }
 0x32d   : > { %13316 = vst [vmem:[#allocation25_spill] sm:$0xff] %v10494_v38  ;;  %v3269_v34 = vpop.f32.mrb[211].mxu0  ;;  %4451 = vmatmul.mubr.bf16.gmra.mrb[8].mxu0 %v10492_v28  ;;  %8056 = vmatprep.mubr.bf16.mxu1 %v10494_v38 }
 0x32e   : > { %3599 = vst [vmem:[#allocation2 + $0xa9] sm:$0xff] %v3535_v27  ;;  %v3536_v33 = vmax.f32 %v3472_v22, 0.0  ;;  %13317 = vst [vmem:[#allocation114_spill] sm:$0xff] %v10496_v14  ;;  %4458 = vmatprep.mubr.bf16.mxu0 %v10452_v24  ;;  %5129 = vmatpush1.bf16.msra.mxu1 %v8517_v36 }
 0x32f   : > { %v2977_v50 = vpop.f32.mrb[224].mxu1  ;;  %13318 = vst [vmem:[#allocation116_spill] sm:$0xff] %v10498_v43  ;;  %8057 = vmatmul.mubr.bf16.gmra.mrb[72].mxu1 %v10498_v43  ;;  %8121 = vmatpush3.bf16.msra.mxu0 %v8515_v55 }
 0x330   : > { %3600 = vst [vmem:[#allocation2 + $0xb1] sm:$0xff] %v3536_v33  ;;  %v3267_v16 = vadd.f32 %v3266_v49, %v2977_v50  ;;  %v2979_v17 = vpop.f32.mrb[225].mxu1  ;;  %v10500_v11 = vpack.c.bf16 %v3536_v33, %v3535_v27  ;;  %5130 = vmatprep.subr.bf16.mxu1 %v13015_v9  ;;  %v3719_v33 = vld [vmem:[#allocation2 + $0x48] sm:$0xff] }
 0x331   : > { %v2980_v59 = vpop.f32.mrb[226].mxu1  ;;  %v10509_v30 = vpop.f32.mrb[212].mxu0  ;;  %v10511_v0 = vpack.c.bf16 %v3720_v39, %v3719_v33 }
 0x332   : > { %13319 = vst [vmem:[#allocation49_spill] sm:$0xff] %v10500_v11  ;;  %v3473_v22 = vadd.f32 %v3267_v16, %v10229_v5  ;;  %v3270_v13 = vadd.f32 %v3269_v34, %v2980_v59  ;;  %v2982_v3 = vpop.f32.mrb[227].mxu1  ;;  %v3282_v6 = vpop.f32.mrb[213].mxu0 }
 0x333   : > { %v3853_v5 = vld [vmem:[#allocation2 + $0x92] sm:$0xff]  ;;  %v3854_v49 = vld [vmem:[#allocation2 + $0x9a] sm:$0xff]  ;;  %13320 = vst [vmem:[#allocation77_spill] sm:$0xff] %v10511_v0  ;;  %v10515_v17 = vpop.f32.mrb[214].mxu0 }
 0x334   : > { %v3537_v61 = vmax.f32 %v3473_v22, 0.0  ;;  %v3474_v27 = vadd.f32 %v3270_v13, %v10238_v62  ;;  %v10513_v50 = vpack.c.bf16 %v3854_v49, %v3853_v5  ;;  %v3285_v59 = vpop.f32.mrb[215].mxu0  ;;  %v8518_v13 = vld [vmem:[#allocation9 + $0x18] sm:$0xff]  }
 0x335   : > { %4459 = vmatmul.mubr.bf16.gmra.mrb[12].mxu0 %v10511_v0  ;;  %5131 = vmatpush1.bf16.msra.mxu1 %v8518_v13 }
 0x336   : > { %3601 = vst [vmem:[#allocation2 + $0xc1] sm:$0xff] %v3537_v61  ;;  %v3538_v25 = vmax.f32 %v3474_v27, 0.0  ;;  %13321 = vst [vmem:[#allocation26_spill] sm:$0xff] %v10513_v50  ;;  %8060 = vmatprep.mubr.bf16.mxu1 %v10513_v50  ;;  %4466 = vmatprep.mubr.bf16.mxu0 %v10479_v37  ;;  %v8521_v50 = vld [vmem:[#allocation9 + $0x28] sm:$0xff]  }
 0x337   : > { %v2985_v4 = vpop.f32.mrb[228].mxu1  ;;  %v3855_v55 = vld [vmem:[#allocation2 + $0xaa] sm:$0xff]  ;;  %v3856_v16 = vld [vmem:[#allocation2 + $0xb2] sm:$0xff]  ;;  %5132 = vmatprep.subr.bf16.mxu1 %v13015_v9 }
 0x338   : > { %3602 = vst [vmem:[#allocation2 + $0xc9] sm:$0xff] %v3538_v25  ;;  %v3275_v62 = vadd.f32 %v7986_v7, %v2985_v4  ;;  %v2987_v34 = vpop.f32.mrb[229].mxu1  ;;  %v10517_v36 = vpack.c.bf16 %v3856_v16, %v3855_v55  ;;  %v10519_v22 = vpack.c.bf16 %v3538_v25, %v3537_v61  ;;  %v3722_v61 = vld [vmem:[#allocation2 + $0x68] sm:$0xff]  ;;  %v3721_v4 = vld [vmem:[#allocation2 + $0x60] sm:$0xff] }
 0x339   : > { %v2988_v3 = vpop.f32.mrb[230].mxu1  ;;  %v10528_v25 = vpop.f32.mrb[216].mxu0 }
 0x33a   : > { %13322 = vst [vmem:[#allocation31_spill] sm:$0xff] %v10517_v36  ;;  %13323 = vst [vmem:[#allocation115_spill] sm:$0xff] %v10519_v22  ;;  %v3475_v27 = vadd.f32 %v3275_v62, %v10226_v12  ;;  %v3278_v39 = vadd.f32 %v7987_v19, %v2988_v3  ;;  %8061 = vmatmul.mubr.bf16.gmra.mrb[76].mxu1 %v10517_v36  ;;  %v2990_v7 = vpop.f32.mrb[231].mxu1  ;;  %v10530_v55 = vpop.f32.mrb[217].mxu0  ;;  %v10532_v19 = vpack.c.bf16 %v3722_v61, %v3721_v4 }
 0x33b   : > { %v10534_v34 = vpop.f32.mrb[218].mxu0  ;;  %v8519_v7 = vld [vmem:[#allocation9 + $0x20] sm:$0xff]  }
 0x33c   : > { %v3539_v33 = vmax.f32 %v3475_v27, 0.0  ;;  %v3476_v5 = vadd.f32 %v3278_v39, %v10235_v45  ;;  %13324 = vst [vmem:[#allocation53_spill] sm:$0xff] %v10532_v19  ;;  %v10538_v27 = vpop.f32.mrb[219].mxu0  ;;  %5133 = vmatpush1.bf16.msra.mxu1 %v8519_v7 }
 0x33d   : > { %4467 = vmatmul.mubr.bf16.gmra.mrb[16].mxu0 %v10532_v19  ;;  %5134 = vmatprep.subr.bf16.mxu1 %v13015_v9 }
 0x33e   : > { %3603 = vst [vmem:[#allocation2 + $0xd9] sm:$0xff] %v3539_v33  ;;  %v3540_v49 = vmax.f32 %v3476_v5, 0.0  ;;  %4474 = vmatprep.mubr.bf16.mxu0 %v10473_v35 }
 0x33f   : > { %v2993_v12 = vpop.f32.mrb[232].mxu1  ;;  %v3857_v16 = vld [vmem:[#allocation2 + $0xc2] sm:$0xff]  ;;  %v3858_v62 = vld [vmem:[#allocation2 + $0xca] sm:$0xff] }
 0x340   : > { %3604 = vst [vmem:[#allocation2 + $0xe1] sm:$0xff] %v3540_v49  ;;  %v3283_v13 = vadd.f32 %v3282_v6, %v2993_v12  ;;  %v2995_v45 = vpop.f32.mrb[233].mxu1  ;;  %v10536_v3 = vpack.c.bf16 %v3858_v62, %v3857_v16  ;;  %v10540_v39 = vpack.c.bf16 %v3540_v49, %v3539_v33  ;;  %v3724_v16 = vld [vmem:[#allocation2 + $0x80] sm:$0xff]  ;;  %v3723_v62 = vld [vmem:[#allocation2 + $0x78] sm:$0xff]  ;;  %5135 = vmatpush1.bf16.msra.mxu1 %v8521_v50 }
 0x341   : > { %v2996_v5 = vpop.f32.mrb[234].mxu1  ;;  %v10548_v33 = vpop.f32.mrb[220].mxu0  ;;  %5136 = vmatprep.subr.bf16.mxu1 %v13015_v9 }
 0x342   : > { %13325 = vst [vmem:[#allocation78_spill] sm:$0xff] %v10536_v3  ;;  %13326 = vst [vmem:[#allocation27_spill] sm:$0xff] %v10540_v39  ;;  %v3477_v61 = vadd.f32 %v3283_v13, %v10250_v20  ;;  %v3286_v4 = vadd.f32 %v3285_v59, %v2996_v5  ;;  %8064 = vmatprep.mubr.bf16.mxu1 %v10536_v3  ;;  %v2998_v36 = vpop.f32.mrb[235].mxu1  ;;  %v10550_v45 = vpop.f32.mrb[221].mxu0  ;;  %v10552_v59 = vpack.c.bf16 %v3724_v16, %v3723_v62  ;;  %v13330_v16 = vld [vmem:[#allocation22_spill] sm:$0xff] }
 0x343   : > { %v10554_v36 = vpop.f32.mrb[222].mxu0 }
 0x344   : > { %v3541_v6 = vmax.f32 %v3477_v61, 0.0  ;;  %v3478_v12 = vadd.f32 %v3286_v4, %v10259_v63  ;;  %13327 = vst [vmem:[#allocation118_spill] sm:$0xff] %v10552_v59  ;;  %v10559_v4 = vpop.f32.mrb[223].mxu0 }
 0x345   : > { %4475 = vmatmul.mubr.bf16.gmra.mrb[20].mxu0 %v10552_v59 }
 0x346   : > { %3605 = vst [vmem:[#allocation2 + $0xf1] sm:$0xff] %v3541_v6  ;;  %v3542_v49 = vmax.f32 %v3478_v12, 0.0  ;;  %v8520_v12 = vld [vmem:[#allocation9 + $0xa8] sm:$0xff]   ;;  %4482 = vmatprep.mubr.bf16.mxu0 %v10496_v14 }
 0x347   : > { %v3001_v20 = vpop.f32.mrb[236].mxu1  ;;  %v3859_v13 = vld [vmem:[#allocation2 + $0xda] sm:$0xff]  ;;  %v3860_v5 = vld [vmem:[#allocation2 + $0xe2] sm:$0xff]  ;;  %8122 = vmatprep.subr.bf16.mxu0 %v8520_v12 }
 0x348   : > { %3606 = vst [vmem:[#allocation2 + $0xf9] sm:$0xff] %v3542_v49  ;;  %v3291_v63 = vadd.f32 %v10509_v30, %v3001_v20  ;;  %v3003_v7 = vpop.f32.mrb[237].mxu1  ;;  %v10557_v61 = vpack.c.bf16 %v3860_v5, %v3859_v13  ;;  %v10561_v3 = vpack.c.bf16 %v3542_v49, %v3541_v6  ;;  %v3726_v49 = vld [vmem:[#allocation2 + $0x98] sm:$0xff]  ;;  %8123 = vmatpush3.bf16.msra.mxu0 %v8520_v12 }
 0x349   : > { %v3004_v43 = vpop.f32.mrb[238].mxu1  ;;  %v10570_v13 = vpop.f32.mrb[224].mxu0 }
 0x34a   : > { %13328 = vst [vmem:[#allocation120_spill] sm:$0xff] %v10557_v61  ;;  %13329 = vst [vmem:[#allocation79_spill] sm:$0xff] %v10561_v3  ;;  %v3479_v62 = vadd.f32 %v3291_v63, %v13330_v16  ;;  %v3294_v38 = vadd.f32 %v10515_v17, %v3004_v43  ;;  %8065 = vmatmul.mubr.bf16.gmra.mrb[80].mxu1 %v10557_v61  ;;  %v3006_v30 = vpop.f32.mrb[239].mxu1  ;;  %v3725_v63 = vld [vmem:[#allocation2 + $0x90] sm:$0xff]  ;;  %v10572_v43 = vpop.f32.mrb[225].mxu0 }
 0x34b   : > { %v10574_v7 = vpack.c.bf16 %v3726_v49, %v3725_v63  ;;  %v10576_v50 = vpop.f32.mrb[226].mxu0 }
 0x34c   : > { %v3543_v20 = vmax.f32 %v3479_v62, 0.0  ;;  %v3480_v6 = vadd.f32 %v3294_v38, %v10256_v15  ;;  %v10581_v62 = vpop.f32.mrb[227].mxu0 }
 0x34d   : > { %13331 = vst [vmem:[#allocation28_spill] sm:$0xff] %v10574_v7  ;;  %4483 = vmatmul.mubr.bf16.gmra.mrb[24].mxu0 %v10574_v7 }
 0x34e   : > { %3607 = vst [vmem:[#allocation2 + $0x109] sm:$0xff] %v3543_v20  ;;  %v3544_v5 = vmax.f32 %v3480_v6, 0.0  ;;  %v8522_v6 = vld [vmem:[#allocation9 + $0x30] sm:$0xff]   ;;  %4490 = vmatprep.mubr.bf16.mxu0 %v10500_v11 }
 0x34f   : > { %v3009_v17 = vpop.f32.mrb[240].mxu1  ;;  %v3861_v16 = vld [vmem:[#allocation2 + $0xf2] sm:$0xff]  ;;  %v3862_v30 = vld [vmem:[#allocation2 + $0xfa] sm:$0xff]  ;;  %5137 = vmatpush1.bf16.msra.mxu1 %v8522_v6 }
 0x350   : > { %3608 = vst [vmem:[#allocation2 + $0x111] sm:$0xff] %v3544_v5  ;;  %v3299_v15 = vadd.f32 %v10530_v55, %v3009_v17  ;;  %v3011_v38 = vpop.f32.mrb[241].mxu1  ;;  %v10579_v12 = vpack.c.bf16 %v3862_v30, %v3861_v16  ;;  %v10583_v61 = vpack.c.bf16 %v3544_v5, %v3543_v20  ;;  %v3728_v30 = vld [vmem:[#allocation2 + $0xb0] sm:$0xff]  ;;  %5138 = vmatprep.subr.bf16.mxu1 %v13015_v9 }
 0x351   : > { %v3012_v14 = vpop.f32.mrb[242].mxu1  ;;  %v10592_v20 = vpop.f32.mrb[228].mxu0  ;;  %v3727_v38 = vld [vmem:[#allocation2 + $0xa8] sm:$0xff] }
 0x352   : > { %13332 = vst [vmem:[#allocation117_spill] sm:$0xff] %v10579_v12  ;;  %13333 = vst [vmem:[#allocation119_spill] sm:$0xff] %v10583_v61  ;;  %v3481_v49 = vadd.f32 %v3299_v15, %v10270_v58  ;;  %v3302_v63 = vadd.f32 %v10538_v27, %v3012_v14  ;;  %8068 = vmatprep.mubr.bf16.mxu1 %v10579_v12  ;;  %v3014_v55 = vpop.f32.mrb[243].mxu1  ;;  %v10594_v58 = vpop.f32.mrb[229].mxu0  ;;  %v10596_v27 = vpack.c.bf16 %v3728_v30, %v3727_v38  ;;  %v13337_v30 = vld [vmem:[#allocation52_spill] sm:$0xff] }
 0x353   : > { %v10598_v55 = vpop.f32.mrb[230].mxu0 }
 0x354   : > { %v3545_v17 = vmax.f32 %v3481_v49, 0.0  ;;  %v3482_v16 = vadd.f32 %v3302_v63, %v10279_v47  ;;  %13334 = vst [vmem:[#allocation80_spill] sm:$0xff] %v10596_v27  ;;  %v10605_v11 = vpop.f32.mrb[231].mxu0 }
 0x355   : > { %4491 = vmatmul.mubr.bf16.gmra.mrb[28].mxu0 %v10596_v27  ;;  %v3729_v27 = vld [vmem:[#allocation2 + $0xc0] sm:$0xff] }
 0x356   : > { %3609 = vst [vmem:[#allocation2 + $0x121] sm:$0xff] %v3545_v17  ;;  %v3546_v5 = vmax.f32 %v3482_v16, 0.0  ;;  %v8523_v16 = vld [vmem:[#allocation9 + $0x38] sm:$0xff]   ;;  %4498 = vmatprep.mubr.bf16.mxu0 %v10519_v22 }
 0x357   : > { %v3017_v14 = vpop.f32.mrb[244].mxu1  ;;  %v3863_v15 = vld [vmem:[#allocation2 + $0x10a] sm:$0xff]  ;;  %v3864_v12 = vld [vmem:[#allocation2 + $0x112] sm:$0xff]  ;;  %5139 = vmatpush1.bf16.msra.mxu1 %v8523_v16 }
 0x358   : > { %3610 = vst [vmem:[#allocation2 + $0x129] sm:$0xff] %v3546_v5  ;;  %v3307_v47 = vadd.f32 %v10528_v25, %v3017_v14  ;;  %v3019_v6 = vpop.f32.mrb[245].mxu1  ;;  %v10601_v49 = vpack.c.bf16 %v3864_v12, %v3863_v15  ;;  %v10603_v63 = vpack.c.bf16 %v3546_v5, %v3545_v17  ;;  %v13338_v14 = vld [vmem:[#allocation16_spill] sm:$0xff]  ;;  %v3730_v5 = vld [vmem:[#allocation2 + $0xc8] sm:$0xff]  ;;  %5140 = vmatprep.subr.bf16.mxu1 %v13015_v9 }
 0x359   : > { %v3020_v7 = vpop.f32.mrb[246].mxu1  ;;  %v10614_v15 = vpop.f32.mrb[232].mxu0 }
 0x35a   : > { %13335 = vst [vmem:[#allocation96_spill] sm:$0xff] %v10601_v49  ;;  %13336 = vst [vmem:[#allocation92_spill] sm:$0xff] %v10603_v63  ;;  %v3483_v38 = vadd.f32 %v3307_v47, %v13337_v30  ;;  %v3310_v59 = vadd.f32 %v10534_v34, %v3020_v7  ;;  %8069 = vmatmul.mubr.bf16.gmra.mrb[84].mxu1 %v10601_v49  ;;  %v3022_v25 = vpop.f32.mrb[247].mxu1  ;;  %v10616_v47 = vpop.f32.mrb[233].mxu0  ;;  %v10618_v7 = vpack.c.bf16 %v3730_v5, %v3729_v27 }
 0x35b   : > { %v10620_v25 = vpop.f32.mrb[234].mxu0 }
 0x35c   : > { %v3547_v12 = vmax.f32 %v3483_v38, 0.0  ;;  %v3484_v17 = vadd.f32 %v3310_v59, %v13338_v14  ;;  %13339 = vst [vmem:[#allocation99_spill] sm:$0xff] %v10618_v7  ;;  %v10627_v22 = vpop.f32.mrb[235].mxu0 }
 0x35d   : > { %4499 = vmatmul.mubr.bf16.gmra.mrb[32].mxu0 %v10618_v7  ;;  %v8525_v7 = vld [vmem:[#allocation9 + $0xb0] sm:$0xff]  }
 0x35e   : > { %3611 = vst [vmem:[#allocation2 + $0x139] sm:$0xff] %v3547_v12  ;;  %v3548_v6 = vmax.f32 %v3484_v17, 0.0  ;;  %v8524_v17 = vld [vmem:[#allocation9 + $0x40] sm:$0xff]   ;;  %4506 = vmatprep.mubr.bf16.mxu0 %v10540_v39  ;;  %8124 = vmatprep.subr.bf16.mxu0 %v8525_v7 }
 0x35f   : > { %v3025_v34 = vpop.f32.mrb[248].mxu1  ;;  %v3865_v30 = vld [vmem:[#allocation2 + $0x122] sm:$0xff]  ;;  %v3866_v49 = vld [vmem:[#allocation2 + $0x12a] sm:$0xff]  ;;  %5141 = vmatpush1.bf16.msra.mxu1 %v8524_v17  ;;  %8125 = vmatpush3.bf16.msra.mxu0 %v8525_v7 }
 0x360   : > { %3612 = vst [vmem:[#allocation2 + $0x141] sm:$0xff] %v3548_v6  ;;  %v3315_v59 = vadd.f32 %v10550_v45, %v3025_v34  ;;  %v3027_v16 = vpop.f32.mrb[249].mxu1  ;;  %v10623_v38 = vpack.c.bf16 %v3866_v49, %v3865_v30  ;;  %v10625_v14 = vpack.c.bf16 %v3548_v6, %v3547_v12  ;;  %v3732_v6 = vld [vmem:[#allocation2 + $0xe0] sm:$0xff]  ;;  %5142 = vmatprep.subr.bf16.mxu1 %v13015_v9  ;;  %v8526_v30 = vld [vmem:[#allocation9 + $0x48] sm:$0xff]  }
 0x361   : > { %v3028_v35 = vpop.f32.mrb[250].mxu1  ;;  %v10636_v34 = vpop.f32.mrb[236].mxu0 }
 0x362   : > { %13340 = vst [vmem:[#allocation95_spill] sm:$0xff] %v10623_v38  ;;  %13341 = vst [vmem:[#allocation33_spill] sm:$0xff] %v10625_v14  ;;  %v3485_v27 = vadd.f32 %v3315_v59, %v10290_v40  ;;  %v3318_v5 = vadd.f32 %v10559_v4, %v3028_v35  ;;  %8072 = vmatprep.mubr.bf16.mxu1 %v10623_v38  ;;  %v3030_v45 = vpop.f32.mrb[251].mxu1  ;;  %v3731_v40 = vld [vmem:[#allocation2 + $0xd8] sm:$0xff]  ;;  %v10638_v59 = vpop.f32.mrb[237].mxu0 }
 0x363   : > { %v10640_v4 = vpack.c.bf16 %v3732_v6, %v3731_v40  ;;  %v10642_v17 = vpop.f32.mrb[238].mxu0  ;;  %5143 = vmatpush1.bf16.msra.mxu1 %v8526_v30  ;;  %v8527_v40 = vld [vmem:[#allocation9 + $0x50] sm:$0xff]  }
 0x364   : > { %v3549_v49 = vmax.f32 %v3485_v27, 0.0  ;;  %v3486_v12 = vadd.f32 %v3318_v5, %v10299_v8  ;;  %5144 = vmatprep.subr.bf16.mxu1 %v13015_v9 }
 0x365   : > { %13342 = vst [vmem:[#allocation103_spill] sm:$0xff] %v10640_v4  ;;  %4507 = vmatmul.mubr.bf16.gmra.mrb[36].mxu0 %v10640_v4 }
 0x366   : > { %3613 = vst [vmem:[#allocation2 + $0x151] sm:$0xff] %v3549_v49  ;;  %v3550_v16 = vmax.f32 %v3486_v12, 0.0  ;;  %v10649_v12 = vpop.f32.mrb[239].mxu0  ;;  %4514 = vmatprep.mubr.bf16.mxu0 %v10561_v3 }
 0x367   : > { %v3033_v35 = vpop.f32.mrb[252].mxu1  ;;  %v3867_v38 = vld [vmem:[#allocation2 + $0x13a] sm:$0xff]  ;;  %v3868_v45 = vld [vmem:[#allocation2 + $0x142] sm:$0xff]  ;;  %5145 = vmatpush1.bf16.msra.mxu1 %v8527_v40 }
 0x368   : > { %3614 = vst [vmem:[#allocation2 + $0x159] sm:$0xff] %v3550_v16  ;;  %v3323_v8 = vadd.f32 %v10548_v33, %v3033_v35  ;;  %v3035_v27 = vpop.f32.mrb[253].mxu1  ;;  %v10645_v5 = vpack.c.bf16 %v3868_v45, %v3867_v38  ;;  %v10647_v39 = vpack.c.bf16 %v3550_v16, %v3549_v49  ;;  %v13345_v49 = vld [vmem:[#allocation18_spill] sm:$0xff]  ;;  %v3734_v35 = vld [vmem:[#allocation2 + $0xf8] sm:$0xff]  ;;  %5146 = vmatprep.subr.bf16.mxu1 %v13015_v9 }
 0x369   : > { %v3036_v6 = vpop.f32.mrb[254].mxu1  ;;  %v10659_v45 = vpop.f32.mrb[240].mxu0  ;;  %v8528_v27 = vld [vmem:[#allocation9 + $0x58] sm:$0xff]  }
 0x36a   : > { %13343 = vst [vmem:[#allocation46_spill] sm:$0xff] %v10645_v5  ;;  %v3487_v19 = vadd.f32 %v3323_v8, %v13344_v60  ;;  %v3326_v30 = vadd.f32 %v10554_v36, %v3036_v6  ;;  %8073 = vmatmul.mubr.bf16.gmra.mrb[88].mxu1 %v10645_v5  ;;  %v3038_v33 = vpop.f32.mrb[255].mxu1  ;;  %v3733_v36 = vld [vmem:[#allocation2 + $0xf0] sm:$0xff]  ;;  %v10661_v8 = vpop.f32.mrb[241].mxu0 }
 0x36b   : > { %v10663_v3 = vpack.c.bf16 %v3734_v35, %v3733_v36  ;;  %5147 = vmatpush1.bf16.msra.mxu1 %v8528_v27  ;;  %v8529_v35 = vld [vmem:[#allocation9 + $0x60] sm:$0xff]  }
 0x36c   : > { %v3551_v38 = vmax.f32 %v3487_v19, 0.0  ;;  %v3488_v16 = vadd.f32 %v3326_v30, %v13345_v49  ;;  %v10665_v19 = vpop.f32.mrb[242].mxu0  ;;  %5148 = vmatprep.subr.bf16.mxu1 %v13015_v9 }
 0x36d   : > { %13346 = vst [vmem:[#allocation50_spill] sm:$0xff] %v10663_v3  ;;  %4515 = vmatmul.mubr.bf16.gmra.mrb[40].mxu0 %v10663_v3 }
 0x36e   : > { %3615 = vst [vmem:[#allocation2 + $0x169] sm:$0xff] %v3551_v38  ;;  %v3552_v60 = vmax.f32 %v3488_v16, 0.0  ;;  %v10672_v16 = vpop.f32.mrb[243].mxu0  ;;  %4522 = vmatprep.mubr.bf16.mxu0 %v10583_v61 }
 0x36f   : > { %v3041_v6 = vpop.f32.mrb[0].mxu1  ;;  %v3869_v33 = vld [vmem:[#allocation2 + $0x152] sm:$0xff]  ;;  %v3870_v40 = vld [vmem:[#allocation2 + $0x15a] sm:$0xff]  ;;  %5149 = vmatpush1.bf16.msra.mxu1 %v8529_v35 }
 0x370   : > { %3616 = vst [vmem:[#allocation2 + $0x171] sm:$0xff] %v3552_v60  ;;  %v3331_v7 = vadd.f32 %v10572_v43, %v3041_v6  ;;  %v3043_v30 = vpop.f32.mrb[1].mxu1  ;;  %v10668_v49 = vpack.c.bf16 %v3870_v40, %v3869_v33  ;;  %v10670_v5 = vpack.c.bf16 %v3552_v60, %v3551_v38  ;;  %v3736_v6 = vld [vmem:[#allocation2 + $0x110] sm:$0xff]  ;;  %5150 = vmatprep.subr.bf16.mxu1 %v13015_v9  ;;  %v8530_v40 = vld [vmem:[#allocation9 + $0x68] sm:$0xff]  }
 0x371   : > { %v3044_v4 = vpop.f32.mrb[2].mxu1  ;;  %v10682_v33 = vpop.f32.mrb[244].mxu0 }
 0x372   : > { %13347 = vst [vmem:[#allocation100_spill] sm:$0xff] %v10668_v49  ;;  %13348 = vst [vmem:[#allocation81_spill] sm:$0xff] %v10670_v5  ;;  %v3489_v36 = vadd.f32 %v3331_v7, %v10310_v2  ;;  %v3334_v27 = vadd.f32 %v10581_v62, %v3044_v4  ;;  %8076 = vmatprep.mubr.bf16.mxu1 %v10668_v49  ;;  %v3046_v43 = vpop.f32.mrb[3].mxu1  ;;  %v3735_v2 = vld [vmem:[#allocation2 + $0x108] sm:$0xff]  ;;  %v10684_v7 = vpop.f32.mrb[245].mxu0 }
 0x373   : > { %v10686_v4 = vpack.c.bf16 %v3736_v6, %v3735_v2  ;;  %v10688_v35 = vpop.f32.mrb[246].mxu0  ;;  %5151 = vmatpush1.bf16.msra.mxu1 %v8530_v40  ;;  %v8531_v6 = vld [vmem:[#allocation9 + $0x70] sm:$0xff]  }
 0x374   : > { %v3553_v38 = vmax.f32 %v3489_v36, 0.0  ;;  %v3490_v60 = vadd.f32 %v3334_v27, %v10319_v42  ;;  %5152 = vmatprep.subr.bf16.mxu1 %v13015_v9  ;;  %v13351_v2 = vld [vmem:[#allocation108_spill] sm:$0xff] }
 0x375   : > { %13349 = vst [vmem:[#allocation38_spill] sm:$0xff] %v10686_v4  ;;  %4523 = vmatmul.mubr.bf16.gmra.mrb[44].mxu0 %v10686_v4 }
 0x376   : > { %3617 = vst [vmem:[#allocation2 + $0x181] sm:$0xff] %v3553_v38  ;;  %v3554_v30 = vmax.f32 %v3490_v60, 0.0  ;;  %v10695_v60 = vpop.f32.mrb[247].mxu0  ;;  %4530 = vmatprep.mubr.bf16.mxu0 %v10603_v63 }
 0x377   : > { %v3049_v62 = vpop.f32.mrb[4].mxu1  ;;  %v3871_v61 = vld [vmem:[#allocation2 + $0x16a] sm:$0xff]  ;;  %v3872_v43 = vld [vmem:[#allocation2 + $0x172] sm:$0xff]  ;;  %5153 = vmatpush1.bf16.msra.mxu1 %v8531_v6 }
 0x378   : > { %3618 = vst [vmem:[#allocation2 + $0x189] sm:$0xff] %v3554_v30  ;;  %v3339_v42 = vadd.f32 %v10570_v13, %v3049_v62  ;;  %v3051_v36 = vpop.f32.mrb[5].mxu1  ;;  %v10691_v27 = vpack.c.bf16 %v3872_v43, %v3871_v61  ;;  %v10693_v3 = vpack.c.bf16 %v3554_v30, %v3553_v38  ;;  %v3738_v30 = vld [vmem:[#allocation2 + $0x128] sm:$0xff]  ;;  %5154 = vmatprep.subr.bf16.mxu1 %v13015_v9  ;;  %v8532_v43 = vld [vmem:[#allocation9 + $0x78] sm:$0xff]  }
 0x379   : > { %v3052_v49 = vpop.f32.mrb[6].mxu1  ;;  %v10705_v62 = vpop.f32.mrb[248].mxu0 }
 0x37a   : > { %13350 = vst [vmem:[#allocation57_spill] sm:$0xff] %v10691_v27  ;;  %v3491_v44 = vadd.f32 %v3339_v42, %v13351_v2  ;;  %v3342_v40 = vadd.f32 %v10576_v50, %v3052_v49  ;;  %8077 = vmatmul.mubr.bf16.gmra.mrb[92].mxu1 %v10691_v27  ;;  %v3054_v61 = vpop.f32.mrb[7].mxu1  ;;  %v3737_v42 = vld [vmem:[#allocation2 + $0x120] sm:$0xff]  ;;  %v10707_v2 = vpop.f32.mrb[249].mxu0 }
 0x37b   : > { %v10709_v49 = vpack.c.bf16 %v3738_v30, %v3737_v42  ;;  %v10711_v6 = vpop.f32.mrb[250].mxu0  ;;  %5155 = vmatpush1.bf16.msra.mxu1 %v8532_v43 }
 0x37c   : > { %v3555_v13 = vmax.f32 %v3491_v44, 0.0  ;;  %v3492_v38 = vadd.f32 %v3342_v40, %v10316_v48 }
 0x37d   : > { %13352 = vst [vmem:[#allocation106_spill] sm:$0xff] %v10709_v49  ;;  %4531 = vmatmul.mubr.bf16.gmra.mrb[48].mxu0 %v10709_v49 }
 0x37e   : > { %3619 = vst [vmem:[#allocation2 + $0x199] sm:$0xff] %v3555_v13  ;;  %v3556_v36 = vmax.f32 %v3492_v38, 0.0  ;;  %v10718_v38 = vpop.f32.mrb[251].mxu0  ;;  %4538 = vmatprep.mubr.bf16.mxu0 %v10625_v14 }
 0x37f   : > { %v3057_v50 = vpop.f32.mrb[8].mxu1  ;;  %v3873_v27 = vld [vmem:[#allocation2 + $0x182] sm:$0xff]  ;;  %v3874_v61 = vld [vmem:[#allocation2 + $0x18a] sm:$0xff] }
 0x380   : > { %3620 = vst [vmem:[#allocation2 + $0x1a1] sm:$0xff] %v3556_v36  ;;  %v3347_v48 = vadd.f32 %v10594_v58, %v3057_v50  ;;  %v3059_v44 = vpop.f32.mrb[9].mxu1  ;;  %v10714_v40 = vpack.c.bf16 %v3874_v61, %v3873_v27  ;;  %v10716_v63 = vpack.c.bf16 %v3556_v36, %v3555_v13  ;;  %v8533_v58 = vld [vmem:[#allocation9 + $0xb8] sm:$0xff]   ;;  %v3740_v13 = vld [vmem:[#allocation2 + $0x140] sm:$0xff] }
 0x381   : > { %v3060_v4 = vpop.f32.mrb[10].mxu1  ;;  %8126 = vmatprep.subr.bf16.mxu0 %v8533_v58  ;;  %v10726_v36 = vpop.f32.mrb[252].mxu0  ;;  %v3739_v44 = vld [vmem:[#allocation2 + $0x138] sm:$0xff] }
 0x382   : > { %13353 = vst [vmem:[#allocation58_spill] sm:$0xff] %v10714_v40  ;;  %v3493_v30 = vadd.f32 %v3347_v48, %v10330_v21  ;;  %v3350_v42 = vadd.f32 %v10605_v11, %v3060_v4  ;;  %8080 = vmatprep.mubr.bf16.mxu1 %v10714_v40  ;;  %v3062_v43 = vpop.f32.mrb[11].mxu1  ;;  %8127 = vmatpush3.bf16.msra.mxu0 %v8533_v58  ;;  %v10728_v21 = vpop.f32.mrb[253].mxu0  ;;  %v13356_v40 = vld [vmem:[#allocation109_spill] sm:$0xff] }
 0x383   : > { %5991 = vmatprep.subr.bf16.mxu0 %v13015_v9  ;;  %v10731_v4 = vpack.c.bf16 %v3740_v13, %v3739_v44 }
 0x384   : > { %v3557_v50 = vmax.f32 %v3493_v30, 0.0  ;;  %v3494_v27 = vadd.f32 %v3350_v42, %v10339_v18  ;;  %v10733_v30 = vpop.f32.mrb[254].mxu0 }
 0x385   : > { %13354 = vst [vmem:[#allocation54_spill] sm:$0xff] %v10731_v4  ;;  %4539 = vmatmul.mubr.bf16.gmra.mrb[52].mxu0 %v10731_v4 }
 0x386   : > { %3621 = vst [vmem:[#allocation2 + $0x1b1] sm:$0xff] %v3557_v50  ;;  %v3558_v61 = vmax.f32 %v3494_v27, 0.0  ;;  %v10740_v27 = vpop.f32.mrb[255].mxu0  ;;  %4546 = vmatprep.mubr.bf16.mxu0 %v10647_v39 }
 0x387   : > { %v3065_v11 = vpop.f32.mrb[12].mxu1  ;;  %v3875_v48 = vld [vmem:[#allocation2 + $0x19a] sm:$0xff]  ;;  %v3876_v43 = vld [vmem:[#allocation2 + $0x1a2] sm:$0xff] }
 0x388   : > { %3622 = vst [vmem:[#allocation2 + $0x1b9] sm:$0xff] %v3558_v61  ;;  %v3355_v18 = vadd.f32 %v10592_v20, %v3065_v11  ;;  %v3067_v42 = vpop.f32.mrb[13].mxu1  ;;  %v10736_v14 = vpack.c.bf16 %v3876_v43, %v3875_v48  ;;  %v10738_v58 = vpack.c.bf16 %v3558_v61, %v3557_v50  ;;  %v3742_v48 = vld [vmem:[#allocation2 + $0x158] sm:$0xff]  ;;  %v3741_v61 = vld [vmem:[#allocation2 + $0x150] sm:$0xff] }
 0x389   : > { %v3068_v49 = vpop.f32.mrb[14].mxu1  ;;  %v10748_v42 = vpack.c.bf16 %v3742_v48, %v3741_v61  ;;  %v3744_v48 = vld [vmem:[#allocation2 + $0x170] sm:$0xff] }
 0x38a   : > { %13355 = vst [vmem:[#allocation82_spill] sm:$0xff] %v10736_v14  ;;  %v3495_v13 = vadd.f32 %v3355_v18, %v13356_v40  ;;  %v3358_v44 = vadd.f32 %v10598_v55, %v3068_v49  ;;  %8081 = vmatmul.mubr.bf16.gmra.mrb[96].mxu1 %v10736_v14  ;;  %v3070_v37 = vpop.f32.mrb[15].mxu1 }
 0x38c   : > { %v3559_v20 = vmax.f32 %v3495_v13, 0.0  ;;  %v3496_v11 = vadd.f32 %v3358_v44, %v10336_v53 }
 0x38d   : > { %4547 = vmatmul.mubr.bf16.gmra.mrb[56].mxu0 %v10748_v42 }
 0x38e   : > { %3623 = vst [vmem:[#allocation2 + $0x1c9] sm:$0xff] %v3559_v20  ;;  %v3560_v50 = vmax.f32 %v3496_v11, 0.0  ;;  %4554 = vmatprep.mubr.bf16.mxu0 %v10670_v5 }
 0x38f   : > { %v3073_v43 = vpop.f32.mrb[16].mxu1  ;;  %v3877_v4 = vld [vmem:[#allocation2 + $0x1b2] sm:$0xff]  ;;  %v3878_v0 = vld [vmem:[#allocation2 + $0x1ba] sm:$0xff] }
 0x390   : > { %3624 = vst [vmem:[#allocation2 + $0x1d1] sm:$0xff] %v3560_v50  ;;  %v3363_v55 = vadd.f32 %v10616_v47, %v3073_v43  ;;  %v3075_v49 = vpop.f32.mrb[17].mxu1  ;;  %v10751_v40 = vpack.c.bf16 %v3878_v0, %v3877_v4  ;;  %v10753_v18 = vpack.c.bf16 %v3560_v50, %v3559_v20  ;;  %v3743_v4 = vld [vmem:[#allocation2 + $0x168] sm:$0xff] }
 0x391   : > { %v3076_v37 = vpop.f32.mrb[18].mxu1  ;;  %v10761_v50 = vpack.c.bf16 %v3744_v48, %v3743_v4  ;;  %v3746_v48 = vld [vmem:[#allocation2 + $0x188] sm:$0xff]  ;;  %v10774_v4 = vld [vmem:[#allocation9 + $0x200] sm:$0xff]  }
 0x392   : > { %v3497_v53 = vadd.f32 %v3363_v55, %v10350_v52  ;;  %v3366_v13 = vadd.f32 %v10627_v22, %v3076_v37  ;;  %8084 = vmatprep.mubr.bf16.mxu1 %v10751_v40  ;;  %v3078_v44 = vpop.f32.mrb[19].mxu1  ;;  %8192 = vmatprep.subr.bf16.mxu1 %v10774_v4 }
 0x393   : > { %13357 = vst [vmem:[#allocation43_spill] sm:$0xff] %v10761_v50 }
 0x394   : > { %v3561_v11 = vmax.f32 %v3497_v53, 0.0  ;;  %v3498_v47 = vadd.f32 %v3366_v13, %v10359_v32 }
 0x395   : > { %4555 = vmatmul.mubr.bf16.gmra.mrb[60].mxu0 %v10761_v50 }
 0x396   : > { %3625 = vst [vmem:[#allocation2 + $0x1e1] sm:$0xff] %v3561_v11  ;;  %v3562_v0 = vmax.f32 %v3498_v47, 0.0  ;;  %4562 = vmatprep.mubr.bf16.mxu0 %v10693_v3  ;;  %v13358_v47 = vld [vmem:[#allocation60_spill] sm:$0xff] }
 0x397   : > { %v3081_v20 = vpop.f32.mrb[20].mxu1  ;;  %v3879_v61 = vld [vmem:[#allocation2 + $0x1ca] sm:$0xff]  ;;  %v3880_v43 = vld [vmem:[#allocation2 + $0x1d2] sm:$0xff] }
 0x398   : > { %3626 = vst [vmem:[#allocation2 + $0x1e9] sm:$0xff] %v3562_v0  ;;  %v3371_v52 = vadd.f32 %v10614_v15, %v3081_v20  ;;  %v3083_v22 = vpop.f32.mrb[21].mxu1  ;;  %v10764_v55 = vpack.c.bf16 %v3880_v43, %v3879_v61  ;;  %v10766_v49 = vpack.c.bf16 %v3562_v0, %v3561_v11  ;;  %v3745_v0 = vld [vmem:[#allocation2 + $0x180] sm:$0xff] }
 0x399   : > { %v3084_v37 = vpop.f32.mrb[22].mxu1  ;;  %v10776_v61 = vpack.c.bf16 %v3746_v48, %v3745_v0  ;;  %v3748_v48 = vld [vmem:[#allocation2 + $0x1a0] sm:$0xff] }
 0x39a   : > { %v3499_v32 = vadd.f32 %v3371_v52, %v10347_v56  ;;  %v3374_v53 = vadd.f32 %v10620_v25, %v3084_v37  ;;  %8085 = vmatmul.mubr.bf16.gmra.mrb[100].mxu1 %v10764_v55  ;;  %v3086_v13 = vpop.f32.mrb[23].mxu1 }
 0x39c   : > { %v3563_v44 = vmax.f32 %v3499_v32, 0.0  ;;  %v3500_v15 = vadd.f32 %v3374_v53, %v13358_v47 }
 0x39d   : > { %4563 = vmatmul.mubr.bf16.gmra.mrb[64].mxu0 %v10776_v61 }
 0x39e   : > { %3627 = vst [vmem:[#allocation2 + $0x1f9] sm:$0xff] %v3563_v44  ;;  %v3564_v11 = vmax.f32 %v3500_v15, 0.0  ;;  %4570 = vmatprep.mubr.bf16.mxu0 %v10716_v63 }
 0x39f   : > { %v3089_v20 = vpop.f32.mrb[24].mxu1  ;;  %v3881_v56 = vld [vmem:[#allocation2 + $0x1e2] sm:$0xff]  ;;  %v3882_v43 = vld [vmem:[#allocation2 + $0x1ea] sm:$0xff] }
 0x3a0   : > { %3628 = vst [vmem:[#allocation2 + $0x201] sm:$0xff] %v3564_v11  ;;  %v3379_v25 = vadd.f32 %v10638_v59, %v3089_v20  ;;  %v3091_v52 = vpop.f32.mrb[25].mxu1  ;;  %v10780_v22 = vpack.c.bf16 %v3882_v43, %v3881_v56  ;;  %v10782_v37 = vpack.c.bf16 %v3564_v11, %v3563_v44  ;;  %v3747_v44 = vld [vmem:[#allocation2 + $0x198] sm:$0xff] }
 0x3a1   : > { %v3092_v32 = vpop.f32.mrb[26].mxu1  ;;  %v10790_v20 = vpack.c.bf16 %v3748_v48, %v3747_v44  ;;  %v3750_v48 = vld [vmem:[#allocation2 + $0x1b8] sm:$0xff] }
 0x3a2   : > { %v3501_v53 = vadd.f32 %v3379_v25, %v10370_v51  ;;  %v3382_v13 = vadd.f32 %v10649_v12, %v3092_v32  ;;  %8088 = vmatprep.mubr.bf16.mxu1 %v10780_v22  ;;  %v3094_v47 = vpop.f32.mrb[27].mxu1 }
 0x3a4   : > { %v3565_v15 = vmax.f32 %v3501_v53, 0.0  ;;  %v3502_v59 = vadd.f32 %v3382_v13, %v10377_v1  ;;  %v13360_v1 = vld [vmem:[#allocation20_spill] sm:$0xff] }
 0x3a5   : > { %4571 = vmatmul.mubr.bf16.gmra.mrb[68].mxu0 %v10790_v20 }
 0x3a6   : > { %3629 = vst [vmem:[#allocation2 + $0x211] sm:$0xff] %v3565_v15  ;;  %v3566_v0 = vmax.f32 %v3502_v59, 0.0  ;;  %4578 = vmatprep.mubr.bf16.mxu0 %v10738_v58 }
 0x3a7   : > { %v3097_v11 = vpop.f32.mrb[28].mxu1  ;;  %v3883_v56 = vld [vmem:[#allocation2 + $0x1fa] sm:$0xff]  ;;  %v3884_v43 = vld [vmem:[#allocation2 + $0x202] sm:$0xff] }
 0x3a8   : > { %3630 = vst [vmem:[#allocation2 + $0x219] sm:$0xff] %v3566_v0  ;;  %v3387_v51 = vadd.f32 %v10636_v34, %v3097_v11  ;;  %v3099_v12 = vpop.f32.mrb[29].mxu1  ;;  %v10793_v25 = vpack.c.bf16 %v3884_v43, %v3883_v56  ;;  %v10795_v52 = vpack.c.bf16 %v3566_v0, %v3565_v15  ;;  %v3749_v15 = vld [vmem:[#allocation2 + $0x1b0] sm:$0xff] }
 0x3a9   : > { %v3100_v32 = vpop.f32.mrb[30].mxu1  ;;  %v10803_v11 = vpack.c.bf16 %v3750_v48, %v3749_v15 }
 0x3aa   : > { %13359 = vst [vmem:[#allocation62_spill] sm:$0xff] %v10793_v25  ;;  %v3503_v53 = vadd.f32 %v3387_v51, %v13360_v1  ;;  %v3390_v13 = vadd.f32 %v10642_v17, %v3100_v32  ;;  %8089 = vmatmul.mubr.bf16.gmra.mrb[104].mxu1 %v10793_v25  ;;  %v3102_v47 = vpop.f32.mrb[31].mxu1 }
 0x3ac   : > { %v3567_v59 = vmax.f32 %v3503_v53, 0.0  ;;  %v3504_v34 = vadd.f32 %v3390_v13, %v10374_v31 }
 0x3ad   : > { %4579 = vmatmul.mubr.bf16.gmra.mrb[72].mxu0 %v10803_v11 }
 0x3ae   : > { %3631 = vst [vmem:[#allocation2 + $0x229] sm:$0xff] %v3567_v59  ;;  %v3568_v44 = vmax.f32 %v3504_v34, 0.0  ;;  %4586 = vmatprep.mubr.bf16.mxu0 %v10753_v18  ;;  %v3752_v34 = vld [vmem:[#allocation2 + $0x1d0] sm:$0xff] }
 0x3af   : > { %v3105_v0 = vpop.f32.mrb[32].mxu1  ;;  %v3885_v56 = vld [vmem:[#allocation2 + $0x212] sm:$0xff]  ;;  %v3886_v43 = vld [vmem:[#allocation2 + $0x21a] sm:$0xff] }
 0x3b0   : > { %3632 = vst [vmem:[#allocation2 + $0x231] sm:$0xff] %v3568_v44  ;;  %v3395_v17 = vadd.f32 %v10661_v8, %v3105_v0  ;;  %v3107_v51 = vpop.f32.mrb[33].mxu1  ;;  %v10806_v12 = vpack.c.bf16 %v3886_v43, %v3885_v56  ;;  %v10808_v32 = vpack.c.bf16 %v3568_v44, %v3567_v59  ;;  %v3751_v59 = vld [vmem:[#allocation2 + $0x1c8] sm:$0xff] }
 0x3b1   : > { %v3108_v1 = vpop.f32.mrb[34].mxu1  ;;  %v10816_v15 = vpack.c.bf16 %v3752_v34, %v3751_v59 }
 0x3b2   : > { %v3505_v31 = vadd.f32 %v3395_v17, %v10386_v29  ;;  %v3398_v53 = vadd.f32 %v10672_v16, %v3108_v1  ;;  %8092 = vmatprep.mubr.bf16.mxu1 %v10806_v12  ;;  %v3110_v13 = vpop.f32.mrb[35].mxu1 }
 0x3b3   : > { %v13362_v13 = vld [vmem:[#allocation64_spill] sm:$0xff] }
 0x3b4   : > { %v3569_v47 = vmax.f32 %v3505_v31, 0.0  ;;  %v3506_v8 = vadd.f32 %v3398_v53, %v10392_v57 }
 0x3b5   : > { %4587 = vmatmul.mubr.bf16.gmra.mrb[76].mxu0 %v10816_v15 }
 0x3b6   : > { %3633 = vst [vmem:[#allocation2 + $0x241] sm:$0xff] %v3569_v47  ;;  %v3570_v48 = vmax.f32 %v3506_v8, 0.0  ;;  %4594 = vmatprep.mubr.bf16.mxu0 %v10766_v49  ;;  %v3754_v8 = vld [vmem:[#allocation2 + $0x1e8] sm:$0xff] }
 0x3b7   : > { %v3113_v44 = vpop.f32.mrb[36].mxu1  ;;  %v3887_v0 = vld [vmem:[#allocation2 + $0x22a] sm:$0xff]  ;;  %v3888_v56 = vld [vmem:[#allocation2 + $0x232] sm:$0xff] }
 0x3b8   : > { %3634 = vst [vmem:[#allocation2 + $0x249] sm:$0xff] %v3570_v48  ;;  %v3403_v29 = vadd.f32 %v10659_v45, %v3113_v44  ;;  %v3115_v16 = vpop.f32.mrb[37].mxu1  ;;  %v10819_v43 = vpack.c.bf16 %v3888_v56, %v3887_v0  ;;  %v10821_v17 = vpack.c.bf16 %v3570_v48, %v3569_v47  ;;  %v3753_v47 = vld [vmem:[#allocation2 + $0x1e0] sm:$0xff] }
 0x3b9   : > { %v3116_v51 = vpop.f32.mrb[38].mxu1  ;;  %v10829_v59 = vpack.c.bf16 %v3754_v8, %v3753_v47 }
 0x3ba   : > { %13361 = vst [vmem:[#allocation61_spill] sm:$0xff] %v10821_v17  ;;  %v3507_v57 = vadd.f32 %v3403_v29, %v10383_v23  ;;  %v3406_v1 = vadd.f32 %v10665_v19, %v3116_v51  ;;  %8093 = vmatmul.mubr.bf16.gmra.mrb[108].mxu1 %v10819_v43  ;;  %v3118_v31 = vpop.f32.mrb[39].mxu1 }
 0x3bc   : > { %v3571_v53 = vmax.f32 %v3507_v57, 0.0  ;;  %v3508_v45 = vadd.f32 %v3406_v1, %v13362_v13  ;;  %v13364_v13 = vld [vmem:[#allocation110_spill] sm:$0xff] }
 0x3bd   : > { %4595 = vmatmul.mubr.bf16.gmra.mrb[80].mxu0 %v10829_v59 }
 0x3be   : > { %3635 = vst [vmem:[#allocation2 + $0x259] sm:$0xff] %v3571_v53  ;;  %v3572_v34 = vmax.f32 %v3508_v45, 0.0  ;;  %4602 = vmatprep.mubr.bf16.mxu0 %v10782_v37  ;;  %v3756_v45 = vld [vmem:[#allocation2 + $0x200] sm:$0xff] }
 0x3bf   : > { %v3121_v48 = vpop.f32.mrb[40].mxu1  ;;  %v3889_v44 = vld [vmem:[#allocation2 + $0x242] sm:$0xff]  ;;  %v3890_v0 = vld [vmem:[#allocation2 + $0x24a] sm:$0xff] }
 0x3c0   : > { %3636 = vst [vmem:[#allocation2 + $0x261] sm:$0xff] %v3572_v34  ;;  %v3411_v23 = vadd.f32 %v10684_v7, %v3121_v48  ;;  %v3123_v19 = vpop.f32.mrb[41].mxu1  ;;  %v10832_v56 = vpack.c.bf16 %v3890_v0, %v3889_v44  ;;  %v10834_v29 = vpack.c.bf16 %v3572_v34, %v3571_v53  ;;  %v3755_v53 = vld [vmem:[#allocation2 + $0x1f8] sm:$0xff] }
 0x3c1   : > { %v3124_v16 = vpop.f32.mrb[42].mxu1  ;;  %v10842_v47 = vpack.c.bf16 %v3756_v45, %v3755_v53  ;;  %v3758_v45 = vld [vmem:[#allocation2 + $0x218] sm:$0xff] }
 0x3c2   : > { %13363 = vst [vmem:[#allocation65_spill] sm:$0xff] %v10834_v29  ;;  %v3509_v51 = vadd.f32 %v3411_v23, %v10400_v26  ;;  %v3414_v57 = vadd.f32 %v10695_v60, %v3124_v16  ;;  %8096 = vmatprep.mubr.bf16.mxu1 %v10832_v56  ;;  %v3126_v1 = vpop.f32.mrb[43].mxu1  ;;  %v13366_v16 = vld [vmem:[#allocation21_spill] sm:$0xff] }
 0x3c4   : > { %v3573_v31 = vmax.f32 %v3509_v51, 0.0  ;;  %v3510_v7 = vadd.f32 %v3414_v57, %v13364_v13 }
 0x3c5   : > { %4603 = vmatmul.mubr.bf16.gmra.mrb[84].mxu0 %v10842_v47 }
 0x3c6   : > { %3637 = vst [vmem:[#allocation2 + $0x271] sm:$0xff] %v3573_v31  ;;  %v3574_v8 = vmax.f32 %v3510_v7, 0.0  ;;  %4610 = vmatprep.mubr.bf16.mxu0 %v10795_v52  ;;  %v13367_v7 = vld [vmem:[#allocation121_spill] sm:$0xff] }
 0x3c7   : > { %v3129_v34 = vpop.f32.mrb[44].mxu1  ;;  %v3891_v48 = vld [vmem:[#allocation2 + $0x25a] sm:$0xff]  ;;  %v3892_v44 = vld [vmem:[#allocation2 + $0x262] sm:$0xff] }
 0x3c8   : > { %3638 = vst [vmem:[#allocation2 + $0x279] sm:$0xff] %v3574_v8  ;;  %v3419_v26 = vadd.f32 %v10682_v33, %v3129_v34  ;;  %v3131_v60 = vpop.f32.mrb[45].mxu1  ;;  %v10845_v0 = vpack.c.bf16 %v3892_v44, %v3891_v48  ;;  %v10847_v23 = vpack.c.bf16 %v3574_v8, %v3573_v31  ;;  %v3757_v31 = vld [vmem:[#allocation2 + $0x210] sm:$0xff] }
 0x3c9   : > { %v3132_v19 = vpop.f32.mrb[46].mxu1  ;;  %v10855_v34 = vpack.c.bf16 %v3758_v45, %v3757_v31  ;;  %v13370_v45 = vld [vmem:[#allocation23_spill] sm:$0xff]  ;;  %v3760_v31 = vld [vmem:[#allocation2 + $0x230] sm:$0xff] }
 0x3ca   : > { %13365 = vst [vmem:[#allocation30_spill] sm:$0xff] %v10847_v23  ;;  %v3511_v51 = vadd.f32 %v3419_v26, %v13366_v16  ;;  %v3422_v57 = vadd.f32 %v10688_v35, %v3132_v19  ;;  %8097 = vmatmul.mubr.bf16.gmra.mrb[112].mxu1 %v10845_v0  ;;  %v3134_v1 = vpop.f32.mrb[47].mxu1 }
 0x3cc   : > { %v3575_v13 = vmax.f32 %v3511_v51, 0.0  ;;  %v3512_v33 = vadd.f32 %v3422_v57, %v13367_v7  ;;  %v13369_v51 = vld [vmem:[#allocation36_spill] sm:$0xff] }
 0x3cd   : > { %4611 = vmatmul.mubr.bf16.gmra.mrb[88].mxu0 %v10855_v34 }
 0x3ce   : > { %3639 = vst [vmem:[#allocation2 + $0x289] sm:$0xff] %v3575_v13  ;;  %v3576_v53 = vmax.f32 %v3512_v33, 0.0  ;;  %4618 = vmatprep.mubr.bf16.mxu0 %v10808_v32 }
 0x3cf   : > { %v3137_v8 = vpop.f32.mrb[48].mxu1  ;;  %v3893_v48 = vld [vmem:[#allocation2 + $0x272] sm:$0xff]  ;;  %v3894_v44 = vld [vmem:[#allocation2 + $0x27a] sm:$0xff] }
 0x3d0   : > { %3640 = vst [vmem:[#allocation2 + $0x291] sm:$0xff] %v3576_v53  ;;  %v3427_v35 = vadd.f32 %v10707_v2, %v3137_v8  ;;  %v3139_v26 = vpop.f32.mrb[49].mxu1  ;;  %v10858_v60 = vpack.c.bf16 %v3894_v44, %v3893_v48  ;;  %v10860_v19 = vpack.c.bf16 %v3576_v53, %v3575_v13  ;;  %v3759_v13 = vld [vmem:[#allocation2 + $0x228] sm:$0xff] }
 0x3d1   : > { %v3140_v16 = vpop.f32.mrb[50].mxu1  ;;  %v10868_v48 = vpack.c.bf16 %v3760_v31, %v3759_v13  ;;  %v13373_v13 = vld [vmem:[#allocation68_spill] sm:$0xff] }
 0x3d2   : > { %13368 = vst [vmem:[#allocation76_spill] sm:$0xff] %v10860_v19  ;;  %v3513_v57 = vadd.f32 %v3427_v35, %v13369_v51  ;;  %v3430_v1 = vadd.f32 %v10718_v38, %v3140_v16  ;;  %8100 = vmatprep.mubr.bf16.mxu1 %v10858_v60  ;;  %v3142_v7 = vpop.f32.mrb[51].mxu1 }
 0x3d4   : > { %v3577_v33 = vmax.f32 %v3513_v57, 0.0  ;;  %v3514_v2 = vadd.f32 %v3430_v1, %v13370_v45  ;;  %v13372_v1 = vld [vmem:[#allocation32_spill] sm:$0xff] }
 0x3d5   : > { %4619 = vmatmul.mubr.bf16.gmra.mrb[92].mxu0 %v10868_v48 }
 0x3d6   : > { %3641 = vst [vmem:[#allocation2 + $0x2a1] sm:$0xff] %v3577_v33  ;;  %v3578_v8 = vmax.f32 %v3514_v2, 0.0  ;;  %4626 = vmatprep.mubr.bf16.mxu0 %v10821_v17  ;;  %v13427_v17 = vld [vmem:[#allocation49_spill] sm:$0xff] }
 0x3d7   : > { %v3145_v53 = vpop.f32.mrb[52].mxu1  ;;  %v3895_v44 = vld [vmem:[#allocation2 + $0x28a] sm:$0xff]  ;;  %v3896_v26 = vld [vmem:[#allocation2 + $0x292] sm:$0xff] }
 0x3d8   : > { %3642 = vst [vmem:[#allocation2 + $0x2a9] sm:$0xff] %v3578_v8  ;;  %v3435_v38 = vadd.f32 %v10705_v62, %v3145_v53  ;;  %v3147_v35 = vpop.f32.mrb[53].mxu1  ;;  %v10871_v16 = vpack.c.bf16 %v3896_v26, %v3895_v44  ;;  %v10873_v51 = vpack.c.bf16 %v3578_v8, %v3577_v33  ;;  %v3762_v53 = vld [vmem:[#allocation2 + $0x248] sm:$0xff]  ;;  %v3761_v33 = vld [vmem:[#allocation2 + $0x240] sm:$0xff] }
 0x3d9   : > { %v3148_v57 = vpop.f32.mrb[54].mxu1  ;;  %v10881_v26 = vpack.c.bf16 %v3762_v53, %v3761_v33  ;;  %v13378_v33 = vld [vmem:[#allocation41_spill] sm:$0xff] }
 0x3da   : > { %13371 = vst [vmem:[#allocation83_spill] sm:$0xff] %v10873_v51  ;;  %v3515_v7 = vadd.f32 %v3435_v38, %v13372_v1  ;;  %v3438_v45 = vadd.f32 %v10711_v6, %v3148_v57  ;;  %8101 = vmatmul.mubr.bf16.gmra.mrb[116].mxu1 %v10871_v16  ;;  %v3150_v2 = vpop.f32.mrb[55].mxu1 }
 0x3db   : > { %13374 = vst [vmem:[#allocation47_spill] sm:$0xff] %v10881_v26 }
 0x3dc   : > { %v3579_v31 = vmax.f32 %v3515_v7, 0.0  ;;  %v3516_v62 = vadd.f32 %v3438_v45, %v13373_v13  ;;  %v13377_v45 = vld [vmem:[#allocation29_spill] sm:$0xff] }
 0x3dd   : > { %4627 = vmatmul.mubr.bf16.gmra.mrb[96].mxu0 %v10881_v26 }
 0x3de   : > { %3643 = vst [vmem:[#allocation2 + $0x2b9] sm:$0xff] %v3579_v31  ;;  %v3580_v44 = vmax.f32 %v3516_v62, 0.0  ;;  %4634 = vmatprep.mubr.bf16.mxu0 %v10834_v29  ;;  %v13419_v29 = vld [vmem:[#allocation118_spill] sm:$0xff] }
 0x3df   : > { %v3153_v8 = vpop.f32.mrb[56].mxu1  ;;  %v3897_v35 = vld [vmem:[#allocation2 + $0x2a2] sm:$0xff]  ;;  %v3898_v50 = vld [vmem:[#allocation2 + $0x2aa] sm:$0xff] }
 0x3e0   : > { %3644 = vst [vmem:[#allocation2 + $0x2c1] sm:$0xff] %v3580_v44  ;;  %v3443_v6 = vadd.f32 %v10728_v21, %v3153_v8  ;;  %v3155_v38 = vpop.f32.mrb[57].mxu1  ;;  %v10884_v57 = vpack.c.bf16 %v3898_v50, %v3897_v35  ;;  %v10886_v1 = vpack.c.bf16 %v3580_v44, %v3579_v31  ;;  %v3764_v8 = vld [vmem:[#allocation2 + $0x260] sm:$0xff]  ;;  %v3763_v31 = vld [vmem:[#allocation2 + $0x258] sm:$0xff] }
 0x3e1   : > { %v3156_v7 = vpop.f32.mrb[58].mxu1  ;;  %v10894_v35 = vpack.c.bf16 %v3764_v8, %v3763_v31  ;;  %v13383_v31 = vld [vmem:[#allocation37_spill] sm:$0xff] }
 0x3e2   : > { %13375 = vst [vmem:[#allocation34_spill] sm:$0xff] %v10884_v57  ;;  %13376 = vst [vmem:[#allocation84_spill] sm:$0xff] %v10886_v1  ;;  %v3517_v2 = vadd.f32 %v3443_v6, %v13377_v45  ;;  %v3446_v13 = vadd.f32 %v10740_v27, %v3156_v7  ;;  %8104 = vmatprep.mubr.bf16.mxu1 %v10884_v57  ;;  %v3158_v62 = vpop.f32.mrb[59].mxu1 }
 0x3e3   : > { %13379 = vst [vmem:[#allocation51_spill] sm:$0xff] %v10894_v35 }
 0x3e4   : > { %v3581_v53 = vmax.f32 %v3517_v2, 0.0  ;;  %v3518_v21 = vadd.f32 %v3446_v13, %v13378_v33  ;;  %v13382_v13 = vld [vmem:[#allocation112_spill] sm:$0xff] }
 0x3e5   : > { %4635 = vmatmul.mubr.bf16.gmra.mrb[100].mxu0 %v10894_v35 }
 0x3e6   : > { %3645 = vst [vmem:[#allocation2 + $0x2d1] sm:$0xff] %v3581_v53  ;;  %v3582_v50 = vmax.f32 %v3518_v21, 0.0  ;;  %4642 = vmatprep.mubr.bf16.mxu0 %v10847_v23 }
 0x3e7   : > { %v3161_v44 = vpop.f32.mrb[60].mxu1  ;;  %v3899_v38 = vld [vmem:[#allocation2 + $0x2ba] sm:$0xff]  ;;  %v3900_v5 = vld [vmem:[#allocation2 + $0x2c2] sm:$0xff] }
 0x3e8   : > { %3646 = vst [vmem:[#allocation2 + $0x2d9] sm:$0xff] %v3582_v50  ;;  %v3451_v27 = vadd.f32 %v10726_v36, %v3161_v44  ;;  %v3163_v6 = vpop.f32.mrb[61].mxu1  ;;  %v10897_v7 = vpack.c.bf16 %v3900_v5, %v3899_v38  ;;  %v10899_v45 = vpack.c.bf16 %v3582_v50, %v3581_v53  ;;  %v3766_v44 = vld [vmem:[#allocation2 + $0x278] sm:$0xff]  ;;  %v3765_v53 = vld [vmem:[#allocation2 + $0x270] sm:$0xff] }
 0x3e9   : > { %v3164_v2 = vpop.f32.mrb[62].mxu1  ;;  %v10907_v50 = vpack.c.bf16 %v3766_v44, %v3765_v53 }
 0x3ea   : > { %13380 = vst [vmem:[#allocation85_spill] sm:$0xff] %v10897_v7  ;;  %13381 = vst [vmem:[#allocation55_spill] sm:$0xff] %v10899_v45  ;;  %v3519_v62 = vadd.f32 %v3451_v27, %v13382_v13  ;;  %v3454_v33 = vadd.f32 %v10733_v30, %v3164_v2  ;;  %8105 = vmatmul.mubr.bf16.gmra.mrb[120].mxu1 %v10897_v7  ;;  %v3166_v21 = vpop.f32.mrb[63].mxu1  ;;  %v3768_v13 = vld [vmem:[#allocation2 + $0x290] sm:$0xff] }
 0x3eb   : > { %13384 = vst [vmem:[#allocation86_spill] sm:$0xff] %v10907_v50 }
 0x3ec   : > { %v3583_v8 = vmax.f32 %v3519_v62, 0.0  ;;  %v3520_v36 = vadd.f32 %v3454_v33, %v13383_v31 }
 0x3ed   : > { %4643 = vmatmul.mubr.bf16.gmra.mrb[104].mxu0 %v10907_v50 }
 0x3ee   : > { %3647 = vst [vmem:[#allocation2 + $0x2e9] sm:$0xff] %v3583_v8  ;;  %v3584_v5 = vmax.f32 %v3520_v36, 0.0  ;;  %4650 = vmatprep.mubr.bf16.mxu0 %v10860_v19  ;;  %v3767_v36 = vld [vmem:[#allocation2 + $0x288] sm:$0xff] }
 0x3ef   : > { %v3901_v38 = vld [vmem:[#allocation2 + $0x2d2] sm:$0xff]  ;;  %v3902_v6 = vld [vmem:[#allocation2 + $0x2da] sm:$0xff]  ;;  %v10916_v23 = vpack.c.bf16 %v3768_v13, %v3767_v36  ;;  %v3770_v13 = vld [vmem:[#allocation2 + $0x2a8] sm:$0xff] }
 0x3f0   : > { %3648 = vst [vmem:[#allocation2 + $0x2f1] sm:$0xff] %v3584_v5  ;;  %v10909_v27 = vpack.c.bf16 %v3902_v6, %v3901_v38  ;;  %v10911_v30 = vpack.c.bf16 %v3584_v5, %v3583_v8  ;;  %v4436_v2 = vpop.f32.mrb[0].mxu0 }
 0x3f1   : > { %v4438_v62 = vpop.f32.mrb[1].mxu0  ;;  %13387 = vst [vmem:[#allocation35_spill] sm:$0xff] %v10916_v23 }
 0x3f2   : > { %13385 = vst [vmem:[#allocation59_spill] sm:$0xff] %v10909_v27  ;;  %13386 = vst [vmem:[#allocation69_spill] sm:$0xff] %v10911_v30  ;;  %8108 = vmatprep.mubr.bf16.mxu1 %v10909_v27  ;;  %v8050_v33 = vpop.f32.mrb[64].mxu1  ;;  %v4439_v21 = vpop.f32.mrb[2].mxu0 }
 0x3f3   : > { %v4725_v31 = vpop.f32.mrb[65].mxu1  ;;  %v4441_v44 = vpop.f32.mrb[3].mxu0 }
 0x3f4   : > { %v8051_v53 = vpop.f32.mrb[66].mxu1  ;;  %v10918_v5 = vadd.f32 %v4725_v31, %v4436_v2 }
 0x3f5   : > { %v4728_v6 = vpop.f32.mrb[67].mxu1  ;;  %4651 = vmatmul.mubr.bf16.gmra.mrb[108].mxu0 %v10916_v23 }
 0x3f6   : > { %13388 = vst [vmem:[#allocation66_spill] sm:$0xff] %v10918_v5  ;;  %v10923_v19 = vadd.f32 %v4728_v6, %v4439_v21  ;;  %4658 = vmatprep.mubr.bf16.mxu0 %v10873_v51 }
 0x3f7   : > { %v3903_v38 = vld [vmem:[#allocation2 + $0x2ea] sm:$0xff]  ;;  %v3904_v8 = vld [vmem:[#allocation2 + $0x2f2] sm:$0xff] }
 0x3f8   : > { %v10920_v50 = vpack.c.bf16 %v3904_v8, %v3903_v38  ;;  %13390 = vst [vmem:[#allocation63_spill] sm:$0xff] %v10923_v19  ;;  %v4444_v62 = vpop.f32.mrb[4].mxu0  ;;  %v3769_v38 = vld [vmem:[#allocation2 + $0x2a0] sm:$0xff] }
 0x3f9   : > { %v4446_v36 = vpop.f32.mrb[5].mxu0  ;;  %v10928_v35 = vadd.f32 %v8050_v33, %v4444_v62  ;;  %v10930_v23 = vpack.c.bf16 %v3770_v13, %v3769_v38  ;;  %v3772_v62 = vld [vmem:[#allocation2 + $0x2c0] sm:$0xff] }
 0x3fa   : > { %13389 = vst [vmem:[#allocation87_spill] sm:$0xff] %v10920_v50  ;;  %8109 = vmatmul.mubr.bf16.gmra.mrb[124].mxu1 %v10920_v50  ;;  %v8054_v44 = vpop.f32.mrb[68].mxu1  ;;  %v4447_v2 = vpop.f32.mrb[6].mxu0  ;;  %v8539_v50 = vld [vmem:[#allocation9 + $0x208] sm:$0xff]   ;;  %v13394_v36 = vld [vmem:[#allocation72_spill] sm:$0xff] }
 0x3fb   : > { %5156 = vmatprep.mubr.bf16.mxu1 %v13015_v9  ;;  %13391 = vst [vmem:[#allocation40_spill] sm:$0xff] %v10928_v35  ;;  %v4741_v31 = vpop.f32.mrb[69].mxu1  ;;  %v4449_v8 = vpop.f32.mrb[7].mxu0  ;;  %13392 = vst [vmem:[#allocation39_spill] sm:$0xff] %v10930_v23  ;;  %v10932_v21 = vadd.f32 %v8051_v53, %v4447_v2 }
 0x3fc   : > { %v8055_v5 = vpop.f32.mrb[70].mxu1  ;;  %v8544_v8 = vld [vmem:[#allocation9 + $0x210] sm:$0xff]  }
 0x3fd   : > { %13393 = vst [vmem:[#allocation88_spill] sm:$0xff] %v10932_v21  ;;  %v4744_v6 = vpop.f32.mrb[71].mxu1  ;;  %4659 = vmatmul.mubr.bf16.gmra.mrb[112].mxu0 %v10930_v23  ;;  %v3771_v21 = vld [vmem:[#allocation2 + $0x2b8] sm:$0xff] }
 0x3fe   : > { %4666 = vmatprep.mubr.bf16.mxu0 %v10886_v1  ;;  %v10941_v19 = vpack.c.bf16 %v3772_v62, %v3771_v21 }
 0x400   : > { %v4452_v33 = vpop.f32.mrb[8].mxu0  ;;  %13396 = vst [vmem:[#allocation70_spill] sm:$0xff] %v10941_v19 }
 0x401   : > { %v4454_v13 = vpop.f32.mrb[9].mxu0  ;;  %v10939_v53 = vadd.f32 %v4741_v31, %v4452_v33 }
 0x402   : > { %5157 = vmatmul.mubr.bf16.vlgmr.msra.gmra.mrb[128].mxu1 %v13015_v9  ;;  %v8058_v38 = vpop.f32.mrb[72].mxu1  ;;  %v4455_v2 = vpop.f32.mrb[10].mxu0  ;;  %v3773_v13 = vld [vmem:[#allocation2 + $0x2d0] sm:$0xff] }
 0x403   : > { %5164 = vmatprep.mubr.bf16.mxu1 %v13394_v36  ;;  %8193 = vmatpush3.bf16.msra.mxu1 %v10774_v4  ;;  %13395 = vst [vmem:[#allocation67_spill] sm:$0xff] %v10939_v53  ;;  %v4757_v51 = vpop.f32.mrb[73].mxu1  ;;  %v4457_v23 = vpop.f32.mrb[11].mxu0  ;;  %v10943_v1 = vadd.f32 %v4744_v6, %v4455_v2  ;;  %v8549_v4 = vld [vmem:[#allocation9 + $0x218] sm:$0xff]  }
 0x404   : > { %8194 = vmatprep.subr.bf16.mxu1 %v8539_v50  ;;  %v8059_v35 = vpop.f32.mrb[74].mxu1  ;;  %v3774_v23 = vld [vmem:[#allocation2 + $0x2d8] sm:$0xff] }
 0x405   : > { %13397 = vst [vmem:[#allocation89_spill] sm:$0xff] %v10943_v1  ;;  %v4760_v36 = vpop.f32.mrb[75].mxu1  ;;  %4667 = vmatmul.mubr.bf16.gmra.mrb[116].mxu0 %v10941_v19  ;;  %v13415_v1 = vld [vmem:[#allocation113_spill] sm:$0xff] }
 0x406   : > { %4674 = vmatprep.mubr.bf16.mxu0 %v10899_v45  ;;  %v13418_v53 = vld [vmem:[#allocation25_spill] sm:$0xff] }
 0x407   : > { %8195 = vmatpush3.bf16.msra.mxu1 %v8539_v50 }
 0x408   : > { %8196 = vmatprep.subr.bf16.mxu1 %v8544_v8  ;;  %v4460_v31 = vpop.f32.mrb[12].mxu0 }
 0x409   : > { %v4462_v21 = vpop.f32.mrb[13].mxu0  ;;  %v10951_v50 = vadd.f32 %v8054_v44, %v4460_v31  ;;  %v3776_v31 = vld [vmem:[#allocation2 + $0x2f0] sm:$0xff] }
 0x40a   : > { %5165 = vmatmul.mubr.bf16.gmra.mrb[132].mxu1 %v10454_v46  ;;  %v4463_v6 = vpop.f32.mrb[14].mxu0  ;;  %v10955_v46 = vpack.c.bf16 %v3774_v23, %v3773_v13  ;;  %v3775_v23 = vld [vmem:[#allocation2 + $0x2e8] sm:$0xff] }
 0x40b   : > { %5172 = vmatprep.mubr.bf16.mxu1 %v10443_v41  ;;  %8197 = vmatpush3.bf16.msra.mxu1 %v8544_v8  ;;  %13398 = vst [vmem:[#allocation71_spill] sm:$0xff] %v10951_v50  ;;  %v4465_v2 = vpop.f32.mrb[15].mxu0  ;;  %v10957_v45 = vadd.f32 %v8055_v5, %v4463_v6 }
 0x40c   : > { %8198 = vmatprep.subr.bf16.mxu1 %v8549_v4  ;;  %13399 = vst [vmem:[#allocation90_spill] sm:$0xff] %v10955_v46 }
 0x40d   : > { %v10949_v33 = vpop.f32.mrb[76].mxu1  ;;  %13400 = vst [vmem:[#allocation91_spill] sm:$0xff] %v10957_v45  ;;  %4675 = vmatmul.mubr.bf16.gmra.mrb[120].mxu0 %v10955_v46  ;;  %v13408_v45 = vld [vmem:[#allocation111_spill] sm:$0xff] }
 0x40e   : > { %v4773_v62 = vpop.f32.mrb[77].mxu1  ;;  %4682 = vmatprep.mubr.bf16.mxu0 %v10911_v30 }
 0x40f   : > { %v10953_v19 = vpop.f32.mrb[78].mxu1  ;;  %8199 = vmatpush3.bf16.msra.mxu1 %v8549_v4  ;;  %v10965_v4 = vpack.c.bf16 %v3776_v31, %v3775_v23 }
 0x410   : > { %v4776_v8 = vpop.f32.mrb[79].mxu1  ;;  %v4468_v44 = vpop.f32.mrb[16].mxu0 }
 0x411   : > { %v4470_v21 = vpop.f32.mrb[17].mxu0  ;;  %v10963_v2 = vadd.f32 %v4757_v51, %v4468_v44  ;;  %13402 = vst [vmem:[#allocation93_spill] sm:$0xff] %v10965_v4  ;;  %v8554_v44 = vld [vmem:[#allocation9 + $0x220] sm:$0xff]  }
 0x412   : > { %5173 = vmatmul.mubr.bf16.gmra.mrb[136].mxu1 %v10475_v10  ;;  %v4471_v50 = vpop.f32.mrb[18].mxu0  ;;  %8200 = vmatprep.subr.bf16.mxu1 %v8554_v44 }
 0x413   : > { %5180 = vmatprep.mubr.bf16.mxu1 %v10458_v54  ;;  %13401 = vst [vmem:[#allocation73_spill] sm:$0xff] %v10963_v2  ;;  %v4473_v13 = vpop.f32.mrb[19].mxu0  ;;  %v10967_v5 = vadd.f32 %v4760_v36, %v4471_v50  ;;  %v8535_v50 = vld [vmem:[#allocation9 + $0x180] sm:$0xff]   ;;  %8201 = vmatpush3.bf16.msra.mxu1 %v8554_v44  ;;  %v13407_v2 = vld [vmem:[#allocation77_spill] sm:$0xff]  ;;  %v8537_v44 = vld [vmem:[#allocation9 + $0x190] sm:$0xff]  }
 0x415   : > { %13403 = vst [vmem:[#allocation94_spill] sm:$0xff] %v10967_v5  ;;  %4683 = vmatmul.mubr.bf16.gmra.mrb[124].mxu0 %v10965_v4  ;;  %v13406_v5 = vld [vmem:[#allocation24_spill] sm:$0xff] }
 0x416   : > { %8128 = vmatprep.mubr.bf16.mxu0 %v13015_v9 }
 0x418   : > { %v4476_v6 = vpop.f32.mrb[20].mxu0 }
 0x419   : > { %v4478_v51 = vpop.f32.mrb[21].mxu0  ;;  %v10975_v21 = vadd.f32 %v8058_v38, %v4476_v6  ;;  %v8536_v38 = vld [vmem:[#allocation9 + $0x188] sm:$0xff]  }
 0x41a   : > { %5181 = vmatmul.mubr.bf16.gmra.mrb[140].mxu1 %v10492_v28  ;;  %v4479_v31 = vpop.f32.mrb[22].mxu0  ;;  %v13409_v51 = vld [vmem:[#allocation45_spill] sm:$0xff] }
 0x41b   : > { %5188 = vmatprep.mubr.bf16.mxu1 %v10452_v24  ;;  %13404 = vst [vmem:[#allocation97_spill] sm:$0xff] %v10975_v21  ;;  %v4481_v36 = vpop.f32.mrb[23].mxu0  ;;  %v10979_v4 = vadd.f32 %v8059_v35, %v4479_v31 }
 0x41d   : > { %v10973_v30 = vpop.f32.mrb[80].mxu1  ;;  %13405 = vst [vmem:[#allocation98_spill] sm:$0xff] %v10979_v4  ;;  %8129 = vmatmul.mubr.bf16.vlgmr.msra.gmra.mrb[128].mxu0 %v13406_v5  ;;  %v13412_v5 = vld [vmem:[#allocation42_spill] sm:$0xff] }
 0x41e   : > { %v4789_v13 = vpop.f32.mrb[81].mxu1  ;;  %8132 = vmatprep.mubr.bf16.mxu0 %v13408_v45  ;;  %5992 = vmatpush1.bf16.msra.mxu0 %v8535_v50  ;;  %v13413_v45 = vld [vmem:[#allocation53_spill] sm:$0xff]  ;;  %v13414_v50 = vld [vmem:[#allocation75_spill] sm:$0xff] }
 0x41f   : > { %v10977_v23 = vpop.f32.mrb[82].mxu1  ;;  %5993 = vmatprep.subr.bf16.mxu0 %v13015_v9 }
 0x420   : > { %v4792_v46 = vpop.f32.mrb[83].mxu1  ;;  %v4484_v6 = vpop.f32.mrb[24].mxu0 }
 0x421   : > { %v4486_v36 = vpop.f32.mrb[25].mxu0  ;;  %v10986_v21 = vadd.f32 %v4773_v62, %v4484_v6 }
 0x422   : > { %5189 = vmatmul.mubr.bf16.gmra.mrb[144].mxu1 %v13407_v2  ;;  %v4487_v35 = vpop.f32.mrb[26].mxu0  ;;  %5994 = vmatpush1.bf16.msra.mxu0 %v8536_v38  ;;  %v8538_v36 = vld [vmem:[#allocation9 + $0x198] sm:$0xff]  }
 0x423   : > { %5196 = vmatprep.mubr.bf16.mxu1 %v13409_v51  ;;  %13410 = vst [vmem:[#allocation101_spill] sm:$0xff] %v10986_v21  ;;  %v4489_v31 = vpop.f32.mrb[27].mxu0  ;;  %v10988_v4 = vadd.f32 %v4776_v8, %v4487_v35  ;;  %5995 = vmatprep.subr.bf16.mxu0 %v13015_v9 }
 0x425   : > { %13411 = vst [vmem:[#allocation102_spill] sm:$0xff] %v10988_v4  ;;  %8133 = vmatmul.mubr.bf16.gmra.mrb[132].mxu0 %v13412_v5 }
 0x426   : > { %8136 = vmatprep.mubr.bf16.mxu0 %v13414_v50  ;;  %5996 = vmatpush1.bf16.msra.mxu0 %v8537_v44  ;;  %v8540_v50 = vld [vmem:[#allocation9 + $0x1a0] sm:$0xff]  }
 0x427   : > { %5997 = vmatprep.subr.bf16.mxu0 %v13015_v9 }
 0x428   : > { %v4492_v62 = vpop.f32.mrb[28].mxu0 }
 0x429   : > { %v4494_v38 = vpop.f32.mrb[29].mxu0  ;;  %v10999_v8 = vadd.f32 %v10949_v33, %v4492_v62  ;;  %v13421_v33 = vld [vmem:[#allocation114_spill] sm:$0xff]  ;;  %v8541_v62 = vld [vmem:[#allocation9 + $0x1a8] sm:$0xff]  }
 0x42a   : > { %5197 = vmatmul.mubr.bf16.gmra.mrb[148].mxu1 %v13413_v45  ;;  %v4495_v31 = vpop.f32.mrb[30].mxu0  ;;  %5998 = vmatpush1.bf16.msra.mxu0 %v8538_v36  ;;  %v13420_v38 = vld [vmem:[#allocation116_spill] sm:$0xff] }
 0x42b   : > { %5204 = vmatprep.mubr.bf16.mxu1 %v13415_v1  ;;  %13416 = vst [vmem:[#allocation104_spill] sm:$0xff] %v10999_v8  ;;  %v4497_v21 = vpop.f32.mrb[31].mxu0  ;;  %v11004_v5 = vadd.f32 %v10953_v19, %v4495_v31  ;;  %5999 = vmatprep.subr.bf16.mxu0 %v13015_v9 }
 0x42d   : > { %v10996_v6 = vpop.f32.mrb[84].mxu1  ;;  %13417 = vst [vmem:[#allocation105_spill] sm:$0xff] %v11004_v5  ;;  %8137 = vmatmul.mubr.bf16.gmra.mrb[136].mxu0 %v13418_v53  ;;  %v8542_v5 = vld [vmem:[#allocation9 + $0x1b0] sm:$0xff]   ;;  %v13424_v53 = vld [vmem:[#allocation26_spill] sm:$0xff] }
 0x42e   : > { %v4805_v35 = vpop.f32.mrb[85].mxu1  ;;  %8140 = vmatprep.mubr.bf16.mxu0 %v13420_v38  ;;  %6000 = vmatpush1.bf16.msra.mxu0 %v8540_v50  ;;  %v13425_v38 = vld [vmem:[#allocation28_spill] sm:$0xff]  ;;  %v13426_v50 = vld [vmem:[#allocation31_spill] sm:$0xff] }
 0x42f   : > { %v11001_v4 = vpop.f32.mrb[86].mxu1  ;;  %6001 = vmatprep.subr.bf16.mxu0 %v13015_v9 }
 0x430   : > { %v4808_v44 = vpop.f32.mrb[87].mxu1  ;;  %v4500_v8 = vpop.f32.mrb[32].mxu0 }
 0x431   : > { %v4502_v21 = vpop.f32.mrb[33].mxu0  ;;  %v11012_v36 = vadd.f32 %v4789_v13, %v4500_v8 }
 0x432   : > { %5205 = vmatmul.mubr.bf16.gmra.mrb[152].mxu1 %v13419_v29  ;;  %v4503_v19 = vpop.f32.mrb[34].mxu0  ;;  %6002 = vmatpush1.bf16.msra.mxu0 %v8541_v62  ;;  %v8543_v21 = vld [vmem:[#allocation9 + $0x1b8] sm:$0xff]  }
 0x433   : > { %5212 = vmatprep.mubr.bf16.mxu1 %v13421_v33  ;;  %13422 = vst [vmem:[#allocation107_spill] sm:$0xff] %v11012_v36  ;;  %v4505_v31 = vpop.f32.mrb[35].mxu0  ;;  %v11014_v26 = vadd.f32 %v4792_v46, %v4503_v19  ;;  %6003 = vmatprep.subr.bf16.mxu0 %v13015_v9  ;;  %v8555_v46 = vld [vmem:[#allocation9 + $0x228] sm:$0xff]  }
 0x434   : > { %8202 = vmatprep.subr.bf16.mxu1 %v8555_v46 }
 0x435   : > { %13423 = vst [vmem:[#allocation44_spill] sm:$0xff] %v11014_v26  ;;  %8141 = vmatmul.mubr.bf16.gmra.mrb[140].mxu0 %v13424_v53  ;;  %8203 = vmatpush3.bf16.msra.mxu1 %v8555_v46  ;;  %v8547_v46 = vld [vmem:[#allocation9 + $0x1d0] sm:$0xff]  }
 0x436   : > { %8144 = vmatprep.mubr.bf16.mxu0 %v13426_v50  ;;  %6004 = vmatpush1.bf16.msra.mxu0 %v8542_v5  ;;  %v8545_v50 = vld [vmem:[#allocation9 + $0x1c0] sm:$0xff]  }
 0x437   : > { %6005 = vmatprep.subr.bf16.mxu0 %v13015_v9 }
 0x438   : > { %v4508_v13 = vpop.f32.mrb[36].mxu0 }
 0x439   : > { %v4510_v62 = vpop.f32.mrb[37].mxu0  ;;  %v11025_v19 = vadd.f32 %v10973_v30, %v4508_v13  ;;  %v13432_v30 = vld [vmem:[#allocation120_spill] sm:$0xff]  ;;  %v13433_v13 = vld [vmem:[#allocation115_spill] sm:$0xff] }
 0x43a   : > { %5213 = vmatmul.mubr.bf16.gmra.mrb[156].mxu1 %v13425_v38  ;;  %v4511_v26 = vpop.f32.mrb[38].mxu0  ;;  %6006 = vmatpush1.bf16.msra.mxu0 %v8543_v21  ;;  %v13430_v62 = vld [vmem:[#allocation78_spill] sm:$0xff]  ;;  %v13431_v38 = vld [vmem:[#allocation80_spill] sm:$0xff] }
 0x43b   : > { %5220 = vmatprep.mubr.bf16.mxu1 %v13427_v17  ;;  %13428 = vst [vmem:[#allocation14_spill] sm:$0xff] %v11025_v19  ;;  %v4513_v53 = vpop.f32.mrb[39].mxu0  ;;  %v11030_v5 = vadd.f32 %v10977_v23, %v4511_v26  ;;  %6007 = vmatprep.subr.bf16.mxu0 %v13015_v9 }
 0x43c   : > { %v8546_v53 = vld [vmem:[#allocation9 + $0x1c8] sm:$0xff]  }
 0x43d   : > { %v11022_v8 = vpop.f32.mrb[88].mxu1  ;;  %13429 = vst [vmem:[#allocation74_spill] sm:$0xff] %v11030_v5  ;;  %8145 = vmatmul.mubr.bf16.gmra.mrb[144].mxu0 %v13430_v62  ;;  %v13436_v62 = vld [vmem:[#allocation117_spill] sm:$0xff] }
 0x43e   : > { %v4821_v31 = vpop.f32.mrb[89].mxu1  ;;  %8148 = vmatprep.mubr.bf16.mxu0 %v13432_v30  ;;  %6008 = vmatpush1.bf16.msra.mxu0 %v8545_v50  ;;  %v13437_v30 = vld [vmem:[#allocation99_spill] sm:$0xff]  ;;  %v13438_v50 = vld [vmem:[#allocation96_spill] sm:$0xff] }
 0x43f   : > { %v11027_v36 = vpop.f32.mrb[90].mxu1  ;;  %6009 = vmatprep.subr.bf16.mxu0 %v13015_v9 }
 0x440   : > { %v4824_v17 = vpop.f32.mrb[91].mxu1  ;;  %v4516_v21 = vpop.f32.mrb[40].mxu0 }
 0x441   : > { %v4518_v19 = vpop.f32.mrb[41].mxu0  ;;  %v11038_v26 = vadd.f32 %v4805_v35, %v4516_v21 }
 0x442   : > { %5221 = vmatmul.mubr.bf16.gmra.mrb[160].mxu1 %v13431_v38  ;;  %v4519_v23 = vpop.f32.mrb[42].mxu0  ;;  %6010 = vmatpush1.bf16.msra.mxu0 %v8546_v53  ;;  %v8548_v19 = vld [vmem:[#allocation9 + $0x1d8] sm:$0xff]  }
 0x443   : > { %5228 = vmatprep.mubr.bf16.mxu1 %v13433_v13  ;;  %13434 = vst [vmem:[#allocation17_spill] sm:$0xff] %v11038_v26  ;;  %v4521_v5 = vpop.f32.mrb[43].mxu0  ;;  %v11040_v33 = vadd.f32 %v4808_v44, %v4519_v23  ;;  %6011 = vmatprep.subr.bf16.mxu0 %v13015_v9  ;;  %v13439_v13 = vld [vmem:[#allocation27_spill] sm:$0xff] }
 0x445   : > { %13435 = vst [vmem:[#allocation48_spill] sm:$0xff] %v11040_v33  ;;  %8149 = vmatmul.mubr.bf16.gmra.mrb[148].mxu0 %v13436_v62 }
 0x446   : > { %8152 = vmatprep.mubr.bf16.mxu0 %v13438_v50  ;;  %6012 = vmatpush1.bf16.msra.mxu0 %v8547_v46  ;;  %v8550_v50 = vld [vmem:[#allocation9 + $0x1e0] sm:$0xff]  }
 0x447   : > { %6013 = vmatprep.subr.bf16.mxu0 %v13015_v9 }
 0x448   : > { %v4524_v35 = vpop.f32.mrb[44].mxu0 }
 0x449   : > { %v4526_v53 = vpop.f32.mrb[45].mxu0  ;;  %v11051_v44 = vadd.f32 %v10996_v6, %v4524_v35  ;;  %v13445_v6 = vld [vmem:[#allocation79_spill] sm:$0xff] }
 0x44a   : > { %5229 = vmatmul.mubr.bf16.gmra.mrb[164].mxu1 %v13437_v30  ;;  %v4527_v23 = vpop.f32.mrb[46].mxu0  ;;  %6014 = vmatpush1.bf16.msra.mxu0 %v8548_v19  ;;  %v13443_v30 = vld [vmem:[#allocation103_spill] sm:$0xff]  ;;  %v13444_v53 = vld [vmem:[#allocation46_spill] sm:$0xff] }
 0x44b   : > { %5236 = vmatprep.mubr.bf16.mxu1 %v13439_v13  ;;  %13440 = vst [vmem:[#allocation15_spill] sm:$0xff] %v11051_v44  ;;  %v4529_v26 = vpop.f32.mrb[47].mxu0  ;;  %v11056_v62 = vadd.f32 %v11001_v4, %v4527_v23  ;;  %6015 = vmatprep.subr.bf16.mxu0 %v13015_v9  ;;  %v13442_v13 = vld [vmem:[#allocation95_spill] sm:$0xff] }
 0x44c   : > { %v8551_v35 = vld [vmem:[#allocation9 + $0x1e8] sm:$0xff]  }
 0x44d   : > { %v11048_v5 = vpop.f32.mrb[92].mxu1  ;;  %13441 = vst [vmem:[#allocation19_spill] sm:$0xff] %v11056_v62  ;;  %8153 = vmatmul.mubr.bf16.gmra.mrb[152].mxu0 %v13442_v13  ;;  %v8552_v62 = vld [vmem:[#allocation9 + $0x1f0] sm:$0xff]  }
 0x44e   : > { %v4837_v21 = vpop.f32.mrb[93].mxu1  ;;  %8156 = vmatprep.mubr.bf16.mxu0 %v13444_v53  ;;  %6016 = vmatpush1.bf16.msra.mxu0 %v8550_v50  ;;  %v13448_v13 = vld [vmem:[#allocation100_spill] sm:$0xff]  ;;  %v13449_v53 = vld [vmem:[#allocation50_spill] sm:$0xff]  ;;  %v13450_v50 = vld [vmem:[#allocation119_spill] sm:$0xff] }
 0x44f   : > { %v11053_v33 = vpop.f32.mrb[94].mxu1  ;;  %6017 = vmatprep.subr.bf16.mxu0 %v13015_v9 }
 0x450   : > { %v4840_v46 = vpop.f32.mrb[95].mxu1  ;;  %v4532_v44 = vpop.f32.mrb[48].mxu0 }
 0x451   : > { %v4534_v26 = vpop.f32.mrb[49].mxu0  ;;  %v11064_v19 = vadd.f32 %v4821_v31, %v4532_v44 }
 0x452   : > { %5237 = vmatmul.mubr.bf16.gmra.mrb[168].mxu1 %v13443_v30  ;;  %v4535_v4 = vpop.f32.mrb[50].mxu0  ;;  %6018 = vmatpush1.bf16.msra.mxu0 %v8551_v35  ;;  %v8553_v26 = vld [vmem:[#allocation9 + $0x1f8] sm:$0xff]  }
 0x453   : > { %5244 = vmatprep.mubr.bf16.mxu1 %v13445_v6  ;;  %13446 = vst [vmem:[#allocation22_spill] sm:$0xff] %v11064_v19  ;;  %v4537_v23 = vpop.f32.mrb[51].mxu0  ;;  %v11066_v38 = vadd.f32 %v4824_v17, %v4535_v4  ;;  %6019 = vmatprep.subr.bf16.mxu0 %v13015_v9  ;;  %v13454_v6 = vld [vmem:[#allocation38_spill] sm:$0xff] }
 0x455   : > { %13447 = vst [vmem:[#allocation52_spill] sm:$0xff] %v11066_v38  ;;  %8157 = vmatmul.mubr.bf16.gmra.mrb[156].mxu0 %v13448_v13  ;;  %v8556_v38 = vld [vmem:[#allocation9 + $0x230] sm:$0xff]  }
 0x456   : > { %8160 = vmatprep.mubr.bf16.mxu0 %v13015_v9  ;;  %6020 = vmatpush1.bf16.msra.mxu0 %v8552_v62  ;;  %v13453_v62 = vld [vmem:[#allocation58_spill] sm:$0xff] }
 0x457   : > { %6021 = vmatprep.subr.bf16.mxu0 %v13015_v9  ;;  %8204 = vmatprep.subr.bf16.mxu1 %v8556_v38 }
 0x458   : > { %v4540_v31 = vpop.f32.mrb[52].mxu0  ;;  %8205 = vmatpush3.bf16.msra.mxu1 %v8556_v38  ;;  %v13459_v38 = vld [vmem:[#allocation33_spill] sm:$0xff] }
 0x459   : > { %v4542_v35 = vpop.f32.mrb[53].mxu0  ;;  %v11075_v17 = vadd.f32 %v11022_v8, %v4540_v31  ;;  %v13455_v8 = vld [vmem:[#allocation92_spill] sm:$0xff] }
 0x45a   : > { %5245 = vmatmul.mubr.bf16.gmra.mrb[172].mxu1 %v13449_v53  ;;  %v4543_v23 = vpop.f32.mrb[54].mxu0  ;;  %6022 = vmatpush1.bf16.msra.mxu0 %v8553_v26 }
 0x45b   : > { %5252 = vmatprep.mubr.bf16.mxu1 %v13450_v50  ;;  %13451 = vst [vmem:[#allocation16_spill] sm:$0xff] %v11075_v17  ;;  %v4545_v13 = vpop.f32.mrb[55].mxu0  ;;  %v11078_v53 = vadd.f32 %v11027_v36, %v4543_v23  ;;  %v13458_v36 = vld [vmem:[#allocation106_spill] sm:$0xff] }
 0x45d   : > { %v8082_v44 = vpop.f32.mrb[96].mxu1  ;;  %13452 = vst [vmem:[#allocation56_spill] sm:$0xff] %v11078_v53  ;;  %8161 = vmatmul.mubr.bf16.gmra.mrb[160].mxu0 %v13453_v62 }
 0x45e   : > { %v4853_v4 = vpop.f32.mrb[97].mxu1  ;;  %8164 = vmatprep.mubr.bf16.mxu0 %v10736_v14 }
 0x45f   : > { %v8083_v19 = vpop.f32.mrb[98].mxu1 }
 0x460   : > { %v4856_v50 = vpop.f32.mrb[99].mxu1  ;;  %v4548_v31 = vpop.f32.mrb[56].mxu0 }
 0x461   : > { %v4550_v35 = vpop.f32.mrb[57].mxu0  ;;  %v11084_v17 = vadd.f32 %v4837_v21, %v4548_v31 }
 0x462   : > { %5253 = vmatmul.mubr.bf16.gmra.mrb[176].mxu1 %v13454_v6  ;;  %v4551_v13 = vpop.f32.mrb[58].mxu0 }
 0x463   : > { %5260 = vmatprep.mubr.bf16.mxu1 %v13455_v8  ;;  %13456 = vst [vmem:[#allocation18_spill] sm:$0xff] %v11084_v17  ;;  %v4553_v26 = vpop.f32.mrb[59].mxu0  ;;  %v11086_v30 = vadd.f32 %v4840_v46, %v4551_v13 }
 0x465   : > { %13457 = vst [vmem:[#allocation108_spill] sm:$0xff] %v11086_v30  ;;  %8165 = vmatmul.mubr.bf16.gmra.mrb[164].mxu0 %v10751_v40  ;;  %v13462_v30 = vld [vmem:[#allocation54_spill] sm:$0xff] }
 0x466   : > { %8168 = vmatprep.mubr.bf16.mxu0 %v10764_v55 }
 0x468   : > { %v4556_v23 = vpop.f32.mrb[60].mxu0 }
 0x469   : > { %v4558_v53 = vpop.f32.mrb[61].mxu0  ;;  %v11093_v14 = vadd.f32 %v11048_v5, %v4556_v23 }
 0x46a   : > { %5261 = vmatmul.mubr.bf16.gmra.mrb[180].mxu1 %v13458_v36  ;;  %v4559_v31 = vpop.f32.mrb[62].mxu0 }
 0x46b   : > { %5268 = vmatprep.mubr.bf16.mxu1 %v13459_v38  ;;  %13460 = vst [vmem:[#allocation109_spill] sm:$0xff] %v11093_v14  ;;  %v4561_v26 = vpop.f32.mrb[63].mxu0  ;;  %v11096_v46 = vadd.f32 %v11053_v33, %v4559_v31  ;;  %v8557_v31 = vld [vmem:[#allocation9 + $0x238] sm:$0xff]  }
 0x46c   : > { %8206 = vmatprep.subr.bf16.mxu1 %v8557_v31 }
 0x46d   : > { %v8086_v62 = vpop.f32.mrb[100].mxu1  ;;  %13461 = vst [vmem:[#allocation60_spill] sm:$0xff] %v11096_v46  ;;  %8169 = vmatmul.mubr.bf16.gmra.mrb[168].mxu0 %v10780_v22  ;;  %8207 = vmatpush3.bf16.msra.mxu1 %v8557_v31 }
 0x46e   : > { %v4869_v21 = vpop.f32.mrb[101].mxu1  ;;  %8172 = vmatprep.mubr.bf16.mxu0 %v10793_v25 }
 0x46f   : > { %v8087_v35 = vpop.f32.mrb[102].mxu1 }
 0x470   : > { %v4872_v13 = vpop.f32.mrb[103].mxu1  ;;  %v4564_v53 = vpop.f32.mrb[64].mxu0 }
 0x471   : > { %v11102_v17 = vadd.f32 %v4853_v4, %v4564_v53  ;;  %v4566_v5 = vpop.f32.mrb[65].mxu0 }
 0x472   : > { %5269 = vmatmul.mubr.bf16.gmra.mrb[184].mxu1 %v13462_v30  ;;  %v4567_v23 = vpop.f32.mrb[66].mxu0 }
 0x473   : > { %5276 = vmatprep.mubr.bf16.mxu1 %v10647_v39  ;;  %13463 = vst [vmem:[#allocation20_spill] sm:$0xff] %v11102_v17  ;;  %v11104_v14 = vadd.f32 %v4856_v50, %v4567_v23  ;;  %v4569_v26 = vpop.f32.mrb[67].mxu0 }
 0x475   : > { %13464 = vst [vmem:[#allocation64_spill] sm:$0xff] %v11104_v14  ;;  %8173 = vmatmul.mubr.bf16.gmra.mrb[172].mxu0 %v10806_v12 }
 0x476   : > { %8176 = vmatprep.mubr.bf16.mxu0 %v10819_v43 }
 0x478   : > { %v4572_v33 = vpop.f32.mrb[68].mxu0 }
 0x479   : > { %v11110_v46 = vadd.f32 %v8082_v44, %v4572_v33  ;;  %v4574_v4 = vpop.f32.mrb[69].mxu0 }
 0x47a   : > { %5277 = vmatmul.mubr.bf16.gmra.mrb[188].mxu1 %v10748_v42  ;;  %v4575_v5 = vpop.f32.mrb[70].mxu0 }
 0x47b   : > { %5284 = vmatprep.mubr.bf16.mxu1 %v13015_v9  ;;  %13465 = vst [vmem:[#allocation110_spill] sm:$0xff] %v11110_v46  ;;  %v11112_v50 = vadd.f32 %v8083_v19, %v4575_v5  ;;  %v4577_v26 = vpop.f32.mrb[71].mxu0 }
 0x47d   : > { %v8090_v25 = vpop.f32.mrb[104].mxu1  ;;  %8177 = vmatmul.mubr.bf16.gmra.mrb[176].mxu0 %v10832_v56 }
 0x47e   : > { %v4885_v53 = vpop.f32.mrb[105].mxu1  ;;  %8180 = vmatprep.mubr.bf16.mxu0 %v10845_v0 }
 0x47f   : > { %v8091_v23 = vpop.f32.mrb[106].mxu1 }
 0x480   : > { %v4888_v14 = vpop.f32.mrb[107].mxu1  ;;  %v4580_v44 = vpop.f32.mrb[72].mxu0 }
 0x481   : > { %v11118_v33 = vadd.f32 %v4869_v21, %v4580_v44  ;;  %v4582_v4 = vpop.f32.mrb[73].mxu0 }
 0x482   : > { %5285 = vmatmul.mubr.bf16.gmra.mrb[192].mxu1 %v13015_v9  ;;  %v4583_v46 = vpop.f32.mrb[74].mxu0 }
 0x483   : > { %5292 = vmatprep.mubr.bf16.mxu1 %v10693_v3  ;;  %v11120_v17 = vadd.f32 %v4872_v13, %v4583_v46  ;;  %v4585_v19 = vpop.f32.mrb[75].mxu0 }
 0x485   : > { %8181 = vmatmul.mubr.bf16.gmra.mrb[180].mxu0 %v10858_v60 }
 0x486   : > { %8184 = vmatprep.mubr.bf16.mxu0 %v10871_v16 }
 0x488   : > { %v4588_v31 = vpop.f32.mrb[76].mxu0 }
 0x489   : > { %v11126_v5 = vadd.f32 %v8086_v62, %v4588_v31  ;;  %v4590_v26 = vpop.f32.mrb[77].mxu0 }
 0x48a   : > { %5293 = vmatmul.mubr.bf16.gmra.mrb[196].mxu1 %v10776_v61  ;;  %v4591_v44 = vpop.f32.mrb[78].mxu0 }
 0x48b   : > { %5300 = vmatprep.mubr.bf16.mxu1 %v10716_v63  ;;  %13466 = vst [vmem:[#allocation21_spill] sm:$0xff] %v11126_v5  ;;  %v11128_v4 = vadd.f32 %v8087_v35, %v4591_v44  ;;  %v4593_v13 = vpop.f32.mrb[79].mxu0 }
 0x48d   : > { %v8094_v3 = vpop.f32.mrb[108].mxu1  ;;  %13467 = vst [vmem:[#allocation121_spill] sm:$0xff] %v11128_v4  ;;  %8185 = vmatmul.mubr.bf16.gmra.mrb[184].mxu0 %v10884_v57 }
 0x48e   : > { %v4901_v21 = vpop.f32.mrb[109].mxu1  ;;  %8188 = vmatprep.mubr.bf16.mxu0 %v10897_v7 }
 0x48f   : > { %v8095_v46 = vpop.f32.mrb[110].mxu1 }
 0x490   : > { %v4904_v19 = vpop.f32.mrb[111].mxu1  ;;  %v4596_v61 = vpop.f32.mrb[80].mxu0 }
 0x491   : > { %v11134_v62 = vadd.f32 %v4885_v53, %v4596_v61  ;;  %v4598_v31 = vpop.f32.mrb[81].mxu0 }
 0x492   : > { %5301 = vmatmul.mubr.bf16.gmra.mrb[200].mxu1 %v10790_v20  ;;  %v4599_v26 = vpop.f32.mrb[82].mxu0 }
 0x493   : > { %5308 = vmatprep.mubr.bf16.mxu1 %v10738_v58  ;;  %13468 = vst [vmem:[#allocation36_spill] sm:$0xff] %v11134_v62  ;;  %v11136_v5 = vadd.f32 %v4888_v14, %v4599_v26  ;;  %v4601_v35 = vpop.f32.mrb[83].mxu0  ;;  %v13498_v62 = vld [vmem:[#allocation99_spill] sm:$0xff] }
 0x495   : > { %13469 = vst [vmem:[#allocation23_spill] sm:$0xff] %v11136_v5  ;;  %8189 = vmatmul.mubr.bf16.gmra.mrb[188].mxu0 %v10909_v27  ;;  %v13499_v27 = vld [vmem:[#allocation86_spill] sm:$0xff] }
 0x496   : > { %6023 = vmatprep.mubr.bf16.mxu0 %v10443_v41 }
 0x498   : > { %v4604_v44 = vpop.f32.mrb[84].mxu0 }
 0x499   : > { %v11142_v13 = vadd.f32 %v8090_v25, %v4604_v44  ;;  %v4606_v7 = vpop.f32.mrb[85].mxu0 }
 0x49a   : > { %5309 = vmatmul.mubr.bf16.gmra.mrb[204].mxu1 %v10803_v11  ;;  %v4607_v61 = vpop.f32.mrb[86].mxu0 }
 0x49b   : > { %5316 = vmatprep.mubr.bf16.mxu1 %v10753_v18  ;;  %13470 = vst [vmem:[#allocation32_spill] sm:$0xff] %v11142_v13  ;;  %v11144_v31 = vadd.f32 %v8091_v23, %v4607_v61  ;;  %v4609_v26 = vpop.f32.mrb[87].mxu0 }
 0x49d   : > { %v8098_v4 = vpop.f32.mrb[112].mxu1  ;;  %13471 = vst [vmem:[#allocation68_spill] sm:$0xff] %v11144_v31  ;;  %6024 = vmatmul.mubr.bf16.vlgmr.msra.gmra.mrb[192].mxu0 %v10475_v10  ;;  %v13497_v31 = vld [vmem:[#allocation63_spill] sm:$0xff] }
 0x49e   : > { %v4917_v53 = vpop.f32.mrb[113].mxu1  ;;  %6031 = vmatprep.mubr.bf16.mxu0 %v10458_v54 }
 0x49f   : > { %v8099_v14 = vpop.f32.mrb[114].mxu1 }
 0x4a0   : > { %v4920_v35 = vpop.f32.mrb[115].mxu1  ;;  %v4612_v41 = vpop.f32.mrb[88].mxu0 }
 0x4a1   : > { %v11150_v25 = vadd.f32 %v4901_v21, %v4612_v41  ;;  %v4614_v44 = vpop.f32.mrb[89].mxu0 }
 0x4a2   : > { %5317 = vmatmul.mubr.bf16.gmra.mrb[208].mxu1 %v10816_v15  ;;  %v4615_v7 = vpop.f32.mrb[90].mxu0 }
 0x4a3   : > { %5324 = vmatprep.mubr.bf16.mxu1 %v10766_v49  ;;  %13472 = vst [vmem:[#allocation29_spill] sm:$0xff] %v11150_v25  ;;  %v11152_v13 = vadd.f32 %v4904_v19, %v4615_v7  ;;  %v4617_v23 = vpop.f32.mrb[91].mxu0 }
 0x4a5   : > { %13473 = vst [vmem:[#allocation41_spill] sm:$0xff] %v11152_v13  ;;  %6032 = vmatmul.mubr.bf16.gmra.mrb[196].mxu0 %v10492_v28 }
 0x4a6   : > { %6039 = vmatprep.mubr.bf16.mxu0 %v10452_v24 }
 0x4a8   : > { %v4620_v10 = vpop.f32.mrb[92].mxu0 }
 0x4a9   : > { %v11158_v54 = vadd.f32 %v8094_v3, %v4620_v10  ;;  %v4622_v26 = vpop.f32.mrb[93].mxu0 }
 0x4aa   : > { %5325 = vmatmul.mubr.bf16.gmra.mrb[212].mxu1 %v10829_v59  ;;  %v4623_v41 = vpop.f32.mrb[94].mxu0 }
 0x4ab   : > { %5332 = vmatprep.mubr.bf16.mxu1 %v10782_v37  ;;  %13474 = vst [vmem:[#allocation112_spill] sm:$0xff] %v11158_v54  ;;  %v11160_v44 = vadd.f32 %v8095_v46, %v4623_v41  ;;  %v4625_v7 = vpop.f32.mrb[95].mxu0 }
 0x4ad   : > { %v8102_v61 = vpop.f32.mrb[116].mxu1  ;;  %13475 = vst [vmem:[#allocation37_spill] sm:$0xff] %v11160_v44  ;;  %6040 = vmatmul.mubr.bf16.gmra.mrb[200].mxu0 %v13407_v2 }
 0x4ae   : > { %v4933_v21 = vpop.f32.mrb[117].mxu1  ;;  %6047 = vmatprep.mubr.bf16.mxu0 %v13409_v51 }
 0x4af   : > { %v8103_v19 = vpop.f32.mrb[118].mxu1 }
 0x4b0   : > { %v4936_v23 = vpop.f32.mrb[119].mxu1  ;;  %v4628_v24 = vpop.f32.mrb[96].mxu0 }
 0x4b1   : > { %v11166_v28 = vadd.f32 %v4917_v53, %v4628_v24  ;;  %v4630_v3 = vpop.f32.mrb[97].mxu0 }
 0x4b2   : > { %5333 = vmatmul.mubr.bf16.gmra.mrb[216].mxu1 %v10842_v47  ;;  %v4631_v10 = vpop.f32.mrb[98].mxu0 }
 0x4b3   : > { %5340 = vmatprep.mubr.bf16.mxu1 %v10795_v52  ;;  %13476 = vst [vmem:[#allocation72_spill] sm:$0xff] %v11166_v28  ;;  %v11168_v26 = vadd.f32 %v4920_v35, %v4631_v10  ;;  %v4633_v46 = vpop.f32.mrb[99].mxu0 }
 0x4b5   : > { %13477 = vst [vmem:[#allocation24_spill] sm:$0xff] %v11168_v26  ;;  %6048 = vmatmul.mubr.bf16.gmra.mrb[204].mxu0 %v13413_v45  ;;  %v13480_v45 = vld [vmem:[#allocation114_spill] sm:$0xff] }
 0x4b6   : > { %6055 = vmatprep.mubr.bf16.mxu0 %v13415_v1  ;;  %v13481_v1 = vld [vmem:[#allocation61_spill] sm:$0xff] }
 0x4b8   : > { %v4636_v2 = vpop.f32.mrb[100].mxu0 }
 0x4b9   : > { %v11174_v51 = vadd.f32 %v8098_v4, %v4636_v2  ;;  %v4638_v7 = vpop.f32.mrb[101].mxu0 }
 0x4ba   : > { %5341 = vmatmul.mubr.bf16.gmra.mrb[220].mxu1 %v10855_v34  ;;  %v4639_v24 = vpop.f32.mrb[102].mxu0 }
 0x4bb   : > { %5348 = vmatprep.mubr.bf16.mxu1 %v10808_v32  ;;  %13478 = vst [vmem:[#allocation77_spill] sm:$0xff] %v11174_v51  ;;  %v11176_v3 = vadd.f32 %v8099_v14, %v4639_v24  ;;  %v4641_v10 = vpop.f32.mrb[103].mxu0  ;;  %v13484_v24 = vld [vmem:[#allocation28_spill] sm:$0xff] }
 0x4bc   : > { %v13485_v10 = vld [vmem:[#allocation47_spill] sm:$0xff] }
 0x4bd   : > { %v8106_v41 = vpop.f32.mrb[120].mxu1  ;;  %13479 = vst [vmem:[#allocation45_spill] sm:$0xff] %v11176_v3  ;;  %6056 = vmatmul.mubr.bf16.gmra.mrb[208].mxu0 %v13419_v29  ;;  %v13486_v3 = vld [vmem:[#allocation49_spill] sm:$0xff] }
 0x4be   : > { %v4949_v53 = vpop.f32.mrb[121].mxu1  ;;  %6063 = vmatprep.mubr.bf16.mxu0 %v13480_v45  ;;  %v13487_v29 = vld [vmem:[#allocation65_spill] sm:$0xff] }
 0x4bf   : > { %v8107_v35 = vpop.f32.mrb[122].mxu1 }
 0x4c0   : > { %v4952_v46 = vpop.f32.mrb[123].mxu1  ;;  %v4644_v26 = vpop.f32.mrb[104].mxu0 }
 0x4c1   : > { %v11182_v4 = vadd.f32 %v4933_v21, %v4644_v26  ;;  %v4646_v2 = vpop.f32.mrb[105].mxu0 }
 0x4c2   : > { %5349 = vmatmul.mubr.bf16.gmra.mrb[224].mxu1 %v10868_v48  ;;  %v4647_v7 = vpop.f32.mrb[106].mxu0 }
 0x4c3   : > { %5356 = vmatprep.mubr.bf16.mxu1 %v13481_v1  ;;  %13482 = vst [vmem:[#allocation53_spill] sm:$0xff] %v11182_v4  ;;  %v11184_v51 = vadd.f32 %v4936_v23, %v4647_v7  ;;  %v4649_v14 = vpop.f32.mrb[107].mxu0  ;;  %v13492_v4 = vld [vmem:[#allocation115_spill] sm:$0xff] }
 0x4c5   : > { %13483 = vst [vmem:[#allocation113_spill] sm:$0xff] %v11184_v51  ;;  %6064 = vmatmul.mubr.bf16.gmra.mrb[212].mxu0 %v13484_v24  ;;  %v13490_v51 = vld [vmem:[#allocation80_spill] sm:$0xff]  ;;  %v13491_v24 = vld [vmem:[#allocation51_spill] sm:$0xff] }
 0x4c6   : > { %6071 = vmatprep.mubr.bf16.mxu0 %v13486_v3  ;;  %v13493_v3 = vld [vmem:[#allocation30_spill] sm:$0xff] }
 0x4c8   : > { %v4652_v28 = vpop.f32.mrb[108].mxu0 }
 0x4c9   : > { %v11190_v45 = vadd.f32 %v8102_v61, %v4652_v28  ;;  %v4654_v54 = vpop.f32.mrb[109].mxu0 }
 0x4ca   : > { %5357 = vmatmul.mubr.bf16.gmra.mrb[228].mxu1 %v13485_v10  ;;  %v4655_v26 = vpop.f32.mrb[110].mxu0 }
 0x4cb   : > { %5364 = vmatprep.mubr.bf16.mxu1 %v13487_v29  ;;  %13488 = vst [vmem:[#allocation118_spill] sm:$0xff] %v11190_v45  ;;  %v11192_v2 = vadd.f32 %v8103_v19, %v4655_v26  ;;  %v4657_v7 = vpop.f32.mrb[111].mxu0  ;;  %v13495_v45 = vld [vmem:[#allocation66_spill] sm:$0xff] }
 0x4cd   : > { %v8110_v44 = vpop.f32.mrb[124].mxu1  ;;  %13489 = vst [vmem:[#allocation58_spill] sm:$0xff] %v11192_v2  ;;  %6072 = vmatmul.mubr.bf16.gmra.mrb[216].mxu0 %v13490_v51 }
 0x4ce   : > { %v4965_v21 = vpop.f32.mrb[125].mxu1  ;;  %6079 = vmatprep.mubr.bf16.mxu0 %v13492_v4 }
 0x4cf   : > { %v8111_v23 = vpop.f32.mrb[126].mxu1 }
 0x4d0   : > { %v4968_v14 = vpop.f32.mrb[127].mxu1  ;;  %v4660_v13 = vpop.f32.mrb[112].mxu0 }
 0x4d1   : > { %v11198_v61 = vadd.f32 %v4949_v53, %v4660_v13  ;;  %v4662_v54 = vpop.f32.mrb[113].mxu0  ;;  %v13500_v13 = vld [vmem:[#allocation27_spill] sm:$0xff]  ;;  %v13501_v53 = vld [vmem:[#allocation76_spill] sm:$0xff] }
 0x4d2   : > { %5365 = vmatmul.mubr.bf16.gmra.mrb[232].mxu1 %v13491_v24  ;;  %v4663_v26 = vpop.f32.mrb[114].mxu0 }
 0x4d3   : > { %5372 = vmatprep.mubr.bf16.mxu1 %v13493_v3  ;;  %13494 = vst [vmem:[#allocation38_spill] sm:$0xff] %v11198_v61  ;;  %v11203_v7 = vadd.f32 %v4952_v46, %v4663_v26  ;;  %v4665_v51 = vpop.f32.mrb[115].mxu0 }
 0x4d5   : > { %v5158_v28 = vpop.f32.mrb[128].mxu1  ;;  %13496 = vst [vmem:[#allocation92_spill] sm:$0xff] %v11203_v7  ;;  %6080 = vmatmul.mubr.bf16.gmra.mrb[220].mxu0 %v13498_v62  ;;  %v13505_v62 = vld [vmem:[#allocation88_spill] sm:$0xff] }
 0x4d6   : > { %v11201_v25 = vadd.f32 %v5158_v28, %v13495_v45  ;;  %v5160_v19 = vpop.f32.mrb[129].mxu1  ;;  %6087 = vmatprep.mubr.bf16.mxu0 %v13500_v13  ;;  %v13507_v13 = vld [vmem:[#allocation35_spill] sm:$0xff] }
 0x4d7   : > { %v5161_v2 = vpop.f32.mrb[130].mxu1  ;;  %v13503_v19 = vld [vmem:[#allocation40_spill] sm:$0xff] }
 0x4d8   : > { %v11206_v5 = vadd.f32 %v5161_v2, %v13497_v31  ;;  %v5163_v4 = vpop.f32.mrb[131].mxu1  ;;  %v4668_v45 = vpop.f32.mrb[116].mxu0 }
 0x4d9   : > { %v11212_v28 = vadd.f32 %v8106_v41, %v4668_v45  ;;  %v4670_v46 = vpop.f32.mrb[117].mxu0  ;;  %v13509_v41 = vld [vmem:[#allocation83_spill] sm:$0xff] }
 0x4da   : > { %5373 = vmatmul.mubr.bf16.gmra.mrb[236].mxu1 %v13499_v27  ;;  %v4671_v7 = vpop.f32.mrb[118].mxu0  ;;  %v13506_v27 = vld [vmem:[#allocation103_spill] sm:$0xff] }
 0x4db   : > { %5380 = vmatprep.mubr.bf16.mxu1 %v13501_v53  ;;  %13502 = vst [vmem:[#allocation106_spill] sm:$0xff] %v11212_v28  ;;  %v11215_v31 = vadd.f32 %v8107_v35, %v4671_v7  ;;  %v4673_v4 = vpop.f32.mrb[119].mxu0  ;;  %v13508_v53 = vld [vmem:[#allocation79_spill] sm:$0xff] }
 0x4dc   : > { %v13511_v35 = vld [vmem:[#allocation67_spill] sm:$0xff] }
 0x4dd   : > { %v5166_v54 = vpop.f32.mrb[132].mxu1  ;;  %13504 = vst [vmem:[#allocation33_spill] sm:$0xff] %v11215_v31  ;;  %6088 = vmatmul.mubr.bf16.gmra.mrb[224].mxu0 %v13506_v27  ;;  %v13513_v27 = vld [vmem:[#allocation89_spill] sm:$0xff] }
 0x4de   : > { %v5167_v26 = vadd.f32 %v5166_v54, %v13503_v19  ;;  %v5168_v51 = vpop.f32.mrb[133].mxu1  ;;  %6095 = vmatprep.mubr.bf16.mxu0 %v13508_v53  ;;  %v13515_v53 = vld [vmem:[#allocation39_spill] sm:$0xff] }
 0x4df   : > { %v5169_v2 = vpop.f32.mrb[134].mxu1 }
 0x4e0   : > { %v5170_v61 = vadd.f32 %v5169_v2, %v13505_v62  ;;  %v5171_v57 = vpop.f32.mrb[135].mxu1  ;;  %v4676_v45 = vpop.f32.mrb[120].mxu0 }
 0x4e1   : > { %v11222_v46 = vadd.f32 %v4965_v21, %v4676_v45  ;;  %v4678_v19 = vpop.f32.mrb[121].mxu0  ;;  %v13517_v21 = vld [vmem:[#allocation84_spill] sm:$0xff] }
 0x4e2   : > { %5381 = vmatmul.mubr.bf16.gmra.mrb[240].mxu1 %v13507_v13  ;;  %v4679_v4 = vpop.f32.mrb[122].mxu0  ;;  %v13514_v13 = vld [vmem:[#allocation50_spill] sm:$0xff] }
 0x4e3   : > { %5388 = vmatprep.mubr.bf16.mxu1 %v13509_v41  ;;  %13510 = vst [vmem:[#allocation54_spill] sm:$0xff] %v11222_v46  ;;  %v11225_v31 = vadd.f32 %v4968_v14, %v4679_v4  ;;  %v4681_v2 = vpop.f32.mrb[123].mxu0  ;;  %v13516_v41 = vld [vmem:[#allocation119_spill] sm:$0xff] }
 0x4e4   : > { %v13519_v14 = vld [vmem:[#allocation71_spill] sm:$0xff] }
 0x4e5   : > { %v5174_v54 = vpop.f32.mrb[136].mxu1  ;;  %13512 = vst [vmem:[#allocation114_spill] sm:$0xff] %v11225_v31  ;;  %6096 = vmatmul.mubr.bf16.gmra.mrb[228].mxu0 %v13514_v13  ;;  %v13521_v13 = vld [vmem:[#allocation91_spill] sm:$0xff] }
 0x4e6   : > { %v5175_v7 = vadd.f32 %v5174_v54, %v13511_v35  ;;  %v5176_v51 = vpop.f32.mrb[137].mxu1  ;;  %6103 = vmatprep.mubr.bf16.mxu0 %v13516_v41  ;;  %v13522_v41 = vld [vmem:[#allocation70_spill] sm:$0xff] }
 0x4e7   : > { %v5177_v57 = vpop.f32.mrb[138].mxu1 }
 0x4e8   : > { %v5178_v62 = vadd.f32 %v5177_v57, %v13513_v27  ;;  %v5179_v28 = vpop.f32.mrb[139].mxu1  ;;  %v4684_v45 = vpop.f32.mrb[124].mxu0 }
 0x4e9   : > { %v11232_v19 = vadd.f32 %v8110_v44, %v4684_v45  ;;  %v4686_v35 = vpop.f32.mrb[125].mxu0  ;;  %v13523_v44 = vld [vmem:[#allocation55_spill] sm:$0xff] }
 0x4ea   : > { %5389 = vmatmul.mubr.bf16.gmra.mrb[244].mxu1 %v13515_v53  ;;  %v4687_v2 = vpop.f32.mrb[126].mxu0 }
 0x4eb   : > { %5396 = vmatprep.mubr.bf16.mxu1 %v13517_v21  ;;  %13518 = vst [vmem:[#allocation61_spill] sm:$0xff] %v11232_v19  ;;  %v11235_v31 = vadd.f32 %v8111_v23, %v4687_v2  ;;  %v4689_v57 = vpop.f32.mrb[127].mxu0  ;;  %v13524_v23 = vld [vmem:[#allocation73_spill] sm:$0xff] }
 0x4ed   : > { %v5182_v54 = vpop.f32.mrb[140].mxu1  ;;  %13520 = vst [vmem:[#allocation28_spill] sm:$0xff] %v11235_v31  ;;  %6104 = vmatmul.mubr.bf16.gmra.mrb[232].mxu0 %v13454_v6  ;;  %v13526_v31 = vld [vmem:[#allocation94_spill] sm:$0xff] }
 0x4ee   : > { %v5183_v51 = vadd.f32 %v5182_v54, %v13519_v14  ;;  %v5184_v4 = vpop.f32.mrb[141].mxu1  ;;  %6111 = vmatprep.mubr.bf16.mxu0 %v13455_v8 }
 0x4ef   : > { %v5185_v28 = vpop.f32.mrb[142].mxu1 }
 0x4f0   : > { %v5186_v27 = vadd.f32 %v5185_v28, %v13521_v13  ;;  %v5187_v46 = vpop.f32.mrb[143].mxu1  ;;  %v8130_v45 = vpop.f32.mrb[128].mxu0 }
 0x4f1   : > { %v11242_v54 = vadd.f32 %v8130_v45, %v5167_v26  ;;  %v5447_v14 = vpop.f32.mrb[129].mxu0  ;;  %v13528_v26 = vld [vmem:[#allocation90_spill] sm:$0xff]  ;;  %v13529_v45 = vld [vmem:[#allocation111_spill] sm:$0xff] }
 0x4f2   : > { %5397 = vmatmul.mubr.bf16.gmra.mrb[248].mxu1 %v13522_v41  ;;  %v11246_v57 = vadd.f32 %v5447_v14, %v11201_v25  ;;  %v8131_v46 = vpop.f32.mrb[130].mxu0 }
 0x4f3   : > { %5404 = vmatprep.mubr.bf16.mxu1 %v13523_v44  ;;  %v11248_v6 = vadd.f32 %v8131_v46, %v5170_v61  ;;  %v5450_v13 = vpop.f32.mrb[131].mxu0 }
 0x4f4   : > { %v11252_v44 = vadd.f32 %v5450_v13, %v11206_v5  ;;  %v13531_v13 = vld [vmem:[#allocation98_spill] sm:$0xff] }
 0x4f5   : > { %v5190_v35 = vpop.f32.mrb[144].mxu1  ;;  %13525 = vst [vmem:[#allocation47_spill] sm:$0xff] %v11248_v6  ;;  %6112 = vmatmul.mubr.bf16.gmra.mrb[236].mxu0 %v13458_v36 }
 0x4f6   : > { %v5191_v4 = vadd.f32 %v5190_v35, %v13524_v23  ;;  %v5192_v2 = vpop.f32.mrb[145].mxu1  ;;  %13527 = vst [vmem:[#allocation49_spill] sm:$0xff] %v11252_v44  ;;  %6119 = vmatprep.mubr.bf16.mxu0 %v13459_v38  ;;  %v13530_v23 = vld [vmem:[#allocation97_spill] sm:$0xff] }
 0x4f7   : > { %v5193_v28 = vpop.f32.mrb[146].mxu1 }
 0x4f8   : > { %v5194_v8 = vadd.f32 %v5193_v28, %v13526_v31  ;;  %v5195_v19 = vpop.f32.mrb[147].mxu1  ;;  %v8134_v25 = vpop.f32.mrb[132].mxu0 }
 0x4f9   : > { %v11258_v14 = vadd.f32 %v8134_v25, %v5183_v51  ;;  %v5463_v61 = vpop.f32.mrb[133].mxu0  ;;  %v13532_v51 = vld [vmem:[#allocation42_spill] sm:$0xff] }
 0x4fa   : > { %5405 = vmatmul.mubr.bf16.gmra.mrb[252].mxu1 %v13528_v26  ;;  %v11261_v19 = vadd.f32 %v5463_v61, %v5175_v7  ;;  %v8135_v5 = vpop.f32.mrb[134].mxu0  ;;  %v13534_v61 = vld [vmem:[#allocation101_spill] sm:$0xff] }
 0x4fb   : > { %8208 = vmatprep.mubr.bf16.mxu1 %v13529_v45  ;;  %v11263_v28 = vadd.f32 %v8135_v5, %v5186_v27  ;;  %v5466_v36 = vpop.f32.mrb[135].mxu0  ;;  %v13533_v45 = vld [vmem:[#allocation75_spill] sm:$0xff] }
 0x4fc   : > { %v11266_v6 = vadd.f32 %v5466_v36, %v5178_v62 }
 0x4fd   : > { %v5198_v35 = vpop.f32.mrb[148].mxu1  ;;  %6120 = vmatmul.mubr.bf16.gmra.mrb[240].mxu0 %v13462_v30 }
 0x4fe   : > { %v5199_v2 = vadd.f32 %v5198_v35, %v13530_v23  ;;  %v5200_v31 = vpop.f32.mrb[149].mxu1  ;;  %6127 = vmatprep.mubr.bf16.mxu0 %v10647_v39 }
 0x4ff   : > { %v5201_v46 = vpop.f32.mrb[150].mxu1 }
 0x500   : > { %v5202_v44 = vadd.f32 %v5201_v46, %v13531_v13  ;;  %v5203_v38 = vpop.f32.mrb[151].mxu1  ;;  %v8138_v7 = vpop.f32.mrb[136].mxu0  ;;  %v13536_v13 = vld [vmem:[#allocation102_spill] sm:$0xff] }
 0x501   : > { %v11272_v35 = vadd.f32 %v8138_v7, %v5199_v2  ;;  %v5479_v27 = vpop.f32.mrb[137].mxu0  ;;  %v13538_v2 = vld [vmem:[#allocation25_spill] sm:$0xff]  ;;  %v13540_v7 = vld [vmem:[#allocation116_spill] sm:$0xff] }
 0x502   : > { %8209 = vmatmul.mubr.bf16.vlgmr.msra.gmra.mrb[0].mxu1 %v13532_v51  ;;  %v11275_v5 = vadd.f32 %v5479_v27, %v5191_v4  ;;  %v8139_v62 = vpop.f32.mrb[138].mxu0 }
 0x503   : > { %8212 = vmatprep.mubr.bf16.mxu1 %v13533_v45  ;;  %v11277_v36 = vadd.f32 %v8139_v62, %v5202_v44  ;;  %v5482_v30 = vpop.f32.mrb[139].mxu0  ;;  %v13539_v45 = vld [vmem:[#allocation81_spill] sm:$0xff] }
 0x504   : > { %v11280_v51 = vadd.f32 %v5482_v30, %v5194_v8 }
 0x505   : > { %v5206_v25 = vpop.f32.mrb[152].mxu1  ;;  %13535 = vst [vmem:[#allocation65_spill] sm:$0xff] %v11277_v36  ;;  %6128 = vmatmul.mubr.bf16.gmra.mrb[244].mxu0 %v10748_v42  ;;  %v13543_v42 = vld [vmem:[#allocation105_spill] sm:$0xff]  ;;  %v13547_v36 = vld [vmem:[#allocation26_spill] sm:$0xff] }
 0x506   : > { %v5207_v23 = vadd.f32 %v5206_v25, %v13534_v61  ;;  %v5208_v31 = vpop.f32.mrb[153].mxu1  ;;  %13537 = vst [vmem:[#allocation80_spill] sm:$0xff] %v11280_v51  ;;  %6135 = vmatprep.mubr.bf16.mxu0 %v13539_v45  ;;  %v13541_v61 = vld [vmem:[#allocation104_spill] sm:$0xff]  ;;  %v13545_v45 = vld [vmem:[#allocation43_spill] sm:$0xff] }
 0x507   : > { %v5209_v46 = vpop.f32.mrb[154].mxu1 }
 0x508   : > { %v5210_v38 = vadd.f32 %v5209_v46, %v13536_v13  ;;  %v5211_v39 = vpop.f32.mrb[155].mxu1  ;;  %v8142_v4 = vpop.f32.mrb[140].mxu0 }
 0x509   : > { %v5495_v27 = vpop.f32.mrb[141].mxu0 }
 0x50a   : > { %8213 = vmatmul.mubr.bf16.gmra.mrb[4].mxu1 %v13538_v2  ;;  %v11287_v62 = vadd.f32 %v5495_v27, %v5207_v23  ;;  %v8143_v46 = vpop.f32.mrb[142].mxu0  ;;  %v13548_v23 = vld [vmem:[#allocation31_spill] sm:$0xff] }
 0x50b   : > { %8216 = vmatprep.mubr.bf16.mxu1 %v13540_v7  ;;  %v5498_v8 = vpop.f32.mrb[143].mxu0 }
 0x50c   : > { %13542 = vst [vmem:[#allocation51_spill] sm:$0xff] %v11287_v62  ;;  %v11292_v51 = vadd.f32 %v5498_v8, %v5210_v38 }
 0x50d   : > { %v5214_v25 = vpop.f32.mrb[156].mxu1  ;;  %6136 = vmatmul.mubr.bf16.gmra.mrb[248].mxu0 %v13545_v45  ;;  %v13553_v45 = vld [vmem:[#allocation78_spill] sm:$0xff] }
 0x50e   : > { %v5215_v44 = vadd.f32 %v5214_v25, %v13541_v61  ;;  %v5216_v31 = vpop.f32.mrb[157].mxu1  ;;  %13544 = vst [vmem:[#allocation115_spill] sm:$0xff] %v11292_v51  ;;  %6143 = vmatprep.mubr.bf16.mxu0 %v13015_v9  ;;  %v13555_v51 = vld [vmem:[#allocation14_spill] sm:$0xff] }
 0x50f   : > { %v5217_v13 = vpop.f32.mrb[158].mxu1 }
 0x510   : > { %v11289_v30 = vadd.f32 %v8142_v4, %v5215_v44  ;;  %v5218_v39 = vadd.f32 %v5217_v13, %v13543_v42  ;;  %v5219_v2 = vpop.f32.mrb[159].mxu1  ;;  %v8146_v25 = vpop.f32.mrb[144].mxu0  ;;  %v13549_v4 = vld [vmem:[#allocation107_spill] sm:$0xff] }
 0x511   : > { %v5511_v61 = vpop.f32.mrb[145].mxu0  ;;  %v13551_v2 = vld [vmem:[#allocation44_spill] sm:$0xff] }
 0x512   : > { %v11295_v7 = vadd.f32 %v8143_v46, %v5218_v39  ;;  %8217 = vmatmul.mubr.bf16.gmra.mrb[8].mxu1 %v13547_v36  ;;  %v8147_v13 = vpop.f32.mrb[146].mxu0 }
 0x513   : > { %8220 = vmatprep.mubr.bf16.mxu1 %v13548_v23  ;;  %v5514_v38 = vpop.f32.mrb[147].mxu0  ;;  %v13554_v23 = vld [vmem:[#allocation120_spill] sm:$0xff] }
 0x514   : > { %13546 = vst [vmem:[#allocation30_spill] sm:$0xff] %v11295_v7 }
 0x515   : > { %v5222_v27 = vpop.f32.mrb[160].mxu1  ;;  %6144 = vmatmul.mubr.bf16.gmra.mrb[252].mxu0 %v13015_v9 }
 0x516   : > { %v5223_v44 = vadd.f32 %v5222_v27, %v13549_v4  ;;  %v5224_v31 = vpop.f32.mrb[161].mxu1  ;;  %6151 = vmatprep.mubr.bf16.mxu0 %v10716_v63  ;;  %v13558_v63 = vld [vmem:[#allocation117_spill] sm:$0xff] }
 0x517   : > { %v5225_v42 = vpop.f32.mrb[162].mxu1 }
 0x518   : > { %v11301_v8 = vadd.f32 %v5511_v61, %v5223_v44  ;;  %v5226_v46 = vadd.f32 %v5225_v42, %v13551_v2  ;;  %v5227_v39 = vpop.f32.mrb[163].mxu1  ;;  %v8150_v27 = vpop.f32.mrb[148].mxu0 }
 0x519   : > { %v5527_v31 = vpop.f32.mrb[149].mxu0  ;;  %v13557_v39 = vld [vmem:[#allocation74_spill] sm:$0xff] }
 0x51a   : > { %13550 = vst [vmem:[#allocation66_spill] sm:$0xff] %v11301_v8  ;;  %v11305_v36 = vadd.f32 %v5514_v38, %v5226_v46  ;;  %8221 = vmatmul.mubr.bf16.gmra.mrb[12].mxu1 %v13553_v45  ;;  %v8151_v44 = vpop.f32.mrb[150].mxu0 }
 0x51b   : > { %8224 = vmatprep.mubr.bf16.mxu1 %v13554_v23  ;;  %v5530_v42 = vpop.f32.mrb[151].mxu0  ;;  %v13559_v23 = vld [vmem:[#allocation96_spill] sm:$0xff] }
 0x51c   : > { %13552 = vst [vmem:[#allocation63_spill] sm:$0xff] %v11305_v36  ;;  %v13560_v36 = vld [vmem:[#allocation17_spill] sm:$0xff] }
 0x51d   : > { %v5230_v4 = vpop.f32.mrb[164].mxu1  ;;  %6152 = vmatmul.mubr.bf16.gmra.mrb[0].mxu0 %v10790_v20  ;;  %v13562_v20 = vld [vmem:[#allocation48_spill] sm:$0xff] }
 0x51e   : > { %v5231_v7 = vadd.f32 %v5230_v4, %v13555_v51  ;;  %v5232_v61 = vpop.f32.mrb[165].mxu1  ;;  %6159 = vmatprep.mubr.bf16.mxu0 %v10738_v58  ;;  %v13564_v58 = vld [vmem:[#allocation95_spill] sm:$0xff] }
 0x51f   : > { %v5233_v8 = vpop.f32.mrb[166].mxu1 }
 0x520   : > { %v11311_v2 = vadd.f32 %v8146_v25, %v5231_v7  ;;  %v5234_v38 = vadd.f32 %v5233_v8, %v13557_v39  ;;  %v5235_v46 = vpop.f32.mrb[167].mxu1  ;;  %v8154_v51 = vpop.f32.mrb[152].mxu0 }
 0x521   : > { %v5543_v61 = vpop.f32.mrb[153].mxu0 }
 0x522   : > { %13556 = vst [vmem:[#allocation99_spill] sm:$0xff] %v11311_v2  ;;  %v11315_v45 = vadd.f32 %v8147_v13, %v5234_v38  ;;  %8225 = vmatmul.mubr.bf16.gmra.mrb[16].mxu1 %v13558_v63  ;;  %v8155_v25 = vpop.f32.mrb[154].mxu0  ;;  %v13565_v63 = vld [vmem:[#allocation46_spill] sm:$0xff] }
 0x523   : > { %8228 = vmatprep.mubr.bf16.mxu1 %v13559_v23  ;;  %v5546_v8 = vpop.f32.mrb[155].mxu0 }
 0x525   : > { %v5238_v4 = vpop.f32.mrb[168].mxu1  ;;  %6160 = vmatmul.mubr.bf16.gmra.mrb[4].mxu0 %v10803_v11 }
 0x526   : > { %v5239_v62 = vadd.f32 %v5238_v4, %v13560_v36  ;;  %v5240_v7 = vpop.f32.mrb[169].mxu1  ;;  %6167 = vmatprep.mubr.bf16.mxu0 %v10753_v18 }
 0x527   : > { %v5241_v2 = vpop.f32.mrb[170].mxu1  ;;  %v13566_v7 = vld [vmem:[#allocation15_spill] sm:$0xff] }
 0x528   : > { %v11321_v39 = vadd.f32 %v5527_v31, %v5239_v62  ;;  %v5242_v13 = vadd.f32 %v5241_v2, %v13562_v20  ;;  %v5243_v38 = vpop.f32.mrb[171].mxu1  ;;  %v11330_v36 = vpop.f32.mrb[156].mxu0 }
 0x529   : > { %v5559_v4 = vpop.f32.mrb[157].mxu0 }
 0x52a   : > { %13561 = vst [vmem:[#allocation27_spill] sm:$0xff] %v11321_v39  ;;  %v11325_v46 = vadd.f32 %v5530_v42, %v5242_v13  ;;  %8229 = vmatmul.mubr.bf16.gmra.mrb[20].mxu1 %v13564_v58  ;;  %v11333_v39 = vpop.f32.mrb[158].mxu0  ;;  %v13567_v42 = vld [vmem:[#allocation19_spill] sm:$0xff]  ;;  %v13568_v58 = vld [vmem:[#allocation100_spill] sm:$0xff] }
 0x52b   : > { %8232 = vmatprep.mubr.bf16.mxu1 %v13565_v63  ;;  %v5562_v20 = vpop.f32.mrb[159].mxu0  ;;  %v13569_v63 = vld [vmem:[#allocation57_spill] sm:$0xff] }
 0x52c   : > { %13563 = vst [vmem:[#allocation40_spill] sm:$0xff] %v11325_v46 }
 0x52d   : > { %v5246_v23 = vpop.f32.mrb[172].mxu1  ;;  %6168 = vmatmul.mubr.bf16.gmra.mrb[8].mxu0 %v10816_v15 }
 0x52e   : > { %v5247_v62 = vadd.f32 %v5246_v23, %v13566_v7  ;;  %v5248_v31 = vpop.f32.mrb[173].mxu1  ;;  %6175 = vmatprep.mubr.bf16.mxu0 %v10766_v49 }
 0x52f   : > { %v5249_v2 = vpop.f32.mrb[174].mxu1 }
 0x530   : > { %v11335_v11 = vadd.f32 %v8150_v27, %v5247_v62  ;;  %v5250_v13 = vadd.f32 %v5249_v2, %v13567_v42  ;;  %v5251_v38 = vpop.f32.mrb[175].mxu1  ;;  %v11344_v23 = vpop.f32.mrb[160].mxu0  ;;  %v13570_v27 = vld [vmem:[#allocation22_spill] sm:$0xff] }
 0x531   : > { %v11346_v31 = vpop.f32.mrb[161].mxu0 }
 0x532   : > { %v11339_v18 = vadd.f32 %v8151_v44, %v5250_v13  ;;  %8233 = vmatmul.mubr.bf16.gmra.mrb[24].mxu1 %v13568_v58  ;;  %v11349_v2 = vpop.f32.mrb[162].mxu0  ;;  %v13572_v13 = vld [vmem:[#allocation52_spill] sm:$0xff] }
 0x533   : > { %8236 = vmatprep.mubr.bf16.mxu1 %v13569_v63  ;;  %v11351_v15 = vpop.f32.mrb[163].mxu0  ;;  %v13574_v63 = vld [vmem:[#allocation82_spill] sm:$0xff] }
 0x535   : > { %v5254_v7 = vpop.f32.mrb[176].mxu1  ;;  %6176 = vmatmul.mubr.bf16.gmra.mrb[12].mxu0 %v10829_v59 }
 0x536   : > { %v5255_v62 = vadd.f32 %v5254_v7, %v13570_v27  ;;  %v5256_v46 = vpop.f32.mrb[177].mxu1  ;;  %6183 = vmatprep.mubr.bf16.mxu0 %v10782_v37 }
 0x537   : > { %v5257_v42 = vpop.f32.mrb[178].mxu1 }
 0x538   : > { %v11353_v44 = vadd.f32 %v5543_v61, %v5255_v62  ;;  %v5258_v38 = vadd.f32 %v5257_v42, %v13572_v13  ;;  %v5259_v49 = vpop.f32.mrb[179].mxu1  ;;  %v11362_v46 = vpop.f32.mrb[164].mxu0  ;;  %v13575_v61 = vld [vmem:[#allocation16_spill] sm:$0xff] }
 0x539   : > { %v11364_v27 = vpop.f32.mrb[165].mxu0 }
 0x53a   : > { %13571 = vst [vmem:[#allocation88_spill] sm:$0xff] %v11353_v44  ;;  %v11357_v58 = vadd.f32 %v5546_v8, %v5258_v38  ;;  %8237 = vmatmul.mubr.bf16.gmra.mrb[28].mxu1 %v13015_v9  ;;  %v11367_v42 = vpop.f32.mrb[166].mxu0  ;;  %v13576_v38 = vld [vmem:[#allocation56_spill] sm:$0xff] }
 0x53b   : > { %8240 = vmatprep.mubr.bf16.mxu1 %v13574_v63  ;;  %v11369_v59 = vpop.f32.mrb[167].mxu0 }
 0x53c   : > { %13573 = vst [vmem:[#allocation103_spill] sm:$0xff] %v11357_v58 }
 0x53d   : > { %v5262_v7 = vpop.f32.mrb[180].mxu1  ;;  %6184 = vmatmul.mubr.bf16.gmra.mrb[16].mxu0 %v10842_v47 }
 0x53e   : > { %v5263_v62 = vadd.f32 %v5262_v7, %v13575_v61  ;;  %v5264_v44 = vpop.f32.mrb[181].mxu1  ;;  %6191 = vmatprep.mubr.bf16.mxu0 %v10795_v52 }
 0x53f   : > { %v5265_v13 = vpop.f32.mrb[182].mxu1 }
 0x540   : > { %v11371_v8 = vadd.f32 %v8154_v51, %v5263_v62  ;;  %v5266_v49 = vadd.f32 %v5265_v13, %v13576_v38  ;;  %v5267_v37 = vpop.f32.mrb[183].mxu1  ;;  %v11380_v44 = vpop.f32.mrb[168].mxu0  ;;  %v13577_v51 = vld [vmem:[#allocation18_spill] sm:$0xff] }
 0x541   : > { %v11382_v61 = vpop.f32.mrb[169].mxu0  ;;  %v13580_v37 = vld [vmem:[#allocation62_spill] sm:$0xff] }
 0x542   : > { %v11375_v63 = vadd.f32 %v8155_v25, %v5266_v49  ;;  %8241 = vmatmul.mubr.bf16.gmra.mrb[32].mxu1 %v10751_v40  ;;  %v11385_v13 = vpop.f32.mrb[170].mxu0  ;;  %v13579_v40 = vld [vmem:[#allocation108_spill] sm:$0xff] }
 0x543   : > { %8244 = vmatprep.mubr.bf16.mxu1 %v10764_v55  ;;  %v11387_v47 = vpop.f32.mrb[171].mxu0 }
 0x545   : > { %v5270_v7 = vpop.f32.mrb[184].mxu1  ;;  %6192 = vmatmul.mubr.bf16.gmra.mrb[20].mxu0 %v10855_v34 }
 0x546   : > { %v5271_v62 = vadd.f32 %v5270_v7, %v13577_v51  ;;  %v5272_v58 = vpop.f32.mrb[185].mxu1  ;;  %6199 = vmatprep.mubr.bf16.mxu0 %v10808_v32 }
 0x547   : > { %v5273_v38 = vpop.f32.mrb[186].mxu1 }
 0x548   : > { %v11389_v25 = vadd.f32 %v5559_v4, %v5271_v62  ;;  %v5274_v49 = vadd.f32 %v5273_v38, %v13579_v40  ;;  %v5275_v52 = vpop.f32.mrb[187].mxu1  ;;  %v11398_v58 = vpop.f32.mrb[172].mxu0  ;;  %v13581_v4 = vld [vmem:[#allocation109_spill] sm:$0xff] }
 0x549   : > { %v11400_v51 = vpop.f32.mrb[173].mxu0 }
 0x54a   : > { %13578 = vst [vmem:[#allocation79_spill] sm:$0xff] %v11389_v25  ;;  %v11393_v55 = vadd.f32 %v5562_v20, %v5274_v49  ;;  %8245 = vmatmul.mubr.bf16.gmra.mrb[36].mxu1 %v10780_v22  ;;  %v11403_v38 = vpop.f32.mrb[174].mxu0  ;;  %v13582_v22 = vld [vmem:[#allocation60_spill] sm:$0xff] }
 0x54b   : > { %8248 = vmatprep.mubr.bf16.mxu1 %v13580_v37  ;;  %v11405_v34 = vpop.f32.mrb[175].mxu0 }
 0x54d   : > { %v5278_v7 = vpop.f32.mrb[188].mxu1  ;;  %6200 = vmatmul.mubr.bf16.gmra.mrb[24].mxu0 %v10868_v48 }
 0x54e   : > { %v5279_v62 = vadd.f32 %v5278_v7, %v13581_v4  ;;  %v5280_v25 = vpop.f32.mrb[189].mxu1  ;;  %6207 = vmatprep.mubr.bf16.mxu0 %v13481_v1 }
 0x54f   : > { %v5281_v40 = vpop.f32.mrb[190].mxu1 }
 0x550   : > { %v11408_v20 = vadd.f32 %v11330_v36, %v5279_v62  ;;  %v5282_v32 = vadd.f32 %v5281_v40, %v13582_v22  ;;  %v5283_v49 = vpop.f32.mrb[191].mxu1  ;;  %v11418_v25 = vpop.f32.mrb[176].mxu0  ;;  %v13583_v36 = vld [vmem:[#allocation20_spill] sm:$0xff] }
 0x551   : > { %v11420_v7 = vpop.f32.mrb[177].mxu0 }
 0x552   : > { %v11413_v52 = vadd.f32 %v11333_v39, %v5282_v32  ;;  %8249 = vmatmul.mubr.bf16.gmra.mrb[40].mxu1 %v10806_v12  ;;  %v11423_v40 = vpop.f32.mrb[178].mxu0  ;;  %v13584_v12 = vld [vmem:[#allocation64_spill] sm:$0xff] }
 0x553   : > { %8252 = vmatprep.mubr.bf16.mxu1 %v10819_v43  ;;  %v11425_v22 = vpop.f32.mrb[179].mxu0 }
 0x555   : > { %v5286_v37 = vpop.f32.mrb[192].mxu1  ;;  %6208 = vmatmul.mubr.bf16.gmra.mrb[28].mxu0 %v13485_v10 }
 0x556   : > { %v5287_v4 = vadd.f32 %v5286_v37, %v13583_v36  ;;  %v5288_v62 = vpop.f32.mrb[193].mxu1  ;;  %6215 = vmatprep.mubr.bf16.mxu0 %v13487_v29 }
 0x557   : > { %v5289_v48 = vpop.f32.mrb[194].mxu1 }
 0x558   : > { %v11428_v39 = vadd.f32 %v11346_v31, %v5287_v4  ;;  %v5290_v1 = vadd.f32 %v5289_v48, %v13584_v12  ;;  %v5291_v32 = vpop.f32.mrb[195].mxu1  ;;  %v11438_v49 = vpop.f32.mrb[180].mxu0  ;;  %v13586_v31 = vld [vmem:[#allocation110_spill] sm:$0xff] }
 0x559   : > { %v11440_v36 = vpop.f32.mrb[181].mxu0 }
 0x55a   : > { %v11433_v43 = vadd.f32 %v11351_v15, %v5290_v1  ;;  %8253 = vmatmul.mubr.bf16.gmra.mrb[44].mxu1 %v10832_v56  ;;  %v11443_v48 = vpop.f32.mrb[182].mxu0 }
 0x55b   : > { %8256 = vmatprep.mubr.bf16.mxu1 %v10845_v0  ;;  %v11445_v12 = vpop.f32.mrb[183].mxu0 }
 0x55c   : > { %13585 = vst [vmem:[#allocation67_spill] sm:$0xff] %v11433_v43 }
 0x55d   : > { %v5294_v37 = vpop.f32.mrb[196].mxu1  ;;  %6216 = vmatmul.mubr.bf16.gmra.mrb[32].mxu0 %v13491_v24 }
 0x55e   : > { %v5295_v4 = vadd.f32 %v5294_v37, %v13586_v31  ;;  %v5296_v62 = vpop.f32.mrb[197].mxu1  ;;  %6223 = vmatprep.mubr.bf16.mxu0 %v13493_v3 }
 0x55f   : > { %v5297_v10 = vpop.f32.mrb[198].mxu1 }
 0x560   : > { %v11448_v15 = vadd.f32 %v11344_v23, %v5295_v4  ;;  %v5298_v56 = vadd.f32 %v5297_v10, %v11112_v50  ;;  %v5299_v29 = vpop.f32.mrb[199].mxu1  ;;  %v11458_v1 = vpop.f32.mrb[184].mxu0  ;;  %v13591_v10 = vld [vmem:[#allocation34_spill] sm:$0xff] }
 0x561   : > { %v11460_v37 = vpop.f32.mrb[185].mxu0 }
 0x562   : > { %v11453_v0 = vadd.f32 %v11349_v2, %v5298_v56  ;;  %8257 = vmatmul.mubr.bf16.gmra.mrb[48].mxu1 %v10858_v60  ;;  %v11463_v31 = vpop.f32.mrb[186].mxu0  ;;  %v13593_v56 = vld [vmem:[#allocation85_spill] sm:$0xff] }
 0x563   : > { %8260 = vmatprep.mubr.bf16.mxu1 %v10871_v16  ;;  %v11465_v4 = vpop.f32.mrb[187].mxu0  ;;  %v13589_v16 = vld [vmem:[#allocation86_spill] sm:$0xff] }
 0x564   : > { %13587 = vst [vmem:[#allocation89_spill] sm:$0xff] %v11453_v0 }
 0x565   : > { %v5302_v32 = vpop.f32.mrb[200].mxu1  ;;  %6224 = vmatmul.mubr.bf16.gmra.mrb[36].mxu0 %v13589_v16 }
 0x566   : > { %v5303_v23 = vadd.f32 %v5302_v32, %v11118_v33  ;;  %v5304_v50 = vpop.f32.mrb[201].mxu1  ;;  %v13592_v33 = vld [vmem:[#allocation76_spill] sm:$0xff] }
 0x567   : > { %v5305_v24 = vpop.f32.mrb[202].mxu1  ;;  %6231 = vmatprep.mubr.bf16.mxu0 %v13592_v33 }
 0x568   : > { %v11468_v2 = vadd.f32 %v11364_v27, %v5303_v23  ;;  %v5306_v60 = vadd.f32 %v5305_v24, %v11120_v17  ;;  %v5307_v3 = vpop.f32.mrb[203].mxu1  ;;  %v11478_v29 = vpop.f32.mrb[188].mxu0  ;;  %v13594_v27 = vld [vmem:[#allocation21_spill] sm:$0xff] }
 0x569   : > { %v11480_v50 = vpop.f32.mrb[189].mxu0 }
 0x56a   : > { %13588 = vst [vmem:[#allocation50_spill] sm:$0xff] %v11468_v2  ;;  %v11473_v62 = vadd.f32 %v11369_v59, %v5306_v60  ;;  %8261 = vmatmul.mubr.bf16.gmra.mrb[52].mxu1 %v13591_v10  ;;  %v11483_v24 = vpop.f32.mrb[190].mxu0  ;;  %v13596_v60 = vld [vmem:[#allocation121_spill] sm:$0xff]  ;;  %v13598_v2 = vld [vmem:[#allocation59_spill] sm:$0xff] }
 0x56b   : > { %8264 = vmatprep.mubr.bf16.mxu1 %v13593_v56  ;;  %v11485_v16 = vpop.f32.mrb[191].mxu0  ;;  %v13597_v56 = vld [vmem:[#allocation35_spill] sm:$0xff] }
 0x56c   : > { %13590 = vst [vmem:[#allocation39_spill] sm:$0xff] %v11473_v62 }
 0x56d   : > { %v5310_v32 = vpop.f32.mrb[204].mxu1  ;;  %6232 = vmatmul.mubr.bf16.gmra.mrb[40].mxu0 %v13597_v56 }
 0x56e   : > { %v5311_v23 = vadd.f32 %v5310_v32, %v13594_v27  ;;  %v5312_v17 = vpop.f32.mrb[205].mxu1  ;;  %v13599_v32 = vld [vmem:[#allocation83_spill] sm:$0xff] }
 0x56f   : > { %v5313_v3 = vpop.f32.mrb[206].mxu1  ;;  %6239 = vmatprep.mubr.bf16.mxu0 %v13599_v32  ;;  %v13600_v27 = vld [vmem:[#allocation87_spill] sm:$0xff] }
 0x570   : > { %v11488_v59 = vadd.f32 %v11362_v46, %v5311_v23  ;;  %v5314_v10 = vadd.f32 %v5313_v3, %v13596_v60  ;;  %v5315_v33 = vpop.f32.mrb[207].mxu1  ;;  %v11498_v17 = vpop.f32.mrb[192].mxu0  ;;  %v13601_v46 = vld [vmem:[#allocation36_spill] sm:$0xff] }
 0x571   : > { %v6027_v0 = vpop.f32.mrb[193].mxu0 }
 0x572   : > { %13595 = vst [vmem:[#allocation119_spill] sm:$0xff] %v11488_v59  ;;  %v11493_v62 = vadd.f32 %v11367_v42, %v5314_v10  ;;  %8265 = vmatmul.mubr.bf16.gmra.mrb[56].mxu1 %v13598_v2  ;;  %v11501_v3 = vpop.f32.mrb[194].mxu0  ;;  %v13603_v10 = vld [vmem:[#allocation23_spill] sm:$0xff] }
 0x573   : > { %8268 = vmatprep.mubr.bf16.mxu1 %v13600_v27  ;;  %v6030_v33 = vpop.f32.mrb[195].mxu0  ;;  %v13605_v27 = vld [vmem:[#allocation32_spill] sm:$0xff] }
 0x575   : > { %v5318_v43 = vpop.f32.mrb[208].mxu1  ;;  %6240 = vmatmul.mubr.bf16.gmra.mrb[44].mxu0 %v13515_v53 }
 0x576   : > { %v5319_v23 = vadd.f32 %v5318_v43, %v13601_v46  ;;  %v5320_v59 = vpop.f32.mrb[209].mxu1  ;;  %6247 = vmatprep.mubr.bf16.mxu0 %v13517_v21 }
 0x577   : > { %v5321_v60 = vpop.f32.mrb[210].mxu1 }
 0x578   : > { %v11504_v42 = vadd.f32 %v11382_v61, %v5319_v23  ;;  %v5322_v2 = vadd.f32 %v5321_v60, %v13603_v10  ;;  %v5323_v56 = vpop.f32.mrb[211].mxu1  ;;  %v11513_v43 = vpop.f32.mrb[196].mxu0 }
 0x579   : > { %v6035_v59 = vpop.f32.mrb[197].mxu0  ;;  %v13608_v56 = vld [vmem:[#allocation55_spill] sm:$0xff] }
 0x57a   : > { %13602 = vst [vmem:[#allocation84_spill] sm:$0xff] %v11504_v42  ;;  %v11509_v32 = vadd.f32 %v11387_v47, %v5322_v2  ;;  %8269 = vmatmul.mubr.bf16.gmra.mrb[60].mxu1 %v13015_v9  ;;  %v11516_v23 = vpop.f32.mrb[198].mxu0  ;;  %v13606_v47 = vld [vmem:[#allocation68_spill] sm:$0xff] }
 0x57b   : > { %v6038_v33 = vpop.f32.mrb[199].mxu0 }
 0x57c   : > { %13604 = vst [vmem:[#allocation71_spill] sm:$0xff] %v11509_v32 }
 0x57d   : > { %v5326_v0 = vpop.f32.mrb[212].mxu1  ;;  %6248 = vmatmul.mubr.bf16.gmra.mrb[48].mxu0 %v13522_v41  ;;  %v13611_v41 = vld [vmem:[#allocation41_spill] sm:$0xff] }
 0x57e   : > { %v5327_v46 = vadd.f32 %v5326_v0, %v13605_v27  ;;  %v5328_v61 = vpop.f32.mrb[213].mxu1  ;;  %6255 = vmatprep.mubr.bf16.mxu0 %v13608_v56  ;;  %v13613_v56 = vld [vmem:[#allocation69_spill] sm:$0xff] }
 0x57f   : > { %v5329_v60 = vpop.f32.mrb[214].mxu1  ;;  %v13609_v61 = vld [vmem:[#allocation29_spill] sm:$0xff] }
 0x580   : > { %v11519_v53 = vadd.f32 %v11380_v44, %v5327_v46  ;;  %v5330_v10 = vadd.f32 %v5329_v60, %v13606_v47  ;;  %v5331_v2 = vpop.f32.mrb[215].mxu1  ;;  %v11527_v59 = vpop.f32.mrb[200].mxu0 }
 0x581   : > { %v6043_v27 = vpop.f32.mrb[201].mxu0 }
 0x582   : > { %v11524_v21 = vadd.f32 %v11385_v13, %v5330_v10  ;;  %v11530_v42 = vpop.f32.mrb[202].mxu0  ;;  %v12953_v10 = vmov 0.0|0.0  }
 0x583   : > { %v6046_v46 = vpop.f32.mrb[203].mxu0  ;;  %8312 = vmatprep.subr.bf16.mxu1 %v12953_v10 }
 0x584   : > { %13607 = vst [vmem:[#allocation91_spill] sm:$0xff] %v11524_v21  ;;  %v13617_v21 = vld [vmem:[#allocation93_spill] sm:$0xff] }
 0x585   : > { %v5334_v0 = vpop.f32.mrb[216].mxu1  ;;  %6256 = vmatmul.mubr.bf16.gmra.mrb[52].mxu0 %v13528_v26 }
 0x586   : > { %v5335_v32 = vadd.f32 %v5334_v0, %v13609_v61  ;;  %v5336_v33 = vpop.f32.mrb[217].mxu1  ;;  %6263 = vmatprep.mubr.bf16.mxu0 %v13613_v56  ;;  %v6709_v0 = vld [vmem:[%s12711_s3] sm:$0xff]  ;;  %v13616_v56 = vld [vmem:[#allocation37_spill] sm:$0xff] }
 0x587   : > { %v5337_v44 = vpop.f32.mrb[218].mxu1  ;;  %v13614_v33 = vld [vmem:[#allocation112_spill] sm:$0xff] }
 0x588   : > { %v11533_v60 = vadd.f32 %v11400_v51, %v5335_v32  ;;  %v5338_v47 = vadd.f32 %v5337_v44, %v13611_v41  ;;  %v5339_v13 = vpop.f32.mrb[219].mxu1  ;;  %v6710_v51 = vld [vmem:[%s12711_s3 + $0x8] sm:$0xff]  ;;  %v11548_v32 = vpop.f32.mrb[204].mxu0 }
 0x589   : > { %v8313_v27 = vpack.c.bf16 %v6710_v51, %v6709_v0  ;;  %v6051_v61 = vpop.f32.mrb[205].mxu0 }
 0x58a   : > { %13610 = vst [vmem:[#allocation70_spill] sm:$0xff] %v11533_v60  ;;  %v11539_v2 = vadd.f32 %v11405_v34, %v5338_v47  ;;  %v11551_v34 = vpop.f32.mrb[206].mxu0  ;;  %v13619_v61 = vld [vmem:[#allocation72_spill] sm:$0xff] }
 0x58b   : > { %8314 = vmatpush3.bf16.msra.mxu1 %v8313_v27  ;;  %v6054_v47 = vpop.f32.mrb[207].mxu0 }
 0x58c   : > { %13612 = vst [vmem:[#allocation73_spill] sm:$0xff] %v11539_v2  ;;  %8315 = vmatprep.subr.bf16.mxu1 %v12953_v10 }
 0x58d   : > { %v5342_v26 = vpop.f32.mrb[220].mxu1  ;;  %6264 = vmatmul.mubr.bf16.gmra.mrb[56].mxu0 %v13617_v21  ;;  %v13621_v21 = vld [vmem:[#allocation24_spill] sm:$0xff] }
 0x58e   : > { %v5343_v44 = vadd.f32 %v5342_v26, %v13614_v33  ;;  %v5344_v46 = vpop.f32.mrb[221].mxu1  ;;  %6271 = vmatprep.mubr.bf16.mxu0 %v13015_v9 }
 0x58f   : > { %v5345_v41 = vpop.f32.mrb[222].mxu1 }
 0x590   : > { %v11555_v13 = vadd.f32 %v11398_v58, %v5343_v44  ;;  %v5346_v2 = vadd.f32 %v5345_v41, %v13616_v56  ;;  %v5347_v60 = vpop.f32.mrb[223].mxu1  ;;  %v11563_v51 = vpop.f32.mrb[208].mxu0 }
 0x591   : > { %v6059_v26 = vpop.f32.mrb[209].mxu0 }
 0x592   : > { %13615 = vst [vmem:[#allocation94_spill] sm:$0xff] %v11555_v13  ;;  %v11560_v0 = vadd.f32 %v11403_v38, %v5346_v2  ;;  %v11566_v47 = vpop.f32.mrb[210].mxu0 }
 0x593   : > { %v6062_v44 = vpop.f32.mrb[211].mxu0 }
 0x594   : > { %13618 = vst [vmem:[#allocation90_spill] sm:$0xff] %v11560_v0 }
 0x595   : > { %v5350_v27 = vpop.f32.mrb[224].mxu1  ;;  %6272 = vmatmul.mubr.bf16.gmra.mrb[60].mxu0 %v13015_v9 }
 0x596   : > { %v5351_v33 = vadd.f32 %v5350_v27, %v13619_v61  ;;  %v5352_v46 = vpop.f32.mrb[225].mxu1  ;;  %v13623_v61 = vld [vmem:[#allocation77_spill] sm:$0xff] }
 0x597   : > { %v5353_v58 = vpop.f32.mrb[226].mxu1 }
 0x598   : > { %v11569_v60 = vadd.f32 %v11420_v7, %v5351_v33  ;;  %v5354_v41 = vadd.f32 %v5353_v58, %v13621_v21  ;;  %v5355_v38 = vpop.f32.mrb[227].mxu1  ;;  %v11576_v56 = vpop.f32.mrb[212].mxu0  ;;  %v13625_v58 = vld [vmem:[#allocation45_spill] sm:$0xff] }
 0x599   : > { %v6067_v27 = vpop.f32.mrb[213].mxu0 }
 0x59a   : > { %13620 = vst [vmem:[#allocation111_spill] sm:$0xff] %v11569_v60  ;;  %v11574_v2 = vadd.f32 %v11425_v22, %v5354_v41  ;;  %v11579_v0 = vpop.f32.mrb[214].mxu0 }
 0x59b   : > { %v6070_v7 = vpop.f32.mrb[215].mxu0 }
 0x59c   : > { %13622 = vst [vmem:[#allocation97_spill] sm:$0xff] %v11574_v2  ;;  %v13627_v2 = vld [vmem:[#allocation53_spill] sm:$0xff] }
 0x59d   : > { %v5358_v26 = vpop.f32.mrb[228].mxu1 }
 0x59e   : > { %v5359_v46 = vadd.f32 %v5358_v26, %v13623_v61  ;;  %v5360_v10 = vpop.f32.mrb[229].mxu1 }
 0x59f   : > { %v5361_v44 = vpop.f32.mrb[230].mxu1 }
 0x5a0   : > { %v11582_v33 = vadd.f32 %v11418_v25, %v5359_v46  ;;  %v5362_v21 = vadd.f32 %v5361_v44, %v13625_v58  ;;  %v5363_v9 = vpop.f32.mrb[231].mxu1  ;;  %v11588_v41 = vpop.f32.mrb[216].mxu0  ;;  %v13629_v46 = vld [vmem:[#allocation113_spill] sm:$0xff] }
 0x5a1   : > { %v6075_v27 = vpop.f32.mrb[217].mxu0 }
 0x5a2   : > { %13624 = vst [vmem:[#allocation98_spill] sm:$0xff] %v11582_v33  ;;  %v11586_v22 = vadd.f32 %v11423_v40, %v5362_v21  ;;  %v11591_v61 = vpop.f32.mrb[218].mxu0  ;;  %v6711_v40 = vld [vmem:[%s12711_s3 + $0x10] sm:$0xff]  ;;  %v6712_v21 = vld [vmem:[%s12711_s3 + $0x18] sm:$0xff]  ;;  %v13631_v27 = vmov 0.0|0.0  }
 0x5a3   : > { %v6078_v7 = vpop.f32.mrb[219].mxu0 }
 0x5a4   : > { %13626 = vst [vmem:[#allocation42_spill] sm:$0xff] %v11586_v22 }
 0x5a5   : > { %v5366_v38 = vpop.f32.mrb[232].mxu1 }
 0x5a6   : > { %v5367_v26 = vadd.f32 %v5366_v38, %v13627_v2  ;;  %v5368_v10 = vpop.f32.mrb[233].mxu1  ;;  %v8316_v2 = vpack.c.bf16 %v6712_v21, %v6711_v40 }
 0x5a7   : > { %v5369_v60 = vpop.f32.mrb[234].mxu1 }
 0x5a8   : > { %v11594_v25 = vadd.f32 %v11440_v36, %v5367_v26  ;;  %v5370_v44 = vadd.f32 %v5369_v60, %v13629_v46  ;;  %v5371_v58 = vpop.f32.mrb[235].mxu1  ;;  %8317 = vmatpush3.bf16.msra.mxu1 %v8316_v2  ;;  %v6713_v36 = vld [vmem:[%s12711_s3 + $0x20] sm:$0xff]  ;;  %v6714_v60 = vld [vmem:[%s12711_s3 + $0x28] sm:$0xff]  ;;  %v11612_v38 = vpop.f32.mrb[220].mxu0 }
 0x5a9   : > { %8318 = vmatprep.subr.bf16.mxu1 %v13631_v27  ;;  %v8319_v26 = vpack.c.bf16 %v6714_v60, %v6713_v36  ;;  %v6083_v7 = vpop.f32.mrb[221].mxu0  ;;  %v13632_v46 = vld [vmem:[#allocation118_spill] sm:$0xff] }
 0x5aa   : > { %13628 = vst [vmem:[#allocation75_spill] sm:$0xff] %v11594_v25  ;;  %v11604_v9 = vadd.f32 %v11445_v12, %v5370_v44  ;;  %v11616_v44 = vpop.f32.mrb[222].mxu0 }
 0x5ab   : > { %v6086_v21 = vpop.f32.mrb[223].mxu0 }
 0x5ac   : > { %13630 = vst [vmem:[#allocation101_spill] sm:$0xff] %v11604_v9  ;;  %8320 = vmatpush3.bf16.msra.mxu1 %v8319_v26  ;;  %v13634_v9 = vld [vmem:[#allocation58_spill] sm:$0xff] }
 0x5ad   : > { %v5374_v10 = vpop.f32.mrb[236].mxu1  ;;  %8321 = vmatprep.subr.bf16.mxu1 %v13631_v27 }
 0x5ae   : > { %v5375_v58 = vadd.f32 %v5374_v10, %v13632_v46  ;;  %v5376_v12 = vpop.f32.mrb[237].mxu1  ;;  %v13636_v46 = vld [vmem:[#allocation38_spill] sm:$0xff] }
 0x5af   : > { %v5377_v40 = vpop.f32.mrb[238].mxu1 }
 0x5b0   : > { %v11619_v2 = vadd.f32 %v11438_v49, %v5375_v58  ;;  %v5378_v25 = vadd.f32 %v5377_v40, %v13634_v9  ;;  %v5379_v22 = vpop.f32.mrb[239].mxu1  ;;  %v11626_v60 = vpop.f32.mrb[224].mxu0 }
 0x5b1   : > { %v6091_v7 = vpop.f32.mrb[225].mxu0  ;;  %v13638_v22 = vld [vmem:[#allocation92_spill] sm:$0xff] }
 0x5b2   : > { %13633 = vst [vmem:[#allocation102_spill] sm:$0xff] %v11619_v2  ;;  %v11624_v36 = vadd.f32 %v11443_v48, %v5378_v25  ;;  %v11629_v21 = vpop.f32.mrb[226].mxu0  ;;  %v6715_v25 = vld [vmem:[%s12711_s3 + $0x30] sm:$0xff] }
 0x5b3   : > { %v6094_v49 = vpop.f32.mrb[227].mxu0 }
 0x5b4   : > { %13635 = vst [vmem:[#allocation25_spill] sm:$0xff] %v11624_v36 }
 0x5b5   : > { %v5382_v10 = vpop.f32.mrb[240].mxu1 }
 0x5b6   : > { %v5383_v12 = vadd.f32 %v5382_v10, %v13636_v46  ;;  %v5384_v33 = vpop.f32.mrb[241].mxu1 }
 0x5b7   : > { %v5385_v26 = vpop.f32.mrb[242].mxu1  ;;  %v6716_v33 = vld [vmem:[%s12711_s3 + $0x38] sm:$0xff] }
 0x5b8   : > { %v11632_v58 = vadd.f32 %v11460_v37, %v5383_v12  ;;  %v5386_v9 = vadd.f32 %v5385_v26, %v13638_v22  ;;  %v5387_v40 = vpop.f32.mrb[243].mxu1  ;;  %v11644_v10 = vpop.f32.mrb[228].mxu0  ;;  %v8322_v7 = vpack.c.bf16 %v6716_v33, %v6715_v25  ;;  %v13640_v12 = vld [vmem:[#allocation106_spill] sm:$0xff] }
 0x5b9   : > { %v6099_v37 = vpop.f32.mrb[229].mxu0 }
 0x5ba   : > { %13637 = vst [vmem:[#allocation81_spill] sm:$0xff] %v11632_v58  ;;  %v11636_v48 = vadd.f32 %v11465_v4, %v5386_v9  ;;  %v11647_v22 = vpop.f32.mrb[230].mxu0  ;;  %8323 = vmatpush3.bf16.msra.mxu1 %v8322_v7 }
 0x5bb   : > { %v6102_v9 = vpop.f32.mrb[231].mxu0  ;;  %8324 = vmatprep.subr.bf16.mxu1 %v13631_v27 }
 0x5bc   : > { %13639 = vst [vmem:[#allocation116_spill] sm:$0xff] %v11636_v48  ;;  %v13641_v48 = vld [vmem:[#allocation33_spill] sm:$0xff] }
 0x5bd   : > { %v5390_v46 = vpop.f32.mrb[244].mxu1 }
 0x5be   : > { %v5391_v49 = vadd.f32 %v5390_v46, %v13640_v12  ;;  %v5392_v26 = vpop.f32.mrb[245].mxu1  ;;  %v13643_v12 = vld [vmem:[#allocation54_spill] sm:$0xff] }
 0x5bf   : > { %v5393_v4 = vpop.f32.mrb[246].mxu1 }
 0x5c0   : > { %v11651_v40 = vadd.f32 %v11458_v1, %v5391_v49  ;;  %v5394_v58 = vadd.f32 %v5393_v4, %v13641_v48  ;;  %v5395_v36 = vpop.f32.mrb[247].mxu1  ;;  %v11657_v33 = vpop.f32.mrb[232].mxu0  ;;  %v13645_v49 = vld [vmem:[#allocation114_spill] sm:$0xff] }
 0x5c1   : > { %v6107_v37 = vpop.f32.mrb[233].mxu0 }
 0x5c2   : > { %v11655_v25 = vadd.f32 %v11463_v31, %v5394_v58  ;;  %v11660_v2 = vpop.f32.mrb[234].mxu0  ;;  %v6717_v31 = vld [vmem:[%s12711_s3 + $0x40] sm:$0xff]  ;;  %v6718_v58 = vld [vmem:[%s12711_s3 + $0x48] sm:$0xff] }
 0x5c3   : > { %v6110_v13 = vpop.f32.mrb[235].mxu0 }
 0x5c4   : > { %13642 = vst [vmem:[#allocation104_spill] sm:$0xff] %v11655_v25 }
 0x5c5   : > { %v5398_v46 = vpop.f32.mrb[248].mxu1 }
 0x5c6   : > { %v5399_v26 = vadd.f32 %v5398_v46, %v13643_v12  ;;  %v5400_v7 = vpop.f32.mrb[249].mxu1  ;;  %v8325_v46 = vpack.c.bf16 %v6718_v58, %v6717_v31  ;;  %v13647_v12 = vld [vmem:[#allocation61_spill] sm:$0xff] }
 0x5c7   : > { %v5401_v9 = vpop.f32.mrb[250].mxu1 }
 0x5c8   : > { %v11663_v1 = vadd.f32 %v11480_v50, %v5399_v26  ;;  %v5402_v48 = vadd.f32 %v5401_v9, %v13645_v49  ;;  %v5403_v36 = vpop.f32.mrb[251].mxu1  ;;  %v11675_v37 = vpop.f32.mrb[236].mxu0  ;;  %8326 = vmatpush3.bf16.msra.mxu1 %v8325_v46 }
 0x5c9   : > { %v6115_v13 = vpop.f32.mrb[237].mxu0  ;;  %8327 = vmatprep.subr.bf16.mxu1 %v13631_v27 }
 0x5ca   : > { %13644 = vst [vmem:[#allocation105_spill] sm:$0xff] %v11663_v1  ;;  %v11673_v4 = vadd.f32 %v11485_v16, %v5402_v48  ;;  %v11679_v9 = vpop.f32.mrb[238].mxu0  ;;  %v13648_v16 = vld [vmem:[#allocation28_spill] sm:$0xff] }
 0x5cb   : > { %v6118_v36 = vpop.f32.mrb[239].mxu0 }
 0x5cc   : > { %13646 = vst [vmem:[#allocation43_spill] sm:$0xff] %v11673_v4 }
 0x5cd   : > { %v5406_v50 = vpop.f32.mrb[252].mxu1 }
 0x5ce   : > { %v5407_v26 = vadd.f32 %v5406_v50, %v13647_v12  ;;  %v5408_v7 = vpop.f32.mrb[253].mxu1 }
 0x5cf   : > { %v5409_v49 = vpop.f32.mrb[254].mxu1 }
 0x5d0   : > { %v11682_v1 = vadd.f32 %v11478_v29, %v5407_v26  ;;  %v5410_v48 = vadd.f32 %v5409_v49, %v13648_v16  ;;  %v5411_v31 = vpop.f32.mrb[255].mxu1  ;;  %v11688_v46 = vpop.f32.mrb[240].mxu0 }
 0x5d1   : > { %v6123_v4 = vpop.f32.mrb[241].mxu0 }
 0x5d2   : > { %v11686_v58 = vadd.f32 %v11483_v24, %v5410_v48  ;;  %v11691_v7 = vpop.f32.mrb[242].mxu0  ;;  %v13649_v48 = vld [vmem:[#allocation47_spill] sm:$0xff] }
 0x5d3   : > { %v6126_v29 = vpop.f32.mrb[243].mxu0 }
 0x5d5   : > { %v8210_v13 = vpop.f32.mrb[0].mxu1 }
 0x5d6   : > { %v6323_v50 = vadd.f32 %v8210_v13, %v11513_v43  ;;  %v6314_v12 = vpop.f32.mrb[1].mxu1  ;;  %v6719_v43 = vld [vmem:[%s12711_s3 + $0x50] sm:$0xff]  ;;  %v13650_v13 = vld [vmem:[#allocation49_spill] sm:$0xff] }
 0x5d7   : > { %v6315_v36 = vadd.f32 %v6314_v12, %v11498_v17  ;;  %v8211_v25 = vpop.f32.mrb[2].mxu1  ;;  %v6720_v17 = vld [vmem:[%s12711_s3 + $0x58] sm:$0xff] }
 0x5d8   : > { %v11695_v26 = vadd.f32 %v6323_v50, %v11242_v54  ;;  %v6326_v49 = vadd.f32 %v8211_v25, %v11516_v23  ;;  %v6317_v24 = vpop.f32.mrb[3].mxu1  ;;  %v8328_v54 = vpack.c.bf16 %v6720_v17, %v6719_v43  ;;  %v11714_v25 = vpop.f32.mrb[244].mxu0 }
 0x5d9   : > { %v11699_v16 = vadd.f32 %v6315_v36, %v11246_v57  ;;  %v6318_v4 = vadd.f32 %v6317_v24, %v11501_v3  ;;  %v6131_v3 = vpop.f32.mrb[245].mxu0 }
 0x5da   : > { %v11709_v31 = vadd.f32 %v6326_v49, %v13649_v48  ;;  %8329 = vmatpush3.bf16.msra.mxu1 %v8328_v54  ;;  %v11718_v36 = vpop.f32.mrb[246].mxu0 }
 0x5db   : > { %v11712_v23 = vadd.f32 %v6318_v4, %v13650_v13  ;;  %8330 = vmatprep.subr.bf16.mxu1 %v13631_v27  ;;  %v6134_v24 = vpop.f32.mrb[247].mxu0 }
 0x5dd   : > { %v8214_v57 = vpop.f32.mrb[4].mxu1 }
 0x5de   : > { %v6339_v50 = vadd.f32 %v8214_v57, %v11548_v32  ;;  %v6330_v12 = vpop.f32.mrb[5].mxu1 }
 0x5df   : > { %v6331_v29 = vadd.f32 %v6330_v12, %v11527_v59  ;;  %v8215_v49 = vpop.f32.mrb[6].mxu1 }
 0x5e0   : > { %v11722_v43 = vadd.f32 %v6339_v50, %v11258_v14  ;;  %v6342_v4 = vadd.f32 %v8215_v49, %v11551_v34  ;;  %v6333_v17 = vpop.f32.mrb[7].mxu1  ;;  %v11735_v59 = vpop.f32.mrb[248].mxu0 }
 0x5e1   : > { %v11726_v48 = vadd.f32 %v6331_v29, %v11261_v19  ;;  %v6334_v54 = vadd.f32 %v6333_v17, %v11530_v42  ;;  %v6139_v3 = vpop.f32.mrb[249].mxu0 }
 0x5e2   : > { %v11730_v32 = vadd.f32 %v6342_v4, %v11263_v28  ;;  %v11738_v34 = vpop.f32.mrb[250].mxu0  ;;  %v13653_v4 = vld [vmem:[#allocation65_spill] sm:$0xff] }
 0x5e3   : > { %v11733_v13 = vadd.f32 %v6334_v54, %v11266_v6  ;;  %v6142_v29 = vpop.f32.mrb[251].mxu0  ;;  %v13654_v54 = vld [vmem:[#allocation80_spill] sm:$0xff] }
 0x5e4   : > { %13651 = vst [vmem:[#allocation26_spill] sm:$0xff] %v11730_v32 }
 0x5e5   : > { %v8218_v57 = vpop.f32.mrb[8].mxu1 }
 0x5e6   : > { %v6355_v14 = vadd.f32 %v8218_v57, %v11576_v56  ;;  %v6346_v50 = vpop.f32.mrb[9].mxu1  ;;  %v6721_v56 = vld [vmem:[%s12711_s3 + $0x60] sm:$0xff] }
 0x5e7   : > { %v6347_v19 = vadd.f32 %v6346_v50, %v11563_v51  ;;  %v8219_v12 = vpop.f32.mrb[10].mxu1  ;;  %v6722_v51 = vld [vmem:[%s12711_s3 + $0x68] sm:$0xff] }
 0x5e8   : > { %v11742_v42 = vadd.f32 %v6355_v14, %v11272_v35  ;;  %v6358_v28 = vadd.f32 %v8219_v12, %v11579_v0  ;;  %v6349_v6 = vpop.f32.mrb[11].mxu1  ;;  %v8331_v35 = vpack.c.bf16 %v6722_v51, %v6721_v56  ;;  %v11761_v57 = vpop.f32.mrb[252].mxu0 }
 0x5e9   : > { %v11746_v49 = vadd.f32 %v6347_v19, %v11275_v5  ;;  %v6350_v24 = vadd.f32 %v6349_v6, %v11566_v47  ;;  %v6633_v5 = vadd.f32 %v11712_v23, %v11699_v16  ;;  %v6147_v3 = vpop.f32.mrb[253].mxu0 }
 0x5ea   : > { %v11756_v17 = vadd.f32 %v6358_v28, %v13653_v4  ;;  %8332 = vmatpush3.bf16.msra.mxu1 %v8331_v35  ;;  %v11767_v19 = vpop.f32.mrb[254].mxu0  ;;  %v13655_v4 = vld [vmem:[#allocation51_spill] sm:$0xff] }
 0x5eb   : > { %13652 = vst [vmem:[#allocation31_spill] sm:$0xff] %v11746_v49  ;;  %v11759_v0 = vadd.f32 %v6350_v24, %v13654_v54  ;;  %8333 = vmatprep.subr.bf16.mxu1 %v13631_v27  ;;  %v6150_v28 = vpop.f32.mrb[255].mxu0  ;;  %v6634_v51 = vadd.f32 %v6633_v5, %v11695_v26  ;;  %v13656_v27 = vld [vmem:[#allocation30_spill] sm:$0xff] }
 0x5ed   : > { %v8222_v47 = vpop.f32.mrb[12].mxu1 }
 0x5ee   : > { %v6371_v14 = vadd.f32 %v8222_v47, %v11612_v38  ;;  %v6362_v50 = vpop.f32.mrb[13].mxu1  ;;  %v13657_v47 = vld [vmem:[#allocation115_spill] sm:$0xff] }
 0x5ef   : > { %v6363_v12 = vadd.f32 %v6362_v50, %v11588_v41  ;;  %v8223_v29 = vpop.f32.mrb[14].mxu1 }
 0x5f0   : > { %v11771_v6 = vadd.f32 %v6371_v14, %v11289_v30  ;;  %v6374_v24 = vadd.f32 %v8223_v29, %v11616_v44  ;;  %v6365_v56 = vpop.f32.mrb[15].mxu1  ;;  %v11785_v3 = vpop.f32.mrb[0].mxu0  ;;  %v6635_v30 = vadd.f32 %v6634_v51, %v11709_v31  ;;  %v13659_v51 = vld [vmem:[#allocation66_spill] sm:$0xff] }
 0x5f1   : > { %v11776_v35 = vadd.f32 %v6363_v12, %v13655_v4  ;;  %v6366_v38 = vadd.f32 %v6365_v56, %v11591_v61  ;;  %v6155_v44 = vpop.f32.mrb[1].mxu0 }
 0x5f2   : > { %v11780_v54 = vadd.f32 %v6374_v24, %v13656_v27  ;;  %v11789_v29 = vpop.f32.mrb[2].mxu0  ;;  %v13658_v24 = vld [vmem:[#allocation99_spill] sm:$0xff]  ;;  %v6636_v27 = vadd.f32 %v6635_v30, %v11726_v48 }
 0x5f3   : > { %v11783_v41 = vadd.f32 %v6366_v38, %v13657_v47  ;;  %v6158_v28 = vpop.f32.mrb[3].mxu0  ;;  %v13660_v44 = vld [vmem:[#allocation63_spill] sm:$0xff] }
 0x5f5   : > { %v8226_v14 = vpop.f32.mrb[16].mxu1 }
 0x5f6   : > { %v6387_v50 = vadd.f32 %v8226_v14, %v11644_v10  ;;  %v6378_v5 = vpop.f32.mrb[17].mxu1 }
 0x5f7   : > { %v6379_v12 = vadd.f32 %v6378_v5, %v11626_v60  ;;  %v8227_v61 = vpop.f32.mrb[18].mxu1 }
 0x5f8   : > { %v11793_v56 = vadd.f32 %v6387_v50, %v13658_v24  ;;  %v6390_v4 = vadd.f32 %v8227_v61, %v11647_v22  ;;  %v6381_v38 = vpop.f32.mrb[19].mxu1  ;;  %v11807_v5 = vpop.f32.mrb[4].mxu0  ;;  %v6637_v50 = vadd.f32 %v6636_v27, %v11733_v13 }
 0x5f9   : > { %v11798_v47 = vadd.f32 %v6379_v12, %v13659_v51  ;;  %v6382_v10 = vadd.f32 %v6381_v38, %v11629_v21  ;;  %v6163_v22 = vpop.f32.mrb[5].mxu0 }
 0x5fa   : > { %v11802_v14 = vadd.f32 %v6390_v4, %v11315_v45  ;;  %v11811_v24 = vpop.f32.mrb[6].mxu0  ;;  %v6723_v45 = vld [vmem:[%s12711_s3 + $0x70] sm:$0xff]  ;;  %v6724_v4 = vld [vmem:[%s12711_s3 + $0x78] sm:$0xff] }
 0x5fb   : > { %v11805_v60 = vadd.f32 %v6382_v10, %v13660_v44  ;;  %v6166_v38 = vpop.f32.mrb[7].mxu0  ;;  %v8334_v10 = vpack.c.bf16 %v6724_v4, %v6723_v45  ;;  %v6638_v44 = vadd.f32 %v6637_v50, %v11722_v43 }
 0x5fc   : > { %v13662_v38 = vmov 0.0  }
 0x5fd   : > { %v8230_v28 = vpop.f32.mrb[20].mxu1  ;;  %8335 = vmatpush3.bf16.msra.mxu1 %v8334_v10  ;;  %8304 = vmatprep.mubr.msk.f32.mxu1 %vm8740_vm0, %v13662_v38  ;;  %v6639_v50 = vadd.f32 %v6638_v44, %v11730_v32  ;;  %v13664_v44 = vld [vmem:[#allocation88_spill] sm:$0xff] }
 0x5fe   : > { %v6403_v61 = vadd.f32 %v8230_v28, %v11675_v37  ;;  %v6394_v30 = vpop.f32.mrb[21].mxu1  ;;  %8307 = vmatprep.subr.mxu1 %v13662_v38 }
 0x5ff   : > { %v6395_v12 = vadd.f32 %v6394_v30, %v11657_v33  ;;  %v8231_v21 = vpop.f32.mrb[22].mxu1  ;;  %v13661_v33 = vld [vmem:[#allocation27_spill] sm:$0xff] }
 0x600   : > { %v11821_v27 = vadd.f32 %v6403_v61, %v11335_v11  ;;  %v6406_v37 = vadd.f32 %v8231_v21, %v11679_v9  ;;  %v6397_v51 = vpop.f32.mrb[23].mxu1  ;;  %v13663_v11 = vld [vmem:[#allocation40_spill] sm:$0xff]  ;;  %v11838_v9 = vpop.f32.mrb[8].mxu0 }
 0x601   : > { %v11826_v28 = vadd.f32 %v6395_v12, %v13661_v33  ;;  %v6398_v22 = vadd.f32 %v6397_v51, %v11660_v2  ;;  %v6171_v21 = vpop.f32.mrb[9].mxu0 }
 0x602   : > { %v11830_v30 = vadd.f32 %v6406_v37, %v11339_v18  ;;  %v11842_v45 = vpop.f32.mrb[10].mxu0  ;;  %v13665_v21 = vld [vmem:[#allocation103_spill] sm:$0xff] }
 0x603   : > { %v11835_v61 = vadd.f32 %v6398_v22, %v13663_v11  ;;  %v6174_v51 = vpop.f32.mrb[11].mxu0  ;;  %v6640_v11 = vadd.f32 %v6639_v50, %v11746_v49 }
 0x605   : > { %v8234_v12 = vpop.f32.mrb[24].mxu1 }
 0x606   : > { %v6419_v2 = vadd.f32 %v8234_v12, %v11714_v25  ;;  %v6410_v18 = vpop.f32.mrb[25].mxu1 }
 0x607   : > { %v6411_v4 = vadd.f32 %v6410_v18, %v11688_v46  ;;  %v8235_v37 = vpop.f32.mrb[26].mxu1 }
 0x608   : > { %v11846_v10 = vadd.f32 %v6419_v2, %v11371_v8  ;;  %v6422_v33 = vadd.f32 %v8235_v37, %v11718_v36  ;;  %v6413_v22 = vpop.f32.mrb[27].mxu1  ;;  %v6177_v18 = vpop.f32.mrb[12].mxu0  ;;  %v6641_v8 = vadd.f32 %v6640_v11, %v11759_v0 }
 0x609   : > { %v11851_v32 = vadd.f32 %v6411_v4, %v13664_v44  ;;  %v6414_v25 = vadd.f32 %v6413_v22, %v11691_v7  ;;  %v6179_v51 = vpop.f32.mrb[13].mxu0 }
 0x60a   : > { %v11855_v12 = vadd.f32 %v6422_v33, %v11375_v63  ;;  %v6180_v50 = vpop.f32.mrb[14].mxu0  ;;  %v6642_v22 = vadd.f32 %v6641_v8, %v11742_v42 }
 0x60b   : > { %v11858_v46 = vadd.f32 %v6414_v25, %v13665_v21  ;;  %v6182_v49 = vpop.f32.mrb[15].mxu0  ;;  %v13666_v25 = vld [vmem:[#allocation79_spill] sm:$0xff] }
 0x60d   : > { %v8238_v2 = vpop.f32.mrb[28].mxu1 }
 0x60e   : > { %v6435_v36 = vadd.f32 %v8238_v2, %v11761_v57  ;;  %v6426_v37 = vpop.f32.mrb[29].mxu1 }
 0x60f   : > { %v6427_v4 = vadd.f32 %v6426_v37, %v11735_v59  ;;  %v8239_v44 = vpop.f32.mrb[30].mxu1 }
 0x610   : > { %v11864_v7 = vadd.f32 %v6435_v36, %v11408_v20  ;;  %v6438_v63 = vadd.f32 %v8239_v44, %v11767_v19  ;;  %v6429_v33 = vpop.f32.mrb[31].mxu1  ;;  %v6185_v49 = vpop.f32.mrb[16].mxu0  ;;  %v6643_v20 = vadd.f32 %v6642_v22, %v11756_v17 }
 0x611   : > { %v11869_v11 = vadd.f32 %v6427_v4, %v13666_v25  ;;  %v6430_v21 = vadd.f32 %v6429_v33, %v11738_v34  ;;  %v6187_v51 = vpop.f32.mrb[17].mxu0 }
 0x612   : > { %v11873_v57 = vadd.f32 %v6438_v63, %v11413_v52  ;;  %v6188_v8 = vpop.f32.mrb[18].mxu0  ;;  %v6644_v63 = vadd.f32 %v6643_v20, %v11776_v35 }
 0x613   : > { %v11876_v59 = vadd.f32 %v6430_v21, %v11393_v55  ;;  %v6190_v44 = vpop.f32.mrb[19].mxu0  ;;  %v13670_v21 = vld [vmem:[#allocation67_spill] sm:$0xff] }
 0x615   : > { %v8242_v2 = vpop.f32.mrb[32].mxu1 }
 0x616   : > { %v6451_v19 = vadd.f32 %v8242_v2, %v11807_v5  ;;  %v6442_v36 = vpop.f32.mrb[33].mxu1  ;;  %v13668_v5 = vld [vmem:[#allocation89_spill] sm:$0xff] }
 0x617   : > { %v6443_v37 = vadd.f32 %v6442_v36, %v11785_v3  ;;  %v8243_v4 = vpop.f32.mrb[34].mxu1 }
 0x618   : > { %v11882_v34 = vadd.f32 %v6451_v19, %v11448_v15  ;;  %v6454_v52 = vadd.f32 %v8243_v4, %v11811_v24  ;;  %v6445_v55 = vpop.f32.mrb[35].mxu1  ;;  %v6193_v2 = vpop.f32.mrb[20].mxu0  ;;  %v6645_v15 = vadd.f32 %v6644_v63, %v11783_v41 }
 0x619   : > { %v11887_v33 = vadd.f32 %v6443_v37, %v11428_v39  ;;  %v6446_v22 = vadd.f32 %v6445_v55, %v11789_v29  ;;  %v6195_v19 = vpop.f32.mrb[21].mxu0 }
 0x61a   : > { %13667 = vst [vmem:[#allocation107_spill] sm:$0xff] %v11882_v34  ;;  %v11891_v25 = vadd.f32 %v6454_v52, %v13668_v5  ;;  %v6196_v39 = vpop.f32.mrb[22].mxu0  ;;  %v13672_v52 = vld [vmem:[#allocation119_spill] sm:$0xff]  ;;  %v6646_v63 = vadd.f32 %v6645_v15, %v11771_v6 }
 0x61b   : > { %v11894_v3 = vadd.f32 %v6446_v22, %v13670_v21  ;;  %v6198_v44 = vpop.f32.mrb[23].mxu0  ;;  %v13674_v21 = vld [vmem:[#allocation50_spill] sm:$0xff]  ;;  %v13677_v19 = vld [vmem:[#allocation39_spill] sm:$0xff] }
 0x61c   : > { %13669 = vst [vmem:[#allocation44_spill] sm:$0xff] %v11891_v25 }
 0x61d   : > { %13671 = vst [vmem:[#allocation78_spill] sm:$0xff] %v11894_v3  ;;  %v6670_v24 = vadd.f32 %v11894_v3, %v11887_v33  ;;  %v8246_v51 = vpop.f32.mrb[36].mxu1 }
 0x61e   : > { %v6467_v20 = vadd.f32 %v8246_v51, %v6177_v18  ;;  %v6458_v36 = vpop.f32.mrb[37].mxu1 }
 0x61f   : > { %v6671_v37 = vadd.f32 %v6670_v24, %v11882_v34  ;;  %v6459_v29 = vadd.f32 %v6458_v36, %v11838_v9  ;;  %v8247_v4 = vpop.f32.mrb[38].mxu1 }
 0x620   : > { %v11902_v55 = vadd.f32 %v6467_v20, %v13672_v52  ;;  %v6470_v22 = vadd.f32 %v8247_v4, %v6180_v50  ;;  %v6461_v5 = vpop.f32.mrb[39].mxu1  ;;  %v6201_v20 = vpop.f32.mrb[24].mxu0  ;;  %v6647_v50 = vadd.f32 %v6646_v63, %v11780_v54  ;;  %v13680_v63 = vld [vmem:[#allocation84_spill] sm:$0xff] }
 0x621   : > { %v11906_v3 = vadd.f32 %v6459_v29, %v13674_v21  ;;  %v6672_v18 = vadd.f32 %v6671_v37, %v11891_v25  ;;  %v6462_v51 = vadd.f32 %v6461_v5, %v11842_v45  ;;  %v6203_v29 = vpop.f32.mrb[25].mxu0 }
 0x622   : > { %13673 = vst [vmem:[#allocation120_spill] sm:$0xff] %v11902_v55  ;;  %v11911_v24 = vadd.f32 %v6470_v22, %v11493_v62  ;;  %v6204_v37 = vpop.f32.mrb[26].mxu0 }
 0x623   : > { %13675 = vst [vmem:[#allocation14_spill] sm:$0xff] %v11906_v3  ;;  %v6673_v9 = vadd.f32 %v6672_v18, %v11906_v3  ;;  %v11915_v36 = vadd.f32 %v6462_v51, %v13677_v19  ;;  %v6206_v22 = vpop.f32.mrb[27].mxu0  ;;  %v6648_v19 = vadd.f32 %v6647_v50, %v11798_v47 }
 0x624   : > { %13676 = vst [vmem:[#allocation74_spill] sm:$0xff] %v11911_v24 }
 0x625   : > { %13678 = vst [vmem:[#allocation117_spill] sm:$0xff] %v11915_v36  ;;  %v6674_v15 = vadd.f32 %v6673_v9, %v11915_v36  ;;  %v8250_v4 = vpop.f32.mrb[40].mxu1 }
 0x626   : > { %v6483_v44 = vadd.f32 %v8250_v4, %v6193_v2  ;;  %v6474_v52 = vpop.f32.mrb[41].mxu1  ;;  %v13682_v4 = vld [vmem:[#allocation91_spill] sm:$0xff] }
 0x627   : > { %v6675_v45 = vadd.f32 %v6674_v15, %v11902_v55  ;;  %v6475_v5 = vadd.f32 %v6474_v52, %v6185_v49  ;;  %v8251_v62 = vpop.f32.mrb[42].mxu1  ;;  %v13684_v15 = vld [vmem:[#allocation71_spill] sm:$0xff] }
 0x628   : > { %v11921_v21 = vadd.f32 %v6483_v44, %v11519_v53  ;;  %v6486_v18 = vadd.f32 %v8251_v62, %v6196_v39  ;;  %v6477_v51 = vpop.f32.mrb[43].mxu1  ;;  %v6209_v53 = vpop.f32.mrb[28].mxu0  ;;  %v6649_v39 = vadd.f32 %v6648_v19, %v11805_v60  ;;  %v13688_v19 = vld [vmem:[#allocation70_spill] sm:$0xff] }
 0x629   : > { %v11925_v3 = vadd.f32 %v6475_v5, %v13680_v63  ;;  %v6676_v9 = vadd.f32 %v6675_v45, %v11911_v24  ;;  %v6478_v2 = vadd.f32 %v6477_v51, %v6188_v8  ;;  %v6211_v62 = vpop.f32.mrb[29].mxu0 }
 0x62a   : > { %13679 = vst [vmem:[#allocation96_spill] sm:$0xff] %v11921_v21  ;;  %v11929_v29 = vadd.f32 %v6486_v18, %v13682_v4  ;;  %v6212_v63 = vpop.f32.mrb[30].mxu0  ;;  %v13686_v4 = vld [vmem:[#allocation94_spill] sm:$0xff] }
 0x62b   : > { %13681 = vst [vmem:[#allocation17_spill] sm:$0xff] %v11925_v3  ;;  %v6677_v49 = vadd.f32 %v6676_v9, %v11925_v3  ;;  %v11933_v52 = vadd.f32 %v6478_v2, %v13684_v15  ;;  %v6214_v51 = vpop.f32.mrb[31].mxu0  ;;  %v6650_v3 = vadd.f32 %v6649_v39, %v11793_v56  ;;  %v13690_v62 = vld [vmem:[#allocation90_spill] sm:$0xff] }
 0x62c   : > { %13683 = vst [vmem:[#allocation48_spill] sm:$0xff] %v11929_v29 }
 0x62d   : > { %13685 = vst [vmem:[#allocation95_spill] sm:$0xff] %v11933_v52  ;;  %v6678_v44 = vadd.f32 %v6677_v49, %v11933_v52  ;;  %v8254_v50 = vpop.f32.mrb[44].mxu1 }
 0x62e   : > { %v6499_v5 = vadd.f32 %v8254_v50, %v6209_v53  ;;  %v6490_v22 = vpop.f32.mrb[45].mxu1 }
 0x62f   : > { %v6679_v8 = vadd.f32 %v6678_v44, %v11921_v21  ;;  %v6491_v45 = vadd.f32 %v6490_v22, %v6201_v20  ;;  %v8255_v18 = vpop.f32.mrb[46].mxu1  ;;  %v13692_v44 = vld [vmem:[#allocation73_spill] sm:$0xff] }
 0x630   : > { %v11939_v9 = vadd.f32 %v6499_v5, %v13686_v4  ;;  %v6502_v2 = vadd.f32 %v8255_v18, %v6212_v63  ;;  %v6493_v15 = vpop.f32.mrb[47].mxu1  ;;  %v6217_v22 = vpop.f32.mrb[32].mxu0  ;;  %v6651_v5 = vadd.f32 %v6650_v3, %v11802_v14 }
 0x631   : > { %v11943_v24 = vadd.f32 %v6491_v45, %v13688_v19  ;;  %v6494_v49 = vadd.f32 %v6493_v15, %v6204_v37  ;;  %v6680_v50 = vadd.f32 %v6679_v8, %v11929_v29  ;;  %v6219_v63 = vpop.f32.mrb[33].mxu0  ;;  %v13696_v29 = vld [vmem:[#allocation97_spill] sm:$0xff] }
 0x632   : > { %13687 = vst [vmem:[#allocation46_spill] sm:$0xff] %v11939_v9  ;;  %v11946_v53 = vadd.f32 %v6502_v2, %v13690_v62  ;;  %v6220_v4 = vpop.f32.mrb[34].mxu0  ;;  %v6652_v2 = vadd.f32 %v6651_v5, %v11826_v28  ;;  %v13694_v62 = vld [vmem:[#allocation111_spill] sm:$0xff]  ;;  %v13698_v5 = vld [vmem:[#allocation98_spill] sm:$0xff] }
 0x633   : > { %13689 = vst [vmem:[#allocation15_spill] sm:$0xff] %v11943_v24  ;;  %v11950_v20 = vadd.f32 %v6494_v49, %v13692_v44  ;;  %v6681_v39 = vadd.f32 %v6680_v50, %v11943_v24  ;;  %v6222_v37 = vpop.f32.mrb[35].mxu0 }
 0x634   : > { %13691 = vst [vmem:[#allocation19_spill] sm:$0xff] %v11946_v53  ;;  %v6653_v21 = vadd.f32 %v6652_v2, %v11835_v61 }
 0x635   : > { %13693 = vst [vmem:[#allocation100_spill] sm:$0xff] %v11950_v20  ;;  %v8258_v51 = vpop.f32.mrb[48].mxu1  ;;  %v6682_v44 = vadd.f32 %v6681_v39, %v11950_v20 }
 0x636   : > { %v6506_v18 = vpop.f32.mrb[49].mxu1 }
 0x637   : > { %v6507_v45 = vadd.f32 %v6506_v18, %v6217_v22  ;;  %v8259_v19 = vpop.f32.mrb[50].mxu1  ;;  %v6683_v24 = vadd.f32 %v6682_v44, %v11939_v9 }
 0x638   : > { %v6509_v15 = vpop.f32.mrb[51].mxu1  ;;  %v6225_v63 = vpop.f32.mrb[36].mxu0 }
 0x639   : > { %v11956_v8 = vadd.f32 %v6507_v45, %v13694_v62  ;;  %v6510_v49 = vadd.f32 %v6509_v15, %v6220_v4  ;;  %v6515_v52 = vadd.f32 %v8258_v51, %v6225_v63  ;;  %v6227_v22 = vpop.f32.mrb[37].mxu0  ;;  %v13700_v62 = vld [vmem:[#allocation42_spill] sm:$0xff]  ;;  %v6684_v51 = vadd.f32 %v6683_v24, %v11946_v53  ;;  %v13703_v24 = vld [vmem:[#allocation101_spill] sm:$0xff] }
 0x63a   : > { %v6228_v37 = vpop.f32.mrb[38].mxu0 }
 0x63b   : > { %13695 = vst [vmem:[#allocation57_spill] sm:$0xff] %v11956_v8  ;;  %v11960_v3 = vadd.f32 %v6510_v49, %v13696_v29  ;;  %v11965_v55 = vadd.f32 %v6515_v52, %v13698_v5  ;;  %v6518_v45 = vadd.f32 %v8259_v19, %v6228_v37  ;;  %v6230_v15 = vpop.f32.mrb[39].mxu0  ;;  %v6654_v29 = vadd.f32 %v6653_v21, %v11821_v27  ;;  %v13702_v37 = vld [vmem:[#allocation75_spill] sm:$0xff] }
 0x63c   : > { %v6685_v19 = vadd.f32 %v6684_v51, %v11956_v8 }
 0x63d   : > { %13697 = vst [vmem:[#allocation22_spill] sm:$0xff] %v11960_v3  ;;  %v8262_v50 = vpop.f32.mrb[52].mxu1  ;;  %13699 = vst [vmem:[#allocation52_spill] sm:$0xff] %v11965_v55  ;;  %v11969_v49 = vadd.f32 %v6518_v45, %v13700_v62  ;;  %v6655_v63 = vadd.f32 %v6654_v29, %v11830_v30 }
 0x63e   : > { %v6522_v18 = vpop.f32.mrb[53].mxu1 }
 0x63f   : > { %v8263_v4 = vpop.f32.mrb[54].mxu1  ;;  %13701 = vst [vmem:[#allocation82_spill] sm:$0xff] %v11969_v49  ;;  %v6656_v62 = vadd.f32 %v6655_v63, %v11851_v32 }
 0x640   : > { %v6525_v39 = vpop.f32.mrb[55].mxu1  ;;  %v6233_v2 = vpop.f32.mrb[40].mxu0 }
 0x641   : > { %v6523_v22 = vadd.f32 %v6522_v18, %v6233_v2  ;;  %v6235_v44 = vpop.f32.mrb[41].mxu0  ;;  %v6686_v18 = vadd.f32 %v6685_v19, %v11960_v3  ;;  %v6657_v2 = vadd.f32 %v6656_v62, %v11858_v46  ;;  %v13705_v3 = vld [vmem:[#allocation25_spill] sm:$0xff] }
 0x642   : > { %v6236_v52 = vpop.f32.mrb[42].mxu0 }
 0x643   : > { %v11975_v5 = vadd.f32 %v6523_v22, %v13702_v37  ;;  %v6526_v15 = vadd.f32 %v6525_v39, %v6236_v52  ;;  %v6238_v36 = vpop.f32.mrb[43].mxu0  ;;  %v6687_v44 = vadd.f32 %v6686_v18, %v11965_v55  ;;  %v13704_v52 = vld [vmem:[#allocation102_spill] sm:$0xff] }
 0x645   : > { %v8266_v20 = vpop.f32.mrb[56].mxu1  ;;  %v11979_v53 = vadd.f32 %v6526_v15, %v13703_v24  ;;  %v6658_v24 = vadd.f32 %v6657_v2, %v11846_v10  ;;  %v6688_v19 = vadd.f32 %v6687_v44, %v11969_v49 }
 0x646   : > { %v6538_v9 = vpop.f32.mrb[57].mxu1 }
 0x647   : > { %v8267_v21 = vpop.f32.mrb[58].mxu1  ;;  %v6659_v18 = vadd.f32 %v6658_v24, %v11855_v12 }
 0x648   : > { %v6541_v45 = vpop.f32.mrb[59].mxu1  ;;  %v6241_v29 = vpop.f32.mrb[44].mxu0 }
 0x649   : > { %v6531_v51 = vadd.f32 %v8262_v50, %v6241_v29  ;;  %v6243_v8 = vpop.f32.mrb[45].mxu0  ;;  %v6689_v50 = vadd.f32 %v6688_v19, %v11975_v5  ;;  %v6660_v44 = vadd.f32 %v6659_v18, %v11869_v11 }
 0x64a   : > { %v6244_v37 = vpop.f32.mrb[46].mxu0 }
 0x64b   : > { %v11985_v36 = vadd.f32 %v6531_v51, %v13704_v52  ;;  %v6534_v25 = vadd.f32 %v8263_v4, %v6244_v37  ;;  %v6246_v63 = vpop.f32.mrb[47].mxu0  ;;  %v6690_v4 = vadd.f32 %v6689_v50, %v11979_v53  ;;  %v13706_v37 = vld [vmem:[#allocation81_spill] sm:$0xff]  ;;  %v6661_v24 = vadd.f32 %v6660_v44, %v11876_v59 }
 0x64d   : > { %v8270_v22 = vpop.f32.mrb[60].mxu1  ;;  %v11990_v62 = vadd.f32 %v6534_v25, %v13705_v3  ;;  %v6691_v25 = vadd.f32 %v6690_v4, %v11985_v36  ;;  %v13707_v3 = vld [vmem:[#allocation116_spill] sm:$0xff]  ;;  %v6662_v4 = vadd.f32 %v6661_v24, %v11864_v7 }
 0x64e   : > { %v6554_v39 = vpop.f32.mrb[61].mxu1 }
 0x64f   : > { %v8271_v34 = vpop.f32.mrb[62].mxu1 }
 0x650   : > { %v6557_v15 = vpop.f32.mrb[63].mxu1  ;;  %v6249_v8 = vpop.f32.mrb[48].mxu0 }
 0x651   : > { %v6539_v29 = vadd.f32 %v6538_v9, %v6249_v8  ;;  %v6251_v55 = vpop.f32.mrb[49].mxu0 }
 0x652   : > { %v6252_v51 = vpop.f32.mrb[50].mxu0  ;;  %v6692_v55 = vadd.f32 %v6691_v25, %v11990_v62  ;;  %v6663_v25 = vadd.f32 %v6662_v4, %v11873_v57 }
 0x653   : > { %v11996_v52 = vadd.f32 %v6539_v29, %v13706_v37  ;;  %v6542_v63 = vadd.f32 %v6541_v45, %v6252_v51  ;;  %v6254_v2 = vpop.f32.mrb[51].mxu0  ;;  %v13709_v37 = vld [vmem:[#allocation104_spill] sm:$0xff] }
 0x655   : > { %v12001_v49 = vadd.f32 %v6542_v63, %v13707_v3  ;;  %v6693_v29 = vadd.f32 %v6692_v55, %v11996_v52 }
 0x657   : > { %13708 = vst [vmem:[#allocation16_spill] sm:$0xff] %v12001_v49  ;;  %v6694_v2 = vadd.f32 %v6693_v29, %v12001_v49 }
 0x658   : > { %v6257_v19 = vpop.f32.mrb[52].mxu0 }
 0x659   : > { %v6547_v9 = vadd.f32 %v8266_v20, %v6257_v19  ;;  %v6259_v8 = vpop.f32.mrb[53].mxu0 }
 0x65a   : > { %v6260_v50 = vpop.f32.mrb[54].mxu0  ;;  %v13710_v8 = vld [vmem:[#allocation105_spill] sm:$0xff] }
 0x65b   : > { %v12007_v45 = vadd.f32 %v6547_v9, %v11651_v40  ;;  %v6550_v51 = vadd.f32 %v8267_v21, %v6260_v50  ;;  %v6262_v18 = vpop.f32.mrb[55].mxu0  ;;  %v6664_v50 = vrot.slane %v6663_v25, 4 }
 0x65d   : > { %v12011_v63 = vadd.f32 %v6550_v51, %v13709_v37  ;;  %v6695_v20 = vadd.f32 %v6694_v2, %v12007_v45  ;;  %v13711_v51 = vld [vmem:[#allocation43_spill] sm:$0xff]  ;;  %v6665_v4 = vadd.f32 %v6664_v50, %v6663_v25 }
 0x65f   : > { %v6696_v24 = vadd.f32 %v6695_v20, %v12011_v63 }
 0x660   : > { %v6265_v44 = vpop.f32.mrb[56].mxu0 }
 0x661   : > { %v6555_v3 = vadd.f32 %v6554_v39, %v6265_v44  ;;  %v6267_v19 = vpop.f32.mrb[57].mxu0 }
 0x662   : > { %v6268_v55 = vpop.f32.mrb[58].mxu0 }
 0x663   : > { %v12017_v40 = vadd.f32 %v6555_v3, %v13710_v8  ;;  %v6558_v21 = vadd.f32 %v6557_v15, %v6268_v55  ;;  %v6270_v9 = vpop.f32.mrb[59].mxu0  ;;  %v6666_v55 = vrot.slane %v6665_v4, 2 }
 0x665   : > { %v12021_v18 = vadd.f32 %v6558_v21, %v13711_v51  ;;  %v6697_v29 = vadd.f32 %v6696_v24, %v12017_v40  ;;  %v6667_v9 = vadd.f32 %v6666_v55, %v6665_v4  ;;  %v7518_v4 = vld [vmem:[%s12712_s4] ss:$0 sm:$0xff] }
 0x667   : > { %v6698_v44 = vadd.f32 %v6697_v29, %v12021_v18  ;;  %v6668_v50 = vrot.slane %v6667_v9, 1 }
 0x668   : > { %v6273_v37 = vpop.f32.mrb[60].mxu0 }
 0x669   : > { %v6563_v49 = vadd.f32 %v8270_v22, %v6273_v37  ;;  %v6275_v2 = vpop.f32.mrb[61].mxu0  ;;  %v6669_v29 = vadd.f32 %v6668_v50, %v6667_v9  ;;  %v8741_v50 = vmov 1966171168  }
 0x66a   : > { %v6276_v39 = vpop.f32.mrb[62].mxu0 }
 0x66b   : > { %v12026_v3 = vadd.f32 %v6563_v49, %v11682_v1  ;;  %v6566_v15 = vadd.f32 %v8271_v34, %v6276_v39  ;;  %v6278_v19 = vpop.f32.mrb[63].mxu0  ;;  %v6707_v34 = vmul.f32 0.00390625, %v6669_v29 }
 0x66d   : > { %v6699_v20 = vadd.f32 %v6698_v44, %v12026_v3  ;;  %v12030_v8 = vadd.f32 %v6566_v15, %v11686_v58  ;;  %v6808_v58 = vld [vmem:[%s12713_s5] sm:$0x3] }
 0x66f   : > { %v6700_v21 = vadd.f32 %v6699_v20, %v12030_v8 }
 0x671   : > { %v6701_v25 = vrot.slane %v6700_v21, 4 }
 0x673   : > { %v6702_v22 = vadd.f32 %v6701_v25, %v6700_v21 }
 0x675   : > { %v6703_v24 = vrot.slane %v6702_v22, 2 }
 0x677   : > { %v6704_v51 = vadd.f32 %v6703_v24, %v6702_v22  ;;  %v6966_v24 = vunpack.c.l.s4 %v8741_v50 }
 0x679   : > { %v6705_v37 = vrot.slane %v6704_v51, 1  ;;  %v6967_v29 = vunpack.c.0.s8 %v6966_v24 }
 0x67b   : > { %v6706_v1 = vadd.f32 %v6705_v37, %v6704_v51  ;;  %v6968_v51 = vlaneseq }
 0x67d   : > { %v6708_v49 = vmul.f32 0.00390625, %v6706_v1  ;;  %v6969_v37 = vshrl.u32 %v6968_v51, 7 }
 0x67f   : > { %v6735_v2 = vsel %vm6734_vm1, %v6708_v49, %v6707_v34  ;;  %v6970_v1 = vsub.s32 %v6967_v29, %v6969_v37 }
 0x680   : > { %8305 = vmatmul.mubr.f32.vlgmr.msra.gmra.mrb[64].mxu1 %v6735_v2  ;;  %v6989_v2 = vsub.s32 0, %v6969_v37 }
 0x681   : > { %8309 = vmatprep.mubr.msk.f32.mxu1 %vm8740_vm0, %v13662_v38  ;;  %8308 = vmatpush3.msk.msra.mxu1 %vm6820_vm2, %v6808_v58  ;;  %v7519_v38 = vld [vmem:[%s12714_s6] ss:$0 sm:$0xff] }
 0x753   : > { %v6803_v39 = vpop.f32.mrb[64].mxu1 }
 0x754   : > { %v6804_v44 = vadd.f32 %v7518_v4, %v6803_v39  ;;  %v8306_v15 = vpop.f32.mrb[65].mxu1 }
 0x756   : > { %v6807_v19 = vmax.f32 %v6804_v44, 0.0 }
 0x758   : > { %8310 = vmatmul.mubr.msk.f32.vlgmr.msra.gmra.mrb[66].mxu1 %vm6816_vm3, %v6807_v19 }
 0x82b   : > { %v6890_v55 = vpop.f32.mrb[66].mxu1 }
 0x82c   : > { %v6891_v20 = vadd.f32 %v7519_v38, %v6890_v55  ;;  %v8311_v21 = vpop.f32.mrb[67].mxu1 }
 0x82e   : > { %v7522_v9 = vmul.f32 -1.442695, %v6891_v20 }
 0x830   : > { %8558 = vpow2.f32 %v7522_v9 }
 0x83a   : > { %v8559_v25 = vpop.eup %8558 }
 0x83b   : > { %v6897_v22 = vadd.f32 1.0, %v8559_v25 }
 0x83d   : > { %8560 = vrcp.f32 %v6897_v22 }
 0x847   : > { %v8561_v34 = vpop.eup %8560 }
 0x848   : > { %v6971_v49 = vrot.slane %v8561_v34, %v6970_v1  ;;  %v13725_v34 = vld [vmem:[#allocation120_spill] sm:$0xff] }
 0x84a   : > { %v6972_v58 = vcombine.high %v6971_v49, %v6971_v49  ;;  %v6979_v4 = vrot.slane %v6971_v49, %v6970_v1 }
 0x84c   : > { %v6986_v39 = vrot.slane %v6972_v58, %v6970_v1  ;;  %v6990_v44 = vrot.slane %v6979_v4, %v6989_v2  ;;  %v13729_v4 = vld [vmem:[#allocation17_spill] sm:$0xff] }
 0x84e   : > { %v12044_v15 = vrot.slane %v6986_v39, %v6989_v2  ;;  %v12047_v19 = vmul.f32 %v6990_v44, %v11699_v16  ;;  %v12050_v38 = vmul.f32 %v6990_v44, %v11712_v23  ;;  %v12053_v55 = vmul.f32 %v6990_v44, %v11695_v26  ;;  %v13712_v16 = vld [vmem:[#allocation26_spill] sm:$0xff]  ;;  %v13713_v23 = vld [vmem:[#allocation31_spill] sm:$0xff] }
 0x84f   : > { %v12056_v20 = vmul.f32 %v6990_v44, %v11709_v31  ;;  %v12059_v21 = vmul.f32 %v6990_v44, %v11726_v48  ;;  %v12062_v9 = vmul.f32 %v6990_v44, %v11733_v13  ;;  %v12065_v25 = vmul.f32 %v6990_v44, %v11722_v43  ;;  %v13727_v2 = vld [vmem:[#allocation74_spill] sm:$0xff] }
 0x850   : > { %v12068_v22 = vmul.f32 %v6990_v44, %v13712_v16  ;;  %v12071_v50 = vmul.f32 %v6990_v44, %v13713_v23  ;;  %v12074_v26 = vmul.f32 %v6990_v44, %v11759_v0  ;;  %v12077_v31 = vmul.f32 %v6990_v44, %v11742_v42  ;;  %v13733_v23 = vld [vmem:[#allocation96_spill] sm:$0xff] }
 0x851   : > { %v12080_v48 = vmul.f32 %v6990_v44, %v11756_v17  ;;  %v12083_v13 = vmul.f32 %v6990_v44, %v11776_v35  ;;  %v12086_v43 = vmul.f32 %v6990_v44, %v11783_v41  ;;  %v12089_v24 = vmul.f32 %v6990_v44, %v11771_v6 }
 0x852   : > { %v12092_v51 = vmul.f32 %v6990_v44, %v11780_v54  ;;  %v12095_v0 = vmul.f32 %v6990_v44, %v11798_v47  ;;  %v12098_v42 = vmul.f32 %v6990_v44, %v11805_v60  ;;  %v12101_v17 = vmul.f32 %v6990_v44, %v11793_v56 }
 0x853   : > { %v12104_v35 = vmul.f32 %v6990_v44, %v11802_v14  ;;  %v12107_v41 = vmul.f32 %v6990_v44, %v11826_v28  ;;  %v12110_v6 = vmul.f32 %v6990_v44, %v11835_v61  ;;  %v12113_v54 = vmul.f32 %v6990_v44, %v11821_v27 }
 0x854   : > { %v12116_v47 = vmul.f32 %v6990_v44, %v11830_v30  ;;  %v12119_v60 = vmul.f32 %v6990_v44, %v11851_v32  ;;  %v12122_v56 = vmul.f32 %v6990_v44, %v11858_v46  ;;  %v12125_v14 = vmul.f32 %v6990_v44, %v11846_v10 }
 0x855   : > { %v12128_v28 = vmul.f32 %v6990_v44, %v11855_v12  ;;  %v12131_v61 = vmul.f32 %v6990_v44, %v11869_v11  ;;  %v12134_v27 = vmul.f32 %v6990_v44, %v11876_v59  ;;  %v12137_v32 = vmul.f32 %v6990_v44, %v11864_v7  ;;  %v13715_v12 = vld [vmem:[#allocation78_spill] sm:$0xff]  ;;  %v13717_v11 = vld [vmem:[#allocation107_spill] sm:$0xff]  ;;  %v13719_v59 = vld [vmem:[#allocation44_spill] sm:$0xff] }
 0x856   : > { %v12140_v30 = vmul.f32 %v6990_v44, %v11873_v57  ;;  %v12144_v10 = vmul.f32 %v12044_v15, %v11887_v33  ;;  %v12148_v46 = vmul.f32 %v12044_v15, %v13715_v12  ;;  %v12152_v29 = vmul.f32 %v12044_v15, %v13717_v11  ;;  %v13721_v57 = vld [vmem:[#allocation14_spill] sm:$0xff]  ;;  %v13723_v33 = vld [vmem:[#allocation117_spill] sm:$0xff]  ;;  %v13731_v44 = vld [vmem:[#allocation95_spill] sm:$0xff] }
 0x857   : > { %v12156_v7 = vmul.f32 %v12044_v15, %v13719_v59  ;;  %v12160_v37 = vmul.f32 %v12044_v15, %v13721_v57  ;;  %v12164_v1 = vmul.f32 %v12044_v15, %v13723_v33  ;;  %v12168_v49 = vmul.f32 %v12044_v15, %v13725_v34  ;;  %v6902_v11 = vld [vmem:[%s8955_s21 + $0x10] sm:$0xff]  ;;  %v6900_v59 = vld [vmem:[%s8955_s21] sm:$0xff]  ;;  %v13737_v34 = vld [vmem:[#allocation15_spill] sm:$0xff] }
 0x858   : > { %13714 = vst [vmem:[#allocation56_spill] sm:$0xff] %v12144_v10  ;;  %13716 = vst [vmem:[#allocation18_spill] sm:$0xff] %v12148_v46  ;;  %v12172_v58 = vmul.f32 %v12044_v15, %v13727_v2  ;;  %v12176_v39 = vmul.f32 %v12044_v15, %v13729_v4  ;;  %v12180_v16 = vmul.f32 %v12044_v15, %v13731_v44  ;;  %v13735_v57 = vld [vmem:[#allocation48_spill] sm:$0xff]  ;;  %v6924_v10 = vld [vmem:[%s8955_s21 + $0xc0] sm:$0xff] }
 0x859   : > { %13718 = vst [vmem:[#allocation108_spill] sm:$0xff] %v12152_v29  ;;  %13720 = vst [vmem:[#allocation62_spill] sm:$0xff] %v12156_v7  ;;  %v12184_v12 = vmul.f32 %v12044_v15, %v13733_v23  ;;  %v12190_v33 = vmul.f32 %v12044_v15, %v13735_v57  ;;  %v12194_v2 = vmul.f32 %v12044_v15, %v13737_v34  ;;  %v13739_v4 = vld [vmem:[#allocation100_spill] sm:$0xff]  ;;  %v6904_v57 = vld [vmem:[%s8955_s21 + $0x20] sm:$0xff] }
 0x85a   : > { %13722 = vst [vmem:[#allocation109_spill] sm:$0xff] %v12160_v37  ;;  %13724 = vst [vmem:[#allocation60_spill] sm:$0xff] %v12164_v1  ;;  %v12198_v44 = vmul.f32 %v12044_v15, %v13739_v4  ;;  %v6907_v1 = vld [vmem:[%s8955_s21 + $0x38] sm:$0xff]  ;;  %v6905_v37 = vld [vmem:[%s8955_s21 + $0x28] sm:$0xff] }
 0x85b   : > { %13726 = vst [vmem:[#allocation20_spill] sm:$0xff] %v12168_v49  ;;  %13728 = vst [vmem:[#allocation64_spill] sm:$0xff] %v12172_v58  ;;  %v6906_v58 = vld [vmem:[%s8955_s21 + $0x30] sm:$0xff] }
 0x85c   : > { %13730 = vst [vmem:[#allocation110_spill] sm:$0xff] %v12176_v39  ;;  %13732 = vst [vmem:[#allocation86_spill] sm:$0xff] %v12180_v16  ;;  %v13741_v16 = vld [vmem:[#allocation46_spill] sm:$0xff]  ;;  %v6901_v39 = vld [vmem:[%s8955_s21 + $0x8] sm:$0xff] }
 0x85d   : > { %13734 = vst [vmem:[#allocation34_spill] sm:$0xff] %v12184_v12  ;;  %13736 = vst [vmem:[#allocation76_spill] sm:$0xff] %v12190_v33  ;;  %v12202_v23 = vmul.f32 %v12044_v15, %v13741_v16  ;;  %v6903_v12 = vld [vmem:[%s8955_s21 + $0x18] sm:$0xff]  ;;  %v13743_v33 = vld [vmem:[#allocation19_spill] sm:$0xff] }
 0x85e   : > { %13738 = vst [vmem:[#allocation85_spill] sm:$0xff] %v12194_v2  ;;  %13740 = vst [vmem:[#allocation21_spill] sm:$0xff] %v12198_v44  ;;  %v12210_v34 = vmul.f32 %v12044_v15, %v13743_v33  ;;  %v13745_v2 = vld [vmem:[#allocation57_spill] sm:$0xff]  ;;  %v13747_v44 = vld [vmem:[#allocation22_spill] sm:$0xff] }
 0x85f   : > { %13742 = vst [vmem:[#allocation121_spill] sm:$0xff] %v12202_v23  ;;  %v12214_v4 = vmul.f32 %v12044_v15, %v13745_v2  ;;  %v12218_v16 = vmul.f32 %v12044_v15, %v13747_v44  ;;  %v13749_v23 = vld [vmem:[#allocation52_spill] sm:$0xff]  ;;  %v6908_v33 = vld [vmem:[%s8955_s21 + $0x40] sm:$0xff]  ;;  %v12234_v44 = vmul.f32 %v12044_v15, %v11975_v5  ;;  %v12250_v5 = vmul.f32 %v12044_v15, %v11990_v62 }
 0x860   : > { %13744 = vst [vmem:[#allocation35_spill] sm:$0xff] %v12210_v34  ;;  %v12222_v49 = vmul.f32 %v12044_v15, %v13749_v23  ;;  %v6910_v7 = vld [vmem:[%s8955_s21 + $0x50] sm:$0xff]  ;;  %v13751_v34 = vld [vmem:[#allocation82_spill] sm:$0xff]  ;;  %v12238_v23 = vmul.f32 %v12044_v15, %v11979_v53  ;;  %v12254_v53 = vmul.f32 %v12044_v15, %v11996_v52  ;;  %v12270_v52 = vmul.f32 %v12044_v15, %v12011_v63 }
 0x861   : > { %13746 = vst [vmem:[#allocation59_spill] sm:$0xff] %v12214_v4  ;;  %13748 = vst [vmem:[#allocation83_spill] sm:$0xff] %v12218_v16  ;;  %v12230_v2 = vmul.f32 %v12044_v15, %v13751_v34  ;;  %v6911_v16 = vld [vmem:[%s8955_s21 + $0x58] sm:$0xff]  ;;  %v6909_v4 = vld [vmem:[%s8955_s21 + $0x48] sm:$0xff] }
 0x862   : > { %13750 = vst [vmem:[#allocation87_spill] sm:$0xff] %v12222_v49  ;;  %13753 = vst [vmem:[#allocation23_spill] sm:$0xff] %v12234_v44  ;;  %v12242_v49 = vmul.f32 %v12044_v15, %v11985_v36  ;;  %v6914_v29 = vld [vmem:[%s8955_s21 + $0x70] sm:$0xff]  ;;  %v6912_v34 = vld [vmem:[%s8955_s21 + $0x60] sm:$0xff] }
 0x863   : > { %13752 = vst [vmem:[#allocation36_spill] sm:$0xff] %v12230_v2  ;;  %13754 = vst [vmem:[#allocation32_spill] sm:$0xff] %v12238_v23  ;;  %v13758_v23 = vld [vmem:[#allocation16_spill] sm:$0xff]  ;;  %v6915_v44 = vld [vmem:[%s8955_s21 + $0x78] sm:$0xff] }
 0x864   : > { %13755 = vst [vmem:[#allocation68_spill] sm:$0xff] %v12242_v49  ;;  %13756 = vst [vmem:[#allocation55_spill] sm:$0xff] %v12250_v5  ;;  %v12258_v36 = vmul.f32 %v12044_v15, %v13758_v23  ;;  %v12262_v49 = vmul.f32 %v12044_v15, %v12007_v45  ;;  %v6913_v2 = vld [vmem:[%s8955_s21 + $0x68] sm:$0xff]  ;;  %v6918_v46 = vld [vmem:[%s8955_s21 + $0x90] sm:$0xff]  ;;  %v12274_v23 = vmul.f32 %v12044_v15, %v12017_v40 }
 0x865   : > { %13757 = vst [vmem:[#allocation29_spill] sm:$0xff] %v12254_v53  ;;  %v6916_v62 = vld [vmem:[%s8955_s21 + $0x80] sm:$0xff]  ;;  %13761 = vst [vmem:[#allocation112_spill] sm:$0xff] %v12270_v52  ;;  %v12278_v45 = vmul.f32 %v12044_v15, %v12021_v18  ;;  %v6917_v53 = vld [vmem:[%s8955_s21 + $0x88] sm:$0xff]  ;;  %v12290_v40 = vmul.f32 %v12044_v15, %v12030_v8  ;;  %v12296_v18 = vadd.f32 %v12050_v38, %v6901_v39 }
 0x866   : > { %13759 = vst [vmem:[#allocation41_spill] sm:$0xff] %v12258_v36  ;;  %13760 = vst [vmem:[#allocation69_spill] sm:$0xff] %v12262_v49  ;;  %v12282_v49 = vmul.f32 %v12044_v15, %v12026_v3  ;;  %v6919_v36 = vld [vmem:[%s8955_s21 + $0x98] sm:$0xff]  ;;  %v6922_v5 = vld [vmem:[%s8955_s21 + $0xb0] sm:$0xff]  ;;  %v12299_v3 = vadd.f32 %v12053_v55, %v6902_v11  ;;  %v12306_v8 = vadd.f32 %v12056_v20, %v6903_v12 }
 0x867   : > { %13762 = vst [vmem:[#allocation37_spill] sm:$0xff] %v12274_v23  ;;  %13763 = vst [vmem:[#allocation93_spill] sm:$0xff] %v12278_v45  ;;  %v6920_v63 = vld [vmem:[%s8955_s21 + $0xa0] sm:$0xff]  ;;  %v12293_v23 = vadd.f32 %v12047_v19, %v6900_v59  ;;  %v6921_v45 = vld [vmem:[%s8955_s21 + $0xa8] sm:$0xff]  ;;  %v12309_v15 = vadd.f32 %v12059_v21, %v6904_v57  ;;  %v12312_v19 = vadd.f32 %v12062_v9, %v6905_v37 }
 0x868   : > { %13764 = vst [vmem:[#allocation72_spill] sm:$0xff] %v12282_v49  ;;  %v6923_v49 = vld [vmem:[%s8955_s21 + $0xb8] sm:$0xff]  ;;  %v6926_v52 = vld [vmem:[%s8955_s21 + $0xd0] sm:$0xff]  ;;  %v12315_v38 = vadd.f32 %v12065_v25, %v6906_v58  ;;  %v6925_v39 = vld [vmem:[%s8955_s21 + $0xc8] sm:$0xff]  ;;  %v12322_v20 = vadd.f32 %v12068_v22, %v6907_v1  ;;  %v12325_v21 = vadd.f32 %v12071_v50, %v6908_v33  ;;  %v12328_v9 = vadd.f32 %v12074_v26, %v6909_v4 }
 0x869   : > { %v6927_v55 = vld [vmem:[%s8955_s21 + $0xd8] sm:$0xff]  ;;  %v6930_v11 = vld [vmem:[%s8955_s21 + $0xf0] sm:$0xff]  ;;  %v6928_v59 = vld [vmem:[%s8955_s21 + $0xe0] sm:$0xff]  ;;  %v12331_v25 = vadd.f32 %v12077_v31, %v6910_v7  ;;  %v12338_v22 = vadd.f32 %v12080_v48, %v6911_v16  ;;  %v12341_v50 = vadd.f32 %v12083_v13, %v6912_v34  ;;  %v12344_v26 = vadd.f32 %v12086_v43, %v6913_v2 }
 0x86a   : > { %v6931_v37 = vld [vmem:[%s8955_s21 + $0xf8] sm:$0xff]  ;;  %v6929_v58 = vld [vmem:[%s8955_s21 + $0xe8] sm:$0xff]  ;;  %v6934_v12 = vld [vmem:[%s8955_s21 + $0x110] sm:$0xff]  ;;  %v12347_v31 = vadd.f32 %v12089_v24, %v6914_v29  ;;  %v12357_v48 = vadd.f32 %v12095_v0, %v6916_v62  ;;  %v12360_v13 = vadd.f32 %v12098_v42, %v6917_v53  ;;  %v12363_v43 = vadd.f32 %v12101_v17, %v6918_v46 }
 0x86b   : > { %13765 = vst [vmem:[#allocation24_spill] sm:$0xff] %v12331_v25  ;;  %v6932_v57 = vld [vmem:[%s8955_s21 + $0x100] sm:$0xff]  ;;  %v6935_v7 = vld [vmem:[%s8955_s21 + $0x118] sm:$0xff]  ;;  %v6933_v1 = vld [vmem:[%s8955_s21 + $0x108] sm:$0xff]  ;;  %v12354_v25 = vadd.f32 %v12092_v51, %v6915_v44  ;;  %v12370_v34 = vadd.f32 %v12104_v35, %v6919_v36  ;;  %v12373_v51 = vadd.f32 %v12107_v41, %v6920_v63  ;;  %v12376_v0 = vadd.f32 %v12110_v6, %v6921_v45 }
 0x86c   : > { %v6938_v4 = vld [vmem:[%s8955_s21 + $0x130] sm:$0xff]  ;;  %v6936_v33 = vld [vmem:[%s8955_s21 + $0x120] sm:$0xff]  ;;  %v6939_v24 = vld [vmem:[%s8955_s21 + $0x138] sm:$0xff]  ;;  %v12379_v42 = vadd.f32 %v12113_v54, %v6922_v5  ;;  %v12385_v53 = vadd.f32 %v12116_v47, %v6923_v49  ;;  %v12388_v35 = vadd.f32 %v12119_v60, %v6924_v10  ;;  %v12391_v41 = vadd.f32 %v12122_v56, %v6925_v39 }
 0x86d   : > { %v6937_v29 = vld [vmem:[%s8955_s21 + $0x128] sm:$0xff]  ;;  %v6942_v16 = vld [vmem:[%s8955_s21 + $0x150] sm:$0xff]  ;;  %v6940_v2 = vld [vmem:[%s8955_s21 + $0x140] sm:$0xff]  ;;  %v12394_v6 = vadd.f32 %v12125_v14, %v6926_v52  ;;  %v12400_v62 = vadd.f32 %v12128_v28, %v6927_v55  ;;  %v12403_v47 = vadd.f32 %v12131_v61, %v6928_v59  ;;  %v12406_v60 = vadd.f32 %v12134_v27, %v6929_v58 }
 0x86e   : > { %v6943_v17 = vld [vmem:[%s8955_s21 + $0x158] sm:$0xff]  ;;  %v6941_v46 = vld [vmem:[%s8955_s21 + $0x148] sm:$0xff]  ;;  %v6946_v44 = vld [vmem:[%s8955_s21 + $0x170] sm:$0xff]  ;;  %v12409_v56 = vadd.f32 %v12137_v32, %v6930_v11  ;;  %v12415_v52 = vadd.f32 %v12140_v30, %v6931_v37 }
 0x86f   : > { %v6944_v54 = vld [vmem:[%s8955_s21 + $0x160] sm:$0xff]  ;;  %v6947_v5 = vld [vmem:[%s8955_s21 + $0x178] sm:$0xff]  ;;  %v6945_v36 = vld [vmem:[%s8955_s21 + $0x168] sm:$0xff] }
 0x870   : > { %v6948_v14 = vld [vmem:[%s8955_s21 + $0x180] sm:$0xff]  ;;  %v6949_v10 = vld [vmem:[%s8955_s21 + $0x188] sm:$0xff]  ;;  %v6950_v49 = vld [vmem:[%s8955_s21 + $0x190] sm:$0xff]  ;;  %13766 = vst [vmem:[#allocation77_spill] sm:$0xff] %v12415_v52 }
 0x871   : > { %v13767_v28 = vld [vmem:[#allocation56_spill] sm:$0xff]  ;;  %v13769_v61 = vld [vmem:[#allocation18_spill] sm:$0xff]  ;;  %v6951_v32 = vld [vmem:[%s8955_s21 + $0x198] sm:$0xff] }
 0x872   : > { %v12418_v45 = vadd.f32 %v13767_v28, %v6932_v57  ;;  %v12421_v63 = vadd.f32 %v13769_v61, %v6933_v1  ;;  %v13771_v27 = vld [vmem:[#allocation108_spill] sm:$0xff]  ;;  %v6952_v39 = vld [vmem:[%s8955_s21 + $0x1a0] sm:$0xff]  ;;  %v6953_v11 = vld [vmem:[%s8955_s21 + $0x1a8] sm:$0xff] }
 0x873   : > { %v12424_v55 = vadd.f32 %v13771_v27, %v6934_v12  ;;  %v13773_v59 = vld [vmem:[#allocation62_spill] sm:$0xff]  ;;  %v13775_v30 = vld [vmem:[#allocation109_spill] sm:$0xff]  ;;  %v13777_v57 = vld [vmem:[#allocation60_spill] sm:$0xff] }
 0x874   : > { %13768 = vst [vmem:[#allocation45_spill] sm:$0xff] %v12418_v45  ;;  %13770 = vst [vmem:[#allocation53_spill] sm:$0xff] %v12421_v63  ;;  %v12430_v58 = vadd.f32 %v13773_v59, %v6935_v7  ;;  %v12433_v37 = vadd.f32 %v13775_v30, %v6936_v33  ;;  %v12436_v28 = vadd.f32 %v13777_v57, %v6937_v29  ;;  %v13779_v1 = vld [vmem:[#allocation20_spill] sm:$0xff]  ;;  %v6955_v27 = vld [vmem:[%s8955_s21 + $0x1b8] sm:$0xff] }
 0x875   : > { %13772 = vst [vmem:[#allocation113_spill] sm:$0xff] %v12424_v55  ;;  %v12439_v61 = vadd.f32 %v13779_v1, %v6938_v4  ;;  %v6954_v12 = vld [vmem:[%s8955_s21 + $0x1b0] sm:$0xff]  ;;  %v6956_v55 = vld [vmem:[%s8955_s21 + $0x1c0] sm:$0xff]  ;;  %v6957_v4 = vld [vmem:[%s8955_s21 + $0x1c8] sm:$0xff] }
 0x876   : > { %13774 = vst [vmem:[#allocation118_spill] sm:$0xff] %v12430_v58  ;;  %13776 = vst [vmem:[#allocation58_spill] sm:$0xff] %v12433_v37  ;;  %v13781_v63 = vld [vmem:[#allocation64_spill] sm:$0xff]  ;;  %v13782_v7 = vld [vmem:[#allocation110_spill] sm:$0xff] }
 0x877   : > { %13778 = vst [vmem:[#allocation38_spill] sm:$0xff] %v12436_v28  ;;  %13780 = vst [vmem:[#allocation92_spill] sm:$0xff] %v12439_v61  ;;  %v12445_v45 = vadd.f32 %v13781_v63, %v6939_v24  ;;  %v12448_v59 = vadd.f32 %v13782_v7, %v6940_v2  ;;  %v13784_v33 = vld [vmem:[#allocation86_spill] sm:$0xff]  ;;  %v6958_v1 = vld [vmem:[%s8955_s21 + $0x1d0] sm:$0xff] }
 0x878   : > { %v12451_v30 = vadd.f32 %v13784_v33, %v6941_v46  ;;  %v13786_v29 = vld [vmem:[#allocation34_spill] sm:$0xff]  ;;  %v6959_v61 = vld [vmem:[%s8955_s21 + $0x1d8] sm:$0xff]  ;;  %v13788_v28 = vld [vmem:[#allocation76_spill] sm:$0xff] }
 0x879   : > { %13783 = vst [vmem:[#allocation106_spill] sm:$0xff] %v12448_v59  ;;  %v12454_v57 = vadd.f32 %v13786_v29, %v6942_v16  ;;  %v12460_v37 = vadd.f32 %v13788_v28, %v6943_v17  ;;  %v13789_v58 = vld [vmem:[#allocation85_spill] sm:$0xff]  ;;  %v6960_v46 = vld [vmem:[%s8955_s21 + $0x1e0] sm:$0xff]  ;;  %v6961_v33 = vld [vmem:[%s8955_s21 + $0x1e8] sm:$0xff] }
 0x87a   : > { %13785 = vst [vmem:[#allocation33_spill] sm:$0xff] %v12451_v30  ;;  %v12463_v52 = vadd.f32 %v13789_v58, %v6944_v54  ;;  %v13791_v24 = vld [vmem:[#allocation21_spill] sm:$0xff]  ;;  %v6962_v30 = vld [vmem:[%s8955_s21 + $0x1f0] sm:$0xff]  ;;  %v13795_v16 = vld [vmem:[#allocation35_spill] sm:$0xff] }
 0x87b   : > { %13787 = vst [vmem:[#allocation54_spill] sm:$0xff] %v12454_v57  ;;  %v12466_v63 = vadd.f32 %v13791_v24, %v6945_v36  ;;  %v13793_v2 = vld [vmem:[#allocation121_spill] sm:$0xff]  ;;  %v12475_v29 = vadd.f32 %v13795_v16, %v6947_v5  ;;  %v13796_v57 = vld [vmem:[#allocation59_spill] sm:$0xff]  ;;  %v13799_v24 = vld [vmem:[#allocation36_spill] sm:$0xff] }
 0x87c   : > { %13790 = vst [vmem:[#allocation114_spill] sm:$0xff] %v12463_v52  ;;  %v12469_v7 = vadd.f32 %v13793_v2, %v6946_v44  ;;  %v12478_v59 = vadd.f32 %v13796_v57, %v6948_v14  ;;  %v13797_v17 = vld [vmem:[#allocation83_spill] sm:$0xff]  ;;  %v6963_v36 = vld [vmem:[%s8955_s21 + $0x1f8] sm:$0xff]  ;;  %v13802_v5 = vld [vmem:[#allocation68_spill] sm:$0xff]  ;;  %s12539_s21 = scalar_lea.vmem [#allocation10], %s7370_s29  ;;  %s7532_s29 = sshll.u32 %s8806_s28, 13 }
 0x87d   : > { %13792 = vst [vmem:[#allocation61_spill] sm:$0xff] %v12466_v63  ;;  %v12481_v28 = vadd.f32 %v13797_v17, %v6949_v10  ;;  %v13798_v54 = vld [vmem:[#allocation87_spill] sm:$0xff]  ;;  %v12488_v63 = vadd.f32 %v13799_v24, %v6951_v32  ;;  %v12497_v16 = vadd.f32 %v13802_v5, %v6954_v12  ;;  %v13804_v10 = vld [vmem:[#allocation29_spill] sm:$0xff]  ;;  %s7268_s10 = sshll.u32 %s12539_s21, 4  ;;  %s12653_s19 = scalar_lea.hbm %s12715_s7, %s7532_s29  ;;  %s12655_s10 = int_to_ptr.vmem [resolvable:$true] %s7268_s10 }
 0x87e   : > { %13794 = vst [vmem:[#allocation28_spill] sm:$0xff] %v12469_v7  ;;  %v12484_v58 = vadd.f32 %v13798_v54, %v6950_v49  ;;  %v13800_v44 = vld [vmem:[#allocation23_spill] sm:$0xff]  ;;  %v13801_v7 = vld [vmem:[#allocation32_spill] sm:$0xff]  ;;  %v12503_v17 = vadd.f32 %v13804_v10, %v6956_v55  ;;  %v13805_v49 = vld [vmem:[#allocation41_spill] sm:$0xff]  ;;  %v12524_v55 = vadd.f32 %v12290_v40, %v6963_v36  ;;  %v7128_v10 = vmax.f32 %v12306_v8, 0.0  ;;  %s8658_s14 = scalar_lea.vmem %s12655_s10, 8192  ;;  %p8665_p8 = scmp.lt.s32.totalorder %s12655_s10, %s8663_s30 }
 0x87f   : > { %v12491_v2 = vadd.f32 %v13800_v44, %v6952_v39  ;;  %v12494_v52 = vadd.f32 %v13801_v7, %v6953_v11  ;;  %v13803_v14 = vld [vmem:[#allocation55_spill] sm:$0xff]  ;;  %v12506_v54 = vadd.f32 %v13805_v49, %v6957_v4  ;;  %v13806_v32 = vld [vmem:[#allocation69_spill] sm:$0xff]  ;;  %v13807_v39 = vld [vmem:[#allocation112_spill] sm:$0xff]  ;;  %v7125_v4 = vmax.f32 %v12293_v23, 0.0  ;;  %p8659_p1 = scmp.ne.s32.totalorder %s12655_s10, %s8658_s14  ;;  %p8666_p13 = scmp.lt.s32.totalorder %s8664_s9, %s8658_s14 }
 0x880   : > { %v12500_v57 = vadd.f32 %v13803_v14, %v6955_v27  ;;  %v12509_v24 = vadd.f32 %v13806_v32, %v6958_v1  ;;  %v12512_v44 = vadd.f32 %v13807_v39, %v6959_v61  ;;  %v13808_v11 = vld [vmem:[#allocation37_spill] sm:$0xff]  ;;  %v13810_v27 = vld [vmem:[#allocation72_spill] sm:$0xff]  ;;  %v7126_v1 = vmax.f32 %v12296_v18, 0.0  ;;  %7192 = vst [vmem:[%s12539_s21 + $0x18] sm:$0xff] %v7128_v10 }
 0x881   : > { %v12515_v7 = vadd.f32 %v13808_v11, %v6960_v46  ;;  %v13809_v12 = vld [vmem:[#allocation93_spill] sm:$0xff]  ;;  %v12521_v14 = vadd.f32 %v13810_v27, %v6962_v30  ;;  %v7127_v61 = vmax.f32 %v12299_v3, 0.0  ;;  %v7129_v46 = vmax.f32 %v12309_v15, 0.0  ;;  %v13811_v36 = vld [vmem:[#allocation24_spill] sm:$0xff]  ;;  %7189 = vst [vmem:[%s12539_s21] sm:$0xff] %v7125_v4  ;;  %v13817_v11 = vld [vmem:[#allocation58_spill] sm:$0xff]  ;;  %p8660_p2 = pnand %p8659_p1, %p8897_p4  ;;  %p8667_p3 = por %p8666_p13, %p8665_p8 }
 0x882   : > { %v12518_v5 = vadd.f32 %v13809_v12, %v6961_v33  ;;  %v7130_v49 = vmax.f32 %v12312_v19, 0.0  ;;  %v7131_v33 = vmax.f32 %v12315_v38, 0.0  ;;  %v7132_v30 = vmax.f32 %v12322_v20, 0.0  ;;  %7190 = vst [vmem:[%s12539_s21 + $0x8] sm:$0xff] %v7126_v1  ;;  %v13815_v39 = vld [vmem:[#allocation113_spill] sm:$0xff]  ;;  %v13818_v27 = vld [vmem:[#allocation38_spill] sm:$0xff] }
 0x883   : > { %v7133_v32 = vmax.f32 %v12325_v21, 0.0  ;;  %v7134_v40 = vmax.f32 %v12328_v9, 0.0  ;;  %v7135_v23 = vmax.f32 %v13811_v36, 0.0  ;;  %7191 = vst [vmem:[%s12539_s21 + $0x10] sm:$0xff] %v7127_v61  ;;  %v7136_v18 = vmax.f32 %v12338_v22, 0.0  ;;  %7193 = vst [vmem:[%s12539_s21 + $0x20] sm:$0xff] %v7129_v46  ;;  %p8661_p6 = pneg %p8660_p2 }
 0x884   : > { %v7137_v3 = vmax.f32 %v12341_v50, 0.0  ;;  %v7138_v8 = vmax.f32 %v12344_v26, 0.0  ;;  %v7139_v15 = vmax.f32 %v12347_v31, 0.0  ;;  %7194 = vst [vmem:[%s12539_s21 + $0x28] sm:$0xff] %v7130_v49  ;;  %7195 = vst [vmem:[%s12539_s21 + $0x30] sm:$0xff] %v7131_v33  ;;  %v7140_v19 = vmax.f32 %v12354_v25, 0.0 }
 0x885   : > { %v7141_v38 = vmax.f32 %v12357_v48, 0.0  ;;  %v7142_v20 = vmax.f32 %v12360_v13, 0.0  ;;  %v7143_v21 = vmax.f32 %v12363_v43, 0.0  ;;  %7196 = vst [vmem:[%s12539_s21 + $0x38] sm:$0xff] %v7132_v30  ;;  %7197 = vst [vmem:[%s12539_s21 + $0x40] sm:$0xff] %v7133_v32  ;;  %v7144_v9 = vmax.f32 %v12370_v34, 0.0  ;;  %p8668_p7 = pnand %p8667_p3, %p8661_p6 }
 0x886   : > { %7198 = vst [vmem:[%s12539_s21 + $0x48] sm:$0xff] %v7134_v40  ;;  %7199 = vst [vmem:[%s12539_s21 + $0x50] sm:$0xff] %v7135_v23  ;;  %v7145_v22 = vmax.f32 %v12373_v51, 0.0  ;;  %v7146_v25 = vmax.f32 %v12376_v0, 0.0  ;;  %v7147_v50 = vmax.f32 %v12379_v42, 0.0  ;;  %v7148_v26 = vmax.f32 %v12385_v53, 0.0 }
 0x887   : > { %7200 = vst [vmem:[%s12539_s21 + $0x58] sm:$0xff] %v7136_v18  ;;  %7201 = vst [vmem:[%s12539_s21 + $0x60] sm:$0xff] %v7137_v3  ;;  %v7149_v31 = vmax.f32 %v12388_v35, 0.0  ;;  %v7150_v48 = vmax.f32 %v12391_v41, 0.0  ;;  %v7151_v13 = vmax.f32 %v12394_v6, 0.0  ;;  %v7152_v43 = vmax.f32 %v12400_v62, 0.0 }
 0x888   : > { %7202 = vst [vmem:[%s12539_s21 + $0x68] sm:$0xff] %v7138_v8  ;;  %7203 = vst [vmem:[%s12539_s21 + $0x70] sm:$0xff] %v7139_v15  ;;  %v7153_v34 = vmax.f32 %v12403_v47, 0.0  ;;  %v7154_v51 = vmax.f32 %v12406_v60, 0.0  ;;  %v7155_v0 = vmax.f32 %v12409_v56, 0.0  ;;  %v13812_v42 = vld [vmem:[#allocation77_spill] sm:$0xff] }
 0x889   : > { %7204 = vst [vmem:[%s12539_s21 + $0x78] sm:$0xff] %v7140_v19  ;;  %7205 = vst [vmem:[%s12539_s21 + $0x80] sm:$0xff] %v7141_v38  ;;  %v7156_v53 = vmax.f32 %v13812_v42, 0.0  ;;  %v13813_v35 = vld [vmem:[#allocation45_spill] sm:$0xff]  ;;  %v7159_v47 = vmax.f32 %v13815_v39, 0.0  ;;  %v13816_v60 = vld [vmem:[#allocation118_spill] sm:$0xff] }
 0x88a   : > { %7206 = vst [vmem:[%s12539_s21 + $0x88] sm:$0xff] %v7142_v20  ;;  %7207 = vst [vmem:[%s12539_s21 + $0x90] sm:$0xff] %v7143_v21  ;;  %v7157_v41 = vmax.f32 %v13813_v35, 0.0  ;;  %v13814_v6 = vld [vmem:[#allocation53_spill] sm:$0xff]  ;;  %v7160_v56 = vmax.f32 %v13816_v60, 0.0  ;;  %v7161_v12 = vmax.f32 %v13817_v11, 0.0 }
 0x88b   : > { %7208 = vst [vmem:[%s12539_s21 + $0x98] sm:$0xff] %v7144_v9  ;;  %7209 = vst [vmem:[%s12539_s21 + $0xa0] sm:$0xff] %v7145_v22  ;;  %v7158_v62 = vmax.f32 %v13814_v6, 0.0  ;;  %v7162_v4 = vmax.f32 %v13818_v27, 0.0  ;;  %v13819_v1 = vld [vmem:[#allocation92_spill] sm:$0xff]  ;;  %v7164_v10 = vmax.f32 %v12445_v45, 0.0 }
 0x88c   : > { %7210 = vst [vmem:[%s12539_s21 + $0xa8] sm:$0xff] %v7146_v25  ;;  %7211 = vst [vmem:[%s12539_s21 + $0xb0] sm:$0xff] %v7147_v50  ;;  %v7163_v61 = vmax.f32 %v13819_v1, 0.0  ;;  %v13820_v46 = vld [vmem:[#allocation106_spill] sm:$0xff]  ;;  %v13821_v33 = vld [vmem:[#allocation33_spill] sm:$0xff]  ;;  %v7168_v36 = vmax.f32 %v12460_v37, 0.0 }
 0x88d   : > { %7212 = vst [vmem:[%s12539_s21 + $0xb8] sm:$0xff] %v7148_v26  ;;  %7213 = vst [vmem:[%s12539_s21 + $0xc0] sm:$0xff] %v7149_v31  ;;  %v7165_v49 = vmax.f32 %v13820_v46, 0.0  ;;  %v7166_v30 = vmax.f32 %v13821_v33, 0.0  ;;  %v13822_v32 = vld [vmem:[#allocation54_spill] sm:$0xff]  ;;  %v13824_v45 = vld [vmem:[#allocation61_spill] sm:$0xff] }
 0x88e   : > { %7214 = vst [vmem:[%s12539_s21 + $0xc8] sm:$0xff] %v7150_v48  ;;  %7215 = vst [vmem:[%s12539_s21 + $0xd0] sm:$0xff] %v7151_v13  ;;  %v7167_v40 = vmax.f32 %v13822_v32, 0.0  ;;  %v13823_v23 = vld [vmem:[#allocation114_spill] sm:$0xff]  ;;  %v7170_v3 = vmax.f32 %v13824_v45, 0.0  ;;  %v13825_v8 = vld [vmem:[#allocation28_spill] sm:$0xff] }
 0x88f   : > { %7216 = vst [vmem:[%s12539_s21 + $0xd8] sm:$0xff] %v7152_v43  ;;  %7217 = vst [vmem:[%s12539_s21 + $0xe0] sm:$0xff] %v7153_v34  ;;  %v7169_v18 = vmax.f32 %v13823_v23, 0.0  ;;  %v7171_v15 = vmax.f32 %v13825_v8, 0.0  ;;  %v7172_v19 = vmax.f32 %v12475_v29, 0.0  ;;  %v7173_v38 = vmax.f32 %v12478_v59, 0.0 }
 0x890   : > { %7218 = vst [vmem:[%s12539_s21 + $0xe8] sm:$0xff] %v7154_v51  ;;  %7219 = vst [vmem:[%s12539_s21 + $0xf0] sm:$0xff] %v7155_v0  ;;  %v7174_v37 = vmax.f32 %v12481_v28, 0.0  ;;  %v7175_v20 = vmax.f32 %v12484_v58, 0.0  ;;  %v7176_v29 = vmax.f32 %v12488_v63, 0.0  ;;  %v7177_v21 = vmax.f32 %v12491_v2, 0.0 }
 0x891   : > { %7220 = vst [vmem:[%s12539_s21 + $0xf8] sm:$0xff] %v7156_v53  ;;  %7221 = vst [vmem:[%s12539_s21 + $0x100] sm:$0xff] %v7157_v41  ;;  %v7178_v59 = vmax.f32 %v12494_v52, 0.0  ;;  %v7179_v28 = vmax.f32 %v12497_v16, 0.0  ;;  %v7180_v58 = vmax.f32 %v12500_v57, 0.0  ;;  %v7181_v9 = vmax.f32 %v12503_v17, 0.0 }
 0x892   : > { %7222 = vst [vmem:[%s12539_s21 + $0x108] sm:$0xff] %v7158_v62  ;;  %7223 = vst [vmem:[%s12539_s21 + $0x110] sm:$0xff] %v7159_v47  ;;  %v7182_v63 = vmax.f32 %v12506_v54, 0.0  ;;  %v7183_v2 = vmax.f32 %v12509_v24, 0.0  ;;  %v7184_v52 = vmax.f32 %v12512_v44, 0.0  ;;  %v7185_v16 = vmax.f32 %v12515_v7, 0.0 }
 0x893   : > { %7224 = vst [vmem:[%s12539_s21 + $0x118] sm:$0xff] %v7160_v56  ;;  %7225 = vst [vmem:[%s12539_s21 + $0x120] sm:$0xff] %v7161_v12  ;;  %v7186_v57 = vmax.f32 %v12518_v5, 0.0  ;;  %v7187_v17 = vmax.f32 %v12521_v14, 0.0  ;;  %v7188_v54 = vmax.f32 %v12524_v55, 0.0 }
 0x894   : > { %7226 = vst [vmem:[%s12539_s21 + $0x128] sm:$0xff] %v7162_v4  ;;  %7227 = vst [vmem:[%s12539_s21 + $0x130] sm:$0xff] %v7163_v61 }
 0x895   : > { %7228 = vst [vmem:[%s12539_s21 + $0x138] sm:$0xff] %v7164_v10  ;;  %7229 = vst [vmem:[%s12539_s21 + $0x140] sm:$0xff] %v7165_v49 }
 0x896   : > { %7230 = vst [vmem:[%s12539_s21 + $0x148] sm:$0xff] %v7166_v30  ;;  %7231 = vst [vmem:[%s12539_s21 + $0x150] sm:$0xff] %v7167_v40 }
 0x897   : > { %7232 = vst [vmem:[%s12539_s21 + $0x158] sm:$0xff] %v7168_v36  ;;  %7233 = vst [vmem:[%s12539_s21 + $0x160] sm:$0xff] %v7169_v18 }
 0x898   : > { %7234 = vst [vmem:[%s12539_s21 + $0x168] sm:$0xff] %v7170_v3  ;;  %7235 = vst [vmem:[%s12539_s21 + $0x170] sm:$0xff] %v7171_v15 }
 0x899   : > { %7236 = vst [vmem:[%s12539_s21 + $0x178] sm:$0xff] %v7172_v19  ;;  %7237 = vst [vmem:[%s12539_s21 + $0x180] sm:$0xff] %v7173_v38 }
 0x89a   : > { %7238 = vst [vmem:[%s12539_s21 + $0x188] sm:$0xff] %v7174_v37  ;;  %7239 = vst [vmem:[%s12539_s21 + $0x190] sm:$0xff] %v7175_v20 }
 0x89b   : > { %7240 = vst [vmem:[%s12539_s21 + $0x198] sm:$0xff] %v7176_v29  ;;  %7241 = vst [vmem:[%s12539_s21 + $0x1a0] sm:$0xff] %v7177_v21 }
 0x89c   : > { %7242 = vst [vmem:[%s12539_s21 + $0x1a8] sm:$0xff] %v7178_v59  ;;  %7243 = vst [vmem:[%s12539_s21 + $0x1b0] sm:$0xff] %v7179_v28 }
 0x89d   : > { %7244 = vst [vmem:[%s12539_s21 + $0x1b8] sm:$0xff] %v7180_v58  ;;  %7245 = vst [vmem:[%s12539_s21 + $0x1c0] sm:$0xff] %v7181_v9 }
 0x89e   : > { %7246 = vst [vmem:[%s12539_s21 + $0x1c8] sm:$0xff] %v7182_v63  ;;  %7247 = vst [vmem:[%s12539_s21 + $0x1d0] sm:$0xff] %v7183_v2 }
 0x89f   : > { %7248 = vst [vmem:[%s12539_s21 + $0x1d8] sm:$0xff] %v7184_v52  ;;  %7249 = vst [vmem:[%s12539_s21 + $0x1e0] sm:$0xff] %v7185_v16 }
 0x8a0   : > { %7250 = vst [vmem:[%s12539_s21 + $0x1e8] sm:$0xff] %v7186_v57  ;;  %7251 = vst [vmem:[%s12539_s21 + $0x1f0] sm:$0xff] %v7187_v17 }
 0x8a1   : > { %7252 = vst [vmem:[%s12539_s21 + $0x1f8] sm:$0xff] %v7188_v54 }
 0x8a2   : > { %8671 = shalt.err (!%p8668_p7)
}
 0x8a3   : > { %s8672_s20 = scalar_lea.hbm %s12653_s19, 8192  ;;  %s8676_s21 = scalar_lea.hbm %s12715_s7, 32768 }
 0x8a4   : > { %p8673_p9 = scmp.ne.s32.totalorder %s12653_s19, %s8672_s20  ;;  %p8677_p5 = scmp.lt.u32.totalorder %s12653_s19, %s12715_s7 }
 0x8a5   : > { %p8678_p10 = scmp.lt.u32.totalorder %s8676_s21, %s8672_s20  ;;  %p8680_p1 = scmp.lt.u32.totalorder %s8672_s20, %s12653_s19 }
 0x8a6   : > { %p8674_p12 = pnand %p8673_p9, %p8897_p4 }
 0x8a7   : > { %p8679_p11 = por %p8678_p10, %p8677_p5 }
 0x8a8   : > { %p8675_p0 = pneg %p8674_p12 }
 0x8a9   : > { %p8681_p2 = por %p8680_p1, %p8679_p11 }
 0x8ab   : > { %p8682_p6 = pnand %p8681_p2, %p8675_p0 }
 0x8ad   : > { %8685 = shalt.err (!%p8682_p6)
}
 0x8ae   : > { %s8743_s15 = smov 128   ;;  %s8744_s14 = smov 8  }
 0x8af   : > { %8346 = dma.vmem_to_hbm [thread:$0]  (%p8897_p4), %s12655_s10, 8192, %s12653_s19, %s7254_s12, %s8743_s15, %s8743_s15, %s8744_s14  }
 0x8b0 PF: > { %p8368_p8 = scmp.ge.s32.totalorder %s8728_s27, 2  ;;  %s7283_s18 = sand.u32 1, %s8716_s24  }
 0x8b1   : > { %p13826_p13 = scmp.ne.s32.totalorder %s12978_s8, 0  ;;  %s7284_s30 = scalar_lea.sflag [#allocation6], %s7283_s18 }
 0x8b3   : > { %p8360_p3 = pnand %p8368_p8, %p13826_p13 }
 0x8b5   : > { %8711 = dma.done.wait (!%p8360_p3), %s7284_s30, 8192  }
 0x8b6   : > { %8713 = vsyncadd (!%p8360_p3), %s7284_s30, 4294959104  ;;  %p21_p7 = scmp.ge.s32.totalorder %s8887_s13, 6   ;;  %s13827_s24 = smov %s8720_s25 }
 0x8b7   : > { %s13828_s25 = smov %s8724_s26  ;;  %s13829_s26 = smov %s8903_s17 }
 0x8b8   : > { %s13830_s27 = smov %s8887_s13  ;;  %23 = sbr.rel (!%p21_p7) target bundleno = 6 (0x6), region = 108 }
 0x8bf   :  { %7289 = vsyncpa [#allocation5], 1 }
 0x8c0   :  { %7291 = vsyncpa [#allocation5 + $0x1], 1 }
 0x8c1   :  { %7292 = vsyncpa [#allocation8], 1 }
 0x8c2   :  { %7293 = vsyncpa [#allocation6], 1 }
 0x8c3   :  { %7295 = vsyncpa [#allocation6 + $0x1], 1 }

</bundles_post_ra>
